<compile_context>
chip_gen: v7x
topology: tpu7x:2x2x1
jax: 0.10.0
libtpu: 0.0.40
codegen_flags: <defaults>
</compile_context>

<pallas_src>
import functools

import jax
import jax.numpy as jnp
from jax.experimental import pallas as pl
from jax.experimental.pallas import tpu as pltpu

D_MODEL = 64
D_FF = 128
NUM_LAYERS = 4
NHEAD = 4                  # heads are semantically irrelevant at seq_len == 1
LN_EPS = 1e-5
OUT_PAD = 128              # lane-dense output width
_VEC_ROWS_PER_LAYER = 7    # battn, g1, bn1, b1, b2, g2, bn2


def _round_up(x, m):
    return ((x + m - 1) // m) * m


def _device_kind():
    try:
        return jax.devices()[0].device_kind.lower()
    except Exception:
        return ""


def _num_tensorcores():
    kind = _device_kind()
    # chips exposing 2 TensorCores behind one JAX device (megacore-style sharding)
    return 2 if any(t in kind for t in ("v4", "v5p", "v7", "tpu7")) else 1


def _default_store_dtype():
    kind = _device_kind()
    # v5e: 1 vst slot / ~0.8 TB/s HBM -> halve the logit-slab writeback
    if ("v5e" in kind) or ("v5 lite" in kind) or ("v5lite" in kind):
        return jnp.bfloat16
    return jnp.float32


def _auto_tile_b(B, max_tile=4096):
    per_core = pl.cdiv(B, _num_tensorcores())
    return min(max(_round_up(per_core, 16), 16), max_tile)


def _layer_norm(x, gamma, beta):
    mu = jnp.mean(x, axis=-1, keepdims=True)
    xc = x - mu
    var = jnp.mean(xc * xc, axis=-1, keepdims=True)
    inv = jax.lax.rsqrt(var + LN_EPS)
    return xc * inv * gamma + beta


def transformer_meta_kernel(
    x_ref,        # (TB, in_pad)                         mm_dtype
    w64_ref,      # (in_pad + L*(d + dff), d)            mm_dtype : we | wattn x L | w2 x L
    w128_ref,     # ((L + 1) * d, 128)                   mm_dtype : w1 x L | wout_pad
    vec_ref,      # (rows, 128)                          f32      : be | bout | per-layer vecs
    o_ref,        # (TB, OUT_PAD)                        store dtype (raw logits)
    *, mm_dtype, in_pad,
):
    def mm(a, w):
        return jnp.dot(a.astype(mm_dtype), w, preferred_element_type=jnp.float32)

    def vec(row, width):
        return vec_ref[row:row + 1, :width]          # (1, width) f32, static slice

    # static offsets into the packed slabs (all multiples of 16 -> tile aligned)
    WATTN = in_pad
    W2 = in_pad + NUM_LAYERS * D_MODEL
    WOUT = NUM_LAYERS * D_MODEL

    # feature embedding (f32 accumulate, f32 bias add)
    h = mm(x_ref[...], w64_ref[0:in_pad, :]) + vec(0, D_MODEL)

    # transformer encoder: seq_len == 1 -> attention == one fused matmul per layer
    for l in range(NUM_LAYERS):
        base = 2 + _VEC_ROWS_PER_LAYER * l

        w_attn = w64_ref[WATTN + l * D_MODEL: WATTN + (l + 1) * D_MODEL, :]
        attn = mm(h, w_attn) + vec(base + 0, D_MODEL)
        h = _layer_norm(h + attn, vec(base + 1, D_MODEL), vec(base + 2, D_MODEL))

        w1 = w128_ref[l * D_MODEL:(l + 1) * D_MODEL, :]
        ff = jnp.maximum(mm(h, w1) + vec(base + 3, D_FF), 0.0)   # ReLU (PyTorch default)
        w2 = w64_ref[W2 + l * D_FF: W2 + (l + 1) * D_FF, :]
        ff = mm(ff, w2) + vec(base + 4, D_MODEL)
        h = _layer_norm(h + ff, vec(base + 5, D_MODEL), vec(base + 6, D_MODEL))

    # final projection: store raw lane-dense logits; sigmoid is applied in the
    # wrapper on the single valid lane (avoids 128x padded EUP work here).
    logits = mm(h, w128_ref[WOUT:WOUT + D_MODEL, :]) + vec(1, OUT_PAD)
    o_ref[...] = logits.astype(o_ref.dtype)


def _const_weight_spec(shape):
    idx = lambda i: (0,) * len(shape)
    try:
        # constant index_map -> block never changes, single buffer is enough
        return pl.BlockSpec(shape, idx, pipeline_mode=pl.Buffered(1))
    except (TypeError, AttributeError):
        return pl.BlockSpec(shape, idx)


def _pack_params(params, input_dim, out_dim, mm_dtype):
    """Fuse seq_len==1 attention and pack all 14 parameter tensors into 3 slabs."""
    in_pad = _round_up(input_dim, 16)
    L = NUM_LAYERS

    # seq_len==1:  Wo(Wv h + bv) + bo == h @ (wv@wo) + (bv@wo + bo)
    w_attn = jnp.einsum("lij,ljk->lik", params["wv"], params["wo"])
    b_attn = jnp.einsum("lij,ljk->lik", params["bv"], params["wo"]) + params["bo"]

    # 64-output-lane matmul slab: we | wattn x L | w2 x L
    we_pad = jnp.pad(params["we"], ((0, in_pad - input_dim), (0, 0)))
    w64 = jnp.concatenate(
        [we_pad,
         w_attn.reshape(L * D_MODEL, D_MODEL),
         params["w2"].reshape(L * D_FF, D_MODEL)], axis=0).astype(mm_dtype)

    # 128-output-lane matmul slab: w1 x L | wout (zero-padded to 128 lanes)
    wout_pad = jnp.pad(params["wout"], ((0, 0), (0, OUT_PAD - out_dim)))
    w128 = jnp.concatenate(
        [params["w1"].reshape(L * D_MODEL, D_FF), wout_pad], axis=0).astype(mm_dtype)

    # f32 vector slab (one row per vector, zero-padded to 128 lanes):
    #   row 0: be, row 1: bout(padded), rows 2+7l: battn, g1, bn1, b1, b2, g2, bn2
    def row(v):
        return jnp.pad(v, ((0, 0), (0, OUT_PAD - v.shape[1])))

    rows = [row(params["be"]), row(params["bout"])]
    for l in range(L):
        rows += [row(b_attn[l]), row(params["g1"][l]), row(params["bn1"][l]),
                 row(params["b1"][l]), row(params["b2"][l]),
                 row(params["g2"][l]), row(params["bn2"][l])]
    vecs = jnp.concatenate(rows, axis=0).astype(jnp.float32)
    vecs = jnp.pad(vecs, ((0, _round_up(vecs.shape[0], 8) - vecs.shape[0]), (0, 0)))

    return in_pad, w64, w128, vecs


def transformer_meta_forward(x, params, *, tile_b=None, mm_dtype=jnp.bfloat16,
                             store_dtype=None):
    B, input_dim = x.shape
    out_dim = params["wout"].shape[1]

    if tile_b is None:
        tile_b = _auto_tile_b(B)          # 1 step on v5e/v6e, 2 parallel steps on v7x
    if store_dtype is None:
        store_dtype = _default_store_dtype()

    in_pad, w64, w128, vecs = _pack_params(params, input_dim, out_dim, mm_dtype)

    # x: cast to matmul dtype wrapper-side; pad batch to tile multiple, cols to in_pad
    n_tiles = pl.cdiv(B, tile_b)
    B_pad = n_tiles * tile_b
    xp = x.astype(mm_dtype)
    if B_pad != B or in_pad != input_dim:
        xp = jnp.pad(xp, ((0, B_pad - B), (0, in_pad - input_dim)))

    # advisory cost estimate
    flops_per_row = 2 * (in_pad * D_MODEL
                         + NUM_LAYERS * (D_MODEL * D_MODEL
                                         + D_MODEL * D_FF + D_FF * D_MODEL)
                         + D_MODEL * OUT_PAD)
    cost = pl.CostEstimate(
        flops=B_pad * flops_per_row,
        transcendentals=B_pad * 2 * NUM_LAYERS,                  # LayerNorm rsqrt
        bytes_accessed=(xp.size * xp.dtype.itemsize
                        + B_pad * OUT_PAD * jnp.dtype(store_dtype).itemsize
                        + sum(int(w.size) * w.dtype.itemsize
                              for w in (w64, w128, vecs))))

    logits = pl.pallas_call(
        functools.partial(transformer_meta_kernel, mm_dtype=mm_dtype, in_pad=in_pad),
        out_shape=jax.ShapeDtypeStruct((B_pad, OUT_PAD), store_dtype),
        grid_spec=pltpu.PrefetchScalarGridSpec(
            num_scalar_prefetch=0,
            grid=(n_tiles,),
            in_specs=[pl.BlockSpec((tile_b, in_pad), lambda i: (i, 0)),
                      _const_weight_spec(w64.shape),
                      _const_weight_spec(w128.shape),
                      _const_weight_spec(vecs.shape)],
            out_specs=pl.BlockSpec((tile_b, OUT_PAD), lambda i: (i, 0)),
        ),
        compiler_params=pltpu.CompilerParams(
            dimension_semantics=("parallel",)),
        cost_estimate=cost,
    )(xp, w64, w128, vecs)

    # sigmoid on the single valid lane, in f32, outside the kernel
    return jax.nn.sigmoid(logits[:B, :out_dim].astype(jnp.float32))


def init_params(key, input_dim, output_dim):
    """Deterministic synthetic parameters (shapes match the PyTorch module)."""
    keys = jax.random.split(key, 20)
    k = iter(keys)
    s = 0.05

    def rnd(kk, shape):
        return jax.random.normal(kk, shape, dtype=jnp.float32) * s

    return {
        "we": rnd(next(k), (input_dim, D_MODEL)),
        "be": rnd(next(k), (1, D_MODEL)),
        "wv": rnd(next(k), (NUM_LAYERS, D_MODEL, D_MODEL)),
        "bv": rnd(next(k), (NUM_LAYERS, 1, D_MODEL)),
        "wo": rnd(next(k), (NUM_LAYERS, D_MODEL, D_MODEL)),
        "bo": rnd(next(k), (NUM_LAYERS, 1, D_MODEL)),
        "g1": jnp.ones((NUM_LAYERS, 1, D_MODEL), jnp.float32),
        "bn1": jnp.zeros((NUM_LAYERS, 1, D_MODEL), jnp.float32),
        "w1": rnd(next(k), (NUM_LAYERS, D_MODEL, D_FF)),
        "b1": rnd(next(k), (NUM_LAYERS, 1, D_FF)),
        "w2": rnd(next(k), (NUM_LAYERS, D_FF, D_MODEL)),
        "b2": rnd(next(k), (NUM_LAYERS, 1, D_MODEL)),
        "g2": jnp.ones((NUM_LAYERS, 1, D_MODEL), jnp.float32),
        "bn2": jnp.zeros((NUM_LAYERS, 1, D_MODEL), jnp.float32),
        "wout": rnd(next(k), (D_MODEL, output_dim)),
        "bout": rnd(next(k), (1, output_dim)),
    }


def reference_forward_unfused(x, p):
    """Pure-f32 JAX reference mirroring the PyTorch module (eval mode)."""
    h = x @ p["we"] + p["be"]
    for l in range(NUM_LAYERS):
        v = h @ p["wv"][l] + p["bv"][l]
        attn = v @ p["wo"][l] + p["bo"][l]
        h = _layer_norm(h + attn, p["g1"][l], p["bn1"][l])
        ff = jnp.maximum(h @ p["w1"][l] + p["b1"][l], 0.0)
        ff = ff @ p["w2"][l] + p["b2"][l]
        h = _layer_norm(h + ff, p["g2"][l], p["bn2"][l])
    return jax.nn.sigmoid(h @ p["wout"] + p["bout"])


def reference_forward_matched(x, p, mm_dtype=jnp.bfloat16):
    """JAX reference using the same attention fusion + mm_dtype casts as the kernel."""
    def mm(a, w):
        return jnp.dot(a.astype(mm_dtype), w.astype(mm_dtype),
                       preferred_element_type=jnp.float32)

    h = mm(x, p["we"]) + p["be"]
    for l in range(NUM_LAYERS):
        w_attn = p["wv"][l] @ p["wo"][l]
        b_attn = p["bv"][l] @ p["wo"][l] + p["bo"][l]
        attn = mm(h, w_attn) + b_attn
        h = _layer_norm(h + attn, p["g1"][l], p["bn1"][l])
        ff = jnp.maximum(mm(h, p["w1"][l]) + p["b1"][l], 0.0)
        ff = mm(ff, p["w2"][l]) + p["b2"][l]
        h = _layer_norm(h + ff, p["g2"][l], p["bn2"][l])
    return jax.nn.sigmoid(mm(h, p["wout"]) + p["bout"])


if __name__ == "__main__":
    B = 256            # adaptive tile: 1 grid step on v5e/v6e, 2 parallel steps on v7x
    INPUT_DIM = 16
    OUTPUT_DIM = 1

    key = jax.random.PRNGKey(0)
    kx, kp = jax.random.split(key)
    x = jax.random.normal(kx, (B, INPUT_DIM), dtype=jnp.float32)
    params = init_params(kp, INPUT_DIM, OUTPUT_DIM)

    fwd = jax.jit(functools.partial(transformer_meta_forward, mm_dtype=jnp.bfloat16))
    out = jax.block_until_ready(fwd(x, params))

    ref_tight = reference_forward_matched(x, params, mm_dtype=jnp.bfloat16)
    ref_f32 = reference_forward_unfused(x, params)

    assert out.shape == (B, OUTPUT_DIM), out.shape
    assert jnp.all(jnp.isfinite(out))
    # tight: same fusion + bf16 matmul operands as the kernel (extra slack only if
    # the logit slab was stored in bf16, i.e. on v5e)
    tight_atol = 2e-3 if _default_store_dtype() == jnp.float32 else 5e-3
    assert jnp.allclose(out, ref_tight, atol=tight_atol, rtol=2e-3)
    # loose: against the exact-f32 PyTorch-semantics reference
    assert jnp.allclose(out, ref_f32, atol=2e-2, rtol=2e-2)

    print("KERNEL_OK")
</pallas_src>

<mosaic_0001>
module attributes {stable_mosaic.version = 11 : i64} {
  func.func @transformer_meta_kernel(%arg0: i32, %arg1: memref<256x16xbf16, #tpu.memory_space<vmem>>, %arg2: memref<784x64xbf16, #tpu.memory_space<vmem>>, %arg3: memref<320x128xbf16, #tpu.memory_space<vmem>>, %arg4: memref<32x128xf32, #tpu.memory_space<vmem>>, %arg5: memref<256x128xf32, #tpu.memory_space<vmem>>) attributes {dimension_semantics = [#tpu.dimension_semantics<parallel>], iteration_bounds = array<i64: 1>, scalar_prefetch = 0 : i64, scratch_operands = 0 : i64, tpu.core_type = #tpu.core_type<tc>, window_params = [{transform_indices = @transform_0, window_bounds = array<i64: 256, 16>}, {pipeline_mode = #tpu.pipeline_mode<synchronous>, transform_indices = @transform_1, window_bounds = array<i64: 784, 64>}, {pipeline_mode = #tpu.pipeline_mode<synchronous>, transform_indices = @transform_2, window_bounds = array<i64: 320, 128>}, {pipeline_mode = #tpu.pipeline_mode<synchronous>, transform_indices = @transform_3, window_bounds = array<i64: 32, 128>}, {transform_indices = @transform_4, window_bounds = array<i64: 256, 128>}]} {
    %c0 = arith.constant 0 : index
    %c0_0 = arith.constant 0 : index
    %0 = vector.load %arg1[%c0, %c0_0] : memref<256x16xbf16, #tpu.memory_space<vmem>>, vector<256x16xbf16>
    %c0_1 = arith.constant 0 : index
    %c0_2 = arith.constant 0 : index
    %1 = vector.load %arg2[%c0_1, %c0_2] : memref<784x64xbf16, #tpu.memory_space<vmem>>, vector<16x64xbf16>
    %cst = arith.constant dense<0.000000e+00> : vector<256x64xf32>
    %2 = tpu.matmul %0, %1, %cst {dimension_numbers = #tpu.dot_dimension_numbers<[1], [0], [0], [1], [0, 0, 1, 1], [], []>} : vector<256x16xbf16>, vector<16x64xbf16>, vector<256x64xf32> -> vector<256x64xf32>
    %c0_3 = arith.constant 0 : index
    %c0_4 = arith.constant 0 : index
    %3 = vector.load %arg4[%c0_3, %c0_4] : memref<32x128xf32, #tpu.memory_space<vmem>>, vector<1x64xf32>
    %4 = vector.broadcast %3 : vector<1x64xf32> to vector<256x64xf32>
    %5 = arith.addf %2, %4 : vector<256x64xf32>
    %c16 = arith.constant 16 : index
    %c0_5 = arith.constant 0 : index
    %6 = vector.load %arg2[%c16, %c0_5] : memref<784x64xbf16, #tpu.memory_space<vmem>>, vector<64x64xbf16>
    %7 = arith.truncf %5 : vector<256x64xf32> to vector<256x64xbf16>
    %cst_6 = arith.constant dense<0.000000e+00> : vector<256x64xf32>
    %8 = tpu.matmul %7, %6, %cst_6 {dimension_numbers = #tpu.dot_dimension_numbers<[1], [0], [0], [1], [0, 0, 1, 1], [], []>} : vector<256x64xbf16>, vector<64x64xbf16>, vector<256x64xf32> -> vector<256x64xf32>
    %c2 = arith.constant 2 : index
    %c0_7 = arith.constant 0 : index
    %9 = vector.load %arg4[%c2, %c0_7] : memref<32x128xf32, #tpu.memory_space<vmem>>, vector<1x64xf32>
    %10 = vector.broadcast %9 : vector<1x64xf32> to vector<256x64xf32>
    %11 = arith.addf %8, %10 : vector<256x64xf32>
    %12 = arith.addf %5, %11 : vector<256x64xf32>
    %c3 = arith.constant 3 : index
    %c0_8 = arith.constant 0 : index
    %13 = vector.load %arg4[%c3, %c0_8] : memref<32x128xf32, #tpu.memory_space<vmem>>, vector<1x64xf32>
    %c4 = arith.constant 4 : index
    %c0_9 = arith.constant 0 : index
    %14 = vector.load %arg4[%c4, %c0_9] : memref<32x128xf32, #tpu.memory_space<vmem>>, vector<1x64xf32>
    %cst_10 = arith.constant dense<0.000000e+00> : vector<256xf32>
    %15 = vector.multi_reduction <add>, %12, %cst_10 [1] : vector<256x64xf32> to vector<256xf32>
    %16 = vector.shape_cast %15 : vector<256xf32> to vector<256x1xf32>
    %cst_11 = arith.constant 6.400000e+01 : f32
    %17 = vector.broadcast %cst_11 : f32 to vector<256x1xf32>
    %18 = arith.divf %16, %17 : vector<256x1xf32>
    %19 = vector.broadcast %18 : vector<256x1xf32> to vector<256x64xf32>
    %20 = arith.subf %12, %19 : vector<256x64xf32>
    %21 = arith.mulf %20, %20 : vector<256x64xf32>
    %cst_12 = arith.constant dense<0.000000e+00> : vector<256xf32>
    %22 = vector.multi_reduction <add>, %21, %cst_12 [1] : vector<256x64xf32> to vector<256xf32>
    %23 = vector.shape_cast %22 : vector<256xf32> to vector<256x1xf32>
    %cst_13 = arith.constant 6.400000e+01 : f32
    %24 = vector.broadcast %cst_13 : f32 to vector<256x1xf32>
    %25 = arith.divf %23, %24 : vector<256x1xf32>
    %cst_14 = arith.constant 9.99999974E-6 : f32
    %26 = vector.broadcast %cst_14 : f32 to vector<256x1xf32>
    %27 = arith.addf %25, %26 : vector<256x1xf32>
    %28 = math.rsqrt %27 : vector<256x1xf32>
    %29 = vector.broadcast %28 : vector<256x1xf32> to vector<256x64xf32>
    %30 = arith.mulf %20, %29 : vector<256x64xf32>
    %31 = vector.broadcast %13 : vector<1x64xf32> to vector<256x64xf32>
    %32 = arith.mulf %30, %31 : vector<256x64xf32>
    %33 = vector.broadcast %14 : vector<1x64xf32> to vector<256x64xf32>
    %34 = arith.addf %32, %33 : vector<256x64xf32>
    %c0_15 = arith.constant 0 : index
    %c0_16 = arith.constant 0 : index
    %35 = vector.load %arg3[%c0_15, %c0_16] : memref<320x128xbf16, #tpu.memory_space<vmem>>, vector<64x128xbf16>
    %36 = arith.truncf %34 : vector<256x64xf32> to vector<256x64xbf16>
    %cst_17 = arith.constant dense<0.000000e+00> : vector<256x128xf32>
    %37 = tpu.matmul %36, %35, %cst_17 {dimension_numbers = #tpu.dot_dimension_numbers<[1], [0], [0], [1], [0, 0, 1, 1], [], []>} : vector<256x64xbf16>, vector<64x128xbf16>, vector<256x128xf32> -> vector<256x128xf32>
    %c5 = arith.constant 5 : index
    %c0_18 = arith.constant 0 : index
    %38 = vector.load %arg4[%c5, %c0_18] : memref<32x128xf32, #tpu.memory_space<vmem>>, vector<1x128xf32>
    %39 = vector.broadcast %38 : vector<1x128xf32> to vector<256x128xf32>
    %40 = arith.addf %37, %39 : vector<256x128xf32>
    %cst_19 = arith.constant 0.000000e+00 : f32
    %41 = vector.broadcast %cst_19 : f32 to vector<256x128xf32>
    %42 = arith.maximumf %40, %41 : vector<256x128xf32>
    %c272 = arith.constant 272 : index
    %c0_20 = arith.constant 0 : index
    %43 = vector.load %arg2[%c272, %c0_20] : memref<784x64xbf16, #tpu.memory_space<vmem>>, vector<128x64xbf16>
    %44 = arith.truncf %42 : vector<256x128xf32> to vector<256x128xbf16>
    %cst_21 = arith.constant dense<0.000000e+00> : vector<256x64xf32>
    %45 = tpu.matmul %44, %43, %cst_21 {dimension_numbers = #tpu.dot_dimension_numbers<[1], [0], [0], [1], [0, 0, 1, 1], [], []>} : vector<256x128xbf16>, vector<128x64xbf16>, vector<256x64xf32> -> vector<256x64xf32>
    %c6 = arith.constant 6 : index
    %c0_22 = arith.constant 0 : index
    %46 = vector.load %arg4[%c6, %c0_22] : memref<32x128xf32, #tpu.memory_space<vmem>>, vector<1x64xf32>
    %47 = vector.broadcast %46 : vector<1x64xf32> to vector<256x64xf32>
    %48 = arith.addf %45, %47 : vector<256x64xf32>
    %49 = arith.addf %34, %48 : vector<256x64xf32>
    %c7 = arith.constant 7 : index
    %c0_23 = arith.constant 0 : index
    %50 = vector.load %arg4[%c7, %c0_23] : memref<32x128xf32, #tpu.memory_space<vmem>>, vector<1x64xf32>
    %c8 = arith.constant 8 : index
    %c0_24 = arith.constant 0 : index
    %51 = vector.load %arg4[%c8, %c0_24] : memref<32x128xf32, #tpu.memory_space<vmem>>, vector<1x64xf32>
    %cst_25 = arith.constant dense<0.000000e+00> : vector<256xf32>
    %52 = vector.multi_reduction <add>, %49, %cst_25 [1] : vector<256x64xf32> to vector<256xf32>
    %53 = vector.shape_cast %52 : vector<256xf32> to vector<256x1xf32>
    %cst_26 = arith.constant 6.400000e+01 : f32
    %54 = vector.broadcast %cst_26 : f32 to vector<256x1xf32>
    %55 = arith.divf %53, %54 : vector<256x1xf32>
    %56 = vector.broadcast %55 : vector<256x1xf32> to vector<256x64xf32>
    %57 = arith.subf %49, %56 : vector<256x64xf32>
    %58 = arith.mulf %57, %57 : vector<256x64xf32>
    %cst_27 = arith.constant dense<0.000000e+00> : vector<256xf32>
    %59 = vector.multi_reduction <add>, %58, %cst_27 [1] : vector<256x64xf32> to vector<256xf32>
    %60 = vector.shape_cast %59 : vector<256xf32> to vector<256x1xf32>
    %cst_28 = arith.constant 6.400000e+01 : f32
    %61 = vector.broadcast %cst_28 : f32 to vector<256x1xf32>
    %62 = arith.divf %60, %61 : vector<256x1xf32>
    %cst_29 = arith.constant 9.99999974E-6 : f32
    %63 = vector.broadcast %cst_29 : f32 to vector<256x1xf32>
    %64 = arith.addf %62, %63 : vector<256x1xf32>
    %65 = math.rsqrt %64 : vector<256x1xf32>
    %66 = vector.broadcast %65 : vector<256x1xf32> to vector<256x64xf32>
    %67 = arith.mulf %57, %66 : vector<256x64xf32>
    %68 = vector.broadcast %50 : vector<1x64xf32> to vector<256x64xf32>
    %69 = arith.mulf %67, %68 : vector<256x64xf32>
    %70 = vector.broadcast %51 : vector<1x64xf32> to vector<256x64xf32>
    %71 = arith.addf %69, %70 : vector<256x64xf32>
    %c80 = arith.constant 80 : index
    %c0_30 = arith.constant 0 : index
    %72 = vector.load %arg2[%c80, %c0_30] : memref<784x64xbf16, #tpu.memory_space<vmem>>, vector<64x64xbf16>
    %73 = arith.truncf %71 : vector<256x64xf32> to vector<256x64xbf16>
    %cst_31 = arith.constant dense<0.000000e+00> : vector<256x64xf32>
    %74 = tpu.matmul %73, %72, %cst_31 {dimension_numbers = #tpu.dot_dimension_numbers<[1], [0], [0], [1], [0, 0, 1, 1], [], []>} : vector<256x64xbf16>, vector<64x64xbf16>, vector<256x64xf32> -> vector<256x64xf32>
    %c9 = arith.constant 9 : index
    %c0_32 = arith.constant 0 : index
    %75 = vector.load %arg4[%c9, %c0_32] : memref<32x128xf32, #tpu.memory_space<vmem>>, vector<1x64xf32>
    %76 = vector.broadcast %75 : vector<1x64xf32> to vector<256x64xf32>
    %77 = arith.addf %74, %76 : vector<256x64xf32>
    %78 = arith.addf %71, %77 : vector<256x64xf32>
    %c10 = arith.constant 10 : index
    %c0_33 = arith.constant 0 : index
    %79 = vector.load %arg4[%c10, %c0_33] : memref<32x128xf32, #tpu.memory_space<vmem>>, vector<1x64xf32>
    %c11 = arith.constant 11 : index
    %c0_34 = arith.constant 0 : index
    %80 = vector.load %arg4[%c11, %c0_34] : memref<32x128xf32, #tpu.memory_space<vmem>>, vector<1x64xf32>
    %cst_35 = arith.constant dense<0.000000e+00> : vector<256xf32>
    %81 = vector.multi_reduction <add>, %78, %cst_35 [1] : vector<256x64xf32> to vector<256xf32>
    %82 = vector.shape_cast %81 : vector<256xf32> to vector<256x1xf32>
    %cst_36 = arith.constant 6.400000e+01 : f32
    %83 = vector.broadcast %cst_36 : f32 to vector<256x1xf32>
    %84 = arith.divf %82, %83 : vector<256x1xf32>
    %85 = vector.broadcast %84 : vector<256x1xf32> to vector<256x64xf32>
    %86 = arith.subf %78, %85 : vector<256x64xf32>
    %87 = arith.mulf %86, %86 : vector<256x64xf32>
    %cst_37 = arith.constant dense<0.000000e+00> : vector<256xf32>
    %88 = vector.multi_reduction <add>, %87, %cst_37 [1] : vector<256x64xf32> to vector<256xf32>
    %89 = vector.shape_cast %88 : vector<256xf32> to vector<256x1xf32>
    %cst_38 = arith.constant 6.400000e+01 : f32
    %90 = vector.broadcast %cst_38 : f32 to vector<256x1xf32>
    %91 = arith.divf %89, %90 : vector<256x1xf32>
    %cst_39 = arith.constant 9.99999974E-6 : f32
    %92 = vector.broadcast %cst_39 : f32 to vector<256x1xf32>
    %93 = arith.addf %91, %92 : vector<256x1xf32>
    %94 = math.rsqrt %93 : vector<256x1xf32>
    %95 = vector.broadcast %94 : vector<256x1xf32> to vector<256x64xf32>
    %96 = arith.mulf %86, %95 : vector<256x64xf32>
    %97 = vector.broadcast %79 : vector<1x64xf32> to vector<256x64xf32>
    %98 = arith.mulf %96, %97 : vector<256x64xf32>
    %99 = vector.broadcast %80 : vector<1x64xf32> to vector<256x64xf32>
    %100 = arith.addf %98, %99 : vector<256x64xf32>
    %c64 = arith.constant 64 : index
    %c0_40 = arith.constant 0 : index
    %101 = vector.load %arg3[%c64, %c0_40] : memref<320x128xbf16, #tpu.memory_space<vmem>>, vector<64x128xbf16>
    %102 = arith.truncf %100 : vector<256x64xf32> to vector<256x64xbf16>
    %cst_41 = arith.constant dense<0.000000e+00> : vector<256x128xf32>
    %103 = tpu.matmul %102, %101, %cst_41 {dimension_numbers = #tpu.dot_dimension_numbers<[1], [0], [0], [1], [0, 0, 1, 1], [], []>} : vector<256x64xbf16>, vector<64x128xbf16>, vector<256x128xf32> -> vector<256x128xf32>
    %c12 = arith.constant 12 : index
    %c0_42 = arith.constant 0 : index
    %104 = vector.load %arg4[%c12, %c0_42] : memref<32x128xf32, #tpu.memory_space<vmem>>, vector<1x128xf32>
    %105 = vector.broadcast %104 : vector<1x128xf32> to vector<256x128xf32>
    %106 = arith.addf %103, %105 : vector<256x128xf32>
    %cst_43 = arith.constant 0.000000e+00 : f32
    %107 = vector.broadcast %cst_43 : f32 to vector<256x128xf32>
    %108 = arith.maximumf %106, %107 : vector<256x128xf32>
    %c400 = arith.constant 400 : index
    %c0_44 = arith.constant 0 : index
    %109 = vector.load %arg2[%c400, %c0_44] : memref<784x64xbf16, #tpu.memory_space<vmem>>, vector<128x64xbf16>
    %110 = arith.truncf %108 : vector<256x128xf32> to vector<256x128xbf16>
    %cst_45 = arith.constant dense<0.000000e+00> : vector<256x64xf32>
    %111 = tpu.matmul %110, %109, %cst_45 {dimension_numbers = #tpu.dot_dimension_numbers<[1], [0], [0], [1], [0, 0, 1, 1], [], []>} : vector<256x128xbf16>, vector<128x64xbf16>, vector<256x64xf32> -> vector<256x64xf32>
    %c13 = arith.constant 13 : index
    %c0_46 = arith.constant 0 : index
    %112 = vector.load %arg4[%c13, %c0_46] : memref<32x128xf32, #tpu.memory_space<vmem>>, vector<1x64xf32>
    %113 = vector.broadcast %112 : vector<1x64xf32> to vector<256x64xf32>
    %114 = arith.addf %111, %113 : vector<256x64xf32>
    %115 = arith.addf %100, %114 : vector<256x64xf32>
    %c14 = arith.constant 14 : index
    %c0_47 = arith.constant 0 : index
    %116 = vector.load %arg4[%c14, %c0_47] : memref<32x128xf32, #tpu.memory_space<vmem>>, vector<1x64xf32>
    %c15 = arith.constant 15 : index
    %c0_48 = arith.constant 0 : index
    %117 = vector.load %arg4[%c15, %c0_48] : memref<32x128xf32, #tpu.memory_space<vmem>>, vector<1x64xf32>
    %cst_49 = arith.constant dense<0.000000e+00> : vector<256xf32>
    %118 = vector.multi_reduction <add>, %115, %cst_49 [1] : vector<256x64xf32> to vector<256xf32>
    %119 = vector.shape_cast %118 : vector<256xf32> to vector<256x1xf32>
    %cst_50 = arith.constant 6.400000e+01 : f32
    %120 = vector.broadcast %cst_50 : f32 to vector<256x1xf32>
    %121 = arith.divf %119, %120 : vector<256x1xf32>
    %122 = vector.broadcast %121 : vector<256x1xf32> to vector<256x64xf32>
    %123 = arith.subf %115, %122 : vector<256x64xf32>
    %124 = arith.mulf %123, %123 : vector<256x64xf32>
    %cst_51 = arith.constant dense<0.000000e+00> : vector<256xf32>
    %125 = vector.multi_reduction <add>, %124, %cst_51 [1] : vector<256x64xf32> to vector<256xf32>
    %126 = vector.shape_cast %125 : vector<256xf32> to vector<256x1xf32>
    %cst_52 = arith.constant 6.400000e+01 : f32
    %127 = vector.broadcast %cst_52 : f32 to vector<256x1xf32>
    %128 = arith.divf %126, %127 : vector<256x1xf32>
    %cst_53 = arith.constant 9.99999974E-6 : f32
    %129 = vector.broadcast %cst_53 : f32 to vector<256x1xf32>
    %130 = arith.addf %128, %129 : vector<256x1xf32>
    %131 = math.rsqrt %130 : vector<256x1xf32>
    %132 = vector.broadcast %131 : vector<256x1xf32> to vector<256x64xf32>
    %133 = arith.mulf %123, %132 : vector<256x64xf32>
    %134 = vector.broadcast %116 : vector<1x64xf32> to vector<256x64xf32>
    %135 = arith.mulf %133, %134 : vector<256x64xf32>
    %136 = vector.broadcast %117 : vector<1x64xf32> to vector<256x64xf32>
    %137 = arith.addf %135, %136 : vector<256x64xf32>
    %c144 = arith.constant 144 : index
    %c0_54 = arith.constant 0 : index
    %138 = vector.load %arg2[%c144, %c0_54] : memref<784x64xbf16, #tpu.memory_space<vmem>>, vector<64x64xbf16>
    %139 = arith.truncf %137 : vector<256x64xf32> to vector<256x64xbf16>
    %cst_55 = arith.constant dense<0.000000e+00> : vector<256x64xf32>
    %140 = tpu.matmul %139, %138, %cst_55 {dimension_numbers = #tpu.dot_dimension_numbers<[1], [0], [0], [1], [0, 0, 1, 1], [], []>} : vector<256x64xbf16>, vector<64x64xbf16>, vector<256x64xf32> -> vector<256x64xf32>
    %c16_56 = arith.constant 16 : index
    %c0_57 = arith.constant 0 : index
    %141 = vector.load %arg4[%c16_56, %c0_57] : memref<32x128xf32, #tpu.memory_space<vmem>>, vector<1x64xf32>
    %142 = vector.broadcast %141 : vector<1x64xf32> to vector<256x64xf32>
    %143 = arith.addf %140, %142 : vector<256x64xf32>
    %144 = arith.addf %137, %143 : vector<256x64xf32>
    %c17 = arith.constant 17 : index
    %c0_58 = arith.constant 0 : index
    %145 = vector.load %arg4[%c17, %c0_58] : memref<32x128xf32, #tpu.memory_space<vmem>>, vector<1x64xf32>
    %c18 = arith.constant 18 : index
    %c0_59 = arith.constant 0 : index
    %146 = vector.load %arg4[%c18, %c0_59] : memref<32x128xf32, #tpu.memory_space<vmem>>, vector<1x64xf32>
    %cst_60 = arith.constant dense<0.000000e+00> : vector<256xf32>
    %147 = vector.multi_reduction <add>, %144, %cst_60 [1] : vector<256x64xf32> to vector<256xf32>
    %148 = vector.shape_cast %147 : vector<256xf32> to vector<256x1xf32>
    %cst_61 = arith.constant 6.400000e+01 : f32
    %149 = vector.broadcast %cst_61 : f32 to vector<256x1xf32>
    %150 = arith.divf %148, %149 : vector<256x1xf32>
    %151 = vector.broadcast %150 : vector<256x1xf32> to vector<256x64xf32>
    %152 = arith.subf %144, %151 : vector<256x64xf32>
    %153 = arith.mulf %152, %152 : vector<256x64xf32>
    %cst_62 = arith.constant dense<0.000000e+00> : vector<256xf32>
    %154 = vector.multi_reduction <add>, %153, %cst_62 [1] : vector<256x64xf32> to vector<256xf32>
    %155 = vector.shape_cast %154 : vector<256xf32> to vector<256x1xf32>
    %cst_63 = arith.constant 6.400000e+01 : f32
    %156 = vector.broadcast %cst_63 : f32 to vector<256x1xf32>
    %157 = arith.divf %155, %156 : vector<256x1xf32>
    %cst_64 = arith.constant 9.99999974E-6 : f32
    %158 = vector.broadcast %cst_64 : f32 to vector<256x1xf32>
    %159 = arith.addf %157, %158 : vector<256x1xf32>
    %160 = math.rsqrt %159 : vector<256x1xf32>
    %161 = vector.broadcast %160 : vector<256x1xf32> to vector<256x64xf32>
    %162 = arith.mulf %152, %161 : vector<256x64xf32>
    %163 = vector.broadcast %145 : vector<1x64xf32> to vector<256x64xf32>
    %164 = arith.mulf %162, %163 : vector<256x64xf32>
    %165 = vector.broadcast %146 : vector<1x64xf32> to vector<256x64xf32>
    %166 = arith.addf %164, %165 : vector<256x64xf32>
    %c128 = arith.constant 128 : index
    %c0_65 = arith.constant 0 : index
    %167 = vector.load %arg3[%c128, %c0_65] : memref<320x128xbf16, #tpu.memory_space<vmem>>, vector<64x128xbf16>
    %168 = arith.truncf %166 : vector<256x64xf32> to vector<256x64xbf16>
    %cst_66 = arith.constant dense<0.000000e+00> : vector<256x128xf32>
    %169 = tpu.matmul %168, %167, %cst_66 {dimension_numbers = #tpu.dot_dimension_numbers<[1], [0], [0], [1], [0, 0, 1, 1], [], []>} : vector<256x64xbf16>, vector<64x128xbf16>, vector<256x128xf32> -> vector<256x128xf32>
    %c19 = arith.constant 19 : index
    %c0_67 = arith.constant 0 : index
    %170 = vector.load %arg4[%c19, %c0_67] : memref<32x128xf32, #tpu.memory_space<vmem>>, vector<1x128xf32>
    %171 = vector.broadcast %170 : vector<1x128xf32> to vector<256x128xf32>
    %172 = arith.addf %169, %171 : vector<256x128xf32>
    %cst_68 = arith.constant 0.000000e+00 : f32
    %173 = vector.broadcast %cst_68 : f32 to vector<256x128xf32>
    %174 = arith.maximumf %172, %173 : vector<256x128xf32>
    %c528 = arith.constant 528 : index
    %c0_69 = arith.constant 0 : index
    %175 = vector.load %arg2[%c528, %c0_69] : memref<784x64xbf16, #tpu.memory_space<vmem>>, vector<128x64xbf16>
    %176 = arith.truncf %174 : vector<256x128xf32> to vector<256x128xbf16>
    %cst_70 = arith.constant dense<0.000000e+00> : vector<256x64xf32>
    %177 = tpu.matmul %176, %175, %cst_70 {dimension_numbers = #tpu.dot_dimension_numbers<[1], [0], [0], [1], [0, 0, 1, 1], [], []>} : vector<256x128xbf16>, vector<128x64xbf16>, vector<256x64xf32> -> vector<256x64xf32>
    %c20 = arith.constant 20 : index
    %c0_71 = arith.constant 0 : index
    %178 = vector.load %arg4[%c20, %c0_71] : memref<32x128xf32, #tpu.memory_space<vmem>>, vector<1x64xf32>
    %179 = vector.broadcast %178 : vector<1x64xf32> to vector<256x64xf32>
    %180 = arith.addf %177, %179 : vector<256x64xf32>
    %181 = arith.addf %166, %180 : vector<256x64xf32>
    %c21 = arith.constant 21 : index
    %c0_72 = arith.constant 0 : index
    %182 = vector.load %arg4[%c21, %c0_72] : memref<32x128xf32, #tpu.memory_space<vmem>>, vector<1x64xf32>
    %c22 = arith.constant 22 : index
    %c0_73 = arith.constant 0 : index
    %183 = vector.load %arg4[%c22, %c0_73] : memref<32x128xf32, #tpu.memory_space<vmem>>, vector<1x64xf32>
    %cst_74 = arith.constant dense<0.000000e+00> : vector<256xf32>
    %184 = vector.multi_reduction <add>, %181, %cst_74 [1] : vector<256x64xf32> to vector<256xf32>
    %185 = vector.shape_cast %184 : vector<256xf32> to vector<256x1xf32>
    %cst_75 = arith.constant 6.400000e+01 : f32
    %186 = vector.broadcast %cst_75 : f32 to vector<256x1xf32>
    %187 = arith.divf %185, %186 : vector<256x1xf32>
    %188 = vector.broadcast %187 : vector<256x1xf32> to vector<256x64xf32>
    %189 = arith.subf %181, %188 : vector<256x64xf32>
    %190 = arith.mulf %189, %189 : vector<256x64xf32>
    %cst_76 = arith.constant dense<0.000000e+00> : vector<256xf32>
    %191 = vector.multi_reduction <add>, %190, %cst_76 [1] : vector<256x64xf32> to vector<256xf32>
    %192 = vector.shape_cast %191 : vector<256xf32> to vector<256x1xf32>
    %cst_77 = arith.constant 6.400000e+01 : f32
    %193 = vector.broadcast %cst_77 : f32 to vector<256x1xf32>
    %194 = arith.divf %192, %193 : vector<256x1xf32>
    %cst_78 = arith.constant 9.99999974E-6 : f32
    %195 = vector.broadcast %cst_78 : f32 to vector<256x1xf32>
    %196 = arith.addf %194, %195 : vector<256x1xf32>
    %197 = math.rsqrt %196 : vector<256x1xf32>
    %198 = vector.broadcast %197 : vector<256x1xf32> to vector<256x64xf32>
    %199 = arith.mulf %189, %198 : vector<256x64xf32>
    %200 = vector.broadcast %182 : vector<1x64xf32> to vector<256x64xf32>
    %201 = arith.mulf %199, %200 : vector<256x64xf32>
    %202 = vector.broadcast %183 : vector<1x64xf32> to vector<256x64xf32>
    %203 = arith.addf %201, %202 : vector<256x64xf32>
    %c208 = arith.constant 208 : index
    %c0_79 = arith.constant 0 : index
    %204 = vector.load %arg2[%c208, %c0_79] : memref<784x64xbf16, #tpu.memory_space<vmem>>, vector<64x64xbf16>
    %205 = arith.truncf %203 : vector<256x64xf32> to vector<256x64xbf16>
    %cst_80 = arith.constant dense<0.000000e+00> : vector<256x64xf32>
    %206 = tpu.matmul %205, %204, %cst_80 {dimension_numbers = #tpu.dot_dimension_numbers<[1], [0], [0], [1], [0, 0, 1, 1], [], []>} : vector<256x64xbf16>, vector<64x64xbf16>, vector<256x64xf32> -> vector<256x64xf32>
    %c23 = arith.constant 23 : index
    %c0_81 = arith.constant 0 : index
    %207 = vector.load %arg4[%c23, %c0_81] : memref<32x128xf32, #tpu.memory_space<vmem>>, vector<1x64xf32>
    %208 = vector.broadcast %207 : vector<1x64xf32> to vector<256x64xf32>
    %209 = arith.addf %206, %208 : vector<256x64xf32>
    %210 = arith.addf %203, %209 : vector<256x64xf32>
    %c24 = arith.constant 24 : index
    %c0_82 = arith.constant 0 : index
    %211 = vector.load %arg4[%c24, %c0_82] : memref<32x128xf32, #tpu.memory_space<vmem>>, vector<1x64xf32>
    %c25 = arith.constant 25 : index
    %c0_83 = arith.constant 0 : index
    %212 = vector.load %arg4[%c25, %c0_83] : memref<32x128xf32, #tpu.memory_space<vmem>>, vector<1x64xf32>
    %cst_84 = arith.constant dense<0.000000e+00> : vector<256xf32>
    %213 = vector.multi_reduction <add>, %210, %cst_84 [1] : vector<256x64xf32> to vector<256xf32>
    %214 = vector.shape_cast %213 : vector<256xf32> to vector<256x1xf32>
    %cst_85 = arith.constant 6.400000e+01 : f32
    %215 = vector.broadcast %cst_85 : f32 to vector<256x1xf32>
    %216 = arith.divf %214, %215 : vector<256x1xf32>
    %217 = vector.broadcast %216 : vector<256x1xf32> to vector<256x64xf32>
    %218 = arith.subf %210, %217 : vector<256x64xf32>
    %219 = arith.mulf %218, %218 : vector<256x64xf32>
    %cst_86 = arith.constant dense<0.000000e+00> : vector<256xf32>
    %220 = vector.multi_reduction <add>, %219, %cst_86 [1] : vector<256x64xf32> to vector<256xf32>
    %221 = vector.shape_cast %220 : vector<256xf32> to vector<256x1xf32>
    %cst_87 = arith.constant 6.400000e+01 : f32
    %222 = vector.broadcast %cst_87 : f32 to vector<256x1xf32>
    %223 = arith.divf %221, %222 : vector<256x1xf32>
    %cst_88 = arith.constant 9.99999974E-6 : f32
    %224 = vector.broadcast %cst_88 : f32 to vector<256x1xf32>
    %225 = arith.addf %223, %224 : vector<256x1xf32>
    %226 = math.rsqrt %225 : vector<256x1xf32>
    %227 = vector.broadcast %226 : vector<256x1xf32> to vector<256x64xf32>
    %228 = arith.mulf %218, %227 : vector<256x64xf32>
    %229 = vector.broadcast %211 : vector<1x64xf32> to vector<256x64xf32>
    %230 = arith.mulf %228, %229 : vector<256x64xf32>
    %231 = vector.broadcast %212 : vector<1x64xf32> to vector<256x64xf32>
    %232 = arith.addf %230, %231 : vector<256x64xf32>
    %c192 = arith.constant 192 : index
    %c0_89 = arith.constant 0 : index
    %233 = vector.load %arg3[%c192, %c0_89] : memref<320x128xbf16, #tpu.memory_space<vmem>>, vector<64x128xbf16>
    %234 = arith.truncf %232 : vector<256x64xf32> to vector<256x64xbf16>
    %cst_90 = arith.constant dense<0.000000e+00> : vector<256x128xf32>
    %235 = tpu.matmul %234, %233, %cst_90 {dimension_numbers = #tpu.dot_dimension_numbers<[1], [0], [0], [1], [0, 0, 1, 1], [], []>} : vector<256x64xbf16>, vector<64x128xbf16>, vector<256x128xf32> -> vector<256x128xf32>
    %c26 = arith.constant 26 : index
    %c0_91 = arith.constant 0 : index
    %236 = vector.load %arg4[%c26, %c0_91] : memref<32x128xf32, #tpu.memory_space<vmem>>, vector<1x128xf32>
    %237 = vector.broadcast %236 : vector<1x128xf32> to vector<256x128xf32>
    %238 = arith.addf %235, %237 : vector<256x128xf32>
    %cst_92 = arith.constant 0.000000e+00 : f32
    %239 = vector.broadcast %cst_92 : f32 to vector<256x128xf32>
    %240 = arith.maximumf %238, %239 : vector<256x128xf32>
    %c656 = arith.constant 656 : index
    %c0_93 = arith.constant 0 : index
    %241 = vector.load %arg2[%c656, %c0_93] : memref<784x64xbf16, #tpu.memory_space<vmem>>, vector<128x64xbf16>
    %242 = arith.truncf %240 : vector<256x128xf32> to vector<256x128xbf16>
    %cst_94 = arith.constant dense<0.000000e+00> : vector<256x64xf32>
    %243 = tpu.matmul %242, %241, %cst_94 {dimension_numbers = #tpu.dot_dimension_numbers<[1], [0], [0], [1], [0, 0, 1, 1], [], []>} : vector<256x128xbf16>, vector<128x64xbf16>, vector<256x64xf32> -> vector<256x64xf32>
    %c27 = arith.constant 27 : index
    %c0_95 = arith.constant 0 : index
    %244 = vector.load %arg4[%c27, %c0_95] : memref<32x128xf32, #tpu.memory_space<vmem>>, vector<1x64xf32>
    %245 = vector.broadcast %244 : vector<1x64xf32> to vector<256x64xf32>
    %246 = arith.addf %243, %245 : vector<256x64xf32>
    %247 = arith.addf %232, %246 : vector<256x64xf32>
    %c28 = arith.constant 28 : index
    %c0_96 = arith.constant 0 : index
    %248 = vector.load %arg4[%c28, %c0_96] : memref<32x128xf32, #tpu.memory_space<vmem>>, vector<1x64xf32>
    %c29 = arith.constant 29 : index
    %c0_97 = arith.constant 0 : index
    %249 = vector.load %arg4[%c29, %c0_97] : memref<32x128xf32, #tpu.memory_space<vmem>>, vector<1x64xf32>
    %cst_98 = arith.constant dense<0.000000e+00> : vector<256xf32>
    %250 = vector.multi_reduction <add>, %247, %cst_98 [1] : vector<256x64xf32> to vector<256xf32>
    %251 = vector.shape_cast %250 : vector<256xf32> to vector<256x1xf32>
    %cst_99 = arith.constant 6.400000e+01 : f32
    %252 = vector.broadcast %cst_99 : f32 to vector<256x1xf32>
    %253 = arith.divf %251, %252 : vector<256x1xf32>
    %254 = vector.broadcast %253 : vector<256x1xf32> to vector<256x64xf32>
    %255 = arith.subf %247, %254 : vector<256x64xf32>
    %256 = arith.mulf %255, %255 : vector<256x64xf32>
    %cst_100 = arith.constant dense<0.000000e+00> : vector<256xf32>
    %257 = vector.multi_reduction <add>, %256, %cst_100 [1] : vector<256x64xf32> to vector<256xf32>
    %258 = vector.shape_cast %257 : vector<256xf32> to vector<256x1xf32>
    %cst_101 = arith.constant 6.400000e+01 : f32
    %259 = vector.broadcast %cst_101 : f32 to vector<256x1xf32>
    %260 = arith.divf %258, %259 : vector<256x1xf32>
    %cst_102 = arith.constant 9.99999974E-6 : f32
    %261 = vector.broadcast %cst_102 : f32 to vector<256x1xf32>
    %262 = arith.addf %260, %261 : vector<256x1xf32>
    %263 = math.rsqrt %262 : vector<256x1xf32>
    %264 = vector.broadcast %263 : vector<256x1xf32> to vector<256x64xf32>
    %265 = arith.mulf %255, %264 : vector<256x64xf32>
    %266 = vector.broadcast %248 : vector<1x64xf32> to vector<256x64xf32>
    %267 = arith.mulf %265, %266 : vector<256x64xf32>
    %268 = vector.broadcast %249 : vector<1x64xf32> to vector<256x64xf32>
    %269 = arith.addf %267, %268 : vector<256x64xf32>
    %c256 = arith.constant 256 : index
    %c0_103 = arith.constant 0 : index
    %270 = vector.load %arg3[%c256, %c0_103] : memref<320x128xbf16, #tpu.memory_space<vmem>>, vector<64x128xbf16>
    %271 = arith.truncf %269 : vector<256x64xf32> to vector<256x64xbf16>
    %cst_104 = arith.constant dense<0.000000e+00> : vector<256x128xf32>
    %272 = tpu.matmul %271, %270, %cst_104 {dimension_numbers = #tpu.dot_dimension_numbers<[1], [0], [0], [1], [0, 0, 1, 1], [], []>} : vector<256x64xbf16>, vector<64x128xbf16>, vector<256x128xf32> -> vector<256x128xf32>
    %c1 = arith.constant 1 : index
    %c0_105 = arith.constant 0 : index
    %273 = vector.load %arg4[%c1, %c0_105] : memref<32x128xf32, #tpu.memory_space<vmem>>, vector<1x128xf32>
    %274 = vector.broadcast %273 : vector<1x128xf32> to vector<256x128xf32>
    %275 = arith.addf %272, %274 : vector<256x128xf32>
    %c0_106 = arith.constant 0 : index
    %c0_107 = arith.constant 0 : index
    %276 = vector.load %arg5[%c0_106, %c0_107] : memref<256x128xf32, #tpu.memory_space<vmem>>, vector<256x128xf32>
    tpu.vector_store %arg5[%c0_106, %c0_107], %275 {strides = array<i32>} : memref<256x128xf32, #tpu.memory_space<vmem>>, vector<256x128xf32>,
    return
  }
  func.func @transform_0(%arg0: i32) -> (i32, i32) {
    %c0_i32 = arith.constant 0 : i32
    %c0_i32_0 = arith.constant 0 : i32
    return %arg0, %c0_i32 : i32, i32
  }
  func.func @transform_1(%arg0: i32) -> (i32, i32) {
    %c0_i32 = arith.constant 0 : i32
    %c0_i32_0 = arith.constant 0 : i32
    %c0_i32_1 = arith.constant 0 : i32
    return %c0_i32, %c0_i32_0 : i32, i32
  }
  func.func @transform_2(%arg0: i32) -> (i32, i32) {
    %c0_i32 = arith.constant 0 : i32
    %c0_i32_0 = arith.constant 0 : i32
    %c0_i32_1 = arith.constant 0 : i32
    return %c0_i32, %c0_i32_0 : i32, i32
  }
  func.func @transform_3(%arg0: i32) -> (i32, i32) {
    %c0_i32 = arith.constant 0 : i32
    %c0_i32_0 = arith.constant 0 : i32
    %c0_i32_1 = arith.constant 0 : i32
    return %c0_i32, %c0_i32_0 : i32, i32
  }
  func.func @transform_4(%arg0: i32) -> (i32, i32) {
    %c0_i32 = arith.constant 0 : i32
    %c0_i32_0 = arith.constant 0 : i32
    return %arg0, %c0_i32 : i32, i32
  }
}

</mosaic_0001>

<bundles_post_ra>
// kernel: transformer_meta_forward.1
= control target key start
LH: loop header
LB: loop body
LE: loop exit
PB: predicated region body
PF: predicated region fallthrough
CT: control target
= control target key end

     0   :  { %vm143_vm0 = vcmask 130048   ;;  %vm406_vm1 = vcmask 523264   ;;  %s15274_s1 = inlined_call_operand.vmem [shape: bf16[784,64], index: 1, kind: input, shape index: {}]   ;;  %s15275_s0 = inlined_call_operand.vmem [shape: bf16[256,16], index: 0, kind: input, shape index: {}]   ;;  %s15276_s3 = inlined_call_operand.vmem [shape: f32[32,128], index: 3, kind: input, shape index: {}]   ;;  %s15277_s2 = inlined_call_operand.vmem [shape: bf16[320,128], index: 2, kind: input, shape index: {}]   ;;  %s15278_s4 = inlined_call_operand.vmem [shape: f32[256,128], index: 4, kind: output, shape index: {}]  }
   0x1   :  { %v9191_v0 = vld [vmem:[%s15274_s1] sm:$0xff]   ;;  %v9193_v2 = vld [vmem:[%s15275_s0 + $0x8] sm:$0xff]   ;;  %v9194_v3 = vld [vmem:[%s15275_s0 + $0x10] sm:$0xff]  }
   0x2   :  { %v9192_v1 = vld [vmem:[%s15275_s0] sm:$0xff]   ;;  %8605 = vmatprep.subr.bf16.mxu0 %v9191_v0  ;;  %v9195_v4 = vld [vmem:[%s15275_s0 + $0x18] sm:$0xff]   ;;  %v9197_v6 = vld [vmem:[%s15275_s0 + $0x28] sm:$0xff]  }
   0x3   :  { %8606 = vmatpush3.bf16.msra.mxu0 %v9191_v0  ;;  %8607 = vmatprep.mubr.msk.bf16.mxu0 %vm143_vm0, %v9192_v1  ;;  %v9196_v5 = vld [vmem:[%s15275_s0 + $0x20] sm:$0xff]   ;;  %v9198_v7 = vld [vmem:[%s15275_s0 + $0x30] sm:$0xff]   ;;  %v9208_v8 = vld [vmem:[%s15274_s1 + $0x8] sm:$0xff]  }
   0x4   :  { %v9209_v9 = vld [vmem:[%s15274_s1 + $0x10] sm:$0xff]   ;;  %8639 = vmatprep.subr.bf16.mxu1 %v9208_v8  ;;  %v9199_v10 = vld [vmem:[%s15275_s0 + $0x38] sm:$0xff]   ;;  %v9200_v11 = vld [vmem:[%s15275_s0 + $0x40] sm:$0xff]  }
   0x5   :  { %8640 = vmatpush3.bf16.msra.mxu1 %v9208_v8  ;;  %v9201_v12 = vld [vmem:[%s15275_s0 + $0x48] sm:$0xff]   ;;  %v9202_v13 = vld [vmem:[%s15275_s0 + $0x50] sm:$0xff]   ;;  %v9203_v14 = vld [vmem:[%s15275_s0 + $0x58] sm:$0xff]  }
   0x6   :  { %8608 = vmatmul.mubr.msk.bf16.vlgmr.msra.gmra.mrb[0].mxu0 %vm143_vm0, %v9193_v2  ;;  %8641 = vmatprep.subr.bf16.mxu1 %v9209_v9  ;;  %v9204_v15 = vld [vmem:[%s15275_s0 + $0x60] sm:$0xff]   ;;  %v9205_v16 = vld [vmem:[%s15275_s0 + $0x68] sm:$0xff]   ;;  %v9206_v17 = vld [vmem:[%s15275_s0 + $0x70] sm:$0xff]  }
   0x7   :  { %8611 = vmatprep.mubr.msk.bf16.mxu0 %vm143_vm0, %v9194_v3  ;;  %v9207_v18 = vld [vmem:[%s15275_s0 + $0x78] sm:$0xff]   ;;  %v9211_v20 = vld [vmem:[%s15274_s1 + $0x20] sm:$0xff]  }
   0x8   :  { %v9210_v19 = vld [vmem:[%s15274_s1 + $0x18] sm:$0xff]   ;;  %v9895_v22 = vld [vmem:[%s15276_s3] ss:$0 sm:$0xff] }
   0x9   :  { %8642 = vmatpush3.bf16.msra.mxu1 %v9209_v9 }
   0xa   :  { %8643 = vmatprep.subr.bf16.mxu1 %v9210_v19 }
   0xd   :  { %8644 = vmatpush3.bf16.msra.mxu1 %v9210_v19 }
   0xe   :  { %8612 = vmatmul.mubr.msk.bf16.gmra.mrb[4].mxu0 %vm143_vm0, %v9195_v4  ;;  %8645 = vmatprep.subr.bf16.mxu1 %v9211_v20 }
   0xf   :  { %8615 = vmatprep.mubr.msk.bf16.mxu0 %vm143_vm0, %v9196_v5 }
  0x11   :  { %8646 = vmatpush3.bf16.msra.mxu1 %v9211_v20 }
  0x16   :  { %8616 = vmatmul.mubr.msk.bf16.gmra.mrb[8].mxu0 %vm143_vm0, %v9197_v6 }
  0x17   :  { %8619 = vmatprep.mubr.msk.bf16.mxu0 %vm143_vm0, %v9198_v7 }
  0x1e   :  { %8620 = vmatmul.mubr.msk.bf16.gmra.mrb[12].mxu0 %vm143_vm0, %v9199_v10 }
  0x1f   :  { %8623 = vmatprep.mubr.msk.bf16.mxu0 %vm143_vm0, %v9200_v11 }
  0x26   :  { %8624 = vmatmul.mubr.msk.bf16.gmra.mrb[16].mxu0 %vm143_vm0, %v9201_v12 }
  0x27   :  { %8627 = vmatprep.mubr.msk.bf16.mxu0 %vm143_vm0, %v9202_v13 }
  0x2e   :  { %8628 = vmatmul.mubr.msk.bf16.gmra.mrb[20].mxu0 %vm143_vm0, %v9203_v14 }
  0x2f   :  { %8631 = vmatprep.mubr.msk.bf16.mxu0 %vm143_vm0, %v9204_v15 }
  0x36   :  { %8632 = vmatmul.mubr.msk.bf16.gmra.mrb[24].mxu0 %vm143_vm0, %v9205_v16 }
  0x37   :  { %8635 = vmatprep.mubr.msk.bf16.mxu0 %vm143_vm0, %v9206_v17 }
  0x3e   :  { %8636 = vmatmul.mubr.msk.bf16.gmra.mrb[28].mxu0 %vm143_vm0, %v9207_v18 }
  0xd9   :  { %v8609_v21 = vpop.f32.mrb[0].mxu0 }
  0xda   :  { %v226_v23 = vpop.f32.mrb[1].mxu0  ;;  %v9907_v29 = vadd.f32 %v8609_v21, %v9895_v22 }
  0xdb   :  { %v8610_v24 = vpop.f32.mrb[2].mxu0  ;;  %v9901_v27 = vadd.f32 %v9895_v22, %v226_v23 }
  0xdc   :  { %v9898_v25 = vadd.f32 %v8610_v24, %v9895_v22  ;;  %v229_v26 = vpop.f32.mrb[3].mxu0 }
  0xdd   :  { %v9904_v28 = vadd.f32 %v9895_v22, %v229_v26 }
  0xde   :  { %v362_v31 = vpack.c.bf16 %v9898_v25, %v9907_v29 }
  0xdf   :  { %v361_v30 = vpack.c.bf16 %v9904_v28, %v9901_v27 }
  0xe1   :  { %v8613_v32 = vpop.f32.mrb[4].mxu0  ;;  %8647 = vmatprep.mubr.msk.bf16.mxu1 %vm406_vm1, %v361_v30 }
  0xe2   :  { %v242_v33 = vpop.f32.mrb[5].mxu0  ;;  %8648 = vmatmul.mubr.msk.bf16.vlgmr.msra.gmra.mrb[0].mxu1 %vm406_vm1, %v362_v31  ;;  %v9919_v36 = vadd.f32 %v8613_v32, %v9895_v22 }
  0xe3   :  { %v9916_v34 = vadd.f32 %v9895_v22, %v242_v33  ;;  %v8614_v35 = vpop.f32.mrb[6].mxu0 }
  0xe4   :  { %v9922_v37 = vadd.f32 %v8614_v35, %v9895_v22  ;;  %v245_v38 = vpop.f32.mrb[7].mxu0 }
  0xe5   :  { %v9925_v39 = vadd.f32 %v9895_v22, %v245_v38 }
  0xe6   :  { %v364_v41 = vpack.c.bf16 %v9922_v37, %v9919_v36 }
  0xe7   :  { %v363_v40 = vpack.c.bf16 %v9925_v39, %v9916_v34 }
  0xe9   :  { %v8617_v42 = vpop.f32.mrb[8].mxu0  ;;  %8651 = vmatprep.mubr.msk.bf16.mxu1 %vm406_vm1, %v363_v40 }
  0xea   :  { %v258_v43 = vpop.f32.mrb[9].mxu0  ;;  %8652 = vmatmul.mubr.msk.bf16.gmra.mrb[4].mxu1 %vm406_vm1, %v364_v41  ;;  %v9937_v46 = vadd.f32 %v8617_v42, %v9895_v22 }
  0xeb   :  { %v9934_v44 = vadd.f32 %v9895_v22, %v258_v43  ;;  %v8618_v45 = vpop.f32.mrb[10].mxu0 }
  0xec   :  { %v9940_v47 = vadd.f32 %v8618_v45, %v9895_v22  ;;  %v261_v48 = vpop.f32.mrb[11].mxu0 }
  0xed   :  { %v9943_v49 = vadd.f32 %v9895_v22, %v261_v48 }
  0xee   :  { %v366_v51 = vpack.c.bf16 %v9940_v47, %v9937_v46 }
  0xef   :  { %v365_v50 = vpack.c.bf16 %v9943_v49, %v9934_v44 }
  0xf1   :  { %v8621_v52 = vpop.f32.mrb[12].mxu0  ;;  %8655 = vmatprep.mubr.msk.bf16.mxu1 %vm406_vm1, %v365_v50 }
  0xf2   :  { %v274_v53 = vpop.f32.mrb[13].mxu0  ;;  %8656 = vmatmul.mubr.msk.bf16.gmra.mrb[8].mxu1 %vm406_vm1, %v366_v51  ;;  %v9955_v56 = vadd.f32 %v8621_v52, %v9895_v22  ;;  %v10044_v51 = vld [vmem:[%s15276_s3 + $0x2] ss:$0 sm:$0xff] }
  0xf3   :  { %v9952_v54 = vadd.f32 %v9895_v22, %v274_v53  ;;  %v8622_v55 = vpop.f32.mrb[14].mxu0 }
  0xf4   :  { %v9958_v57 = vadd.f32 %v8622_v55, %v9895_v22  ;;  %v277_v58 = vpop.f32.mrb[15].mxu0 }
  0xf5   :  { %v9961_v59 = vadd.f32 %v9895_v22, %v277_v58 }
  0xf6   :  { %v368_v61 = vpack.c.bf16 %v9958_v57, %v9955_v56 }
  0xf7   :  { %v367_v60 = vpack.c.bf16 %v9961_v59, %v9952_v54 }
  0xf9   :  { %v8625_v62 = vpop.f32.mrb[16].mxu0  ;;  %8659 = vmatprep.mubr.msk.bf16.mxu1 %vm406_vm1, %v367_v60 }
  0xfa   :  { %v290_v63 = vpop.f32.mrb[17].mxu0  ;;  %8660 = vmatmul.mubr.msk.bf16.gmra.mrb[12].mxu1 %vm406_vm1, %v368_v61  ;;  %v9973_v2 = vadd.f32 %v8625_v62, %v9895_v22 }
  0xfb   :  { %v9970_v0 = vadd.f32 %v9895_v22, %v290_v63  ;;  %v8626_v1 = vpop.f32.mrb[18].mxu0 }
  0xfc   :  { %v9976_v3 = vadd.f32 %v8626_v1, %v9895_v22  ;;  %v293_v4 = vpop.f32.mrb[19].mxu0 }
  0xfd   :  { %v9979_v5 = vadd.f32 %v9895_v22, %v293_v4 }
  0xfe   :  { %v370_v7 = vpack.c.bf16 %v9976_v3, %v9973_v2 }
  0xff   :  { %v369_v6 = vpack.c.bf16 %v9979_v5, %v9970_v0 }
 0x101   :  { %v8629_v8 = vpop.f32.mrb[20].mxu0  ;;  %8663 = vmatprep.mubr.msk.bf16.mxu1 %vm406_vm1, %v369_v6 }
 0x102   :  { %v306_v9 = vpop.f32.mrb[21].mxu0  ;;  %8664 = vmatmul.mubr.msk.bf16.gmra.mrb[16].mxu1 %vm406_vm1, %v370_v7  ;;  %v9991_v12 = vadd.f32 %v8629_v8, %v9895_v22 }
 0x103   :  { %v9988_v10 = vadd.f32 %v9895_v22, %v306_v9  ;;  %v8630_v11 = vpop.f32.mrb[22].mxu0 }
 0x104   :  { %v9994_v13 = vadd.f32 %v8630_v11, %v9895_v22  ;;  %v309_v14 = vpop.f32.mrb[23].mxu0 }
 0x105   :  { %v9997_v15 = vadd.f32 %v9895_v22, %v309_v14 }
 0x106   :  { %v372_v17 = vpack.c.bf16 %v9994_v13, %v9991_v12 }
 0x107   :  { %v371_v16 = vpack.c.bf16 %v9997_v15, %v9988_v10 }
 0x109   :  { %v8633_v18 = vpop.f32.mrb[24].mxu0  ;;  %8667 = vmatprep.mubr.msk.bf16.mxu1 %vm406_vm1, %v371_v16 }
 0x10a   :  { %v322_v19 = vpop.f32.mrb[25].mxu0  ;;  %8668 = vmatmul.mubr.msk.bf16.gmra.mrb[20].mxu1 %vm406_vm1, %v372_v17  ;;  %v10009_v23 = vadd.f32 %v8633_v18, %v9895_v22 }
 0x10b   :  { %v10006_v20 = vadd.f32 %v9895_v22, %v322_v19  ;;  %v8634_v21 = vpop.f32.mrb[26].mxu0 }
 0x10c   :  { %v10012_v24 = vadd.f32 %v8634_v21, %v9895_v22  ;;  %v325_v26 = vpop.f32.mrb[27].mxu0 }
 0x10d   :  { %v10015_v30 = vadd.f32 %v9895_v22, %v325_v26 }
 0x10e   :  { %v374_v32 = vpack.c.bf16 %v10012_v24, %v10009_v23 }
 0x10f   :  { %v373_v31 = vpack.c.bf16 %v10015_v30, %v10006_v20 }
 0x111   :  { %v8637_v33 = vpop.f32.mrb[28].mxu0  ;;  %8671 = vmatprep.mubr.msk.bf16.mxu1 %vm406_vm1, %v373_v31 }
 0x112   :  { %v338_v35 = vpop.f32.mrb[29].mxu0  ;;  %8672 = vmatmul.mubr.msk.bf16.gmra.mrb[24].mxu1 %vm406_vm1, %v374_v32  ;;  %v10027_v41 = vadd.f32 %v8637_v33, %v9895_v22 }
 0x113   :  { %v10024_v38 = vadd.f32 %v9895_v22, %v338_v35  ;;  %v8638_v40 = vpop.f32.mrb[30].mxu0 }
 0x114   :  { %v10030_v42 = vadd.f32 %v8638_v40, %v9895_v22  ;;  %v341_v43 = vpop.f32.mrb[31].mxu0 }
 0x115   :  { %v10033_v45 = vadd.f32 %v9895_v22, %v341_v43 }
 0x116   :  { %v376_v50 = vpack.c.bf16 %v10030_v42, %v10027_v41 }
 0x117   :  { %v375_v48 = vpack.c.bf16 %v10033_v45, %v10024_v38 }
 0x119   :  { %8675 = vmatprep.mubr.msk.bf16.mxu1 %vm406_vm1, %v375_v48 }
 0x11a   :  { %8676 = vmatmul.mubr.msk.bf16.gmra.mrb[28].mxu1 %vm406_vm1, %v376_v50 }
 0x1b5   :  { %v8649_v52 = vpop.f32.mrb[0].mxu1 }
 0x1b6   :  { %v498_v53 = vadd.f32 %v8649_v52, %v10044_v51  ;;  %v489_v22 = vpop.f32.mrb[1].mxu1 }
 0x1b7   :  { %v490_v55 = vadd.f32 %v10044_v51, %v489_v22  ;;  %v8650_v58 = vpop.f32.mrb[2].mxu1 }
 0x1b8   :  { %v501_v60 = vadd.f32 %v8650_v58, %v10044_v51  ;;  %v492_v61 = vpop.f32.mrb[3].mxu1  ;;  %v10050_v62 = vadd.f32 %v498_v53, %v9907_v29 }
 0x1b9   :  { %v493_v63 = vadd.f32 %v10044_v51, %v492_v61  ;;  %v10054_v1 = vadd.f32 %v490_v55, %v9901_v27 }
 0x1ba   :  { %v656_v4 = vsel %vm406_vm1, %v10050_v62, 0.0  ;;  %v10059_v6 = vadd.f32 %v501_v60, %v9898_v25 }
 0x1bb   :  { %657 = vadd.xlane.f32.xlu1 %v656_v4  ;;  %v650_v7 = vsel %vm406_vm1, %v10054_v1, 0.0  ;;  %v10064_v8 = vadd.f32 %v493_v63, %v9904_v28 }
 0x1bc   :  { %651 = vadd.xlane.f32.xlu0 %v650_v7  ;;  %v659_v27 = vsel %vm406_vm1, %v10059_v6, 0.0 }
 0x1bd   :  { %v8653_v29 = vpop.f32.mrb[4].mxu1  ;;  %v653_v16 = vsel %vm406_vm1, %v10064_v8, 0.0 }
 0x1be   :  { %v505_v9 = vpop.f32.mrb[5].mxu1  ;;  %v514_v11 = vadd.f32 %v8653_v29, %v10044_v51 }
 0x1bf   :  { %v506_v14 = vadd.f32 %v10044_v51, %v505_v9  ;;  %660 = vadd.xlane.f32.xlu1 %v659_v27  ;;  %v8654_v25 = vpop.f32.mrb[6].mxu1 }
 0x1c0   :  { %v508_v17 = vpop.f32.mrb[7].mxu1  ;;  %654 = vadd.xlane.f32.xlu0 %v653_v16  ;;  %v517_v28 = vadd.f32 %v8654_v25, %v10044_v51  ;;  %v10083_v31 = vadd.f32 %v514_v11, %v9919_v36 }
 0x1c1   :  { %v509_v18 = vadd.f32 %v10044_v51, %v508_v17  ;;  %v10075_v19 = vadd.f32 %v506_v14, %v9916_v34 }
 0x1c2   :  { %v10088_v35 = vadd.f32 %v517_v28, %v9922_v37 }
 0x1c3   :  { %v662_v21 = vsel %vm406_vm1, %v10075_v19, 0.0  ;;  %v10080_v26 = vadd.f32 %v509_v18, %v9925_v39  ;;  %v668_v39 = vsel %vm406_vm1, %v10083_v31, 0.0 }
 0x1c4   :  { %663 = vadd.xlane.f32.xlu0 %v662_v21  ;;  %v671_v37 = vsel %vm406_vm1, %v10088_v35, 0.0 }
 0x1c5   :  { %v8657_v32 = vpop.f32.mrb[8].mxu1  ;;  %v665_v33 = vsel %vm406_vm1, %v10080_v26, 0.0 }
 0x1c6   :  { %v521_v40 = vpop.f32.mrb[9].mxu1  ;;  %666 = vadd.xlane.f32.xlu1 %v665_v33  ;;  %v530_v34 = vadd.f32 %v8657_v32, %v10044_v51 }
 0x1c7   :  { %v522_v43 = vadd.f32 %v10044_v51, %v521_v40  ;;  %v8658_v48 = vpop.f32.mrb[10].mxu1 }
 0x1c8   :  { %v524_v36 = vpop.f32.mrb[11].mxu1  ;;  %669 = vadd.xlane.f32.xlu0 %v668_v39  ;;  %v533_v50 = vadd.f32 %v8658_v48, %v10044_v51  ;;  %v10107_v58 = vadd.f32 %v530_v34, %v9937_v46 }
 0x1c9   :  { %v525_v52 = vadd.f32 %v10044_v51, %v524_v36  ;;  %v10099_v53 = vadd.f32 %v522_v43, %v9934_v44 }
 0x1ca   :  { %672 = vadd.xlane.f32.xlu1 %v671_v37  ;;  %v10112_v63 = vadd.f32 %v533_v50, %v9940_v47 }
 0x1cb   :  { %v674_v22 = vsel %vm406_vm1, %v10099_v53, 0.0  ;;  %v10104_v55 = vadd.f32 %v525_v52, %v9943_v49  ;;  %v680_v49 = vsel %vm406_vm1, %v10107_v58, 0.0 }
 0x1cc   :  { %675 = vadd.xlane.f32.xlu0 %v674_v22  ;;  %v683_v47 = vsel %vm406_vm1, %v10112_v63, 0.0 }
 0x1cd   :  { %v8661_v60 = vpop.f32.mrb[12].mxu1  ;;  %v677_v61 = vsel %vm406_vm1, %v10104_v55, 0.0 }
 0x1ce   :  { %v537_v44 = vpop.f32.mrb[13].mxu1  ;;  %678 = vadd.xlane.f32.xlu1 %v677_v61  ;;  %v546_v4 = vadd.f32 %v8661_v60, %v10044_v51 }
 0x1cf   :  { %v538_v7 = vadd.f32 %v10044_v51, %v537_v44  ;;  %v8662_v29 = vpop.f32.mrb[14].mxu1 }
 0x1d0   :  { %v540_v46 = vpop.f32.mrb[15].mxu1  ;;  %681 = vadd.xlane.f32.xlu0 %v680_v49  ;;  %v549_v9 = vadd.f32 %v8662_v29, %v10044_v51  ;;  %v10131_v16 = vadd.f32 %v546_v4, %v9955_v56 }
 0x1d1   :  { %v541_v27 = vadd.f32 %v10044_v51, %v540_v46  ;;  %v10123_v11 = vadd.f32 %v538_v7, %v9952_v54 }
 0x1d2   :  { %684 = vadd.xlane.f32.xlu1 %v683_v47  ;;  %v10136_v18 = vadd.f32 %v549_v9, %v9958_v57 }
 0x1d3   :  { %v686_v14 = vsel %vm406_vm1, %v10123_v11, 0.0  ;;  %v10128_v25 = vadd.f32 %v541_v27, %v9961_v59  ;;  %v692_v59 = vsel %vm406_vm1, %v10131_v16, 0.0 }
 0x1d4   :  { %687 = vadd.xlane.f32.xlu0 %v686_v14  ;;  %v695_v57 = vsel %vm406_vm1, %v10136_v18, 0.0 }
 0x1d5   :  { %v8665_v17 = vpop.f32.mrb[16].mxu1  ;;  %v689_v28 = vsel %vm406_vm1, %v10128_v25, 0.0 }
 0x1d6   :  { %v553_v54 = vpop.f32.mrb[17].mxu1  ;;  %690 = vadd.xlane.f32.xlu1 %v689_v28  ;;  %v562_v21 = vadd.f32 %v8665_v17, %v10044_v51 }
 0x1d7   :  { %v554_v32 = vadd.f32 %v10044_v51, %v553_v54  ;;  %v8666_v33 = vpop.f32.mrb[18].mxu1 }
 0x1d8   :  { %v556_v56 = vpop.f32.mrb[19].mxu1  ;;  %693 = vadd.xlane.f32.xlu0 %v692_v59  ;;  %v565_v40 = vadd.f32 %v8666_v33, %v10044_v51  ;;  %v10155_v36 = vadd.f32 %v562_v21, %v9973_v2 }
 0x1d9   :  { %v557_v34 = vadd.f32 %v10044_v51, %v556_v56  ;;  %v10147_v43 = vadd.f32 %v554_v32, %v9970_v0 }
 0x1da   :  { %696 = vadd.xlane.f32.xlu1 %v695_v57  ;;  %v10160_v37 = vadd.f32 %v565_v40, %v9976_v3 }
 0x1db   :  { %v698_v48 = vsel %vm406_vm1, %v10147_v43, 0.0  ;;  %v10152_v39 = vadd.f32 %v557_v34, %v9979_v5  ;;  %v704_v5 = vsel %vm406_vm1, %v10155_v36, 0.0 }
 0x1dc   :  { %699 = vadd.xlane.f32.xlu0 %v698_v48  ;;  %v707_v3 = vsel %vm406_vm1, %v10160_v37, 0.0 }
 0x1dd   :  { %v8669_v50 = vpop.f32.mrb[20].mxu1  ;;  %v701_v52 = vsel %vm406_vm1, %v10152_v39, 0.0 }
 0x1de   :  { %v569_v0 = vpop.f32.mrb[21].mxu1  ;;  %702 = vadd.xlane.f32.xlu1 %v701_v52  ;;  %v578_v22 = vadd.f32 %v8669_v50, %v10044_v51 }
 0x1df   :  { %v570_v60 = vadd.f32 %v10044_v51, %v569_v0  ;;  %v8670_v61 = vpop.f32.mrb[22].mxu1 }
 0x1e0   :  { %v572_v2 = vpop.f32.mrb[23].mxu1  ;;  %705 = vadd.xlane.f32.xlu0 %v704_v5  ;;  %v581_v44 = vadd.f32 %v8670_v61, %v10044_v51  ;;  %v10179_v46 = vadd.f32 %v578_v22, %v9991_v12 }
 0x1e1   :  { %v573_v4 = vadd.f32 %v10044_v51, %v572_v2  ;;  %v10171_v7 = vadd.f32 %v570_v60, %v9988_v10 }
 0x1e2   :  { %708 = vadd.xlane.f32.xlu1 %v707_v3  ;;  %v10184_v47 = vadd.f32 %v581_v44, %v9994_v13 }
 0x1e3   :  { %v710_v29 = vsel %vm406_vm1, %v10171_v7, 0.0  ;;  %v10176_v49 = vadd.f32 %v573_v4, %v9997_v15  ;;  %v716_v15 = vsel %vm406_vm1, %v10179_v46, 0.0 }
 0x1e4   :  { %711 = vadd.xlane.f32.xlu0 %v710_v29  ;;  %v719_v13 = vsel %vm406_vm1, %v10184_v47, 0.0 }
 0x1e5   :  { %v8673_v9 = vpop.f32.mrb[24].mxu1  ;;  %v713_v27 = vsel %vm406_vm1, %v10176_v49, 0.0 }
 0x1e6   :  { %v585_v10 = vpop.f32.mrb[25].mxu1  ;;  %714 = vadd.xlane.f32.xlu1 %v713_v27  ;;  %v594_v14 = vadd.f32 %v8673_v9, %v10044_v51 }
 0x1e7   :  { %v586_v17 = vadd.f32 %v10044_v51, %v585_v10  ;;  %v8674_v28 = vpop.f32.mrb[26].mxu1 }
 0x1e8   :  { %v588_v12 = vpop.f32.mrb[27].mxu1  ;;  %717 = vadd.xlane.f32.xlu0 %v716_v15  ;;  %v597_v54 = vadd.f32 %v8674_v28, %v10044_v51  ;;  %v10203_v56 = vadd.f32 %v594_v14, %v10009_v23 }
 0x1e9   :  { %v589_v21 = vadd.f32 %v10044_v51, %v588_v12  ;;  %v10195_v32 = vadd.f32 %v586_v17, %v10006_v20 }
 0x1ea   :  { %720 = vadd.xlane.f32.xlu1 %v719_v13  ;;  %v10208_v57 = vadd.f32 %v597_v54, %v10012_v24 }
 0x1eb   :  { %v722_v33 = vsel %vm406_vm1, %v10195_v32, 0.0  ;;  %v10200_v59 = vadd.f32 %v589_v21, %v10015_v30  ;;  %v728_v30 = vsel %vm406_vm1, %v10203_v56, 0.0 }
 0x1ec   :  { %723 = vadd.xlane.f32.xlu0 %v722_v33  ;;  %v731_v24 = vsel %vm406_vm1, %v10208_v57, 0.0 }
 0x1ed   :  { %v8677_v40 = vpop.f32.mrb[28].mxu1  ;;  %v725_v34 = vsel %vm406_vm1, %v10200_v59, 0.0 }
 0x1ee   :  { %v601_v20 = vpop.f32.mrb[29].mxu1  ;;  %726 = vadd.xlane.f32.xlu1 %v725_v34  ;;  %v610_v48 = vadd.f32 %v8677_v40, %v10044_v51 }
 0x1ef   :  { %v602_v50 = vadd.f32 %v10044_v51, %v601_v20  ;;  %v8678_v52 = vpop.f32.mrb[30].mxu1 }
 0x1f0   :  { %v604_v23 = vpop.f32.mrb[31].mxu1  ;;  %729 = vadd.xlane.f32.xlu0 %v728_v30  ;;  %v613_v0 = vadd.f32 %v8678_v52, %v10044_v51  ;;  %v10227_v2 = vadd.f32 %v610_v48, %v10027_v41  ;;  %v9212_v41 = vld [vmem:[%s15277_s2] sm:$0xff]  }
 0x1f1   :  { %v605_v22 = vadd.f32 %v10044_v51, %v604_v23  ;;  %v10219_v60 = vadd.f32 %v602_v50, %v10024_v38  ;;  %8679 = vmatprep.subr.bf16.mxu0 %v9212_v41 }
 0x1f2   :  { %732 = vadd.xlane.f32.xlu1 %v731_v24  ;;  %v10232_v44 = vadd.f32 %v613_v0, %v10030_v42  ;;  %v740_v38 = vsel %vm406_vm1, %v10227_v2, 0.0  ;;  %v9214_v42 = vld [vmem:[%s15277_s2 + $0x10] sm:$0xff]   ;;  %8680 = vmatpush3.bf16.msra.mxu0 %v9212_v41 }
 0x1f3   :  { %v734_v61 = vsel %vm406_vm1, %v10219_v60, 0.0  ;;  %v10224_v5 = vadd.f32 %v605_v22, %v10033_v45  ;;  %v9213_v45 = vld [vmem:[%s15277_s2 + $0x8] sm:$0xff]  }
 0x1f4   :  { %735 = vadd.xlane.f32.xlu0 %v734_v61  ;;  %v743_v4 = vsel %vm406_vm1, %v10232_v44, 0.0  ;;  %8681 = vmatprep.subr.bf16.mxu0 %v9213_v45 }
 0x1f5   :  { %v737_v51 = vsel %vm406_vm1, %v10224_v5, 0.0 }
 0x1f6   :  { %738 = vadd.xlane.f32.xlu1 %v737_v51  ;;  %8682 = vmatpush3.bf16.msra.mxu0 %v9213_v45 }
 0x1f7   :  { %8683 = vmatprep.subr.bf16.mxu0 %v9214_v42 }
 0x1f8   :  { %741 = vadd.xlane.f32.xlu0 %v740_v38 }
 0x1fa   :  { %744 = vadd.xlane.f32.xlu1 %v743_v4  ;;  %8684 = vmatpush3.bf16.msra.mxu0 %v9214_v42 }
 0x248   :  { %v658_v3 = vpop.xlane.xlu1 %657 }
 0x249   :  { %v749_v29 = vmul.f32 0.015625, %v658_v3  ;;  %v652_v9 = vpop.xlane.xlu0 %651 }
 0x24a   :  { %v747_v27 = vmul.f32 0.015625, %v652_v9 }
 0x24b   :  { %v10248_v10 = vsub.f32 %v10050_v62, %v749_v29 }
 0x24c   :  { %v10251_v14 = vsub.f32 %v10054_v1, %v747_v27  ;;  %v661_v17 = vpop.xlane.xlu1 %660 }
 0x24d   :  { %v750_v28 = vmul.f32 0.015625, %v661_v17  ;;  %v655_v15 = vpop.xlane.xlu0 %654  ;;  %v813_v62 = vmul.f32 %v10248_v10, %v10248_v10 }
 0x24e   :  { %v748_v12 = vmul.f32 0.015625, %v655_v15  ;;  %v811_v54 = vmul.f32 %v10251_v14, %v10251_v14 }
 0x24f   :  { %v10256_v21 = vsub.f32 %v10059_v6, %v750_v28  ;;  %v849_v50 = vsel %vm406_vm1, %v813_v62, 0.0 }
 0x250   :  { %v10259_v13 = vsub.f32 %v10064_v8, %v748_v12  ;;  %v843_v33 = vsel %vm406_vm1, %v811_v54, 0.0 }
 0x251   :  { %844 = vadd.xlane.f32.xlu0 %v843_v33  ;;  %v664_v1 = vpop.xlane.xlu0 %663  ;;  %v814_v48 = vmul.f32 %v10256_v21, %v10256_v21 }
 0x252   :  { %v751_v40 = vmul.f32 0.015625, %v664_v1  ;;  %v812_v34 = vmul.f32 %v10259_v13, %v10259_v13 }
 0x253   :  { %v667_v20 = vpop.xlane.xlu1 %666  ;;  %v852_v61 = vsel %vm406_vm1, %v814_v48, 0.0 }
 0x254   :  { %v10269_v6 = vsub.f32 %v10075_v19, %v751_v40  ;;  %v752_v8 = vmul.f32 0.015625, %v667_v20  ;;  %v846_v52 = vsel %vm406_vm1, %v812_v34, 0.0 }
 0x255   :  { %850 = vadd.xlane.f32.xlu0 %v849_v50  ;;  %847 = vadd.xlane.f32.xlu1 %v846_v52  ;;  %v670_v30 = vpop.xlane.xlu0 %669 }
 0x256   :  { %v10274_v23 = vsub.f32 %v10080_v26, %v752_v8  ;;  %v753_v0 = vmul.f32 0.015625, %v670_v30  ;;  %v815_v22 = vmul.f32 %v10269_v6, %v10269_v6 }
 0x257   :  { %v673_v24 = vpop.xlane.xlu1 %672 }
 0x258   :  { %v10280_v19 = vsub.f32 %v10083_v31, %v753_v0  ;;  %v754_v51 = vmul.f32 0.015625, %v673_v24  ;;  %v855_v38 = vsel %vm406_vm1, %v815_v22, 0.0  ;;  %v816_v4 = vmul.f32 %v10274_v23, %v10274_v23 }
 0x259   :  { %853 = vadd.xlane.f32.xlu1 %v852_v61  ;;  %856 = vadd.xlane.f32.xlu0 %v855_v38  ;;  %v676_v26 = vpop.xlane.xlu0 %675 }
 0x25a   :  { %v10286_v41 = vsub.f32 %v10088_v35, %v754_v51  ;;  %v755_v45 = vmul.f32 0.015625, %v676_v26  ;;  %v817_v42 = vmul.f32 %v10280_v19, %v10280_v19  ;;  %v858_v31 = vsel %vm406_vm1, %v816_v4, 0.0 }
 0x25b   :  { %v679_v3 = vpop.xlane.xlu1 %678 }
 0x25c   :  { %v10292_v29 = vsub.f32 %v10099_v53, %v755_v45  ;;  %v756_v9 = vmul.f32 0.015625, %v679_v3  ;;  %v861_v27 = vsel %vm406_vm1, %v817_v42, 0.0  ;;  %v818_v17 = vmul.f32 %v10286_v41, %v10286_v41 }
 0x25d   :  { %859 = vadd.xlane.f32.xlu1 %v858_v31  ;;  %862 = vadd.xlane.f32.xlu0 %v861_v27  ;;  %v682_v35 = vpop.xlane.xlu0 %681 }
 0x25e   :  { %v10298_v28 = vsub.f32 %v10104_v55, %v756_v9  ;;  %v757_v15 = vmul.f32 0.015625, %v682_v35  ;;  %v819_v12 = vmul.f32 %v10292_v29, %v10292_v29  ;;  %v864_v53 = vsel %vm406_vm1, %v818_v17, 0.0 }
 0x25f   :  { %v685_v54 = vpop.xlane.xlu1 %684 }
 0x260   :  { %v10304_v33 = vsub.f32 %v10107_v58, %v757_v15  ;;  %v758_v62 = vmul.f32 0.015625, %v685_v54  ;;  %v867_v1 = vsel %vm406_vm1, %v819_v12, 0.0  ;;  %v820_v40 = vmul.f32 %v10298_v28, %v10298_v28 }
 0x261   :  { %865 = vadd.xlane.f32.xlu1 %v864_v53  ;;  %868 = vadd.xlane.f32.xlu0 %v867_v1  ;;  %v688_v55 = vpop.xlane.xlu0 %687 }
 0x262   :  { %v10310_v34 = vsub.f32 %v10112_v63, %v758_v62  ;;  %v759_v20 = vmul.f32 0.015625, %v688_v55  ;;  %v821_v48 = vmul.f32 %v10304_v33, %v10304_v33  ;;  %v870_v58 = vsel %vm406_vm1, %v820_v40, 0.0 }
 0x263   :  { %v691_v8 = vpop.xlane.xlu1 %690 }
 0x264   :  { %v10316_v50 = vsub.f32 %v10123_v11, %v759_v20  ;;  %v760_v52 = vmul.f32 0.015625, %v691_v8  ;;  %v873_v30 = vsel %vm406_vm1, %v821_v48, 0.0  ;;  %v822_v0 = vmul.f32 %v10310_v34, %v10310_v34 }
 0x265   :  { %871 = vadd.xlane.f32.xlu1 %v870_v58  ;;  %874 = vadd.xlane.f32.xlu0 %v873_v30  ;;  %v694_v63 = vpop.xlane.xlu0 %693 }
 0x266   :  { %v10322_v22 = vsub.f32 %v10128_v25, %v760_v52  ;;  %v761_v24 = vmul.f32 0.015625, %v694_v63  ;;  %v823_v61 = vmul.f32 %v10316_v50, %v10316_v50  ;;  %v876_v11 = vsel %vm406_vm1, %v822_v0, 0.0 }
 0x267   :  { %v697_v51 = vpop.xlane.xlu1 %696 }
 0x268   :  { %v10328_v38 = vsub.f32 %v10131_v16, %v761_v24  ;;  %v762_v4 = vmul.f32 0.015625, %v697_v51  ;;  %v879_v26 = vsel %vm406_vm1, %v823_v61, 0.0  ;;  %v824_v45 = vmul.f32 %v10322_v22, %v10322_v22 }
 0x269   :  { %877 = vadd.xlane.f32.xlu1 %v876_v11  ;;  %880 = vadd.xlane.f32.xlu0 %v879_v26  ;;  %v700_v25 = vpop.xlane.xlu0 %699 }
 0x26a   :  { %v10334_v42 = vsub.f32 %v10136_v18, %v762_v4  ;;  %v763_v3 = vmul.f32 0.015625, %v700_v25  ;;  %v825_v31 = vmul.f32 %v10328_v38, %v10328_v38  ;;  %v882_v16 = vsel %vm406_vm1, %v824_v45, 0.0 }
 0x26b   :  { %v703_v9 = vpop.xlane.xlu1 %702 }
 0x26c   :  { %v10340_v27 = vsub.f32 %v10147_v43, %v763_v3  ;;  %v764_v17 = vmul.f32 0.015625, %v703_v9  ;;  %v885_v35 = vsel %vm406_vm1, %v825_v31, 0.0  ;;  %v826_v15 = vmul.f32 %v10334_v42, %v10334_v42  ;;  %v9215_v31 = vld [vmem:[%s15277_s2 + $0x18] sm:$0xff]  }
 0x26d   :  { %883 = vadd.xlane.f32.xlu1 %v882_v16  ;;  %886 = vadd.xlane.f32.xlu0 %v885_v35  ;;  %v706_v18 = vpop.xlane.xlu0 %705 }
 0x26e   :  { %v10346_v12 = vsub.f32 %v10152_v39, %v764_v17  ;;  %v765_v54 = vmul.f32 0.015625, %v706_v18  ;;  %v827_v53 = vmul.f32 %v10340_v27, %v10340_v27  ;;  %v888_v43 = vsel %vm406_vm1, %v826_v15, 0.0  ;;  %8685 = vmatprep.subr.bf16.mxu0 %v9215_v31 }
 0x26f   :  { %v709_v62 = vpop.xlane.xlu1 %708  ;;  %8686 = vmatpush3.bf16.msra.mxu0 %v9215_v31 }
 0x270   :  { %v10352_v1 = vsub.f32 %v10155_v36, %v765_v54  ;;  %v766_v40 = vmul.f32 0.015625, %v709_v62  ;;  %v891_v55 = vsel %vm406_vm1, %v827_v53, 0.0  ;;  %v828_v20 = vmul.f32 %v10346_v12, %v10346_v12 }
 0x271   :  { %889 = vadd.xlane.f32.xlu1 %v888_v43  ;;  %892 = vadd.xlane.f32.xlu0 %v891_v55  ;;  %v712_v39 = vpop.xlane.xlu0 %711 }
 0x272   :  { %v10358_v48 = vsub.f32 %v10160_v37, %v766_v40  ;;  %v767_v8 = vmul.f32 0.015625, %v712_v39  ;;  %v829_v58 = vmul.f32 %v10352_v1, %v10352_v1  ;;  %v894_v36 = vsel %vm406_vm1, %v828_v20, 0.0 }
 0x273   :  { %v715_v52 = vpop.xlane.xlu1 %714 }
 0x274   :  { %v10364_v30 = vsub.f32 %v10171_v7, %v767_v8  ;;  %v768_v0 = vmul.f32 0.015625, %v715_v52  ;;  %v897_v63 = vsel %vm406_vm1, %v829_v58, 0.0  ;;  %v830_v24 = vmul.f32 %v10358_v48, %v10358_v48 }
 0x275   :  { %895 = vadd.xlane.f32.xlu1 %v894_v36  ;;  %898 = vadd.xlane.f32.xlu0 %v897_v63  ;;  %v718_v37 = vpop.xlane.xlu0 %717 }
 0x276   :  { %v10370_v61 = vsub.f32 %v10176_v49, %v768_v0  ;;  %v769_v51 = vmul.f32 0.015625, %v718_v37  ;;  %v831_v11 = vmul.f32 %v10364_v30, %v10364_v30  ;;  %v900_v7 = vsel %vm406_vm1, %v830_v24, 0.0 }
 0x277   :  { %v721_v4 = vpop.xlane.xlu1 %720 }
 0x278   :  { %v10376_v26 = vsub.f32 %v10179_v46, %v769_v51  ;;  %v770_v45 = vmul.f32 0.015625, %v721_v4  ;;  %v903_v25 = vsel %vm406_vm1, %v831_v11, 0.0  ;;  %v832_v3 = vmul.f32 %v10370_v61, %v10370_v61 }
 0x279   :  { %901 = vadd.xlane.f32.xlu1 %v900_v7  ;;  %904 = vadd.xlane.f32.xlu0 %v903_v25  ;;  %v724_v49 = vpop.xlane.xlu0 %723 }
 0x27a   :  { %v10385_v9 = vsub.f32 %v10184_v47, %v770_v45  ;;  %v771_v16 = vmul.f32 0.015625, %v724_v49  ;;  %v833_v46 = vmul.f32 %v10376_v26, %v10376_v26  ;;  %v906_v35 = vsel %vm406_vm1, %v832_v3, 0.0 }
 0x27b   :  { %v727_v17 = vpop.xlane.xlu1 %726 }
 0x27c   :  { %v10391_v15 = vsub.f32 %v10195_v32, %v771_v16  ;;  %v772_v18 = vmul.f32 0.015625, %v727_v17  ;;  %v909_v54 = vsel %vm406_vm1, %v833_v46, 0.0  ;;  %v834_v53 = vmul.f32 %v10385_v9, %v10385_v9 }
 0x27d   :  { %907 = vadd.xlane.f32.xlu1 %v906_v35  ;;  %910 = vadd.xlane.f32.xlu0 %v909_v54  ;;  %v730_v47 = vpop.xlane.xlu0 %729  ;;  %v9217_v54 = vld [vmem:[%s15274_s1 + $0x90] sm:$0xff]  }
 0x27e   :  { %v10397_v62 = vsub.f32 %v10200_v59, %v772_v18  ;;  %v773_v43 = vmul.f32 0.015625, %v730_v47  ;;  %v835_v40 = vmul.f32 %v10391_v15, %v10391_v15  ;;  %v912_v32 = vsel %vm406_vm1, %v834_v53, 0.0  ;;  %v9218_v53 = vld [vmem:[%s15274_s1 + $0x98] sm:$0xff]   ;;  %v9219_v47 = vld [vmem:[%s15274_s1 + $0xa0] sm:$0xff]  }
 0x27f   :  { %v733_v55 = vpop.xlane.xlu1 %732 }
 0x280   :  { %v10403_v20 = vsub.f32 %v10203_v56, %v773_v43  ;;  %v774_v39 = vmul.f32 0.015625, %v733_v55  ;;  %v915_v8 = vsel %vm406_vm1, %v835_v40, 0.0  ;;  %v836_v58 = vmul.f32 %v10397_v62, %v10397_v62  ;;  %v9220_v43 = vld [vmem:[%s15274_s1 + $0xa8] sm:$0xff]   ;;  %v9221_v40 = vld [vmem:[%s15274_s1 + $0xb0] sm:$0xff]   ;;  %v9222_v55 = vld [vmem:[%s15274_s1 + $0xb8] sm:$0xff]  }
 0x281   :  { %913 = vadd.xlane.f32.xlu1 %v912_v32  ;;  %916 = vadd.xlane.f32.xlu0 %v915_v8  ;;  %v736_v59 = vpop.xlane.xlu0 %735 }
 0x282   :  { %v10409_v52 = vsub.f32 %v10208_v57, %v774_v39  ;;  %v775_v36 = vmul.f32 0.015625, %v736_v59  ;;  %v837_v0 = vmul.f32 %v10403_v20, %v10403_v20  ;;  %v918_v56 = vsel %vm406_vm1, %v836_v58, 0.0 }
 0x283   :  { %v739_v63 = vpop.xlane.xlu1 %738 }
 0x284   :  { %v10415_v24 = vsub.f32 %v10219_v60, %v775_v36  ;;  %v776_v37 = vmul.f32 0.015625, %v739_v63  ;;  %v921_v51 = vsel %vm406_vm1, %v837_v0, 0.0  ;;  %v838_v11 = vmul.f32 %v10409_v52, %v10409_v52 }
 0x285   :  { %919 = vadd.xlane.f32.xlu1 %v918_v56  ;;  %922 = vadd.xlane.f32.xlu0 %v921_v51  ;;  %v742_v57 = vpop.xlane.xlu0 %741 }
 0x286   :  { %v10421_v4 = vsub.f32 %v10224_v5, %v776_v37  ;;  %v777_v7 = vmul.f32 0.015625, %v742_v57  ;;  %v839_v45 = vmul.f32 %v10415_v24, %v10415_v24  ;;  %v924_v60 = vsel %vm406_vm1, %v838_v11, 0.0 }
 0x287   :  { %v745_v25 = vpop.xlane.xlu1 %744 }
 0x288   :  { %v10427_v3 = vsub.f32 %v10227_v2, %v777_v7  ;;  %v778_v49 = vmul.f32 0.015625, %v745_v25  ;;  %v927_v31 = vsel %vm406_vm1, %v839_v45, 0.0  ;;  %v840_v16 = vmul.f32 %v10421_v4, %v10421_v4 }
 0x289   :  { %925 = vadd.xlane.f32.xlu1 %v924_v60  ;;  %928 = vadd.xlane.f32.xlu0 %v927_v31 }
 0x28a   :  { %v10433_v5 = vsub.f32 %v10232_v44, %v778_v49  ;;  %v841_v46 = vmul.f32 %v10427_v3, %v10427_v3  ;;  %v930_v17 = vsel %vm406_vm1, %v840_v16, 0.0  ;;  %v9216_v44 = vld [vmem:[%s15274_s1 + $0x88] sm:$0xff]  }
 0x28b   :  { %8719 = vmatprep.subr.bf16.mxu1 %v9216_v44 }
 0x28c   :  { %v933_v35 = vsel %vm406_vm1, %v841_v46, 0.0  ;;  %v842_v2 = vmul.f32 %v10433_v5, %v10433_v5  ;;  %8720 = vmatpush3.bf16.msra.mxu1 %v9216_v44  ;;  %v10467_v44 = vld [vmem:[%s15276_s3 + $0x3] ss:$0 sm:$0xff] }
 0x28d   :  { %931 = vadd.xlane.f32.xlu1 %v930_v17  ;;  %934 = vadd.xlane.f32.xlu0 %v933_v35 }
 0x28e   :  { %v936_v18 = vsel %vm406_vm1, %v842_v2, 0.0  ;;  %8721 = vmatprep.subr.bf16.mxu1 %v9217_v54 }
 0x290   :  { %8722 = vmatpush3.bf16.msra.mxu1 %v9217_v54 }
 0x291   :  { %937 = vadd.xlane.f32.xlu1 %v936_v18  ;;  %8723 = vmatprep.subr.bf16.mxu1 %v9218_v53 }
 0x294   :  { %8724 = vmatpush3.bf16.msra.mxu1 %v9218_v53 }
 0x295   :  { %8725 = vmatprep.subr.bf16.mxu1 %v9219_v47 }
 0x298   :  { %8726 = vmatpush3.bf16.msra.mxu1 %v9219_v47 }
 0x299   :  { %8727 = vmatprep.subr.bf16.mxu1 %v9220_v43 }
 0x29c   :  { %8728 = vmatpush3.bf16.msra.mxu1 %v9220_v43 }
 0x29d   :  { %8729 = vmatprep.subr.bf16.mxu1 %v9221_v40 }
 0x2a0   :  { %8730 = vmatpush3.bf16.msra.mxu1 %v9221_v40 }
 0x2a1   :  { %8731 = vmatprep.subr.bf16.mxu1 %v9222_v55 }
 0x2a4   :  { %8732 = vmatpush3.bf16.msra.mxu1 %v9222_v55 }
 0x2de   :  { %v845_v32 = vpop.xlane.xlu0 %844 }
 0x2df   :  { %v939_v39 = vmul.f32 0.015625, %v845_v32 }
 0x2e1   :  { %v971_v8 = vadd.f32 1e-05, %v939_v39 }
 0x2e2   :  { %v848_v58 = vpop.xlane.xlu1 %847  ;;  %v851_v59 = vpop.xlane.xlu0 %850 }
 0x2e3   :  { %9276 = vrsqrt.f32 %v971_v8  ;;  %v940_v36 = vmul.f32 0.015625, %v848_v58  ;;  %v941_v0 = vmul.f32 0.015625, %v851_v59 }
 0x2e5   :  { %v972_v63 = vadd.f32 1e-05, %v940_v36  ;;  %v973_v56 = vadd.f32 1e-05, %v941_v0 }
 0x2e6   :  { %v854_v37 = vpop.xlane.xlu1 %853  ;;  %v857_v51 = vpop.xlane.xlu0 %856 }
 0x2e7   :  { %9278 = vrsqrt.f32 %v972_v63  ;;  %v942_v11 = vmul.f32 0.015625, %v854_v37  ;;  %v943_v57 = vmul.f32 0.015625, %v857_v51 }
 0x2e8   :  { %9280 = vrsqrt.f32 %v973_v56 }
 0x2e9   :  { %v974_v7 = vadd.f32 1e-05, %v942_v11  ;;  %v975_v45 = vadd.f32 1e-05, %v943_v57 }
 0x2ea   :  { %v860_v25 = vpop.xlane.xlu1 %859  ;;  %v863_v60 = vpop.xlane.xlu0 %862 }
 0x2eb   :  { %9282 = vrsqrt.f32 %v974_v7  ;;  %v944_v49 = vmul.f32 0.015625, %v860_v25  ;;  %v945_v31 = vmul.f32 0.015625, %v863_v60 }
 0x2ec   :  { %9284 = vrsqrt.f32 %v975_v45 }
 0x2ed   :  { %v9277_v16 = vpop.eup %9276  ;;  %v976_v46 = vadd.f32 1e-05, %v944_v49  ;;  %v977_v17 = vadd.f32 1e-05, %v945_v31 }
 0x2ee   :  { %v866_v35 = vpop.xlane.xlu1 %865  ;;  %v869_v2 = vpop.xlane.xlu0 %868  ;;  %v1035_v18 = vmul.f32 %v9277_v16, %v10251_v14  ;;  %v10474_v14 = vld [vmem:[%s15276_s3 + $0x4] ss:$0 sm:$0xff] }
 0x2ef   :  { %9286 = vrsqrt.f32 %v976_v46  ;;  %v946_v54 = vmul.f32 0.015625, %v866_v35  ;;  %v947_v53 = vmul.f32 0.015625, %v869_v2 }
 0x2f0   :  { %9288 = vrsqrt.f32 %v977_v17  ;;  %v1071_v58 = vmul.f32 %v10467_v44, %v1035_v18 }
 0x2f1   :  { %v9279_v47 = vpop.eup %9278  ;;  %v978_v43 = vadd.f32 1e-05, %v946_v54  ;;  %v979_v40 = vadd.f32 1e-05, %v947_v53 }
 0x2f2   :  { %v9281_v55 = vpop.eup %9280  ;;  %v872_v32 = vpop.xlane.xlu1 %871  ;;  %v1036_v8 = vmul.f32 %v9279_v47, %v10259_v13  ;;  %v10481_v25 = vadd.f32 %v10474_v14, %v1071_v58 }
 0x2f3   :  { %v875_v39 = vpop.xlane.xlu0 %874  ;;  %v1037_v59 = vmul.f32 %v9281_v55, %v10248_v10  ;;  %9290 = vrsqrt.f32 %v978_v43  ;;  %v948_v36 = vmul.f32 0.015625, %v872_v32 }
 0x2f4   :  { %v949_v0 = vmul.f32 0.015625, %v875_v39  ;;  %9292 = vrsqrt.f32 %v979_v40  ;;  %v1072_v63 = vmul.f32 %v10467_v44, %v1036_v8 }
 0x2f5   :  { %v9283_v56 = vpop.eup %9282  ;;  %v980_v37 = vadd.f32 1e-05, %v948_v36  ;;  %v1073_v13 = vmul.f32 %v10467_v44, %v1037_v59 }
 0x2f6   :  { %v981_v51 = vadd.f32 1e-05, %v949_v0  ;;  %v9285_v11 = vpop.eup %9284  ;;  %v1038_v57 = vmul.f32 %v9283_v56, %v10256_v21  ;;  %v878_v7 = vpop.xlane.xlu1 %877  ;;  %v10484_v10 = vadd.f32 %v10474_v14, %v1072_v63 }
 0x2f7   :  { %v881_v45 = vpop.xlane.xlu0 %880  ;;  %9294 = vrsqrt.f32 %v980_v37  ;;  %v950_v60 = vmul.f32 0.015625, %v878_v7  ;;  %v1039_v46 = vmul.f32 %v9285_v11, %v10269_v6  ;;  %v10491_v18 = vadd.f32 %v10474_v14, %v1073_v13 }
 0x2f8   :  { %v951_v49 = vmul.f32 0.015625, %v881_v45  ;;  %v1074_v31 = vmul.f32 %v10467_v44, %v1038_v57  ;;  %9296 = vrsqrt.f32 %v981_v51  ;;  %v1147_v16 = vpack.c.bf16 %v10484_v10, %v10481_v25 }
 0x2f9   :  { %v9287_v21 = vpop.eup %9286  ;;  %v982_v17 = vadd.f32 1e-05, %v950_v60  ;;  %v1075_v40 = vmul.f32 %v10467_v44, %v1039_v46 }
 0x2fa   :  { %v983_v35 = vadd.f32 1e-05, %v951_v49  ;;  %v9289_v2 = vpop.eup %9288  ;;  %v10494_v54 = vadd.f32 %v10474_v14, %v1074_v31  ;;  %v884_v53 = vpop.xlane.xlu1 %883  ;;  %8687 = vmatprep.mubr.msk.bf16.mxu0 %vm406_vm1, %v1147_v16  ;;  %v1040_v43 = vmul.f32 %v9287_v21, %v10274_v23 }
 0x2fb   :  { %v887_v47 = vpop.xlane.xlu0 %886  ;;  %9298 = vrsqrt.f32 %v982_v17  ;;  %v952_v6 = vmul.f32 0.015625, %v884_v53  ;;  %v1041_v32 = vmul.f32 %v9289_v2, %v10280_v19  ;;  %v10505_v56 = vadd.f32 %v10474_v14, %v1075_v40 }
 0x2fc   :  { %v953_v55 = vmul.f32 0.015625, %v887_v47  ;;  %9300 = vrsqrt.f32 %v983_v35  ;;  %v1148_v39 = vpack.c.bf16 %v10494_v54, %v10491_v18  ;;  %v1076_v8 = vmul.f32 %v10467_v44, %v1040_v43 }
 0x2fd   :  { %v9291_v58 = vpop.eup %9290  ;;  %v984_v59 = vadd.f32 1e-05, %v952_v6  ;;  %v1077_v51 = vmul.f32 %v10467_v44, %v1041_v32 }
 0x2fe   :  { %v985_v36 = vadd.f32 1e-05, %v953_v55  ;;  %v9293_v0 = vpop.eup %9292  ;;  %v890_v63 = vpop.xlane.xlu1 %889  ;;  %8688 = vmatmul.mubr.msk.bf16.vlgmr.msra.gmra.mrb[32].mxu0 %vm406_vm1, %v1148_v39  ;;  %v10508_v37 = vadd.f32 %v10474_v14, %v1076_v8  ;;  %v1042_v19 = vmul.f32 %v9291_v58, %v10286_v41 }
 0x2ff   :  { %v893_v23 = vpop.xlane.xlu0 %892  ;;  %9302 = vrsqrt.f32 %v984_v59  ;;  %v954_v11 = vmul.f32 0.015625, %v890_v63  ;;  %v1043_v45 = vmul.f32 %v9293_v0, %v10292_v29  ;;  %v10518_v21 = vadd.f32 %v10474_v14, %v1077_v51 }
 0x300   :  { %v955_v13 = vmul.f32 0.015625, %v893_v23  ;;  %9304 = vrsqrt.f32 %v985_v36  ;;  %v1149_v57 = vpack.c.bf16 %v10508_v37, %v10505_v56  ;;  %v1078_v7 = vmul.f32 %v10467_v44, %v1042_v19 }
 0x301   :  { %v9295_v60 = vpop.eup %9294  ;;  %v986_v49 = vadd.f32 1e-05, %v954_v11  ;;  %v1079_v2 = vmul.f32 %v10467_v44, %v1043_v45 }
 0x302   :  { %v987_v31 = vadd.f32 1e-05, %v955_v13  ;;  %v9297_v16 = vpop.eup %9296  ;;  %v896_v46 = vpop.xlane.xlu1 %895  ;;  %8691 = vmatprep.mubr.msk.bf16.mxu0 %vm406_vm1, %v1149_v57  ;;  %v10521_v17 = vadd.f32 %v10474_v14, %v1078_v7  ;;  %v1044_v35 = vmul.f32 %v9295_v60, %v10298_v28 }
 0x303   :  { %v899_v41 = vpop.xlane.xlu0 %898  ;;  %9306 = vrsqrt.f32 %v986_v49  ;;  %v956_v29 = vmul.f32 0.015625, %v896_v46  ;;  %v1045_v47 = vmul.f32 %v9297_v16, %v10304_v33  ;;  %v10531_v58 = vadd.f32 %v10474_v14, %v1079_v2 }
 0x304   :  { %v957_v53 = vmul.f32 0.015625, %v899_v41  ;;  %9308 = vrsqrt.f32 %v987_v31  ;;  %v1150_v43 = vpack.c.bf16 %v10521_v17, %v10518_v21  ;;  %v1080_v40 = vmul.f32 %v10467_v44, %v1044_v35 }
 0x305   :  { %v9299_v6 = vpop.eup %9298  ;;  %v988_v55 = vadd.f32 1e-05, %v956_v29  ;;  %v1081_v36 = vmul.f32 %v10467_v44, %v1045_v47 }
 0x306   :  { %v989_v32 = vadd.f32 1e-05, %v957_v53  ;;  %v9301_v39 = vpop.eup %9300  ;;  %v902_v8 = vpop.xlane.xlu1 %901  ;;  %8692 = vmatmul.mubr.msk.bf16.gmra.mrb[36].mxu0 %vm406_vm1, %v1150_v43  ;;  %v10534_v59 = vadd.f32 %v10474_v14, %v1080_v40  ;;  %v1046_v33 = vmul.f32 %v9299_v6, %v10310_v34 }
 0x307   :  { %v905_v28 = vpop.xlane.xlu0 %904  ;;  %9310 = vrsqrt.f32 %v988_v55  ;;  %v958_v0 = vmul.f32 0.015625, %v902_v8  ;;  %v1047_v51 = vmul.f32 %v9301_v39, %v10316_v50  ;;  %v10544_v60 = vadd.f32 %v10474_v14, %v1081_v36 }
 0x308   :  { %v959_v63 = vmul.f32 0.015625, %v905_v28  ;;  %9312 = vrsqrt.f32 %v989_v32  ;;  %v1151_v23 = vpack.c.bf16 %v10534_v59, %v10531_v58  ;;  %v1082_v19 = vmul.f32 %v10467_v44, %v1046_v33 }
 0x309   :  { %v9303_v11 = vpop.eup %9302  ;;  %v990_v13 = vadd.f32 1e-05, %v958_v0  ;;  %v1083_v16 = vmul.f32 %v10467_v44, %v1047_v51 }
 0x30a   :  { %v991_v57 = vadd.f32 1e-05, %v959_v63  ;;  %v9305_v7 = vpop.eup %9304  ;;  %v908_v45 = vpop.xlane.xlu1 %907  ;;  %8695 = vmatprep.mubr.msk.bf16.mxu0 %vm406_vm1, %v1151_v23  ;;  %v10547_v49 = vadd.f32 %v10474_v14, %v1082_v19  ;;  %v1048_v31 = vmul.f32 %v9303_v11, %v10322_v22 }
 0x30b   :  { %v911_v34 = vpop.xlane.xlu0 %910  ;;  %9314 = vrsqrt.f32 %v990_v13  ;;  %v960_v50 = vmul.f32 0.015625, %v908_v45  ;;  %v1049_v41 = vmul.f32 %v9305_v7, %v10328_v38  ;;  %v10557_v6 = vadd.f32 %v10474_v14, %v1083_v16 }
 0x30c   :  { %v961_v46 = vmul.f32 0.015625, %v911_v34  ;;  %9316 = vrsqrt.f32 %v991_v57  ;;  %v1152_v35 = vpack.c.bf16 %v10547_v49, %v10544_v60  ;;  %v1084_v2 = vmul.f32 %v10467_v44, %v1048_v31 }
 0x30d   :  { %v9307_v29 = vpop.eup %9306  ;;  %v992_v53 = vadd.f32 1e-05, %v960_v50  ;;  %v1085_v32 = vmul.f32 %v10467_v44, %v1049_v41 }
 0x30e   :  { %v993_v47 = vadd.f32 1e-05, %v961_v46  ;;  %v9309_v43 = vpop.eup %9308  ;;  %v914_v40 = vpop.xlane.xlu1 %913  ;;  %8696 = vmatmul.mubr.msk.bf16.gmra.mrb[40].mxu0 %vm406_vm1, %v1152_v35  ;;  %v10560_v55 = vadd.f32 %v10474_v14, %v1084_v2  ;;  %v1050_v38 = vmul.f32 %v9307_v29, %v10334_v42 }
 0x30f   :  { %v917_v22 = vpop.xlane.xlu0 %916  ;;  %9318 = vrsqrt.f32 %v992_v53  ;;  %v962_v39 = vmul.f32 0.015625, %v914_v40  ;;  %v1051_v36 = vmul.f32 %v9309_v43, %v10340_v27  ;;  %v10570_v11 = vadd.f32 %v10474_v14, %v1085_v32 }
 0x310   :  { %v963_v8 = vmul.f32 0.015625, %v917_v22  ;;  %9320 = vrsqrt.f32 %v993_v47  ;;  %v1153_v28 = vpack.c.bf16 %v10560_v55, %v10557_v6  ;;  %v1086_v33 = vmul.f32 %v10467_v44, %v1050_v38 }
 0x311   :  { %v9311_v0 = vpop.eup %9310  ;;  %v994_v63 = vadd.f32 1e-05, %v962_v39  ;;  %v1087_v7 = vmul.f32 %v10467_v44, %v1051_v36 }
 0x312   :  { %v995_v23 = vadd.f32 1e-05, %v963_v8  ;;  %v9313_v19 = vpop.eup %9312  ;;  %v920_v51 = vpop.xlane.xlu1 %919  ;;  %8699 = vmatprep.mubr.msk.bf16.mxu0 %vm406_vm1, %v1153_v28  ;;  %v10573_v13 = vadd.f32 %v10474_v14, %v1086_v33  ;;  %v1052_v57 = vmul.f32 %v9311_v0, %v10346_v12 }
 0x313   :  { %v923_v42 = vpop.xlane.xlu0 %922  ;;  %9322 = vrsqrt.f32 %v994_v63  ;;  %v964_v27 = vmul.f32 0.015625, %v920_v51  ;;  %v1053_v34 = vmul.f32 %v9313_v19, %v10352_v1  ;;  %v10583_v29 = vadd.f32 %v10474_v14, %v1087_v7 }
 0x314   :  { %v965_v45 = vmul.f32 0.015625, %v923_v42  ;;  %9324 = vrsqrt.f32 %v995_v23  ;;  %v1154_v31 = vpack.c.bf16 %v10573_v13, %v10570_v11  ;;  %v1088_v16 = vmul.f32 %v10467_v44, %v1052_v57 }
 0x315   :  { %v9315_v50 = vpop.eup %9314  ;;  %v996_v46 = vadd.f32 1e-05, %v964_v27  ;;  %v1089_v47 = vmul.f32 %v10467_v44, %v1053_v34 }
 0x316   :  { %v997_v41 = vadd.f32 1e-05, %v965_v45  ;;  %v9317_v35 = vpop.eup %9316  ;;  %v926_v2 = vpop.xlane.xlu1 %925  ;;  %8700 = vmatmul.mubr.msk.bf16.gmra.mrb[44].mxu0 %vm406_vm1, %v1154_v31  ;;  %v10586_v53 = vadd.f32 %v10474_v14, %v1088_v16  ;;  %v1054_v1 = vmul.f32 %v9315_v50, %v10358_v48 }
 0x317   :  { %v929_v12 = vpop.xlane.xlu0 %928  ;;  %9326 = vrsqrt.f32 %v996_v46  ;;  %v966_v43 = vmul.f32 0.015625, %v926_v2  ;;  %v1055_v32 = vmul.f32 %v9317_v35, %v10364_v30  ;;  %v10596_v0 = vadd.f32 %v10474_v14, %v1089_v47 }
 0x318   :  { %v967_v40 = vmul.f32 0.015625, %v929_v12  ;;  %9328 = vrsqrt.f32 %v997_v41  ;;  %v1155_v22 = vpack.c.bf16 %v10586_v53, %v10583_v29  ;;  %v1090_v38 = vmul.f32 %v10467_v44, %v1054_v1 }
 0x319   :  { %v9319_v39 = vpop.eup %9318  ;;  %v998_v8 = vadd.f32 1e-05, %v966_v43  ;;  %v1091_v19 = vmul.f32 %v10467_v44, %v1055_v32 }
 0x31a   :  { %v999_v28 = vadd.f32 1e-05, %v967_v40  ;;  %v9321_v33 = vpop.eup %9320  ;;  %v932_v36 = vpop.xlane.xlu1 %931  ;;  %8703 = vmatprep.mubr.msk.bf16.mxu0 %vm406_vm1, %v1155_v22  ;;  %v10599_v63 = vadd.f32 %v10474_v14, %v1090_v38  ;;  %v1056_v23 = vmul.f32 %v9319_v39, %v10370_v61 }
 0x31b   :  { %v935_v48 = vpop.xlane.xlu0 %934  ;;  %9330 = vrsqrt.f32 %v998_v8  ;;  %v968_v30 = vmul.f32 0.015625, %v932_v36  ;;  %v1057_v42 = vmul.f32 %v9321_v33, %v10376_v26  ;;  %v10609_v61 = vadd.f32 %v10474_v14, %v1091_v19 }
 0x31c   :  { %v969_v51 = vmul.f32 0.015625, %v935_v48  ;;  %9332 = vrsqrt.f32 %v999_v28  ;;  %v1156_v57 = vpack.c.bf16 %v10599_v63, %v10596_v0  ;;  %v1092_v7 = vmul.f32 %v10467_v44, %v1056_v23 }
 0x31d   :  { %v9323_v27 = vpop.eup %9322  ;;  %v1000_v45 = vadd.f32 1e-05, %v968_v30  ;;  %v1093_v46 = vmul.f32 %v10467_v44, %v1057_v42 }
 0x31e   :  { %v1001_v34 = vadd.f32 1e-05, %v969_v51  ;;  %v9325_v31 = vpop.eup %9324  ;;  %v938_v16 = vpop.xlane.xlu1 %937  ;;  %8704 = vmatmul.mubr.msk.bf16.gmra.mrb[48].mxu0 %vm406_vm1, %v1156_v57  ;;  %v10612_v50 = vadd.f32 %v10474_v14, %v1092_v7  ;;  %v1058_v26 = vmul.f32 %v9323_v27, %v10385_v9 }
 0x31f   :  { %9334 = vrsqrt.f32 %v1000_v45  ;;  %v970_v41 = vmul.f32 0.015625, %v938_v16  ;;  %v1059_v35 = vmul.f32 %v9325_v31, %v10391_v15  ;;  %v10622_v40 = vadd.f32 %v10474_v14, %v1093_v46 }
 0x320   :  { %9336 = vrsqrt.f32 %v1001_v34  ;;  %v1157_v2 = vpack.c.bf16 %v10612_v50, %v10609_v61  ;;  %v1094_v12 = vmul.f32 %v10467_v44, %v1058_v26 }
 0x321   :  { %v9327_v1 = vpop.eup %9326  ;;  %v1002_v47 = vadd.f32 1e-05, %v970_v41  ;;  %v1095_v15 = vmul.f32 %v10467_v44, %v1059_v35 }
 0x322   :  { %v9329_v43 = vpop.eup %9328  ;;  %8707 = vmatprep.mubr.msk.bf16.mxu0 %vm406_vm1, %v1157_v2  ;;  %v10625_v9 = vadd.f32 %v10474_v14, %v1094_v12  ;;  %v1060_v22 = vmul.f32 %v9327_v1, %v10397_v62 }
 0x323   :  { %9338 = vrsqrt.f32 %v1002_v47  ;;  %v1061_v38 = vmul.f32 %v9329_v43, %v10403_v20  ;;  %v10635_v33 = vadd.f32 %v10474_v14, %v1095_v15 }
 0x324   :  { %v1158_v32 = vpack.c.bf16 %v10625_v9, %v10622_v40  ;;  %v1096_v39 = vmul.f32 %v10467_v44, %v1060_v22 }
 0x325   :  { %v9331_v8 = vpop.eup %9330  ;;  %v1097_v48 = vmul.f32 %v10467_v44, %v1061_v38 }
 0x326   :  { %v9333_v28 = vpop.eup %9332  ;;  %8708 = vmatmul.mubr.msk.bf16.gmra.mrb[52].mxu0 %vm406_vm1, %v1158_v32  ;;  %v10638_v36 = vadd.f32 %v10474_v14, %v1096_v39  ;;  %v1062_v62 = vmul.f32 %v9331_v8, %v10409_v52 }
 0x327   :  { %v1063_v20 = vmul.f32 %v9333_v28, %v10415_v24  ;;  %v10648_v42 = vadd.f32 %v10474_v14, %v1097_v48 }
 0x328   :  { %v1159_v23 = vpack.c.bf16 %v10638_v36, %v10635_v33  ;;  %v1098_v19 = vmul.f32 %v10467_v44, %v1062_v62 }
 0x329   :  { %v9335_v30 = vpop.eup %9334  ;;  %v1099_v7 = vmul.f32 %v10467_v44, %v1063_v20 }
 0x32a   :  { %v9337_v51 = vpop.eup %9336  ;;  %8711 = vmatprep.mubr.msk.bf16.mxu0 %vm406_vm1, %v1159_v23  ;;  %v10651_v57 = vadd.f32 %v10474_v14, %v1098_v19  ;;  %v1064_v52 = vmul.f32 %v9335_v30, %v10421_v4 }
 0x32b   :  { %v1065_v24 = vmul.f32 %v9337_v51, %v10427_v3  ;;  %v10661_v31 = vadd.f32 %v10474_v14, %v1099_v7 }
 0x32c   :  { %v1160_v27 = vpack.c.bf16 %v10651_v57, %v10648_v42  ;;  %v1100_v45 = vmul.f32 %v10467_v44, %v1064_v52 }
 0x32d   :  { %v9339_v34 = vpop.eup %9338  ;;  %v1101_v26 = vmul.f32 %v10467_v44, %v1065_v24 }
 0x32e   :  { %8712 = vmatmul.mubr.msk.bf16.gmra.mrb[56].mxu0 %vm406_vm1, %v1160_v27  ;;  %v10664_v16 = vadd.f32 %v10474_v14, %v1100_v45  ;;  %v1066_v4 = vmul.f32 %v9339_v34, %v10433_v5  ;;  %v9223_v5 = vld [vmem:[%s15274_s1 + $0xc0] sm:$0xff]  }
 0x32f   :  { %v10673_v41 = vadd.f32 %v10474_v14, %v1101_v26  ;;  %8733 = vmatprep.subr.bf16.mxu1 %v9223_v5 }
 0x330   :  { %v1161_v3 = vpack.c.bf16 %v10664_v16, %v10661_v31  ;;  %v1102_v46 = vmul.f32 %v10467_v44, %v1066_v4  ;;  %8734 = vmatpush3.bf16.msra.mxu1 %v9223_v5  ;;  %v10687_v44 = vld [vmem:[%s15276_s3 + $0x5] ss:$0 sm:$0xff] }
 0x332   :  { %8715 = vmatprep.mubr.msk.bf16.mxu0 %vm406_vm1, %v1161_v3  ;;  %v10676_v35 = vadd.f32 %v10474_v14, %v1102_v46 }
 0x334   :  { %v1162_v2 = vpack.c.bf16 %v10676_v35, %v10673_v41 }
 0x336   :  { %8716 = vmatmul.mubr.msk.bf16.gmra.mrb[60].mxu0 %vm406_vm1, %v1162_v2 }
 0x3d1   :  { %v8689_v12 = vpop.f32.mrb[32].mxu0 }
 0x3d2   :  { %v1283_v14 = vadd.f32 %v8689_v12, %v10687_v44  ;;  %v1274_v1 = vpop.f32.mrb[33].mxu0 }
 0x3d3   :  { %v1275_v47 = vadd.f32 %v10687_v44, %v1274_v1  ;;  %v8690_v43 = vpop.f32.mrb[34].mxu0 }
 0x3d4   :  { %v1286_v22 = vadd.f32 %v8690_v43, %v10687_v44  ;;  %v1277_v15 = vpop.f32.mrb[35].mxu0  ;;  %v1403_v32 = vmax.f32 %v1283_v14, 0.0 }
 0x3d5   :  { %v1278_v38 = vadd.f32 %v10687_v44, %v1277_v15  ;;  %v1401_v8 = vmax.f32 %v1275_v47, 0.0 }
 0x3d6   :  { %v1404_v39 = vmax.f32 %v1286_v22, 0.0 }
 0x3d7   :  { %v1402_v28 = vmax.f32 %v1278_v38, 0.0 }
 0x3d8   :  { %v1450_v62 = vpack.c.bf16 %v1404_v39, %v1403_v32 }
 0x3d9   :  { %v1449_v48 = vpack.c.bf16 %v1402_v28, %v1401_v8  ;;  %v8693_v20 = vpop.f32.mrb[36].mxu0 }
 0x3da   :  { %v1299_v23 = vadd.f32 %v8693_v20, %v10687_v44  ;;  %v1290_v19 = vpop.f32.mrb[37].mxu0 }
 0x3db   :  { %v1291_v30 = vadd.f32 %v10687_v44, %v1290_v19  ;;  %v8694_v51 = vpop.f32.mrb[38].mxu0  ;;  %8735 = vmatprep.mubr.bf16.mxu1 %v1449_v48 }
 0x3dc   :  { %v1302_v52 = vadd.f32 %v8694_v51, %v10687_v44  ;;  %v1293_v7 = vpop.f32.mrb[39].mxu0  ;;  %8736 = vmatmul.mubr.bf16.vlgmr.msra.gmra.mrb[32].mxu1 %v1450_v62  ;;  %v1407_v27 = vmax.f32 %v1299_v23, 0.0 }
 0x3dd   :  { %v1294_v24 = vadd.f32 %v10687_v44, %v1293_v7  ;;  %v1405_v34 = vmax.f32 %v1291_v30, 0.0 }
 0x3de   :  { %v1408_v45 = vmax.f32 %v1302_v52, 0.0 }
 0x3df   :  { %v1406_v4 = vmax.f32 %v1294_v24, 0.0 }
 0x3e0   :  { %v1452_v26 = vpack.c.bf16 %v1408_v45, %v1407_v27 }
 0x3e1   :  { %v1451_v3 = vpack.c.bf16 %v1406_v4, %v1405_v34  ;;  %v8697_v46 = vpop.f32.mrb[40].mxu0 }
 0x3e2   :  { %v1315_v2 = vadd.f32 %v8697_v46, %v10687_v44  ;;  %v1306_v5 = vpop.f32.mrb[41].mxu0 }
 0x3e3   :  { %v1307_v12 = vadd.f32 %v10687_v44, %v1306_v5  ;;  %v8698_v14 = vpop.f32.mrb[42].mxu0  ;;  %8739 = vmatprep.mubr.bf16.mxu1 %v1451_v3 }
 0x3e4   :  { %v1318_v1 = vadd.f32 %v8698_v14, %v10687_v44  ;;  %v1309_v47 = vpop.f32.mrb[43].mxu0  ;;  %8740 = vmatmul.mubr.bf16.gmra.mrb[36].mxu1 %v1452_v26  ;;  %v1411_v22 = vmax.f32 %v1315_v2, 0.0 }
 0x3e5   :  { %v1310_v43 = vadd.f32 %v10687_v44, %v1309_v47  ;;  %v1409_v38 = vmax.f32 %v1307_v12, 0.0 }
 0x3e6   :  { %v1412_v15 = vmax.f32 %v1318_v1, 0.0 }
 0x3e7   :  { %v1410_v32 = vmax.f32 %v1310_v43, 0.0 }
 0x3e8   :  { %v1454_v39 = vpack.c.bf16 %v1412_v15, %v1411_v22 }
 0x3e9   :  { %v1453_v8 = vpack.c.bf16 %v1410_v32, %v1409_v38  ;;  %v8701_v28 = vpop.f32.mrb[44].mxu0 }
 0x3ea   :  { %v1331_v62 = vadd.f32 %v8701_v28, %v10687_v44  ;;  %v1322_v48 = vpop.f32.mrb[45].mxu0 }
 0x3eb   :  { %v1323_v20 = vadd.f32 %v10687_v44, %v1322_v48  ;;  %v8702_v23 = vpop.f32.mrb[46].mxu0  ;;  %8743 = vmatprep.mubr.bf16.mxu1 %v1453_v8 }
 0x3ec   :  { %v1334_v19 = vadd.f32 %v8702_v23, %v10687_v44  ;;  %v1325_v30 = vpop.f32.mrb[47].mxu0  ;;  %8744 = vmatmul.mubr.bf16.gmra.mrb[40].mxu1 %v1454_v39  ;;  %v1415_v52 = vmax.f32 %v1331_v62, 0.0 }
 0x3ed   :  { %v1326_v51 = vadd.f32 %v10687_v44, %v1325_v30  ;;  %v1413_v24 = vmax.f32 %v1323_v20, 0.0 }
 0x3ee   :  { %v1416_v7 = vmax.f32 %v1334_v19, 0.0 }
 0x3ef   :  { %v1414_v27 = vmax.f32 %v1326_v51, 0.0 }
 0x3f0   :  { %v1456_v45 = vpack.c.bf16 %v1416_v7, %v1415_v52 }
 0x3f1   :  { %v1455_v34 = vpack.c.bf16 %v1414_v27, %v1413_v24  ;;  %v8705_v4 = vpop.f32.mrb[48].mxu0 }
 0x3f2   :  { %v1347_v26 = vadd.f32 %v8705_v4, %v10687_v44  ;;  %v1338_v3 = vpop.f32.mrb[49].mxu0 }
 0x3f3   :  { %v1339_v46 = vadd.f32 %v10687_v44, %v1338_v3  ;;  %v8706_v2 = vpop.f32.mrb[50].mxu0  ;;  %8747 = vmatprep.mubr.bf16.mxu1 %v1455_v34 }
 0x3f4   :  { %v1350_v5 = vadd.f32 %v8706_v2, %v10687_v44  ;;  %v1341_v12 = vpop.f32.mrb[51].mxu0  ;;  %8748 = vmatmul.mubr.bf16.gmra.mrb[44].mxu1 %v1456_v45  ;;  %v1419_v1 = vmax.f32 %v1347_v26, 0.0 }
 0x3f5   :  { %v1342_v14 = vadd.f32 %v10687_v44, %v1341_v12  ;;  %v1417_v43 = vmax.f32 %v1339_v46, 0.0 }
 0x3f6   :  { %v1420_v47 = vmax.f32 %v1350_v5, 0.0 }
 0x3f7   :  { %v1418_v22 = vmax.f32 %v1342_v14, 0.0 }
 0x3f8   :  { %v1458_v15 = vpack.c.bf16 %v1420_v47, %v1419_v1 }
 0x3f9   :  { %v1457_v38 = vpack.c.bf16 %v1418_v22, %v1417_v43  ;;  %v8709_v32 = vpop.f32.mrb[52].mxu0 }
 0x3fa   :  { %v1363_v39 = vadd.f32 %v8709_v32, %v10687_v44  ;;  %v1354_v8 = vpop.f32.mrb[53].mxu0 }
 0x3fb   :  { %v1355_v28 = vadd.f32 %v10687_v44, %v1354_v8  ;;  %v8710_v62 = vpop.f32.mrb[54].mxu0  ;;  %8751 = vmatprep.mubr.bf16.mxu1 %v1457_v38 }
 0x3fc   :  { %v1366_v48 = vadd.f32 %v8710_v62, %v10687_v44  ;;  %v1357_v20 = vpop.f32.mrb[55].mxu0  ;;  %8752 = vmatmul.mubr.bf16.gmra.mrb[48].mxu1 %v1458_v15  ;;  %v1423_v19 = vmax.f32 %v1363_v39, 0.0 }
 0x3fd   :  { %v1358_v23 = vadd.f32 %v10687_v44, %v1357_v20  ;;  %v1421_v51 = vmax.f32 %v1355_v28, 0.0 }
 0x3fe   :  { %v1424_v30 = vmax.f32 %v1366_v48, 0.0 }
 0x3ff   :  { %v1422_v52 = vmax.f32 %v1358_v23, 0.0 }
 0x400   :  { %v1460_v7 = vpack.c.bf16 %v1424_v30, %v1423_v19 }
 0x401   :  { %v1459_v24 = vpack.c.bf16 %v1422_v52, %v1421_v51  ;;  %v8713_v27 = vpop.f32.mrb[56].mxu0  ;;  %v10724_v52 = vld [vmem:[%s15276_s3 + $0x6] ss:$0 sm:$0xff] }
 0x402   :  { %v1379_v45 = vadd.f32 %v8713_v27, %v10687_v44  ;;  %v1370_v34 = vpop.f32.mrb[57].mxu0 }
 0x403   :  { %v1371_v4 = vadd.f32 %v10687_v44, %v1370_v34  ;;  %v8714_v26 = vpop.f32.mrb[58].mxu0  ;;  %8755 = vmatprep.mubr.bf16.mxu1 %v1459_v24 }
 0x404   :  { %v1382_v3 = vadd.f32 %v8714_v26, %v10687_v44  ;;  %v1373_v46 = vpop.f32.mrb[59].mxu0  ;;  %8756 = vmatmul.mubr.bf16.gmra.mrb[52].mxu1 %v1460_v7  ;;  %v1427_v5 = vmax.f32 %v1379_v45, 0.0 }
 0x405   :  { %v1374_v2 = vadd.f32 %v10687_v44, %v1373_v46  ;;  %v1425_v14 = vmax.f32 %v1371_v4, 0.0 }
 0x406   :  { %v1428_v12 = vmax.f32 %v1382_v3, 0.0 }
 0x407   :  { %v1426_v1 = vmax.f32 %v1374_v2, 0.0 }
 0x408   :  { %v1462_v47 = vpack.c.bf16 %v1428_v12, %v1427_v5 }
 0x409   :  { %v1461_v43 = vpack.c.bf16 %v1426_v1, %v1425_v14  ;;  %v8717_v22 = vpop.f32.mrb[60].mxu0 }
 0x40a   :  { %v1395_v15 = vadd.f32 %v8717_v22, %v10687_v44  ;;  %v1386_v38 = vpop.f32.mrb[61].mxu0 }
 0x40b   :  { %v1387_v32 = vadd.f32 %v10687_v44, %v1386_v38  ;;  %v8718_v39 = vpop.f32.mrb[62].mxu0  ;;  %8759 = vmatprep.mubr.bf16.mxu1 %v1461_v43 }
 0x40c   :  { %v1398_v8 = vadd.f32 %v8718_v39, %v10687_v44  ;;  %v1389_v28 = vpop.f32.mrb[63].mxu0  ;;  %8760 = vmatmul.mubr.bf16.gmra.mrb[56].mxu1 %v1462_v47  ;;  %v1431_v48 = vmax.f32 %v1395_v15, 0.0 }
 0x40d   :  { %v1390_v62 = vadd.f32 %v10687_v44, %v1389_v28  ;;  %v1429_v23 = vmax.f32 %v1387_v32, 0.0 }
 0x40e   :  { %v1432_v20 = vmax.f32 %v1398_v8, 0.0 }
 0x40f   :  { %v1430_v19 = vmax.f32 %v1390_v62, 0.0 }
 0x410   :  { %v1464_v30 = vpack.c.bf16 %v1432_v20, %v1431_v48 }
 0x411   :  { %v1463_v51 = vpack.c.bf16 %v1430_v19, %v1429_v23 }
 0x413   :  { %8763 = vmatprep.mubr.bf16.mxu1 %v1463_v51 }
 0x414   :  { %8764 = vmatmul.mubr.bf16.gmra.mrb[60].mxu1 %v1464_v30 }
 0x4af   :  { %v8737_v7 = vpop.f32.mrb[32].mxu1 }
 0x4b0   :  { %v1552_v24 = vpop.f32.mrb[33].mxu1  ;;  %v1561_v27 = vadd.f32 %v8737_v7, %v10724_v52 }
 0x4b1   :  { %v1553_v45 = vadd.f32 %v10724_v52, %v1552_v24  ;;  %v8738_v44 = vpop.f32.mrb[34].mxu1 }
 0x4b2   :  { %v1555_v34 = vpop.f32.mrb[35].mxu1  ;;  %v1564_v4 = vadd.f32 %v8738_v44, %v10724_v52  ;;  %v10739_v5 = vadd.f32 %v1561_v27, %v10491_v18 }
 0x4b3   :  { %v1556_v26 = vadd.f32 %v10724_v52, %v1555_v34  ;;  %v10731_v3 = vadd.f32 %v1553_v45, %v10481_v25 }
 0x4b4   :  { %v10744_v1 = vadd.f32 %v1564_v4, %v10494_v54 }
 0x4b5   :  { %v1713_v46 = vsel %vm406_vm1, %v10731_v3, 0.0  ;;  %v10736_v2 = vadd.f32 %v1556_v26, %v10484_v10  ;;  %v1719_v10 = vsel %vm406_vm1, %v10739_v5, 0.0 }
 0x4b6   :  { %1714 = vadd.xlane.f32.xlu0 %v1713_v46  ;;  %v1722_v54 = vsel %vm406_vm1, %v10744_v1, 0.0 }
 0x4b7   :  { %v8741_v12 = vpop.f32.mrb[36].mxu1  ;;  %v1716_v14 = vsel %vm406_vm1, %v10736_v2, 0.0 }
 0x4b8   :  { %1717 = vadd.xlane.f32.xlu1 %v1716_v14  ;;  %v1568_v25 = vpop.f32.mrb[37].mxu1  ;;  %v1577_v47 = vadd.f32 %v8741_v12, %v10724_v52 }
 0x4b9   :  { %v1569_v43 = vadd.f32 %v10724_v52, %v1568_v25  ;;  %v8742_v22 = vpop.f32.mrb[38].mxu1 }
 0x4ba   :  { %1720 = vadd.xlane.f32.xlu0 %v1719_v10  ;;  %v1571_v18 = vpop.f32.mrb[39].mxu1  ;;  %v1580_v15 = vadd.f32 %v8742_v22, %v10724_v52  ;;  %v10763_v28 = vadd.f32 %v1577_v47, %v10518_v21 }
 0x4bb   :  { %v1572_v38 = vadd.f32 %v10724_v52, %v1571_v18  ;;  %v10755_v32 = vadd.f32 %v1569_v43, %v10505_v56 }
 0x4bc   :  { %1723 = vadd.xlane.f32.xlu1 %v1722_v54  ;;  %v10768_v20 = vadd.f32 %v1580_v15, %v10521_v17 }
 0x4bd   :  { %v1725_v39 = vsel %vm406_vm1, %v10755_v32, 0.0  ;;  %v10760_v8 = vadd.f32 %v1572_v38, %v10508_v37  ;;  %v1731_v37 = vsel %vm406_vm1, %v10763_v28, 0.0 }
 0x4be   :  { %1726 = vadd.xlane.f32.xlu0 %v1725_v39  ;;  %v1734_v17 = vsel %vm406_vm1, %v10768_v20, 0.0 }
 0x4bf   :  { %v8745_v62 = vpop.f32.mrb[40].mxu1  ;;  %v1728_v48 = vsel %vm406_vm1, %v10760_v8, 0.0 }
 0x4c0   :  { %1729 = vadd.xlane.f32.xlu1 %v1728_v48  ;;  %v1584_v56 = vpop.f32.mrb[41].mxu1  ;;  %v1593_v23 = vadd.f32 %v8745_v62, %v10724_v52 }
 0x4c1   :  { %v1585_v19 = vadd.f32 %v10724_v52, %v1584_v56  ;;  %v8746_v30 = vpop.f32.mrb[42].mxu1 }
 0x4c2   :  { %1732 = vadd.xlane.f32.xlu0 %v1731_v37  ;;  %v1587_v21 = vpop.f32.mrb[43].mxu1  ;;  %v1596_v51 = vadd.f32 %v8746_v30, %v10724_v52  ;;  %v10787_v44 = vadd.f32 %v1593_v23, %v10544_v60 }
 0x4c3   :  { %v1588_v7 = vadd.f32 %v10724_v52, %v1587_v21  ;;  %v10779_v24 = vadd.f32 %v1585_v19, %v10531_v58 }
 0x4c4   :  { %1735 = vadd.xlane.f32.xlu1 %v1734_v17  ;;  %v10792_v26 = vadd.f32 %v1596_v51, %v10547_v49 }
 0x4c5   :  { %v1737_v27 = vsel %vm406_vm1, %v10779_v24, 0.0  ;;  %v10784_v45 = vadd.f32 %v1588_v7, %v10534_v59  ;;  %v1743_v59 = vsel %vm406_vm1, %v10787_v44, 0.0 }
 0x4c6   :  { %1738 = vadd.xlane.f32.xlu0 %v1737_v27  ;;  %v1746_v49 = vsel %vm406_vm1, %v10792_v26, 0.0 }
 0x4c7   :  { %v8749_v34 = vpop.f32.mrb[44].mxu1  ;;  %v1740_v4 = vsel %vm406_vm1, %v10784_v45, 0.0 }
 0x4c8   :  { %1741 = vadd.xlane.f32.xlu1 %v1740_v4  ;;  %v1600_v58 = vpop.f32.mrb[45].mxu1  ;;  %v1609_v46 = vadd.f32 %v8749_v34, %v10724_v52 }
 0x4c9   :  { %v1601_v12 = vadd.f32 %v10724_v52, %v1600_v58  ;;  %v8750_v14 = vpop.f32.mrb[46].mxu1 }
 0x4ca   :  { %1744 = vadd.xlane.f32.xlu0 %v1743_v59  ;;  %v1603_v60 = vpop.f32.mrb[47].mxu1  ;;  %v1612_v25 = vadd.f32 %v8750_v14, %v10724_v52  ;;  %v10811_v18 = vadd.f32 %v1609_v46, %v10570_v11 }
 0x4cb   :  { %v1604_v47 = vadd.f32 %v10724_v52, %v1603_v60  ;;  %v10803_v43 = vadd.f32 %v1601_v12, %v10557_v6 }
 0x4cc   :  { %1747 = vadd.xlane.f32.xlu1 %v1746_v49  ;;  %v10816_v54 = vadd.f32 %v1612_v25, %v10573_v13 }
 0x4cd   :  { %v1749_v22 = vsel %vm406_vm1, %v10803_v43, 0.0  ;;  %v10808_v10 = vadd.f32 %v1604_v47, %v10560_v55  ;;  %v1755_v55 = vsel %vm406_vm1, %v10811_v18, 0.0 }
 0x4ce   :  { %1750 = vadd.xlane.f32.xlu0 %v1749_v22  ;;  %v1758_v13 = vsel %vm406_vm1, %v10816_v54, 0.0 }
 0x4cf   :  { %v8753_v15 = vpop.f32.mrb[48].mxu1  ;;  %v1752_v38 = vsel %vm406_vm1, %v10808_v10, 0.0 }
 0x4d0   :  { %1753 = vadd.xlane.f32.xlu1 %v1752_v38  ;;  %v1616_v6 = vpop.f32.mrb[49].mxu1  ;;  %v1625_v39 = vadd.f32 %v8753_v15, %v10724_v52 }
 0x4d1   :  { %v1617_v62 = vadd.f32 %v10724_v52, %v1616_v6  ;;  %v8754_v48 = vpop.f32.mrb[50].mxu1 }
 0x4d2   :  { %1756 = vadd.xlane.f32.xlu0 %v1755_v55  ;;  %v1619_v11 = vpop.f32.mrb[51].mxu1  ;;  %v1628_v56 = vadd.f32 %v8754_v48, %v10724_v52  ;;  %v10835_v21 = vadd.f32 %v1625_v39, %v10596_v0 }
 0x4d3   :  { %v1620_v23 = vadd.f32 %v10724_v52, %v1619_v11  ;;  %v10827_v19 = vadd.f32 %v1617_v62, %v10583_v29 }
 0x4d4   :  { %1759 = vadd.xlane.f32.xlu1 %v1758_v13  ;;  %v10840_v17 = vadd.f32 %v1628_v56, %v10599_v63 }
 0x4d5   :  { %v1761_v30 = vsel %vm406_vm1, %v10827_v19, 0.0  ;;  %v10832_v37 = vadd.f32 %v1620_v23, %v10586_v53  ;;  %v1767_v53 = vsel %vm406_vm1, %v10835_v21, 0.0 }
 0x4d6   :  { %1762 = vadd.xlane.f32.xlu0 %v1761_v30  ;;  %v1770_v63 = vsel %vm406_vm1, %v10840_v17, 0.0 }
 0x4d7   :  { %v8757_v51 = vpop.f32.mrb[52].mxu1  ;;  %v1764_v7 = vsel %vm406_vm1, %v10832_v37, 0.0 }
 0x4d8   :  { %1765 = vadd.xlane.f32.xlu1 %v1764_v7  ;;  %v1632_v29 = vpop.f32.mrb[53].mxu1  ;;  %v1641_v27 = vadd.f32 %v8757_v51, %v10724_v52 }
 0x4d9   :  { %v1633_v34 = vadd.f32 %v10724_v52, %v1632_v29  ;;  %v8758_v4 = vpop.f32.mrb[54].mxu1 }
 0x4da   :  { %1768 = vadd.xlane.f32.xlu0 %v1767_v53  ;;  %v1635_v0 = vpop.f32.mrb[55].mxu1  ;;  %v1644_v58 = vadd.f32 %v8758_v4, %v10724_v52  ;;  %v10859_v60 = vadd.f32 %v1641_v27, %v10622_v40 }
 0x4db   :  { %v1636_v46 = vadd.f32 %v10724_v52, %v1635_v0  ;;  %v10851_v12 = vadd.f32 %v1633_v34, %v10609_v61 }
 0x4dc   :  { %1771 = vadd.xlane.f32.xlu1 %v1770_v63  ;;  %v10864_v49 = vadd.f32 %v1644_v58, %v10625_v9 }
 0x4dd   :  { %v1773_v14 = vsel %vm406_vm1, %v10851_v12, 0.0  ;;  %v10856_v59 = vadd.f32 %v1636_v46, %v10612_v50  ;;  %v1779_v50 = vsel %vm406_vm1, %v10859_v60, 0.0 }
 0x4de   :  { %1774 = vadd.xlane.f32.xlu0 %v1773_v14  ;;  %v1782_v9 = vsel %vm406_vm1, %v10864_v49, 0.0 }
 0x4df   :  { %v8761_v25 = vpop.f32.mrb[56].mxu1  ;;  %v1776_v47 = vsel %vm406_vm1, %v10856_v59, 0.0 }
 0x4e0   :  { %1777 = vadd.xlane.f32.xlu1 %v1776_v47  ;;  %v1648_v61 = vpop.f32.mrb[57].mxu1  ;;  %v1657_v22 = vadd.f32 %v8761_v25, %v10724_v52 }
 0x4e1   :  { %v1649_v15 = vadd.f32 %v10724_v52, %v1648_v61  ;;  %v8762_v38 = vpop.f32.mrb[58].mxu1 }
 0x4e2   :  { %1780 = vadd.xlane.f32.xlu0 %v1779_v50  ;;  %v1651_v40 = vpop.f32.mrb[59].mxu1  ;;  %v1660_v6 = vadd.f32 %v8762_v38, %v10724_v52  ;;  %v10883_v11 = vadd.f32 %v1657_v22, %v10648_v42 }
 0x4e3   :  { %v1652_v39 = vadd.f32 %v10724_v52, %v1651_v40  ;;  %v10875_v62 = vadd.f32 %v1649_v15, %v10635_v33 }
 0x4e4   :  { %1783 = vadd.xlane.f32.xlu1 %v1782_v9  ;;  %v10888_v13 = vadd.f32 %v1660_v6, %v10651_v57 }
 0x4e5   :  { %v1785_v48 = vsel %vm406_vm1, %v10875_v62, 0.0  ;;  %v10880_v55 = vadd.f32 %v1652_v39, %v10638_v36  ;;  %v1791_v36 = vsel %vm406_vm1, %v10883_v11, 0.0 }
 0x4e6   :  { %1786 = vadd.xlane.f32.xlu0 %v1785_v48  ;;  %v1794_v57 = vsel %vm406_vm1, %v10888_v13, 0.0 }
 0x4e7   :  { %v8765_v56 = vpop.f32.mrb[60].mxu1  ;;  %v1788_v23 = vsel %vm406_vm1, %v10880_v55, 0.0 }
 0x4e8   :  { %1789 = vadd.xlane.f32.xlu1 %v1788_v23  ;;  %v1664_v33 = vpop.f32.mrb[61].mxu1  ;;  %v1673_v30 = vadd.f32 %v8765_v56, %v10724_v52 }
 0x4e9   :  { %v1665_v51 = vadd.f32 %v10724_v52, %v1664_v33  ;;  %v8766_v7 = vpop.f32.mrb[62].mxu1 }
 0x4ea   :  { %1792 = vadd.xlane.f32.xlu0 %v1791_v36  ;;  %v1667_v42 = vpop.f32.mrb[63].mxu1  ;;  %v1676_v29 = vadd.f32 %v8766_v7, %v10724_v52  ;;  %v10907_v0 = vadd.f32 %v1673_v30, %v10673_v41  ;;  %v9225_v41 = vld [vmem:[%s15274_s1 + $0x30] sm:$0xff]  }
 0x4eb   :  { %v1668_v27 = vadd.f32 %v10724_v52, %v1667_v42  ;;  %v10899_v34 = vadd.f32 %v1665_v51, %v10661_v31 }
 0x4ec   :  { %1795 = vadd.xlane.f32.xlu1 %v1794_v57  ;;  %v10912_v58 = vadd.f32 %v1676_v29, %v10676_v35  ;;  %v1803_v31 = vsel %vm406_vm1, %v10907_v0, 0.0  ;;  %v9226_v35 = vld [vmem:[%s15274_s1 + $0x38] sm:$0xff]  }
 0x4ed   :  { %v1797_v4 = vsel %vm406_vm1, %v10899_v34, 0.0  ;;  %v10904_v53 = vadd.f32 %v1668_v27, %v10664_v16  ;;  %v9224_v16 = vld [vmem:[%s15274_s1 + $0x28] sm:$0xff]  }
 0x4ee   :  { %1798 = vadd.xlane.f32.xlu0 %v1797_v4  ;;  %v1806_v46 = vsel %vm406_vm1, %v10912_v58, 0.0  ;;  %8767 = vmatprep.subr.bf16.mxu0 %v9224_v16 }
 0x4ef   :  { %v1800_v52 = vsel %vm406_vm1, %v10904_v53, 0.0  ;;  %8768 = vmatpush3.bf16.msra.mxu0 %v9224_v16 }
 0x4f0   :  { %1801 = vadd.xlane.f32.xlu1 %v1800_v52  ;;  %8769 = vmatprep.subr.bf16.mxu0 %v9225_v41 }
 0x4f2   :  { %1804 = vadd.xlane.f32.xlu0 %v1803_v31 }
 0x4f3   :  { %8770 = vmatpush3.bf16.msra.mxu0 %v9225_v41 }
 0x4f4   :  { %1807 = vadd.xlane.f32.xlu1 %v1806_v46  ;;  %8771 = vmatprep.subr.bf16.mxu0 %v9226_v35 }
 0x4f7   :  { %8772 = vmatpush3.bf16.msra.mxu0 %v9226_v35 }
 0x543   :  { %v1715_v63 = vpop.xlane.xlu0 %1714 }
 0x544   :  { %v1809_v14 = vmul.f32 0.015625, %v1715_v63 }
 0x545   :  { %v1718_v25 = vpop.xlane.xlu1 %1717 }
 0x546   :  { %v10928_v47 = vsub.f32 %v10731_v3, %v1809_v14  ;;  %v1810_v61 = vmul.f32 0.015625, %v1718_v25 }
 0x547   :  { %v1721_v22 = vpop.xlane.xlu0 %1720 }
 0x548   :  { %v10931_v15 = vsub.f32 %v10736_v2, %v1810_v61  ;;  %v1811_v38 = vmul.f32 0.015625, %v1721_v22  ;;  %v1873_v50 = vmul.f32 %v10928_v47, %v10928_v47 }
 0x549   :  { %v1724_v40 = vpop.xlane.xlu1 %1723 }
 0x54a   :  { %v10936_v6 = vsub.f32 %v10739_v5, %v1811_v38  ;;  %v1812_v39 = vmul.f32 0.015625, %v1724_v40  ;;  %v1905_v9 = vsel %vm406_vm1, %v1873_v50, 0.0  ;;  %v1874_v3 = vmul.f32 %v10931_v15, %v10931_v15 }
 0x54b   :  { %1906 = vadd.xlane.f32.xlu0 %v1905_v9  ;;  %v1727_v48 = vpop.xlane.xlu0 %1726 }
 0x54c   :  { %v10942_v56 = vsub.f32 %v10744_v1, %v1812_v39  ;;  %v1813_v2 = vmul.f32 0.015625, %v1727_v48  ;;  %v1908_v23 = vsel %vm406_vm1, %v1874_v3, 0.0  ;;  %v1875_v33 = vmul.f32 %v10936_v6, %v10936_v6 }
 0x54d   :  { %v1730_v30 = vpop.xlane.xlu1 %1729  ;;  %1909 = vadd.xlane.f32.xlu1 %v1908_v23 }
 0x54e   :  { %v10948_v5 = vsub.f32 %v10755_v32, %v1813_v2  ;;  %v1814_v51 = vmul.f32 0.015625, %v1730_v30  ;;  %v1911_v7 = vsel %vm406_vm1, %v1875_v33, 0.0  ;;  %v1876_v36 = vmul.f32 %v10942_v56, %v10942_v56 }
 0x54f   :  { %1912 = vadd.xlane.f32.xlu0 %v1911_v7  ;;  %v1733_v1 = vpop.xlane.xlu0 %1732 }
 0x550   :  { %v10954_v42 = vsub.f32 %v10760_v8, %v1814_v51  ;;  %v1815_v29 = vmul.f32 0.015625, %v1733_v1  ;;  %v1914_v27 = vsel %vm406_vm1, %v1876_v36, 0.0  ;;  %v1877_v57 = vmul.f32 %v10948_v5, %v10948_v5 }
 0x551   :  { %v1736_v4 = vpop.xlane.xlu1 %1735  ;;  %1915 = vadd.xlane.f32.xlu1 %v1914_v27 }
 0x552   :  { %v10960_v32 = vsub.f32 %v10763_v28, %v1815_v29  ;;  %v1816_v52 = vmul.f32 0.015625, %v1736_v4  ;;  %v1917_v31 = vsel %vm406_vm1, %v1877_v57, 0.0  ;;  %v1878_v46 = vmul.f32 %v10954_v42, %v10954_v42 }
 0x553   :  { %1918 = vadd.xlane.f32.xlu0 %v1917_v31  ;;  %v1739_v8 = vpop.xlane.xlu0 %1738 }
 0x554   :  { %v10966_v16 = vsub.f32 %v10768_v20, %v1816_v52  ;;  %v1817_v41 = vmul.f32 0.015625, %v1739_v8  ;;  %v1920_v35 = vsel %vm406_vm1, %v1878_v46, 0.0  ;;  %v1879_v63 = vmul.f32 %v10960_v32, %v10960_v32 }
 0x555   :  { %v1742_v14 = vpop.xlane.xlu1 %1741  ;;  %1921 = vadd.xlane.f32.xlu1 %v1920_v35 }
 0x556   :  { %v10972_v28 = vsub.f32 %v10779_v24, %v1817_v41  ;;  %v1818_v25 = vmul.f32 0.015625, %v1742_v14  ;;  %v1923_v61 = vsel %vm406_vm1, %v1879_v63, 0.0  ;;  %v1880_v22 = vmul.f32 %v10966_v16, %v10966_v16 }
 0x557   :  { %1924 = vadd.xlane.f32.xlu0 %v1923_v61  ;;  %v1745_v20 = vpop.xlane.xlu0 %1744 }
 0x558   :  { %v10978_v38 = vsub.f32 %v10784_v45, %v1818_v25  ;;  %v1819_v50 = vmul.f32 0.015625, %v1745_v20  ;;  %v1926_v40 = vsel %vm406_vm1, %v1880_v22, 0.0  ;;  %v1881_v39 = vmul.f32 %v10972_v28, %v10972_v28 }
 0x559   :  { %v1748_v9 = vpop.xlane.xlu1 %1747  ;;  %1927 = vadd.xlane.f32.xlu1 %v1926_v40 }
 0x55a   :  { %v10984_v24 = vsub.f32 %v10787_v44, %v1819_v50  ;;  %v1820_v3 = vmul.f32 0.015625, %v1748_v9  ;;  %v1929_v48 = vsel %vm406_vm1, %v1881_v39, 0.0  ;;  %v1882_v2 = vmul.f32 %v10978_v38, %v10978_v38 }
 0x55b   :  { %1930 = vadd.xlane.f32.xlu0 %v1929_v48  ;;  %v1751_v45 = vpop.xlane.xlu0 %1750 }
 0x55c   :  { %v10990_v23 = vsub.f32 %v10792_v26, %v1820_v3  ;;  %v1821_v33 = vmul.f32 0.015625, %v1751_v45  ;;  %v1932_v30 = vsel %vm406_vm1, %v1882_v2, 0.0  ;;  %v1883_v51 = vmul.f32 %v10984_v24, %v10984_v24 }
 0x55d   :  { %v1754_v7 = vpop.xlane.xlu1 %1753  ;;  %1933 = vadd.xlane.f32.xlu1 %v1932_v30 }
 0x55e   :  { %v10996_v44 = vsub.f32 %v10803_v43, %v1821_v33  ;;  %v1822_v36 = vmul.f32 0.015625, %v1754_v7  ;;  %v1935_v1 = vsel %vm406_vm1, %v1883_v51, 0.0  ;;  %v1884_v29 = vmul.f32 %v10990_v23, %v10990_v23 }
 0x55f   :  { %1936 = vadd.xlane.f32.xlu0 %v1935_v1  ;;  %v1757_v26 = vpop.xlane.xlu0 %1756 }
 0x560   :  { %v11002_v27 = vsub.f32 %v10808_v10, %v1822_v36  ;;  %v1823_v57 = vmul.f32 0.015625, %v1757_v26  ;;  %v1938_v4 = vsel %vm406_vm1, %v1884_v29, 0.0  ;;  %v1885_v52 = vmul.f32 %v10996_v44, %v10996_v44 }
 0x561   :  { %v1760_v31 = vpop.xlane.xlu1 %1759  ;;  %1939 = vadd.xlane.f32.xlu1 %v1938_v4 }
 0x562   :  { %v11008_v43 = vsub.f32 %v10811_v18, %v1823_v57  ;;  %v1824_v46 = vmul.f32 0.015625, %v1760_v31  ;;  %v1941_v8 = vsel %vm406_vm1, %v1885_v52, 0.0  ;;  %v1886_v41 = vmul.f32 %v11002_v27, %v11002_v27 }
 0x563   :  { %1942 = vadd.xlane.f32.xlu0 %v1941_v8  ;;  %v1763_v10 = vpop.xlane.xlu0 %1762 }
 0x564   :  { %v11014_v35 = vsub.f32 %v10816_v54, %v1824_v46  ;;  %v1825_v63 = vmul.f32 0.015625, %v1763_v10  ;;  %v1944_v14 = vsel %vm406_vm1, %v1886_v41, 0.0  ;;  %v1887_v25 = vmul.f32 %v11008_v43, %v11008_v43 }
 0x565   :  { %v1766_v61 = vpop.xlane.xlu1 %1765  ;;  %1945 = vadd.xlane.f32.xlu1 %v1944_v14 }
 0x566   :  { %v11020_v18 = vsub.f32 %v10827_v19, %v1825_v63  ;;  %v1826_v22 = vmul.f32 0.015625, %v1766_v61  ;;  %v1947_v20 = vsel %vm406_vm1, %v1887_v25, 0.0  ;;  %v1888_v50 = vmul.f32 %v11014_v35, %v11014_v35 }
 0x567   :  { %1948 = vadd.xlane.f32.xlu0 %v1947_v20  ;;  %v1769_v54 = vpop.xlane.xlu0 %1768 }
 0x568   :  { %v11026_v40 = vsub.f32 %v10832_v37, %v1826_v22  ;;  %v1827_v39 = vmul.f32 0.015625, %v1769_v54  ;;  %v1950_v9 = vsel %vm406_vm1, %v1888_v50, 0.0  ;;  %v1889_v3 = vmul.f32 %v11020_v18, %v11020_v18 }
 0x569   :  { %v1772_v48 = vpop.xlane.xlu1 %1771  ;;  %1951 = vadd.xlane.f32.xlu1 %v1950_v9 }
 0x56a   :  { %v11032_v19 = vsub.f32 %v10835_v21, %v1827_v39  ;;  %v1828_v2 = vmul.f32 0.015625, %v1772_v48  ;;  %v1953_v45 = vsel %vm406_vm1, %v1889_v3, 0.0  ;;  %v1890_v33 = vmul.f32 %v11026_v40, %v11026_v40 }
 0x56b   :  { %1954 = vadd.xlane.f32.xlu0 %v1953_v45  ;;  %v1775_v37 = vpop.xlane.xlu0 %1774 }
 0x56c   :  { %v11038_v30 = vsub.f32 %v10840_v17, %v1828_v2  ;;  %v1829_v51 = vmul.f32 0.015625, %v1775_v37  ;;  %v1956_v7 = vsel %vm406_vm1, %v1890_v33, 0.0  ;;  %v1891_v36 = vmul.f32 %v11032_v19, %v11032_v19 }
 0x56d   :  { %v1778_v1 = vpop.xlane.xlu1 %1777  ;;  %1957 = vadd.xlane.f32.xlu1 %v1956_v7 }
 0x56e   :  { %v11044_v21 = vsub.f32 %v10851_v12, %v1829_v51  ;;  %v1830_v29 = vmul.f32 0.015625, %v1778_v1  ;;  %v1959_v26 = vsel %vm406_vm1, %v1891_v36, 0.0  ;;  %v1892_v57 = vmul.f32 %v11038_v30, %v11038_v30 }
 0x56f   :  { %1960 = vadd.xlane.f32.xlu0 %v1959_v26  ;;  %v1781_v17 = vpop.xlane.xlu0 %1780 }
 0x570   :  { %v11050_v4 = vsub.f32 %v10856_v59, %v1830_v29  ;;  %v1831_v52 = vmul.f32 0.015625, %v1781_v17  ;;  %v1962_v31 = vsel %vm406_vm1, %v1892_v57, 0.0  ;;  %v1893_v46 = vmul.f32 %v11044_v21, %v11044_v21  ;;  %v9227_v59 = vld [vmem:[%s15274_s1 + $0x40] sm:$0xff]  }
 0x571   :  { %v1784_v8 = vpop.xlane.xlu1 %1783  ;;  %1963 = vadd.xlane.f32.xlu1 %v1962_v31  ;;  %8773 = vmatprep.subr.bf16.mxu0 %v9227_v59 }
 0x572   :  { %v11056_v12 = vsub.f32 %v10859_v60, %v1831_v52  ;;  %v1832_v41 = vmul.f32 0.015625, %v1784_v8  ;;  %v1965_v10 = vsel %vm406_vm1, %v1893_v46, 0.0  ;;  %v1894_v63 = vmul.f32 %v11050_v4, %v11050_v4  ;;  %8774 = vmatpush3.bf16.msra.mxu0 %v9227_v59 }
 0x573   :  { %1966 = vadd.xlane.f32.xlu0 %v1965_v10  ;;  %v1787_v14 = vpop.xlane.xlu0 %1786 }
 0x574   :  { %v11065_v25 = vsub.f32 %v10864_v49, %v1832_v41  ;;  %v1833_v61 = vmul.f32 0.015625, %v1787_v14  ;;  %v1968_v22 = vsel %vm406_vm1, %v1894_v63, 0.0  ;;  %v1895_v60 = vmul.f32 %v11056_v12, %v11056_v12 }
 0x575   :  { %v1790_v20 = vpop.xlane.xlu1 %1789  ;;  %1969 = vadd.xlane.f32.xlu1 %v1968_v22 }
 0x576   :  { %v11071_v50 = vsub.f32 %v10875_v62, %v1833_v61  ;;  %v1834_v54 = vmul.f32 0.015625, %v1790_v20  ;;  %v1971_v39 = vsel %vm406_vm1, %v1895_v60, 0.0  ;;  %v1896_v49 = vmul.f32 %v11065_v25, %v11065_v25 }
 0x577   :  { %1972 = vadd.xlane.f32.xlu0 %v1971_v39  ;;  %v1793_v9 = vpop.xlane.xlu0 %1792 }
 0x578   :  { %v11077_v3 = vsub.f32 %v10880_v55, %v1834_v54  ;;  %v1835_v48 = vmul.f32 0.015625, %v1793_v9  ;;  %v1974_v2 = vsel %vm406_vm1, %v1896_v49, 0.0  ;;  %v1897_v45 = vmul.f32 %v11071_v50, %v11071_v50 }
 0x579   :  { %v1796_v33 = vpop.xlane.xlu1 %1795  ;;  %1975 = vadd.xlane.f32.xlu1 %v1974_v2 }
 0x57a   :  { %v11083_v62 = vsub.f32 %v10883_v11, %v1835_v48  ;;  %v1836_v37 = vmul.f32 0.015625, %v1796_v33  ;;  %v1977_v51 = vsel %vm406_vm1, %v1897_v45, 0.0  ;;  %v1898_v7 = vmul.f32 %v11077_v3, %v11077_v3 }
 0x57b   :  { %1978 = vadd.xlane.f32.xlu0 %v1977_v51  ;;  %v1799_v55 = vpop.xlane.xlu0 %1798 }
 0x57c   :  { %v11089_v36 = vsub.f32 %v10888_v13, %v1836_v37  ;;  %v1837_v1 = vmul.f32 0.015625, %v1799_v55  ;;  %v1980_v29 = vsel %vm406_vm1, %v1898_v7, 0.0  ;;  %v1899_v26 = vmul.f32 %v11083_v62, %v11083_v62 }
 0x57d   :  { %1981 = vadd.xlane.f32.xlu1 %v1980_v29  ;;  %v1802_v11 = vpop.xlane.xlu1 %1801 }
 0x57e   :  { %v11095_v57 = vsub.f32 %v10899_v34, %v1837_v1  ;;  %v1838_v17 = vmul.f32 0.015625, %v1802_v11  ;;  %v1983_v52 = vsel %vm406_vm1, %v1899_v26, 0.0  ;;  %v1900_v31 = vmul.f32 %v11089_v36, %v11089_v36 }
 0x57f   :  { %1984 = vadd.xlane.f32.xlu0 %v1983_v52  ;;  %v1805_v13 = vpop.xlane.xlu0 %1804 }
 0x580   :  { %v11101_v46 = vsub.f32 %v10904_v53, %v1838_v17  ;;  %v1839_v8 = vmul.f32 0.015625, %v1805_v13  ;;  %v1986_v41 = vsel %vm406_vm1, %v1900_v31, 0.0  ;;  %v1901_v10 = vmul.f32 %v11095_v57, %v11095_v57 }
 0x581   :  { %1987 = vadd.xlane.f32.xlu1 %v1986_v41  ;;  %v1808_v34 = vpop.xlane.xlu1 %1807 }
 0x582   :  { %v11107_v63 = vsub.f32 %v10907_v0, %v1839_v8  ;;  %v1840_v59 = vmul.f32 0.015625, %v1808_v34  ;;  %v1989_v14 = vsel %vm406_vm1, %v1901_v10, 0.0  ;;  %v1902_v61 = vmul.f32 %v11101_v46, %v11101_v46  ;;  %v11125_v10 = vld [vmem:[%s15276_s3 + $0x7] ss:$0 sm:$0xff] }
 0x583   :  { %1990 = vadd.xlane.f32.xlu0 %v1989_v14 }
 0x584   :  { %v11113_v53 = vsub.f32 %v10912_v58, %v1840_v59  ;;  %v1992_v22 = vsel %vm406_vm1, %v1902_v61, 0.0  ;;  %v1903_v60 = vmul.f32 %v11107_v63, %v11107_v63 }
 0x585   :  { %1993 = vadd.xlane.f32.xlu1 %v1992_v22 }
 0x586   :  { %v1995_v20 = vsel %vm406_vm1, %v1903_v60, 0.0  ;;  %v1904_v0 = vmul.f32 %v11113_v53, %v11113_v53 }
 0x587   :  { %1996 = vadd.xlane.f32.xlu0 %v1995_v20 }
 0x588   :  { %v1998_v54 = vsel %vm406_vm1, %v1904_v0, 0.0 }
 0x589   :  { %1999 = vadd.xlane.f32.xlu1 %v1998_v54 }
 0x5d8   :  { %v1907_v39 = vpop.xlane.xlu0 %1906 }
 0x5d9   :  { %v2001_v49 = vmul.f32 0.015625, %v1907_v39 }
 0x5da   :  { %v1910_v9 = vpop.xlane.xlu1 %1909 }
 0x5db   :  { %v2033_v58 = vadd.f32 1e-05, %v2001_v49  ;;  %v2002_v48 = vmul.f32 0.015625, %v1910_v9  ;;  %v11133_v9 = vld [vmem:[%s15276_s3 + $0x8] ss:$0 sm:$0xff] }
 0x5dc   :  { %v1913_v2 = vpop.xlane.xlu0 %1912 }
 0x5dd   :  { %9340 = vrsqrt.f32 %v2033_v58  ;;  %v2034_v45 = vadd.f32 1e-05, %v2002_v48  ;;  %v2003_v33 = vmul.f32 0.015625, %v1913_v2 }
 0x5de   :  { %v1916_v37 = vpop.xlane.xlu1 %1915 }
 0x5df   :  { %9342 = vrsqrt.f32 %v2034_v45  ;;  %v2035_v51 = vadd.f32 1e-05, %v2003_v33  ;;  %v2004_v7 = vmul.f32 0.015625, %v1916_v37 }
 0x5e0   :  { %v1919_v55 = vpop.xlane.xlu0 %1918 }
 0x5e1   :  { %9344 = vrsqrt.f32 %v2035_v51  ;;  %v2036_v1 = vadd.f32 1e-05, %v2004_v7  ;;  %v2005_v29 = vmul.f32 0.015625, %v1919_v55 }
 0x5e2   :  { %v1922_v26 = vpop.xlane.xlu1 %1921 }
 0x5e3   :  { %9346 = vrsqrt.f32 %v2036_v1  ;;  %v2037_v11 = vadd.f32 1e-05, %v2005_v29  ;;  %v2006_v17 = vmul.f32 0.015625, %v1922_v26 }
 0x5e4   :  { %v1925_v52 = vpop.xlane.xlu0 %1924 }
 0x5e5   :  { %9348 = vrsqrt.f32 %v2037_v11  ;;  %v2038_v31 = vadd.f32 1e-05, %v2006_v17  ;;  %v2007_v13 = vmul.f32 0.015625, %v1925_v52 }
 0x5e6   :  { %v1928_v8 = vpop.xlane.xlu1 %1927 }
 0x5e7   :  { %v9341_v41 = vpop.eup %9340  ;;  %9350 = vrsqrt.f32 %v2038_v31  ;;  %v2039_v34 = vadd.f32 1e-05, %v2007_v13  ;;  %v2008_v59 = vmul.f32 0.015625, %v1928_v8 }
 0x5e8   :  { %v1931_v14 = vpop.xlane.xlu0 %1930  ;;  %v2097_v61 = vmul.f32 %v9341_v41, %v10928_v47 }
 0x5e9   :  { %v9343_v22 = vpop.eup %9342  ;;  %9352 = vrsqrt.f32 %v2039_v34  ;;  %v2040_v60 = vadd.f32 1e-05, %v2008_v59  ;;  %v2009_v20 = vmul.f32 0.015625, %v1931_v14 }
 0x5ea   :  { %v1934_v0 = vpop.xlane.xlu1 %1933  ;;  %v2098_v54 = vmul.f32 %v9343_v22, %v10931_v15  ;;  %v2133_v39 = vmul.f32 %v11125_v10, %v2097_v61 }
 0x5eb   :  { %v9345_v49 = vpop.eup %9344  ;;  %9354 = vrsqrt.f32 %v2040_v60  ;;  %v2041_v58 = vadd.f32 1e-05, %v2009_v20  ;;  %v2010_v48 = vmul.f32 0.015625, %v1934_v0 }
 0x5ec   :  { %v2099_v47 = vmul.f32 %v9345_v49, %v10936_v6  ;;  %v1937_v2 = vpop.xlane.xlu0 %1936  ;;  %v2134_v45 = vmul.f32 %v11125_v10, %v2098_v54  ;;  %v11140_v1 = vadd.f32 %v11133_v9, %v2133_v39 }
 0x5ed   :  { %v9347_v33 = vpop.eup %9346  ;;  %9356 = vrsqrt.f32 %v2041_v58  ;;  %v2042_v37 = vadd.f32 1e-05, %v2010_v48  ;;  %v2011_v15 = vmul.f32 0.015625, %v1937_v2 }
 0x5ee   :  { %v2135_v51 = vmul.f32 %v11125_v10, %v2099_v47  ;;  %v2100_v7 = vmul.f32 %v9347_v33, %v10942_v56  ;;  %v1940_v55 = vpop.xlane.xlu1 %1939  ;;  %v11143_v29 = vadd.f32 %v11133_v9, %v2134_v45 }
 0x5ef   :  { %v9349_v26 = vpop.eup %9348  ;;  %9358 = vrsqrt.f32 %v2042_v37  ;;  %v2043_v6 = vadd.f32 1e-05, %v2011_v15  ;;  %v2012_v11 = vmul.f32 0.015625, %v1940_v55 }
 0x5f0   :  { %v2136_v17 = vmul.f32 %v11125_v10, %v2100_v7  ;;  %v1943_v52 = vpop.xlane.xlu0 %1942  ;;  %v2209_v31 = vpack.c.bf16 %v11143_v29, %v11140_v1  ;;  %v2101_v13 = vmul.f32 %v9349_v26, %v10948_v5  ;;  %v11150_v34 = vadd.f32 %v11133_v9, %v2135_v51 }
 0x5f1   :  { %v9351_v56 = vpop.eup %9350  ;;  %9360 = vrsqrt.f32 %v2043_v6  ;;  %v2044_v8 = vadd.f32 1e-05, %v2012_v11  ;;  %v2013_v41 = vmul.f32 0.015625, %v1943_v52 }
 0x5f2   :  { %v11153_v59 = vadd.f32 %v11133_v9, %v2136_v17  ;;  %v1946_v14 = vpop.xlane.xlu1 %1945  ;;  %8775 = vmatprep.mubr.msk.bf16.mxu0 %vm406_vm1, %v2209_v31  ;;  %v2102_v61 = vmul.f32 %v9351_v56, %v10954_v42  ;;  %v2137_v22 = vmul.f32 %v11125_v10, %v2101_v13 }
 0x5f3   :  { %v9353_v60 = vpop.eup %9352  ;;  %9362 = vrsqrt.f32 %v2044_v8  ;;  %v2045_v5 = vadd.f32 1e-05, %v2013_v41  ;;  %v2014_v20 = vmul.f32 0.015625, %v1946_v14 }
 0x5f4   :  { %v1949_v0 = vpop.xlane.xlu0 %1948  ;;  %v2210_v54 = vpack.c.bf16 %v11153_v59, %v11150_v34  ;;  %v2138_v39 = vmul.f32 %v11125_v10, %v2102_v61  ;;  %v2103_v49 = vmul.f32 %v9353_v60, %v10960_v32  ;;  %v11164_v42 = vadd.f32 %v11133_v9, %v2137_v22 }
 0x5f5   :  { %v9355_v58 = vpop.eup %9354  ;;  %9364 = vrsqrt.f32 %v2045_v5  ;;  %v2046_v48 = vadd.f32 1e-05, %v2014_v20  ;;  %v2015_v47 = vmul.f32 0.015625, %v1949_v0 }
 0x5f6   :  { %v1952_v2 = vpop.xlane.xlu1 %1951  ;;  %8776 = vmatmul.mubr.msk.bf16.vlgmr.msra.gmra.mrb[64].mxu0 %vm406_vm1, %v2210_v54  ;;  %v11167_v45 = vadd.f32 %v11133_v9, %v2138_v39  ;;  %v2104_v33 = vmul.f32 %v9355_v58, %v10966_v16  ;;  %v2139_v37 = vmul.f32 %v11125_v10, %v2103_v49 }
 0x5f7   :  { %v9357_v15 = vpop.eup %9356  ;;  %9366 = vrsqrt.f32 %v2046_v48  ;;  %v2047_v32 = vadd.f32 1e-05, %v2015_v47  ;;  %v2016_v51 = vmul.f32 0.015625, %v1952_v2 }
 0x5f8   :  { %v1955_v7 = vpop.xlane.xlu0 %1954  ;;  %v2211_v55 = vpack.c.bf16 %v11167_v45, %v11164_v42  ;;  %v2140_v26 = vmul.f32 %v11125_v10, %v2104_v33  ;;  %v2105_v6 = vmul.f32 %v9357_v15, %v10972_v28  ;;  %v11177_v16 = vadd.f32 %v11133_v9, %v2139_v37 }
 0x5f9   :  { %v9359_v11 = vpop.eup %9358  ;;  %9368 = vrsqrt.f32 %v2047_v32  ;;  %v2048_v17 = vadd.f32 1e-05, %v2016_v51  ;;  %v2017_v52 = vmul.f32 0.015625, %v1955_v7 }
 0x5fa   :  { %v1958_v31 = vpop.xlane.xlu1 %1957  ;;  %8779 = vmatprep.mubr.msk.bf16.mxu0 %vm406_vm1, %v2211_v55  ;;  %v11180_v13 = vadd.f32 %v11133_v9, %v2140_v26  ;;  %v2106_v56 = vmul.f32 %v9359_v11, %v10978_v38  ;;  %v2141_v8 = vmul.f32 %v11125_v10, %v2105_v6 }
 0x5fb   :  { %v9361_v41 = vpop.eup %9360  ;;  %9370 = vrsqrt.f32 %v2048_v17  ;;  %v2049_v28 = vadd.f32 1e-05, %v2017_v52  ;;  %v2018_v14 = vmul.f32 0.015625, %v1958_v31 }
 0x5fc   :  { %v1961_v61 = vpop.xlane.xlu0 %1960  ;;  %v2212_v22 = vpack.c.bf16 %v11180_v13, %v11177_v16  ;;  %v2142_v60 = vmul.f32 %v11125_v10, %v2106_v56  ;;  %v2107_v5 = vmul.f32 %v9361_v41, %v10984_v24  ;;  %v11190_v38 = vadd.f32 %v11133_v9, %v2141_v8 }
 0x5fd   :  { %v9363_v20 = vpop.eup %9362  ;;  %9372 = vrsqrt.f32 %v2049_v28  ;;  %v2050_v0 = vadd.f32 1e-05, %v2018_v14  ;;  %v2019_v54 = vmul.f32 0.015625, %v1961_v61 }
 0x5fe   :  { %v1964_v39 = vpop.xlane.xlu1 %1963  ;;  %8780 = vmatmul.mubr.msk.bf16.gmra.mrb[68].mxu0 %vm406_vm1, %v2212_v22  ;;  %v11193_v49 = vadd.f32 %v11133_v9, %v2142_v60  ;;  %v2108_v58 = vmul.f32 %v9363_v20, %v10990_v23  ;;  %v2143_v48 = vmul.f32 %v11125_v10, %v2107_v5 }
 0x5ff   :  { %v9365_v47 = vpop.eup %9364  ;;  %9374 = vrsqrt.f32 %v2050_v0  ;;  %v2051_v24 = vadd.f32 1e-05, %v2019_v54  ;;  %v2020_v2 = vmul.f32 0.015625, %v1964_v39 }
 0x600   :  { %v1967_v33 = vpop.xlane.xlu0 %1966  ;;  %v2213_v37 = vpack.c.bf16 %v11193_v49, %v11190_v38  ;;  %v2144_v15 = vmul.f32 %v11125_v10, %v2108_v58  ;;  %v2109_v32 = vmul.f32 %v9365_v47, %v10996_v44  ;;  %v11203_v23 = vadd.f32 %v11133_v9, %v2143_v48 }
 0x601   :  { %v9367_v51 = vpop.eup %9366  ;;  %9376 = vrsqrt.f32 %v2051_v24  ;;  %v2052_v7 = vadd.f32 1e-05, %v2020_v2  ;;  %v2021_v55 = vmul.f32 0.015625, %v1967_v33 }
 0x602   :  { %v1970_v26 = vpop.xlane.xlu1 %1969  ;;  %8783 = vmatprep.mubr.msk.bf16.mxu0 %vm406_vm1, %v2213_v37  ;;  %v11206_v6 = vadd.f32 %v11133_v9, %v2144_v15  ;;  %v2110_v11 = vmul.f32 %v9367_v51, %v11002_v27  ;;  %v2145_v17 = vmul.f32 %v11125_v10, %v2109_v32 }
 0x603   :  { %v9369_v52 = vpop.eup %9368  ;;  %9378 = vrsqrt.f32 %v2052_v7  ;;  %v2053_v44 = vadd.f32 1e-05, %v2021_v55  ;;  %v2022_v31 = vmul.f32 0.015625, %v1970_v26 }
 0x604   :  { %v1973_v56 = vpop.xlane.xlu0 %1972  ;;  %v2214_v8 = vpack.c.bf16 %v11206_v6, %v11203_v23  ;;  %v2146_v41 = vmul.f32 %v11125_v10, %v2110_v11  ;;  %v2111_v28 = vmul.f32 %v9369_v52, %v11008_v43  ;;  %v11216_v27 = vadd.f32 %v11133_v9, %v2145_v17 }
 0x605   :  { %v9371_v14 = vpop.eup %9370  ;;  %9380 = vrsqrt.f32 %v2053_v44  ;;  %v2054_v61 = vadd.f32 1e-05, %v2022_v31  ;;  %v2023_v22 = vmul.f32 0.015625, %v1973_v56 }
 0x606   :  { %v1976_v60 = vpop.xlane.xlu1 %1975  ;;  %8784 = vmatmul.mubr.msk.bf16.gmra.mrb[72].mxu0 %vm406_vm1, %v2214_v8  ;;  %v11219_v5 = vadd.f32 %v11133_v9, %v2146_v41  ;;  %v2112_v20 = vmul.f32 %v9371_v14, %v11014_v35  ;;  %v2147_v0 = vmul.f32 %v11125_v10, %v2111_v28 }
 0x607   :  { %v9373_v54 = vpop.eup %9372  ;;  %9382 = vrsqrt.f32 %v2054_v61  ;;  %v2055_v43 = vadd.f32 1e-05, %v2023_v22  ;;  %v2024_v39 = vmul.f32 0.015625, %v1976_v60 }
 0x608   :  { %v1979_v58 = vpop.xlane.xlu0 %1978  ;;  %v2215_v48 = vpack.c.bf16 %v11219_v5, %v11216_v27  ;;  %v2148_v47 = vmul.f32 %v11125_v10, %v2112_v20  ;;  %v2113_v24 = vmul.f32 %v9373_v54, %v11020_v18  ;;  %v11229_v35 = vadd.f32 %v11133_v9, %v2147_v0 }
 0x609   :  { %v9375_v2 = vpop.eup %9374  ;;  %9384 = vrsqrt.f32 %v2055_v43  ;;  %v2056_v33 = vadd.f32 1e-05, %v2024_v39  ;;  %v2025_v37 = vmul.f32 0.015625, %v1979_v58 }
 0x60a   :  { %v1982_v15 = vpop.xlane.xlu1 %1981  ;;  %8787 = vmatprep.mubr.msk.bf16.mxu0 %vm406_vm1, %v2215_v48  ;;  %v11232_v32 = vadd.f32 %v11133_v9, %v2148_v47  ;;  %v2114_v51 = vmul.f32 %v9375_v2, %v11026_v40  ;;  %v2149_v7 = vmul.f32 %v11125_v10, %v2113_v24 }
 0x60b   :  { %v9377_v55 = vpop.eup %9376  ;;  %9386 = vrsqrt.f32 %v2056_v33  ;;  %v2057_v18 = vadd.f32 1e-05, %v2025_v37  ;;  %v2026_v26 = vmul.f32 0.015625, %v1982_v15 }
 0x60c   :  { %v1985_v11 = vpop.xlane.xlu0 %1984  ;;  %v2216_v17 = vpack.c.bf16 %v11232_v32, %v11229_v35  ;;  %v2150_v52 = vmul.f32 %v11125_v10, %v2114_v51  ;;  %v2115_v44 = vmul.f32 %v9377_v55, %v11032_v19  ;;  %v11242_v40 = vadd.f32 %v11133_v9, %v2149_v7 }
 0x60d   :  { %v9379_v31 = vpop.eup %9378  ;;  %9388 = vrsqrt.f32 %v2057_v18  ;;  %v2058_v56 = vadd.f32 1e-05, %v2026_v26  ;;  %v2027_v8 = vmul.f32 0.015625, %v1985_v11 }
 0x60e   :  { %v1988_v41 = vpop.xlane.xlu1 %1987  ;;  %8788 = vmatmul.mubr.msk.bf16.gmra.mrb[76].mxu0 %vm406_vm1, %v2216_v17  ;;  %v11245_v28 = vadd.f32 %v11133_v9, %v2150_v52  ;;  %v2116_v14 = vmul.f32 %v9379_v31, %v11038_v30  ;;  %v2151_v61 = vmul.f32 %v11125_v10, %v2115_v44 }
 0x60f   :  { %v9381_v22 = vpop.eup %9380  ;;  %9390 = vrsqrt.f32 %v2058_v56  ;;  %v2059_v19 = vadd.f32 1e-05, %v2027_v8  ;;  %v2028_v60 = vmul.f32 0.015625, %v1988_v41 }
 0x610   :  { %v1991_v20 = vpop.xlane.xlu0 %1990  ;;  %v2217_v0 = vpack.c.bf16 %v11245_v28, %v11242_v40  ;;  %v2152_v54 = vmul.f32 %v11125_v10, %v2116_v14  ;;  %v2117_v43 = vmul.f32 %v9381_v22, %v11044_v21  ;;  %v11255_v30 = vadd.f32 %v11133_v9, %v2151_v61 }
 0x611   :  { %v9383_v39 = vpop.eup %9382  ;;  %9392 = vrsqrt.f32 %v2059_v19  ;;  %v2060_v58 = vadd.f32 1e-05, %v2028_v60  ;;  %v2029_v48 = vmul.f32 0.015625, %v1991_v20 }
 0x612   :  { %v1994_v47 = vpop.xlane.xlu1 %1993  ;;  %8791 = vmatprep.mubr.msk.bf16.mxu0 %vm406_vm1, %v2217_v0  ;;  %v11258_v24 = vadd.f32 %v11133_v9, %v2152_v54  ;;  %v2118_v2 = vmul.f32 %v9383_v39, %v11050_v4  ;;  %v2153_v33 = vmul.f32 %v11125_v10, %v2117_v43 }
 0x613   :  { %v9385_v37 = vpop.eup %9384  ;;  %9394 = vrsqrt.f32 %v2060_v58  ;;  %v2061_v21 = vadd.f32 1e-05, %v2029_v48  ;;  %v2030_v15 = vmul.f32 0.015625, %v1994_v47 }
 0x614   :  { %v1997_v51 = vpop.xlane.xlu0 %1996  ;;  %v2218_v7 = vpack.c.bf16 %v11258_v24, %v11255_v30  ;;  %v2154_v55 = vmul.f32 %v11125_v10, %v2118_v2  ;;  %v2119_v18 = vmul.f32 %v9385_v37, %v11056_v12  ;;  %v11268_v4 = vadd.f32 %v11133_v9, %v2153_v33 }
 0x615   :  { %v9387_v26 = vpop.eup %9386  ;;  %9396 = vrsqrt.f32 %v2061_v21  ;;  %v2062_v11 = vadd.f32 1e-05, %v2030_v15  ;;  %v2031_v17 = vmul.f32 0.015625, %v1997_v51 }
 0x616   :  { %v2000_v52 = vpop.xlane.xlu1 %1999  ;;  %8792 = vmatmul.mubr.msk.bf16.gmra.mrb[80].mxu0 %vm406_vm1, %v2218_v7  ;;  %v11271_v44 = vadd.f32 %v11133_v9, %v2154_v55  ;;  %v2120_v31 = vmul.f32 %v9387_v26, %v11065_v25  ;;  %v2155_v56 = vmul.f32 %v11125_v10, %v2119_v18 }
 0x617   :  { %v9389_v8 = vpop.eup %9388  ;;  %9398 = vrsqrt.f32 %v2062_v11  ;;  %v2063_v12 = vadd.f32 1e-05, %v2031_v17  ;;  %v2032_v41 = vmul.f32 0.015625, %v2000_v52 }
 0x618   :  { %v2219_v14 = vpack.c.bf16 %v11271_v44, %v11268_v4  ;;  %v2156_v61 = vmul.f32 %v11125_v10, %v2120_v31  ;;  %v2121_v22 = vmul.f32 %v9389_v8, %v11071_v50  ;;  %v11281_v25 = vadd.f32 %v11133_v9, %v2155_v56 }
 0x619   :  { %v9391_v19 = vpop.eup %9390  ;;  %9400 = vrsqrt.f32 %v2063_v12  ;;  %v2064_v60 = vadd.f32 1e-05, %v2032_v41 }
 0x61a   :  { %8795 = vmatprep.mubr.msk.bf16.mxu0 %vm406_vm1, %v2219_v14  ;;  %v11284_v20 = vadd.f32 %v11133_v9, %v2156_v61  ;;  %v2122_v0 = vmul.f32 %v9391_v19, %v11077_v3  ;;  %v2157_v54 = vmul.f32 %v11125_v10, %v2121_v22 }
 0x61b   :  { %v9393_v43 = vpop.eup %9392  ;;  %9402 = vrsqrt.f32 %v2064_v60 }
 0x61c   :  { %v2220_v50 = vpack.c.bf16 %v11284_v20, %v11281_v25  ;;  %v2158_v39 = vmul.f32 %v11125_v10, %v2122_v0  ;;  %v2123_v58 = vmul.f32 %v9393_v43, %v11083_v62  ;;  %v11294_v47 = vadd.f32 %v11133_v9, %v2157_v54 }
 0x61d   :  { %v9395_v48 = vpop.eup %9394 }
 0x61e   :  { %8796 = vmatmul.mubr.msk.bf16.gmra.mrb[84].mxu0 %vm406_vm1, %v2220_v50  ;;  %v11297_v2 = vadd.f32 %v11133_v9, %v2158_v39  ;;  %v2124_v3 = vmul.f32 %v9395_v48, %v11089_v36  ;;  %v2159_v33 = vmul.f32 %v11125_v10, %v2123_v58 }
 0x61f   :  { %v9397_v37 = vpop.eup %9396 }
 0x620   :  { %v2221_v21 = vpack.c.bf16 %v11297_v2, %v11294_v47  ;;  %v2160_v15 = vmul.f32 %v11125_v10, %v2124_v3  ;;  %v2125_v62 = vmul.f32 %v9397_v37, %v11095_v57  ;;  %v11307_v7 = vadd.f32 %v11133_v9, %v2159_v33 }
 0x621   :  { %v9399_v51 = vpop.eup %9398 }
 0x622   :  { %8799 = vmatprep.mubr.msk.bf16.mxu0 %vm406_vm1, %v2221_v21  ;;  %v11310_v55 = vadd.f32 %v11133_v9, %v2160_v15  ;;  %v2126_v36 = vmul.f32 %v9399_v51, %v11101_v46  ;;  %v2161_v18 = vmul.f32 %v11125_v10, %v2125_v62 }
 0x623   :  { %v9401_v26 = vpop.eup %9400 }
 0x624   :  { %v2222_v11 = vpack.c.bf16 %v11310_v55, %v11307_v7  ;;  %v2162_v17 = vmul.f32 %v11125_v10, %v2126_v36  ;;  %v2127_v57 = vmul.f32 %v9401_v26, %v11107_v63  ;;  %v11320_v31 = vadd.f32 %v11133_v9, %v2161_v18 }
 0x625   :  { %v9403_v52 = vpop.eup %9402 }
 0x626   :  { %8800 = vmatmul.mubr.msk.bf16.gmra.mrb[88].mxu0 %vm406_vm1, %v2222_v11  ;;  %v11323_v56 = vadd.f32 %v11133_v9, %v2162_v17  ;;  %v2128_v46 = vmul.f32 %v9403_v52, %v11113_v53  ;;  %v2163_v8 = vmul.f32 %v11125_v10, %v2127_v57  ;;  %v11343_v53 = vld [vmem:[%s15276_s3 + $0x9] ss:$0 sm:$0xff] }
 0x628   :  { %v2223_v12 = vpack.c.bf16 %v11323_v56, %v11320_v31  ;;  %v2164_v41 = vmul.f32 %v11125_v10, %v2128_v46  ;;  %v11332_v63 = vadd.f32 %v11133_v9, %v2163_v8 }
 0x62a   :  { %8803 = vmatprep.mubr.msk.bf16.mxu0 %vm406_vm1, %v2223_v12  ;;  %v11335_v14 = vadd.f32 %v11133_v9, %v2164_v41 }
 0x62c   :  { %v2224_v61 = vpack.c.bf16 %v11335_v14, %v11332_v63 }
 0x62e   :  { %8804 = vmatmul.mubr.msk.bf16.gmra.mrb[92].mxu0 %vm406_vm1, %v2224_v61 }
 0x6c9   :  { %v8777_v22 = vpop.f32.mrb[64].mxu0 }
 0x6ca   :  { %v2336_v10 = vpop.f32.mrb[65].mxu0  ;;  %v2345_v19 = vadd.f32 %v8777_v22, %v11343_v53 }
 0x6cb   :  { %v2337_v60 = vadd.f32 %v11343_v53, %v2336_v10  ;;  %v8778_v0 = vpop.f32.mrb[66].mxu0 }
 0x6cc   :  { %v2339_v54 = vpop.f32.mrb[67].mxu0  ;;  %v2348_v43 = vadd.f32 %v8778_v0, %v11343_v53  ;;  %v11353_v39 = vadd.f32 %v2345_v19, %v11150_v34 }
 0x6cd   :  { %v11348_v9 = vadd.f32 %v2337_v60, %v11140_v1  ;;  %v2340_v50 = vadd.f32 %v11343_v53, %v2339_v54 }
 0x6ce   :  { %v11361_v3 = vadd.f32 %v2348_v43, %v11153_v59 }
 0x6cf   :  { %v11356_v58 = vadd.f32 %v2340_v50, %v11143_v29  ;;  %v2497_v48 = vsel %vm406_vm1, %v11348_v9, 0.0  ;;  %v2503_v29 = vsel %vm406_vm1, %v11353_v39, 0.0 }
 0x6d0   :  { %2498 = vadd.xlane.f32.xlu0 %v2497_v48  ;;  %v2506_v18 = vsel %vm406_vm1, %v11361_v3, 0.0 }
 0x6d1   :  { %v8781_v33 = vpop.f32.mrb[68].mxu0  ;;  %v2500_v1 = vsel %vm406_vm1, %v11356_v58, 0.0 }
 0x6d2   :  { %2501 = vadd.xlane.f32.xlu1 %v2500_v1  ;;  %v2352_v37 = vpop.f32.mrb[69].mxu0  ;;  %v2361_v21 = vadd.f32 %v8781_v33, %v11343_v53 }
 0x6d3   :  { %v2353_v34 = vadd.f32 %v11343_v53, %v2352_v37  ;;  %v8782_v15 = vpop.f32.mrb[70].mxu0 }
 0x6d4   :  { %2504 = vadd.xlane.f32.xlu0 %v2503_v29  ;;  %v2355_v62 = vpop.f32.mrb[71].mxu0  ;;  %v2364_v59 = vadd.f32 %v8782_v15, %v11343_v53  ;;  %v11377_v26 = vadd.f32 %v2361_v21, %v11177_v16 }
 0x6d5   :  { %v11370_v51 = vadd.f32 %v2353_v34, %v11164_v42  ;;  %v2356_v36 = vadd.f32 %v11343_v53, %v2355_v62 }
 0x6d6   :  { %2507 = vadd.xlane.f32.xlu1 %v2506_v18  ;;  %v11385_v42 = vadd.f32 %v2364_v59, %v11180_v13 }
 0x6d7   :  { %v11380_v11 = vadd.f32 %v2356_v36, %v11167_v45  ;;  %v2509_v17 = vsel %vm406_vm1, %v11370_v51, 0.0  ;;  %v2515_v45 = vsel %vm406_vm1, %v11377_v26, 0.0 }
 0x6d8   :  { %2510 = vadd.xlane.f32.xlu0 %v2509_v17  ;;  %v2518_v10 = vsel %vm406_vm1, %v11385_v42, 0.0 }
 0x6d9   :  { %v8785_v57 = vpop.f32.mrb[72].mxu0  ;;  %v2512_v52 = vsel %vm406_vm1, %v11380_v11, 0.0 }
 0x6da   :  { %2513 = vadd.xlane.f32.xlu1 %v2512_v52  ;;  %v2368_v46 = vpop.f32.mrb[73].mxu0  ;;  %v2377_v8 = vadd.f32 %v8785_v57, %v11343_v53 }
 0x6db   :  { %v2369_v16 = vadd.f32 %v11343_v53, %v2368_v46  ;;  %v8786_v12 = vpop.f32.mrb[74].mxu0 }
 0x6dc   :  { %2516 = vadd.xlane.f32.xlu0 %v2515_v45  ;;  %v2371_v41 = vpop.f32.mrb[75].mxu0  ;;  %v2380_v13 = vadd.f32 %v8786_v12, %v11343_v53  ;;  %v11401_v19 = vadd.f32 %v2377_v8, %v11203_v23 }
 0x6dd   :  { %v11394_v61 = vadd.f32 %v2369_v16, %v11190_v38  ;;  %v2372_v22 = vadd.f32 %v11343_v53, %v2371_v41 }
 0x6de   :  { %2519 = vadd.xlane.f32.xlu1 %v2518_v10  ;;  %v11409_v38 = vadd.f32 %v2380_v13, %v11206_v6 }
 0x6df   :  { %v11404_v60 = vadd.f32 %v2372_v22, %v11193_v49  ;;  %v2521_v0 = vsel %vm406_vm1, %v11394_v61, 0.0  ;;  %v2527_v49 = vsel %vm406_vm1, %v11401_v19, 0.0 }
 0x6e0   :  { %2522 = vadd.xlane.f32.xlu0 %v2521_v0  ;;  %v2530_v34 = vsel %vm406_vm1, %v11409_v38, 0.0 }
 0x6e1   :  { %v8789_v54 = vpop.f32.mrb[76].mxu0  ;;  %v2524_v43 = vsel %vm406_vm1, %v11404_v60, 0.0 }
 0x6e2   :  { %2525 = vadd.xlane.f32.xlu1 %v2524_v43  ;;  %v2384_v50 = vpop.f32.mrb[77].mxu0  ;;  %v2393_v48 = vadd.f32 %v8789_v54, %v11343_v53 }
 0x6e3   :  { %v2385_v23 = vadd.f32 %v11343_v53, %v2384_v50  ;;  %v8790_v33 = vpop.f32.mrb[78].mxu0 }
 0x6e4   :  { %2528 = vadd.xlane.f32.xlu0 %v2527_v49  ;;  %v2387_v1 = vpop.f32.mrb[79].mxu0  ;;  %v2396_v6 = vadd.f32 %v8790_v33, %v11343_v53  ;;  %v11425_v15 = vadd.f32 %v2393_v48, %v11229_v35 }
 0x6e5   :  { %v11418_v37 = vadd.f32 %v2385_v23, %v11216_v27  ;;  %v2388_v21 = vadd.f32 %v11343_v53, %v2387_v1 }
 0x6e6   :  { %2531 = vadd.xlane.f32.xlu1 %v2530_v34  ;;  %v11433_v27 = vadd.f32 %v2396_v6, %v11232_v32 }
 0x6e7   :  { %v11428_v29 = vadd.f32 %v2388_v21, %v11219_v5  ;;  %v2533_v62 = vsel %vm406_vm1, %v11418_v37, 0.0  ;;  %v2539_v5 = vsel %vm406_vm1, %v11425_v15, 0.0 }
 0x6e8   :  { %2534 = vadd.xlane.f32.xlu0 %v2533_v62  ;;  %v2542_v16 = vsel %vm406_vm1, %v11433_v27, 0.0 }
 0x6e9   :  { %v8793_v59 = vpop.f32.mrb[80].mxu0  ;;  %v2536_v36 = vsel %vm406_vm1, %v11428_v29, 0.0 }
 0x6ea   :  { %2537 = vadd.xlane.f32.xlu1 %v2536_v36  ;;  %v2400_v18 = vpop.f32.mrb[81].mxu0  ;;  %v2409_v17 = vadd.f32 %v8793_v59, %v11343_v53 }
 0x6eb   :  { %v2401_v35 = vadd.f32 %v11343_v53, %v2400_v18  ;;  %v8794_v57 = vpop.f32.mrb[82].mxu0 }
 0x6ec   :  { %2540 = vadd.xlane.f32.xlu0 %v2539_v5  ;;  %v2403_v52 = vpop.f32.mrb[83].mxu0  ;;  %v2412_v32 = vadd.f32 %v8794_v57, %v11343_v53  ;;  %v11449_v12 = vadd.f32 %v2409_v17, %v11255_v30 }
 0x6ed   :  { %v11442_v46 = vadd.f32 %v2401_v35, %v11242_v40  ;;  %v2404_v8 = vadd.f32 %v11343_v53, %v2403_v52 }
 0x6ee   :  { %2543 = vadd.xlane.f32.xlu1 %v2542_v16  ;;  %v11457_v40 = vadd.f32 %v2412_v32, %v11258_v24 }
 0x6ef   :  { %v11452_v45 = vadd.f32 %v2404_v8, %v11245_v28  ;;  %v2545_v41 = vsel %vm406_vm1, %v11442_v46, 0.0  ;;  %v2551_v28 = vsel %vm406_vm1, %v11449_v12, 0.0 }
 0x6f0   :  { %2546 = vadd.xlane.f32.xlu0 %v2545_v41  ;;  %v2554_v23 = vsel %vm406_vm1, %v11457_v40, 0.0 }
 0x6f1   :  { %v8797_v13 = vpop.f32.mrb[84].mxu0  ;;  %v2548_v22 = vsel %vm406_vm1, %v11452_v45, 0.0 }
 0x6f2   :  { %2549 = vadd.xlane.f32.xlu1 %v2548_v22  ;;  %v2416_v10 = vpop.f32.mrb[85].mxu0  ;;  %v2425_v0 = vadd.f32 %v8797_v13, %v11343_v53 }
 0x6f3   :  { %v2417_v30 = vadd.f32 %v11343_v53, %v2416_v10  ;;  %v8798_v54 = vpop.f32.mrb[86].mxu0 }
 0x6f4   :  { %2552 = vadd.xlane.f32.xlu0 %v2551_v28  ;;  %v2419_v43 = vpop.f32.mrb[87].mxu0  ;;  %v2428_v24 = vadd.f32 %v8798_v54, %v11343_v53  ;;  %v11473_v33 = vadd.f32 %v2425_v0, %v11281_v25 }
 0x6f5   :  { %v11466_v50 = vadd.f32 %v2417_v30, %v11268_v4  ;;  %v2420_v48 = vadd.f32 %v11343_v53, %v2419_v43 }
 0x6f6   :  { %2555 = vadd.xlane.f32.xlu1 %v2554_v23  ;;  %v11481_v4 = vadd.f32 %v2428_v24, %v11284_v20 }
 0x6f7   :  { %v11476_v49 = vadd.f32 %v2420_v48, %v11271_v44  ;;  %v2557_v1 = vsel %vm406_vm1, %v11466_v50, 0.0  ;;  %v2563_v44 = vsel %vm406_vm1, %v11473_v33, 0.0  ;;  %v9230_v48 = vld [vmem:[%s15277_s2 + $0x30] sm:$0xff]  }
 0x6f8   :  { %2558 = vadd.xlane.f32.xlu0 %v2557_v1  ;;  %v2566_v35 = vsel %vm406_vm1, %v11481_v4, 0.0 }
 0x6f9   :  { %v8801_v6 = vpop.f32.mrb[88].mxu0  ;;  %v2560_v21 = vsel %vm406_vm1, %v11476_v49, 0.0 }
 0x6fa   :  { %2561 = vadd.xlane.f32.xlu1 %v2560_v21  ;;  %v2432_v34 = vpop.f32.mrb[89].mxu0  ;;  %v2441_v62 = vadd.f32 %v8801_v6, %v11343_v53 }
 0x6fb   :  { %v2433_v25 = vadd.f32 %v11343_v53, %v2432_v34  ;;  %v8802_v59 = vpop.f32.mrb[90].mxu0 }
 0x6fc   :  { %2564 = vadd.xlane.f32.xlu0 %v2563_v44  ;;  %v2435_v36 = vpop.f32.mrb[91].mxu0  ;;  %v2444_v20 = vadd.f32 %v8802_v59, %v11343_v53  ;;  %v11497_v57 = vadd.f32 %v2441_v62, %v11307_v7 }
 0x6fd   :  { %v11490_v18 = vadd.f32 %v2433_v25, %v11294_v47  ;;  %v2436_v17 = vadd.f32 %v11343_v53, %v2435_v36 }
 0x6fe   :  { %2567 = vadd.xlane.f32.xlu1 %v2566_v35  ;;  %v11505_v47 = vadd.f32 %v2444_v20, %v11310_v55 }
 0x6ff   :  { %v11500_v5 = vadd.f32 %v2436_v17, %v11297_v2  ;;  %v2569_v52 = vsel %vm406_vm1, %v11490_v18, 0.0  ;;  %v2575_v2 = vsel %vm406_vm1, %v11497_v57, 0.0 }
 0x700   :  { %2570 = vadd.xlane.f32.xlu0 %v2569_v52  ;;  %v2578_v30 = vsel %vm406_vm1, %v11505_v47, 0.0 }
 0x701   :  { %v8805_v32 = vpop.f32.mrb[92].mxu0  ;;  %v2572_v8 = vsel %vm406_vm1, %v11500_v5, 0.0 }
 0x702   :  { %2573 = vadd.xlane.f32.xlu1 %v2572_v8  ;;  %v2448_v16 = vpop.f32.mrb[93].mxu0  ;;  %v2457_v41 = vadd.f32 %v8805_v32, %v11343_v53 }
 0x703   :  { %v2449_v7 = vadd.f32 %v11343_v53, %v2448_v16  ;;  %v8806_v13 = vpop.f32.mrb[94].mxu0 }
 0x704   :  { %2576 = vadd.xlane.f32.xlu0 %v2575_v2  ;;  %v2451_v22 = vpop.f32.mrb[95].mxu0  ;;  %v2460_v55 = vadd.f32 %v8806_v13, %v11343_v53  ;;  %v11521_v54 = vadd.f32 %v2457_v41, %v11332_v63 }
 0x705   :  { %v11514_v10 = vadd.f32 %v2449_v7, %v11320_v31  ;;  %v2452_v0 = vadd.f32 %v11343_v53, %v2451_v22 }
 0x706   :  { %2579 = vadd.xlane.f32.xlu1 %v2578_v30  ;;  %v11529_v31 = vadd.f32 %v2460_v55, %v11335_v14  ;;  %v2587_v24 = vsel %vm406_vm1, %v11521_v54, 0.0  ;;  %v9229_v14 = vld [vmem:[%s15277_s2 + $0x28] sm:$0xff]  }
 0x707   :  { %v11524_v28 = vadd.f32 %v2452_v0, %v11323_v56  ;;  %v2581_v43 = vsel %vm406_vm1, %v11514_v10, 0.0  ;;  %v9228_v56 = vld [vmem:[%s15277_s2 + $0x20] sm:$0xff]  }
 0x708   :  { %2582 = vadd.xlane.f32.xlu0 %v2581_v43  ;;  %v2590_v63 = vsel %vm406_vm1, %v11529_v31, 0.0  ;;  %8807 = vmatprep.subr.bf16.mxu1 %v9228_v56 }
 0x709   :  { %v2584_v53 = vsel %vm406_vm1, %v11524_v28, 0.0  ;;  %8808 = vmatpush3.bf16.msra.mxu1 %v9228_v56 }
 0x70a   :  { %2585 = vadd.xlane.f32.xlu1 %v2584_v53  ;;  %8809 = vmatprep.subr.bf16.mxu1 %v9229_v14 }
 0x70c   :  { %2588 = vadd.xlane.f32.xlu0 %v2587_v24 }
 0x70d   :  { %8810 = vmatpush3.bf16.msra.mxu1 %v9229_v14 }
 0x70e   :  { %2591 = vadd.xlane.f32.xlu1 %v2590_v63  ;;  %8811 = vmatprep.subr.bf16.mxu1 %v9230_v48 }
 0x711   :  { %8812 = vmatpush3.bf16.msra.mxu1 %v9230_v48 }
 0x75d   :  { %v2499_v23 = vpop.xlane.xlu0 %2498 }
 0x75e   :  { %v2593_v1 = vmul.f32 0.015625, %v2499_v23 }
 0x75f   :  { %v2502_v6 = vpop.xlane.xlu1 %2501 }
 0x760   :  { %v11547_v21 = vsub.f32 %v11348_v9, %v2593_v1  ;;  %v2594_v34 = vmul.f32 0.015625, %v2502_v6 }
 0x761   :  { %v2505_v62 = vpop.xlane.xlu0 %2504 }
 0x762   :  { %v11550_v25 = vsub.f32 %v11356_v58, %v2594_v34  ;;  %v2595_v59 = vmul.f32 0.015625, %v2505_v62  ;;  %v2657_v44 = vmul.f32 %v11547_v21, %v11547_v21 }
 0x763   :  { %v2508_v36 = vpop.xlane.xlu1 %2507 }
 0x764   :  { %v11555_v20 = vsub.f32 %v11353_v39, %v2595_v59  ;;  %v2596_v17 = vmul.f32 0.015625, %v2508_v36  ;;  %v2689_v35 = vsel %vm406_vm1, %v2657_v44, 0.0  ;;  %v2658_v9 = vmul.f32 %v11550_v25, %v11550_v25 }
 0x765   :  { %2690 = vadd.xlane.f32.xlu0 %v2689_v35  ;;  %v2511_v52 = vpop.xlane.xlu0 %2510 }
 0x766   :  { %v11561_v32 = vsub.f32 %v11361_v3, %v2596_v17  ;;  %v2597_v58 = vmul.f32 0.015625, %v2511_v52  ;;  %v2692_v8 = vsel %vm406_vm1, %v2658_v9, 0.0  ;;  %v2659_v16 = vmul.f32 %v11555_v20, %v11555_v20 }
 0x767   :  { %v2514_v41 = vpop.xlane.xlu1 %2513  ;;  %2693 = vadd.xlane.f32.xlu1 %v2692_v8 }
 0x768   :  { %v11567_v39 = vsub.f32 %v11370_v51, %v2597_v58  ;;  %v2598_v7 = vmul.f32 0.015625, %v2514_v41  ;;  %v2695_v13 = vsel %vm406_vm1, %v2659_v16, 0.0  ;;  %v2660_v2 = vmul.f32 %v11561_v32, %v11561_v32 }
 0x769   :  { %2696 = vadd.xlane.f32.xlu0 %v2695_v13  ;;  %v2517_v3 = vpop.xlane.xlu0 %2516 }
 0x76a   :  { %v11573_v22 = vsub.f32 %v11380_v11, %v2598_v7  ;;  %v2599_v55 = vmul.f32 0.015625, %v2517_v3  ;;  %v2698_v0 = vsel %vm406_vm1, %v2660_v2, 0.0  ;;  %v2661_v30 = vmul.f32 %v11567_v39, %v11567_v39 }
 0x76b   :  { %v2520_v43 = vpop.xlane.xlu1 %2519  ;;  %2699 = vadd.xlane.f32.xlu1 %v2698_v0 }
 0x76c   :  { %v11579_v51 = vsub.f32 %v11377_v26, %v2599_v55  ;;  %v2600_v53 = vmul.f32 0.015625, %v2520_v43  ;;  %v2701_v24 = vsel %vm406_vm1, %v2661_v30, 0.0  ;;  %v2662_v63 = vmul.f32 %v11573_v22, %v11573_v22 }
 0x76d   :  { %2702 = vadd.xlane.f32.xlu0 %v2701_v24  ;;  %v2523_v11 = vpop.xlane.xlu0 %2522 }
 0x76e   :  { %v11585_v56 = vsub.f32 %v11385_v42, %v2600_v53  ;;  %v2601_v14 = vmul.f32 0.015625, %v2523_v11  ;;  %v2704_v48 = vsel %vm406_vm1, %v2662_v63, 0.0  ;;  %v2663_v23 = vmul.f32 %v11579_v51, %v11579_v51 }
 0x76f   :  { %v2526_v1 = vpop.xlane.xlu1 %2525  ;;  %2705 = vadd.xlane.f32.xlu1 %v2704_v48 }
 0x770   :  { %v11591_v26 = vsub.f32 %v11394_v61, %v2601_v14  ;;  %v2602_v6 = vmul.f32 0.015625, %v2526_v1  ;;  %v2707_v34 = vsel %vm406_vm1, %v2663_v23, 0.0  ;;  %v2664_v62 = vmul.f32 %v11585_v56, %v11585_v56 }
 0x771   :  { %2708 = vadd.xlane.f32.xlu0 %v2707_v34  ;;  %v2529_v42 = vpop.xlane.xlu0 %2528 }
 0x772   :  { %v11597_v59 = vsub.f32 %v11404_v60, %v2602_v6  ;;  %v2603_v44 = vmul.f32 0.015625, %v2529_v42  ;;  %v2710_v36 = vsel %vm406_vm1, %v2664_v62, 0.0  ;;  %v2665_v17 = vmul.f32 %v11591_v26, %v11591_v26 }
 0x773   :  { %v2532_v35 = vpop.xlane.xlu1 %2531  ;;  %2711 = vadd.xlane.f32.xlu1 %v2710_v36 }
 0x774   :  { %v11603_v61 = vsub.f32 %v11401_v19, %v2603_v44  ;;  %v2604_v9 = vmul.f32 0.015625, %v2532_v35  ;;  %v2713_v52 = vsel %vm406_vm1, %v2665_v17, 0.0  ;;  %v2666_v58 = vmul.f32 %v11597_v59, %v11597_v59 }
 0x775   :  { %2714 = vadd.xlane.f32.xlu0 %v2713_v52  ;;  %v2535_v60 = vpop.xlane.xlu0 %2534 }
 0x776   :  { %v11609_v8 = vsub.f32 %v11409_v38, %v2604_v9  ;;  %v2605_v16 = vmul.f32 0.015625, %v2535_v60  ;;  %v2716_v41 = vsel %vm406_vm1, %v2666_v58, 0.0  ;;  %v2667_v7 = vmul.f32 %v11603_v61, %v11603_v61 }
 0x777   :  { %v2538_v13 = vpop.xlane.xlu1 %2537  ;;  %2717 = vadd.xlane.f32.xlu1 %v2716_v41 }
 0x778   :  { %v11615_v19 = vsub.f32 %v11418_v37, %v2605_v16  ;;  %v2606_v2 = vmul.f32 0.015625, %v2538_v13  ;;  %v2719_v3 = vsel %vm406_vm1, %v2667_v7, 0.0  ;;  %v2668_v55 = vmul.f32 %v11609_v8, %v11609_v8 }
 0x779   :  { %2720 = vadd.xlane.f32.xlu0 %v2719_v3  ;;  %v2541_v38 = vpop.xlane.xlu0 %2540 }
 0x77a   :  { %v11621_v0 = vsub.f32 %v11428_v29, %v2606_v2  ;;  %v2607_v30 = vmul.f32 0.015625, %v2541_v38  ;;  %v2722_v43 = vsel %vm406_vm1, %v2668_v55, 0.0  ;;  %v2669_v53 = vmul.f32 %v11615_v19, %v11615_v19 }
 0x77b   :  { %v2544_v24 = vpop.xlane.xlu1 %2543  ;;  %2723 = vadd.xlane.f32.xlu1 %v2722_v43 }
 0x77c   :  { %v11627_v37 = vsub.f32 %v11425_v15, %v2607_v30  ;;  %v2608_v63 = vmul.f32 0.015625, %v2544_v24  ;;  %v2725_v11 = vsel %vm406_vm1, %v2669_v53, 0.0  ;;  %v2670_v14 = vmul.f32 %v11621_v0, %v11621_v0 }
 0x77d   :  { %2726 = vadd.xlane.f32.xlu0 %v2725_v11  ;;  %v2547_v29 = vpop.xlane.xlu0 %2546 }
 0x77e   :  { %v11633_v48 = vsub.f32 %v11433_v27, %v2608_v63  ;;  %v2609_v23 = vmul.f32 0.015625, %v2547_v29  ;;  %v2728_v1 = vsel %vm406_vm1, %v2670_v14, 0.0  ;;  %v2671_v6 = vmul.f32 %v11627_v37, %v11627_v37 }
 0x77f   :  { %v2550_v34 = vpop.xlane.xlu1 %2549  ;;  %2729 = vadd.xlane.f32.xlu1 %v2728_v1 }
 0x780   :  { %v11639_v15 = vsub.f32 %v11442_v46, %v2609_v23  ;;  %v2610_v62 = vmul.f32 0.015625, %v2550_v34  ;;  %v2731_v42 = vsel %vm406_vm1, %v2671_v6, 0.0  ;;  %v2672_v44 = vmul.f32 %v11633_v48, %v11633_v48 }
 0x781   :  { %2732 = vadd.xlane.f32.xlu0 %v2731_v42  ;;  %v2553_v27 = vpop.xlane.xlu0 %2552 }
 0x782   :  { %v11645_v36 = vsub.f32 %v11452_v45, %v2610_v62  ;;  %v2611_v17 = vmul.f32 0.015625, %v2553_v27  ;;  %v2734_v35 = vsel %vm406_vm1, %v2672_v44, 0.0  ;;  %v2673_v9 = vmul.f32 %v11639_v15, %v11639_v15 }
 0x783   :  { %v2556_v52 = vpop.xlane.xlu1 %2555  ;;  %2735 = vadd.xlane.f32.xlu1 %v2734_v35 }
 0x784   :  { %v11651_v46 = vsub.f32 %v11449_v12, %v2611_v17  ;;  %v2612_v58 = vmul.f32 0.015625, %v2556_v52  ;;  %v2737_v60 = vsel %vm406_vm1, %v2673_v9, 0.0  ;;  %v2674_v16 = vmul.f32 %v11645_v36, %v11645_v36 }
 0x785   :  { %2738 = vadd.xlane.f32.xlu0 %v2737_v60  ;;  %v2559_v45 = vpop.xlane.xlu0 %2558 }
 0x786   :  { %v11657_v41 = vsub.f32 %v11457_v40, %v2612_v58  ;;  %v2613_v7 = vmul.f32 0.015625, %v2559_v45  ;;  %v2740_v13 = vsel %vm406_vm1, %v2674_v16, 0.0  ;;  %v2675_v2 = vmul.f32 %v11651_v46, %v11651_v46 }
 0x787   :  { %v2562_v3 = vpop.xlane.xlu1 %2561  ;;  %2741 = vadd.xlane.f32.xlu1 %v2740_v13 }
 0x788   :  { %v11663_v12 = vsub.f32 %v11466_v50, %v2613_v7  ;;  %v2614_v55 = vmul.f32 0.015625, %v2562_v3  ;;  %v2743_v38 = vsel %vm406_vm1, %v2675_v2, 0.0  ;;  %v2676_v30 = vmul.f32 %v11657_v41, %v11657_v41 }
 0x789   :  { %2744 = vadd.xlane.f32.xlu0 %v2743_v38  ;;  %v2565_v40 = vpop.xlane.xlu0 %2564 }
 0x78a   :  { %v11669_v43 = vsub.f32 %v11476_v49, %v2614_v55  ;;  %v2615_v53 = vmul.f32 0.015625, %v2565_v40  ;;  %v2746_v24 = vsel %vm406_vm1, %v2676_v30, 0.0  ;;  %v2677_v63 = vmul.f32 %v11663_v12, %v11663_v12  ;;  %v9231_v49 = vld [vmem:[%s15277_s2 + $0x38] sm:$0xff]  }
 0x78b   :  { %v2568_v11 = vpop.xlane.xlu1 %2567  ;;  %2747 = vadd.xlane.f32.xlu1 %v2746_v24  ;;  %8813 = vmatprep.subr.bf16.mxu1 %v9231_v49 }
 0x78c   :  { %v11675_v50 = vsub.f32 %v11473_v33, %v2615_v53  ;;  %v2616_v14 = vmul.f32 0.015625, %v2568_v11  ;;  %v2749_v29 = vsel %vm406_vm1, %v2677_v63, 0.0  ;;  %v2678_v23 = vmul.f32 %v11669_v43, %v11669_v43  ;;  %8814 = vmatpush3.bf16.msra.mxu1 %v9231_v49 }
 0x78d   :  { %2750 = vadd.xlane.f32.xlu0 %v2749_v29  ;;  %v2571_v1 = vpop.xlane.xlu0 %2570 }
 0x78e   :  { %v11684_v6 = vsub.f32 %v11481_v4, %v2616_v14  ;;  %v2617_v34 = vmul.f32 0.015625, %v2571_v1  ;;  %v2752_v62 = vsel %vm406_vm1, %v2678_v23, 0.0  ;;  %v2679_v33 = vmul.f32 %v11675_v50, %v11675_v50 }
 0x78f   :  { %v2574_v42 = vpop.xlane.xlu1 %2573  ;;  %2753 = vadd.xlane.f32.xlu1 %v2752_v62 }
 0x790   :  { %v11690_v44 = vsub.f32 %v11490_v18, %v2617_v34  ;;  %v2618_v27 = vmul.f32 0.015625, %v2574_v42  ;;  %v2755_v17 = vsel %vm406_vm1, %v2679_v33, 0.0  ;;  %v2680_v4 = vmul.f32 %v11684_v6, %v11684_v6 }
 0x791   :  { %2756 = vadd.xlane.f32.xlu0 %v2755_v17  ;;  %v2577_v35 = vpop.xlane.xlu0 %2576  ;;  %v9233_v17 = vld [vmem:[%s15274_s1 + $0xd0] sm:$0xff]  }
 0x792   :  { %v11696_v9 = vsub.f32 %v11500_v5, %v2618_v27  ;;  %v2619_v52 = vmul.f32 0.015625, %v2577_v35  ;;  %v2758_v58 = vsel %vm406_vm1, %v2680_v4, 0.0  ;;  %v2681_v60 = vmul.f32 %v11690_v44, %v11690_v44  ;;  %v9234_v4 = vld [vmem:[%s15274_s1 + $0xd8] sm:$0xff]   ;;  %v9235_v35 = vld [vmem:[%s15274_s1 + $0xe0] sm:$0xff]  }
 0x793   :  { %v2580_v16 = vpop.xlane.xlu1 %2579  ;;  %2759 = vadd.xlane.f32.xlu1 %v2758_v58  ;;  %v9237_v58 = vld [vmem:[%s15274_s1 + $0xf0] sm:$0xff]  }
 0x794   :  { %v11702_v18 = vsub.f32 %v11497_v57, %v2619_v52  ;;  %v2620_v45 = vmul.f32 0.015625, %v2580_v16  ;;  %v2761_v7 = vsel %vm406_vm1, %v2681_v60, 0.0  ;;  %v2682_v13 = vmul.f32 %v11696_v9, %v11696_v9  ;;  %v9236_v52 = vld [vmem:[%s15274_s1 + $0xe8] sm:$0xff]   ;;  %v9238_v60 = vld [vmem:[%s15274_s1 + $0xf8] sm:$0xff]  }
 0x795   :  { %2762 = vadd.xlane.f32.xlu0 %v2761_v7  ;;  %v2583_v5 = vpop.xlane.xlu0 %2582 }
 0x796   :  { %v11708_v2 = vsub.f32 %v11505_v47, %v2620_v45  ;;  %v2621_v3 = vmul.f32 0.015625, %v2583_v5  ;;  %v2764_v55 = vsel %vm406_vm1, %v2682_v13, 0.0  ;;  %v2683_v38 = vmul.f32 %v11702_v18, %v11702_v18 }
 0x797   :  { %2765 = vadd.xlane.f32.xlu1 %v2764_v55  ;;  %v2586_v57 = vpop.xlane.xlu1 %2585 }
 0x798   :  { %v11714_v30 = vsub.f32 %v11514_v10, %v2621_v3  ;;  %v2622_v40 = vmul.f32 0.015625, %v2586_v57  ;;  %v2767_v53 = vsel %vm406_vm1, %v2683_v38, 0.0  ;;  %v2684_v24 = vmul.f32 %v11708_v2, %v11708_v2 }
 0x799   :  { %2768 = vadd.xlane.f32.xlu0 %v2767_v53  ;;  %v2589_v47 = vpop.xlane.xlu0 %2588 }
 0x79a   :  { %v11720_v63 = vsub.f32 %v11524_v28, %v2622_v40  ;;  %v2623_v11 = vmul.f32 0.015625, %v2589_v47  ;;  %v2770_v14 = vsel %vm406_vm1, %v2684_v24, 0.0  ;;  %v2685_v29 = vmul.f32 %v11714_v30, %v11714_v30 }
 0x79b   :  { %2771 = vadd.xlane.f32.xlu1 %v2770_v14  ;;  %v2592_v10 = vpop.xlane.xlu1 %2591 }
 0x79c   :  { %v11726_v23 = vsub.f32 %v11521_v54, %v2623_v11  ;;  %v2624_v49 = vmul.f32 0.015625, %v2592_v10  ;;  %v2773_v1 = vsel %vm406_vm1, %v2685_v29, 0.0  ;;  %v2686_v34 = vmul.f32 %v11720_v63, %v11720_v63 }
 0x79d   :  { %2774 = vadd.xlane.f32.xlu0 %v2773_v1 }
 0x79e   :  { %v11732_v28 = vsub.f32 %v11529_v31, %v2624_v49  ;;  %v2776_v62 = vsel %vm406_vm1, %v2686_v34, 0.0  ;;  %v2687_v33 = vmul.f32 %v11726_v23, %v11726_v23  ;;  %v9232_v31 = vld [vmem:[%s15274_s1 + $0xc8] sm:$0xff]  }
 0x79f   :  { %2777 = vadd.xlane.f32.xlu1 %v2776_v62  ;;  %8847 = vmatprep.subr.bf16.mxu0 %v9232_v31 }
 0x7a0   :  { %v2779_v42 = vsel %vm406_vm1, %v2687_v33, 0.0  ;;  %v2688_v54 = vmul.f32 %v11732_v28, %v11732_v28  ;;  %8848 = vmatpush3.bf16.msra.mxu0 %v9232_v31 }
 0x7a1   :  { %2780 = vadd.xlane.f32.xlu0 %v2779_v42  ;;  %8849 = vmatprep.subr.bf16.mxu0 %v9233_v17  ;;  %v11765_v42 = vld [vmem:[%s15276_s3 + $0xa] ss:$0 sm:$0xff] }
 0x7a2   :  { %v2782_v27 = vsel %vm406_vm1, %v2688_v54, 0.0 }
 0x7a3   :  { %2783 = vadd.xlane.f32.xlu1 %v2782_v27 }
 0x7a4   :  { %8850 = vmatpush3.bf16.msra.mxu0 %v9233_v17 }
 0x7a5   :  { %8851 = vmatprep.subr.bf16.mxu0 %v9234_v4 }
 0x7a8   :  { %8852 = vmatpush3.bf16.msra.mxu0 %v9234_v4 }
 0x7a9   :  { %8853 = vmatprep.subr.bf16.mxu0 %v9235_v35 }
 0x7ac   :  { %8854 = vmatpush3.bf16.msra.mxu0 %v9235_v35 }
 0x7ad   :  { %8855 = vmatprep.subr.bf16.mxu0 %v9236_v52 }
 0x7b0   :  { %8856 = vmatpush3.bf16.msra.mxu0 %v9236_v52 }
 0x7b1   :  { %8857 = vmatprep.subr.bf16.mxu0 %v9237_v58 }
 0x7b4   :  { %8858 = vmatpush3.bf16.msra.mxu0 %v9237_v58 }
 0x7b5   :  { %8859 = vmatprep.subr.bf16.mxu0 %v9238_v60 }
 0x7b8   :  { %8860 = vmatpush3.bf16.msra.mxu0 %v9238_v60 }
 0x7f2   :  { %v2691_v16 = vpop.xlane.xlu0 %2690 }
 0x7f3   :  { %v2785_v45 = vmul.f32 0.015625, %v2691_v16 }
 0x7f4   :  { %v2694_v7 = vpop.xlane.xlu1 %2693 }
 0x7f5   :  { %v2817_v13 = vadd.f32 1e-05, %v2785_v45  ;;  %v2786_v5 = vmul.f32 0.015625, %v2694_v7  ;;  %v11773_v7 = vld [vmem:[%s15276_s3 + $0xb] ss:$0 sm:$0xff] }
 0x7f6   :  { %v2697_v3 = vpop.xlane.xlu0 %2696 }
 0x7f7   :  { %9404 = vrsqrt.f32 %v2817_v13  ;;  %v2818_v55 = vadd.f32 1e-05, %v2786_v5  ;;  %v2787_v38 = vmul.f32 0.015625, %v2697_v3 }
 0x7f8   :  { %v2700_v57 = vpop.xlane.xlu1 %2699 }
 0x7f9   :  { %9406 = vrsqrt.f32 %v2818_v55  ;;  %v2819_v40 = vadd.f32 1e-05, %v2787_v38  ;;  %v2788_v53 = vmul.f32 0.015625, %v2700_v57 }
 0x7fa   :  { %v2703_v24 = vpop.xlane.xlu0 %2702 }
 0x7fb   :  { %9408 = vrsqrt.f32 %v2819_v40  ;;  %v2820_v47 = vadd.f32 1e-05, %v2788_v53  ;;  %v2789_v11 = vmul.f32 0.015625, %v2703_v24 }
 0x7fc   :  { %v2706_v14 = vpop.xlane.xlu1 %2705 }
 0x7fd   :  { %9410 = vrsqrt.f32 %v2820_v47  ;;  %v2821_v29 = vadd.f32 1e-05, %v2789_v11  ;;  %v2790_v10 = vmul.f32 0.015625, %v2706_v14 }
 0x7fe   :  { %v2709_v49 = vpop.xlane.xlu0 %2708 }
 0x7ff   :  { %9412 = vrsqrt.f32 %v2821_v29  ;;  %v2822_v1 = vadd.f32 1e-05, %v2790_v10  ;;  %v2791_v34 = vmul.f32 0.015625, %v2709_v49 }
 0x800   :  { %v2712_v62 = vpop.xlane.xlu1 %2711 }
 0x801   :  { %v9405_v33 = vpop.eup %9404  ;;  %9414 = vrsqrt.f32 %v2822_v1  ;;  %v2823_v54 = vadd.f32 1e-05, %v2791_v34  ;;  %v2792_v27 = vmul.f32 0.015625, %v2712_v62 }
 0x802   :  { %v2715_v31 = vpop.xlane.xlu0 %2714  ;;  %v2881_v17 = vmul.f32 %v9405_v33, %v11547_v21 }
 0x803   :  { %v9407_v4 = vpop.eup %9406  ;;  %9416 = vrsqrt.f32 %v2823_v54  ;;  %v2824_v35 = vadd.f32 1e-05, %v2792_v27  ;;  %v2793_v52 = vmul.f32 0.015625, %v2715_v31 }
 0x804   :  { %v2718_v58 = vpop.xlane.xlu1 %2717  ;;  %v2882_v60 = vmul.f32 %v9407_v4, %v11550_v25  ;;  %v2917_v16 = vmul.f32 %v11765_v42, %v2881_v17 }
 0x805   :  { %v9409_v45 = vpop.eup %9408  ;;  %9418 = vrsqrt.f32 %v2824_v35  ;;  %v2825_v13 = vadd.f32 1e-05, %v2793_v52  ;;  %v2794_v5 = vmul.f32 0.015625, %v2718_v58 }
 0x806   :  { %v2883_v21 = vmul.f32 %v9409_v45, %v11555_v20  ;;  %v2721_v3 = vpop.xlane.xlu0 %2720  ;;  %v2918_v55 = vmul.f32 %v11765_v42, %v2882_v60  ;;  %v11780_v47 = vadd.f32 %v11773_v7, %v2917_v16 }
 0x807   :  { %v9411_v38 = vpop.eup %9410  ;;  %9420 = vrsqrt.f32 %v2825_v13  ;;  %v2826_v57 = vadd.f32 1e-05, %v2794_v5  ;;  %v2795_v25 = vmul.f32 0.015625, %v2721_v3 }
 0x808   :  { %v2919_v40 = vmul.f32 %v11765_v42, %v2883_v21  ;;  %v2884_v53 = vmul.f32 %v9411_v38, %v11561_v32  ;;  %v2724_v24 = vpop.xlane.xlu1 %2723  ;;  %v11783_v11 = vadd.f32 %v11773_v7, %v2918_v55 }
 0x809   :  { %v9413_v14 = vpop.eup %9412  ;;  %9422 = vrsqrt.f32 %v2826_v57  ;;  %v2827_v20 = vadd.f32 1e-05, %v2795_v25  ;;  %v2796_v29 = vmul.f32 0.015625, %v2724_v24 }
 0x80a   :  { %v2920_v10 = vmul.f32 %v11765_v42, %v2884_v53  ;;  %v2727_v49 = vpop.xlane.xlu0 %2726  ;;  %v2993_v1 = vpack.c.bf16 %v11783_v11, %v11780_v47  ;;  %v2885_v34 = vmul.f32 %v9413_v14, %v11567_v39  ;;  %v11790_v54 = vadd.f32 %v11773_v7, %v2919_v40 }
 0x80b   :  { %v9415_v32 = vpop.eup %9414  ;;  %9424 = vrsqrt.f32 %v2827_v20  ;;  %v2828_v62 = vadd.f32 1e-05, %v2796_v29  ;;  %v2797_v33 = vmul.f32 0.015625, %v2727_v49 }
 0x80c   :  { %v11793_v27 = vadd.f32 %v11773_v7, %v2920_v10  ;;  %v2730_v31 = vpop.xlane.xlu1 %2729  ;;  %8815 = vmatprep.mubr.msk.bf16.mxu1 %vm406_vm1, %v2993_v1  ;;  %v2886_v17 = vmul.f32 %v9415_v32, %v11573_v22  ;;  %v2921_v4 = vmul.f32 %v11765_v42, %v2885_v34 }
 0x80d   :  { %v9417_v35 = vpop.eup %9416  ;;  %9426 = vrsqrt.f32 %v2828_v62  ;;  %v2829_v39 = vadd.f32 1e-05, %v2797_v33  ;;  %v2798_v52 = vmul.f32 0.015625, %v2730_v31 }
 0x80e   :  { %v2733_v58 = vpop.xlane.xlu0 %2732  ;;  %v2994_v60 = vpack.c.bf16 %v11793_v27, %v11790_v54  ;;  %v2922_v16 = vmul.f32 %v11765_v42, %v2886_v17  ;;  %v2887_v45 = vmul.f32 %v9417_v35, %v11579_v51  ;;  %v11804_v22 = vadd.f32 %v11773_v7, %v2921_v4 }
 0x80f   :  { %v9419_v13 = vpop.eup %9418  ;;  %9428 = vrsqrt.f32 %v2829_v39  ;;  %v2830_v5 = vadd.f32 1e-05, %v2798_v52  ;;  %v2799_v21 = vmul.f32 0.015625, %v2733_v58 }
 0x810   :  { %v2736_v3 = vpop.xlane.xlu1 %2735  ;;  %8816 = vmatmul.mubr.msk.bf16.vlgmr.msra.gmra.mrb[64].mxu1 %vm406_vm1, %v2994_v60  ;;  %v11807_v55 = vadd.f32 %v11773_v7, %v2922_v16  ;;  %v2888_v38 = vmul.f32 %v9419_v13, %v11585_v56  ;;  %v2923_v57 = vmul.f32 %v11765_v42, %v2887_v45 }
 0x811   :  { %v9421_v25 = vpop.eup %9420  ;;  %9430 = vrsqrt.f32 %v2830_v5  ;;  %v2831_v51 = vadd.f32 1e-05, %v2799_v21  ;;  %v2800_v40 = vmul.f32 0.015625, %v2736_v3 }
 0x812   :  { %v2739_v53 = vpop.xlane.xlu0 %2738  ;;  %v2995_v24 = vpack.c.bf16 %v11807_v55, %v11804_v22  ;;  %v2924_v14 = vmul.f32 %v11765_v42, %v2888_v38  ;;  %v2889_v20 = vmul.f32 %v9421_v25, %v11591_v26  ;;  %v11817_v56 = vadd.f32 %v11773_v7, %v2923_v57 }
 0x813   :  { %v9423_v29 = vpop.eup %9422  ;;  %9432 = vrsqrt.f32 %v2831_v51  ;;  %v2832_v10 = vadd.f32 1e-05, %v2800_v40  ;;  %v2801_v49 = vmul.f32 0.015625, %v2739_v53 }
 0x814   :  { %v2742_v1 = vpop.xlane.xlu1 %2741  ;;  %8819 = vmatprep.mubr.msk.bf16.mxu1 %vm406_vm1, %v2995_v24  ;;  %v11820_v34 = vadd.f32 %v11773_v7, %v2924_v14  ;;  %v2890_v32 = vmul.f32 %v9423_v29, %v11597_v59  ;;  %v2925_v62 = vmul.f32 %v11765_v42, %v2889_v20 }
 0x815   :  { %v9425_v33 = vpop.eup %9424  ;;  %9434 = vrsqrt.f32 %v2832_v10  ;;  %v2833_v26 = vadd.f32 1e-05, %v2801_v49  ;;  %v2802_v31 = vmul.f32 0.015625, %v2742_v1 }
 0x816   :  { %v2745_v17 = vpop.xlane.xlu0 %2744  ;;  %v2996_v4 = vpack.c.bf16 %v11820_v34, %v11817_v56  ;;  %v2926_v35 = vmul.f32 %v11765_v42, %v2890_v32  ;;  %v2891_v39 = vmul.f32 %v9425_v33, %v11603_v61  ;;  %v11830_v59 = vadd.f32 %v11773_v7, %v2925_v62 }
 0x817   :  { %v9427_v52 = vpop.eup %9426  ;;  %9436 = vrsqrt.f32 %v2833_v26  ;;  %v2834_v58 = vadd.f32 1e-05, %v2802_v31  ;;  %v2803_v60 = vmul.f32 0.015625, %v2745_v17 }
 0x818   :  { %v2748_v16 = vpop.xlane.xlu1 %2747  ;;  %8820 = vmatmul.mubr.msk.bf16.gmra.mrb[68].mxu1 %vm406_vm1, %v2996_v4  ;;  %v11833_v45 = vadd.f32 %v11773_v7, %v2926_v35  ;;  %v2892_v13 = vmul.f32 %v9427_v52, %v11609_v8  ;;  %v2927_v5 = vmul.f32 %v11765_v42, %v2891_v39 }
 0x819   :  { %v9429_v21 = vpop.eup %9428  ;;  %9438 = vrsqrt.f32 %v2834_v58  ;;  %v2835_v61 = vadd.f32 1e-05, %v2803_v60  ;;  %v2804_v3 = vmul.f32 0.015625, %v2748_v16 }
 0x81a   :  { %v2751_v38 = vpop.xlane.xlu0 %2750  ;;  %v2997_v57 = vpack.c.bf16 %v11833_v45, %v11830_v59  ;;  %v2928_v25 = vmul.f32 %v11765_v42, %v2892_v13  ;;  %v2893_v51 = vmul.f32 %v9429_v21, %v11615_v19  ;;  %v11843_v8 = vadd.f32 %v11773_v7, %v2927_v5 }
 0x81b   :  { %v9431_v40 = vpop.eup %9430  ;;  %9440 = vrsqrt.f32 %v2835_v61  ;;  %v2836_v53 = vadd.f32 1e-05, %v2804_v3  ;;  %v2805_v24 = vmul.f32 0.015625, %v2751_v38 }
 0x81c   :  { %v2754_v14 = vpop.xlane.xlu1 %2753  ;;  %8823 = vmatprep.mubr.msk.bf16.mxu1 %vm406_vm1, %v2997_v57  ;;  %v11846_v20 = vadd.f32 %v11773_v7, %v2928_v25  ;;  %v2894_v29 = vmul.f32 %v9431_v40, %v11621_v0  ;;  %v2929_v10 = vmul.f32 %v11765_v42, %v2893_v51 }
 0x81d   :  { %v9433_v49 = vpop.eup %9432  ;;  %9442 = vrsqrt.f32 %v2836_v53  ;;  %v2837_v19 = vadd.f32 1e-05, %v2805_v24  ;;  %v2806_v1 = vmul.f32 0.015625, %v2754_v14 }
 0x81e   :  { %v2757_v32 = vpop.xlane.xlu0 %2756  ;;  %v2998_v62 = vpack.c.bf16 %v11846_v20, %v11843_v8  ;;  %v2930_v33 = vmul.f32 %v11765_v42, %v2894_v29  ;;  %v2895_v26 = vmul.f32 %v9433_v49, %v11627_v37  ;;  %v11856_v0 = vadd.f32 %v11773_v7, %v2929_v10 }
 0x81f   :  { %v9435_v31 = vpop.eup %9434  ;;  %9444 = vrsqrt.f32 %v2837_v19  ;;  %v2838_v17 = vadd.f32 1e-05, %v2806_v1  ;;  %v2807_v4 = vmul.f32 0.015625, %v2757_v32 }
 0x820   :  { %v2760_v35 = vpop.xlane.xlu1 %2759  ;;  %8824 = vmatmul.mubr.msk.bf16.gmra.mrb[72].mxu1 %vm406_vm1, %v2998_v62  ;;  %v11859_v39 = vadd.f32 %v11773_v7, %v2930_v33  ;;  %v2896_v52 = vmul.f32 %v9435_v31, %v11633_v48  ;;  %v2931_v58 = vmul.f32 %v11765_v42, %v2895_v26 }
 0x821   :  { %v9437_v60 = vpop.eup %9436  ;;  %9446 = vrsqrt.f32 %v2838_v17  ;;  %v2839_v37 = vadd.f32 1e-05, %v2807_v4  ;;  %v2808_v16 = vmul.f32 0.015625, %v2760_v35 }
 0x822   :  { %v2763_v13 = vpop.xlane.xlu0 %2762  ;;  %v2999_v5 = vpack.c.bf16 %v11859_v39, %v11856_v0  ;;  %v2932_v21 = vmul.f32 %v11765_v42, %v2896_v52  ;;  %v2897_v61 = vmul.f32 %v9437_v60, %v11639_v15  ;;  %v11869_v48 = vadd.f32 %v11773_v7, %v2931_v58 }
 0x823   :  { %v9439_v3 = vpop.eup %9438  ;;  %9448 = vrsqrt.f32 %v2839_v37  ;;  %v2840_v38 = vadd.f32 1e-05, %v2808_v16  ;;  %v2809_v57 = vmul.f32 0.015625, %v2763_v13 }
 0x824   :  { %v2766_v25 = vpop.xlane.xlu1 %2765  ;;  %8827 = vmatprep.mubr.msk.bf16.mxu1 %vm406_vm1, %v2999_v5  ;;  %v11872_v51 = vadd.f32 %v11773_v7, %v2932_v21  ;;  %v2898_v40 = vmul.f32 %v9439_v3, %v11645_v36  ;;  %v2933_v53 = vmul.f32 %v11765_v42, %v2897_v61 }
 0x825   :  { %v9441_v24 = vpop.eup %9440  ;;  %9450 = vrsqrt.f32 %v2840_v38  ;;  %v2841_v15 = vadd.f32 1e-05, %v2809_v57  ;;  %v2810_v14 = vmul.f32 0.015625, %v2766_v25 }
 0x826   :  { %v2769_v29 = vpop.xlane.xlu0 %2768  ;;  %v3000_v10 = vpack.c.bf16 %v11872_v51, %v11869_v48  ;;  %v2934_v49 = vmul.f32 %v11765_v42, %v2898_v40  ;;  %v2899_v19 = vmul.f32 %v9441_v24, %v11651_v46  ;;  %v11882_v36 = vadd.f32 %v11773_v7, %v2933_v53 }
 0x827   :  { %v9443_v1 = vpop.eup %9442  ;;  %9452 = vrsqrt.f32 %v2841_v15  ;;  %v2842_v32 = vadd.f32 1e-05, %v2810_v14  ;;  %v2811_v62 = vmul.f32 0.015625, %v2769_v29 }
 0x828   :  { %v2772_v33 = vpop.xlane.xlu1 %2771  ;;  %8828 = vmatmul.mubr.msk.bf16.gmra.mrb[76].mxu1 %vm406_vm1, %v3000_v10  ;;  %v11885_v26 = vadd.f32 %v11773_v7, %v2934_v49  ;;  %v2900_v31 = vmul.f32 %v9443_v1, %v11657_v41  ;;  %v2935_v17 = vmul.f32 %v11765_v42, %v2899_v19 }
 0x829   :  { %v9445_v4 = vpop.eup %9444  ;;  %9454 = vrsqrt.f32 %v2842_v32  ;;  %v2843_v46 = vadd.f32 1e-05, %v2811_v62  ;;  %v2812_v35 = vmul.f32 0.015625, %v2772_v33 }
 0x82a   :  { %v2775_v52 = vpop.xlane.xlu0 %2774  ;;  %v3001_v58 = vpack.c.bf16 %v11885_v26, %v11882_v36  ;;  %v2936_v60 = vmul.f32 %v11765_v42, %v2900_v31  ;;  %v2901_v37 = vmul.f32 %v9445_v4, %v11663_v12  ;;  %v11895_v41 = vadd.f32 %v11773_v7, %v2935_v17 }
 0x82b   :  { %v9447_v16 = vpop.eup %9446  ;;  %9456 = vrsqrt.f32 %v2843_v46  ;;  %v2844_v13 = vadd.f32 1e-05, %v2812_v35  ;;  %v2813_v5 = vmul.f32 0.015625, %v2775_v52 }
 0x82c   :  { %v2778_v21 = vpop.xlane.xlu1 %2777  ;;  %8831 = vmatprep.mubr.msk.bf16.mxu1 %vm406_vm1, %v3001_v58  ;;  %v11898_v61 = vadd.f32 %v11773_v7, %v2936_v60  ;;  %v2902_v3 = vmul.f32 %v9447_v16, %v11669_v43  ;;  %v2937_v38 = vmul.f32 %v11765_v42, %v2901_v37 }
 0x82d   :  { %v9449_v57 = vpop.eup %9448  ;;  %9458 = vrsqrt.f32 %v2844_v13  ;;  %v2845_v12 = vadd.f32 1e-05, %v2813_v5  ;;  %v2814_v25 = vmul.f32 0.015625, %v2778_v21 }
 0x82e   :  { %v2781_v40 = vpop.xlane.xlu0 %2780  ;;  %v3002_v53 = vpack.c.bf16 %v11898_v61, %v11895_v41  ;;  %v2938_v24 = vmul.f32 %v11765_v42, %v2902_v3  ;;  %v2903_v15 = vmul.f32 %v9449_v57, %v11675_v50  ;;  %v11908_v43 = vadd.f32 %v11773_v7, %v2937_v38 }
 0x82f   :  { %v9451_v14 = vpop.eup %9450  ;;  %9460 = vrsqrt.f32 %v2845_v12  ;;  %v2846_v29 = vadd.f32 1e-05, %v2814_v25  ;;  %v2815_v10 = vmul.f32 0.015625, %v2781_v40 }
 0x830   :  { %v2784_v49 = vpop.xlane.xlu1 %2783  ;;  %8832 = vmatmul.mubr.msk.bf16.gmra.mrb[80].mxu1 %vm406_vm1, %v3002_v53  ;;  %v11911_v19 = vadd.f32 %v11773_v7, %v2938_v24  ;;  %v2904_v1 = vmul.f32 %v9451_v14, %v11684_v6  ;;  %v2939_v32 = vmul.f32 %v11765_v42, %v2903_v15 }
 0x831   :  { %v9453_v62 = vpop.eup %9452  ;;  %9462 = vrsqrt.f32 %v2846_v29  ;;  %v2847_v50 = vadd.f32 1e-05, %v2815_v10  ;;  %v2816_v33 = vmul.f32 0.015625, %v2784_v49 }
 0x832   :  { %v3003_v31 = vpack.c.bf16 %v11911_v19, %v11908_v43  ;;  %v2940_v17 = vmul.f32 %v11765_v42, %v2904_v1  ;;  %v2905_v4 = vmul.f32 %v9453_v62, %v11690_v44  ;;  %v11921_v6 = vadd.f32 %v11773_v7, %v2939_v32 }
 0x833   :  { %v9455_v46 = vpop.eup %9454  ;;  %9464 = vrsqrt.f32 %v2847_v50  ;;  %v2848_v35 = vadd.f32 1e-05, %v2816_v33 }
 0x834   :  { %8835 = vmatprep.mubr.msk.bf16.mxu1 %vm406_vm1, %v3003_v31  ;;  %v11924_v52 = vadd.f32 %v11773_v7, %v2940_v17  ;;  %v2906_v58 = vmul.f32 %v9455_v46, %v11696_v9  ;;  %v2941_v60 = vmul.f32 %v11765_v42, %v2905_v4 }
 0x835   :  { %v9457_v37 = vpop.eup %9456  ;;  %9466 = vrsqrt.f32 %v2848_v35 }
 0x836   :  { %v3004_v44 = vpack.c.bf16 %v11924_v52, %v11921_v6  ;;  %v2942_v16 = vmul.f32 %v11765_v42, %v2906_v58  ;;  %v2907_v13 = vmul.f32 %v9457_v37, %v11702_v18  ;;  %v11934_v21 = vadd.f32 %v11773_v7, %v2941_v60 }
 0x837   :  { %v9459_v5 = vpop.eup %9458 }
 0x838   :  { %8836 = vmatmul.mubr.msk.bf16.gmra.mrb[84].mxu1 %vm406_vm1, %v3004_v44  ;;  %v11937_v3 = vadd.f32 %v11773_v7, %v2942_v16  ;;  %v2908_v9 = vmul.f32 %v9459_v5, %v11708_v2  ;;  %v2943_v38 = vmul.f32 %v11765_v42, %v2907_v13 }
 0x839   :  { %v9461_v57 = vpop.eup %9460 }
 0x83a   :  { %v3005_v12 = vpack.c.bf16 %v11937_v3, %v11934_v21  ;;  %v2944_v25 = vmul.f32 %v11765_v42, %v2908_v9  ;;  %v2909_v18 = vmul.f32 %v9461_v57, %v11714_v30  ;;  %v11947_v53 = vadd.f32 %v11773_v7, %v2943_v38 }
 0x83b   :  { %v9463_v40 = vpop.eup %9462 }
 0x83c   :  { %8839 = vmatprep.mubr.msk.bf16.mxu1 %vm406_vm1, %v3005_v12  ;;  %v11950_v24 = vadd.f32 %v11773_v7, %v2944_v25  ;;  %v2910_v2 = vmul.f32 %v9463_v40, %v11720_v63  ;;  %v2945_v15 = vmul.f32 %v11765_v42, %v2909_v18 }
 0x83d   :  { %v9465_v14 = vpop.eup %9464 }
 0x83e   :  { %v3006_v29 = vpack.c.bf16 %v11950_v24, %v11947_v53  ;;  %v2946_v10 = vmul.f32 %v11765_v42, %v2910_v2  ;;  %v2911_v30 = vmul.f32 %v9465_v14, %v11726_v23  ;;  %v11960_v1 = vadd.f32 %v11773_v7, %v2945_v15 }
 0x83f   :  { %v9467_v49 = vpop.eup %9466 }
 0x840   :  { %8840 = vmatmul.mubr.msk.bf16.gmra.mrb[88].mxu1 %vm406_vm1, %v3006_v29  ;;  %v11963_v32 = vadd.f32 %v11773_v7, %v2946_v10  ;;  %v2912_v63 = vmul.f32 %v9467_v49, %v11732_v28  ;;  %v2947_v62 = vmul.f32 %v11765_v42, %v2911_v30  ;;  %v9239_v28 = vld [vmem:[%s15274_s1 + $0x100] sm:$0xff]  }
 0x841   :  { %8861 = vmatprep.subr.bf16.mxu0 %v9239_v28 }
 0x842   :  { %v3007_v50 = vpack.c.bf16 %v11963_v32, %v11960_v1  ;;  %v2948_v33 = vmul.f32 %v11765_v42, %v2912_v63  ;;  %v11972_v23 = vadd.f32 %v11773_v7, %v2947_v62  ;;  %8862 = vmatpush3.bf16.msra.mxu0 %v9239_v28  ;;  %v11986_v42 = vld [vmem:[%s15276_s3 + $0xc] ss:$0 sm:$0xff] }
 0x844   :  { %8843 = vmatprep.mubr.msk.bf16.mxu1 %vm406_vm1, %v3007_v50  ;;  %v11975_v31 = vadd.f32 %v11773_v7, %v2948_v33 }
 0x846   :  { %v3008_v17 = vpack.c.bf16 %v11975_v31, %v11972_v23 }
 0x848   :  { %8844 = vmatmul.mubr.msk.bf16.gmra.mrb[92].mxu1 %vm406_vm1, %v3008_v17 }
 0x8e3   :  { %v8817_v4 = vpop.f32.mrb[64].mxu1 }
 0x8e4   :  { %v3129_v7 = vadd.f32 %v8817_v4, %v11986_v42  ;;  %v3120_v46 = vpop.f32.mrb[65].mxu1 }
 0x8e5   :  { %v3121_v35 = vadd.f32 %v11986_v42, %v3120_v46  ;;  %v8818_v58 = vpop.f32.mrb[66].mxu1 }
 0x8e6   :  { %v3132_v60 = vadd.f32 %v8818_v58, %v11986_v42  ;;  %v3123_v37 = vpop.f32.mrb[67].mxu1  ;;  %v3249_v16 = vmax.f32 %v3129_v7, 0.0 }
 0x8e7   :  { %v3124_v44 = vadd.f32 %v11986_v42, %v3123_v37  ;;  %v3247_v5 = vmax.f32 %v3121_v35, 0.0 }
 0x8e8   :  { %v3250_v13 = vmax.f32 %v3132_v60, 0.0 }
 0x8e9   :  { %v3248_v9 = vmax.f32 %v3124_v44, 0.0 }
 0x8ea   :  { %v3296_v38 = vpack.c.bf16 %v3250_v13, %v3249_v16 }
 0x8eb   :  { %v3295_v57 = vpack.c.bf16 %v3248_v9, %v3247_v5  ;;  %v8821_v12 = vpop.f32.mrb[68].mxu1 }
 0x8ec   :  { %v3145_v25 = vadd.f32 %v8821_v12, %v11986_v42  ;;  %v3136_v18 = vpop.f32.mrb[69].mxu1 }
 0x8ed   :  { %v3137_v40 = vadd.f32 %v11986_v42, %v3136_v18  ;;  %v8822_v2 = vpop.f32.mrb[70].mxu1  ;;  %8863 = vmatprep.mubr.bf16.mxu0 %v3295_v57 }
 0x8ee   :  { %v3148_v15 = vadd.f32 %v8822_v2, %v11986_v42  ;;  %v3139_v14 = vpop.f32.mrb[71].mxu1  ;;  %8864 = vmatmul.mubr.bf16.vlgmr.msra.gmra.mrb[96].mxu0 %v3296_v38  ;;  %v3253_v10 = vmax.f32 %v3145_v25, 0.0 }
 0x8ef   :  { %v3140_v29 = vadd.f32 %v11986_v42, %v3139_v14  ;;  %v3251_v49 = vmax.f32 %v3137_v40, 0.0 }
 0x8f0   :  { %v3254_v30 = vmax.f32 %v3148_v15, 0.0 }
 0x8f1   :  { %v3252_v63 = vmax.f32 %v3140_v29, 0.0 }
 0x8f2   :  { %v3298_v62 = vpack.c.bf16 %v3254_v30, %v3253_v10 }
 0x8f3   :  { %v3297_v50 = vpack.c.bf16 %v3252_v63, %v3251_v49  ;;  %v8825_v33 = vpop.f32.mrb[72].mxu1 }
 0x8f4   :  { %v3161_v17 = vadd.f32 %v8825_v33, %v11986_v42  ;;  %v3152_v28 = vpop.f32.mrb[73].mxu1 }
 0x8f5   :  { %v3153_v4 = vadd.f32 %v11986_v42, %v3152_v28  ;;  %v8826_v7 = vpop.f32.mrb[74].mxu1  ;;  %8867 = vmatprep.mubr.bf16.mxu0 %v3297_v50 }
 0x8f6   :  { %v3164_v46 = vadd.f32 %v8826_v7, %v11986_v42  ;;  %v3155_v35 = vpop.f32.mrb[75].mxu1  ;;  %8868 = vmatmul.mubr.bf16.gmra.mrb[100].mxu0 %v3298_v62  ;;  %v3257_v60 = vmax.f32 %v3161_v17, 0.0 }
 0x8f7   :  { %v3156_v58 = vadd.f32 %v11986_v42, %v3155_v35  ;;  %v3255_v44 = vmax.f32 %v3153_v4, 0.0 }
 0x8f8   :  { %v3258_v37 = vmax.f32 %v3164_v46, 0.0 }
 0x8f9   :  { %v3256_v16 = vmax.f32 %v3156_v58, 0.0 }
 0x8fa   :  { %v3300_v13 = vpack.c.bf16 %v3258_v37, %v3257_v60 }
 0x8fb   :  { %v3299_v5 = vpack.c.bf16 %v3256_v16, %v3255_v44  ;;  %v8829_v9 = vpop.f32.mrb[76].mxu1 }
 0x8fc   :  { %v3177_v38 = vadd.f32 %v8829_v9, %v11986_v42  ;;  %v3168_v57 = vpop.f32.mrb[77].mxu1 }
 0x8fd   :  { %v3169_v12 = vadd.f32 %v11986_v42, %v3168_v57  ;;  %v8830_v25 = vpop.f32.mrb[78].mxu1  ;;  %8871 = vmatprep.mubr.bf16.mxu0 %v3299_v5 }
 0x8fe   :  { %v3180_v18 = vadd.f32 %v8830_v25, %v11986_v42  ;;  %v3171_v40 = vpop.f32.mrb[79].mxu1  ;;  %8872 = vmatmul.mubr.bf16.gmra.mrb[104].mxu0 %v3300_v13  ;;  %v3261_v15 = vmax.f32 %v3177_v38, 0.0 }
 0x8ff   :  { %v3172_v2 = vadd.f32 %v11986_v42, %v3171_v40  ;;  %v3259_v29 = vmax.f32 %v3169_v12, 0.0 }
 0x900   :  { %v3262_v14 = vmax.f32 %v3180_v18, 0.0 }
 0x901   :  { %v3260_v10 = vmax.f32 %v3172_v2, 0.0 }
 0x902   :  { %v3302_v30 = vpack.c.bf16 %v3262_v14, %v3261_v15 }
 0x903   :  { %v3301_v49 = vpack.c.bf16 %v3260_v10, %v3259_v29  ;;  %v8833_v63 = vpop.f32.mrb[80].mxu1 }
 0x904   :  { %v3193_v62 = vadd.f32 %v8833_v63, %v11986_v42  ;;  %v3184_v50 = vpop.f32.mrb[81].mxu1 }
 0x905   :  { %v3185_v33 = vadd.f32 %v11986_v42, %v3184_v50  ;;  %v8834_v17 = vpop.f32.mrb[82].mxu1  ;;  %8875 = vmatprep.mubr.bf16.mxu0 %v3301_v49 }
 0x906   :  { %v3196_v28 = vadd.f32 %v8834_v17, %v11986_v42  ;;  %v3187_v4 = vpop.f32.mrb[83].mxu1  ;;  %8876 = vmatmul.mubr.bf16.gmra.mrb[108].mxu0 %v3302_v30  ;;  %v3265_v46 = vmax.f32 %v3193_v62, 0.0 }
 0x907   :  { %v3188_v7 = vadd.f32 %v11986_v42, %v3187_v4  ;;  %v3263_v58 = vmax.f32 %v3185_v33, 0.0 }
 0x908   :  { %v3266_v35 = vmax.f32 %v3196_v28, 0.0 }
 0x909   :  { %v3264_v60 = vmax.f32 %v3188_v7, 0.0 }
 0x90a   :  { %v3304_v37 = vpack.c.bf16 %v3266_v35, %v3265_v46 }
 0x90b   :  { %v3303_v44 = vpack.c.bf16 %v3264_v60, %v3263_v58  ;;  %v8837_v16 = vpop.f32.mrb[84].mxu1 }
 0x90c   :  { %v3209_v13 = vadd.f32 %v8837_v16, %v11986_v42  ;;  %v3200_v5 = vpop.f32.mrb[85].mxu1 }
 0x90d   :  { %v3201_v9 = vadd.f32 %v11986_v42, %v3200_v5  ;;  %v8838_v38 = vpop.f32.mrb[86].mxu1  ;;  %8879 = vmatprep.mubr.bf16.mxu0 %v3303_v44 }
 0x90e   :  { %v3212_v57 = vadd.f32 %v8838_v38, %v11986_v42  ;;  %v3203_v12 = vpop.f32.mrb[87].mxu1  ;;  %8880 = vmatmul.mubr.bf16.gmra.mrb[112].mxu0 %v3304_v37  ;;  %v3269_v18 = vmax.f32 %v3209_v13, 0.0 }
 0x90f   :  { %v3204_v25 = vadd.f32 %v11986_v42, %v3203_v12  ;;  %v3267_v2 = vmax.f32 %v3201_v9, 0.0 }
 0x910   :  { %v3270_v40 = vmax.f32 %v3212_v57, 0.0 }
 0x911   :  { %v3268_v15 = vmax.f32 %v3204_v25, 0.0 }
 0x912   :  { %v3306_v14 = vpack.c.bf16 %v3270_v40, %v3269_v18 }
 0x913   :  { %v3305_v29 = vpack.c.bf16 %v3268_v15, %v3267_v2  ;;  %v8841_v10 = vpop.f32.mrb[88].mxu1  ;;  %v12023_v15 = vld [vmem:[%s15276_s3 + $0xd] ss:$0 sm:$0xff] }
 0x914   :  { %v3225_v30 = vadd.f32 %v8841_v10, %v11986_v42  ;;  %v3216_v49 = vpop.f32.mrb[89].mxu1 }
 0x915   :  { %v3217_v63 = vadd.f32 %v11986_v42, %v3216_v49  ;;  %v8842_v62 = vpop.f32.mrb[90].mxu1  ;;  %8883 = vmatprep.mubr.bf16.mxu0 %v3305_v29 }
 0x916   :  { %v3228_v50 = vadd.f32 %v8842_v62, %v11986_v42  ;;  %v3219_v33 = vpop.f32.mrb[91].mxu1  ;;  %8884 = vmatmul.mubr.bf16.gmra.mrb[116].mxu0 %v3306_v14  ;;  %v3273_v28 = vmax.f32 %v3225_v30, 0.0 }
 0x917   :  { %v3220_v17 = vadd.f32 %v11986_v42, %v3219_v33  ;;  %v3271_v7 = vmax.f32 %v3217_v63, 0.0 }
 0x918   :  { %v3274_v4 = vmax.f32 %v3228_v50, 0.0 }
 0x919   :  { %v3272_v46 = vmax.f32 %v3220_v17, 0.0 }
 0x91a   :  { %v3308_v35 = vpack.c.bf16 %v3274_v4, %v3273_v28 }
 0x91b   :  { %v3307_v58 = vpack.c.bf16 %v3272_v46, %v3271_v7  ;;  %v8845_v60 = vpop.f32.mrb[92].mxu1 }
 0x91c   :  { %v3241_v37 = vadd.f32 %v8845_v60, %v11986_v42  ;;  %v3232_v44 = vpop.f32.mrb[93].mxu1 }
 0x91d   :  { %v3233_v16 = vadd.f32 %v11986_v42, %v3232_v44  ;;  %v8846_v13 = vpop.f32.mrb[94].mxu1  ;;  %8887 = vmatprep.mubr.bf16.mxu0 %v3307_v58 }
 0x91e   :  { %v3244_v5 = vadd.f32 %v8846_v13, %v11986_v42  ;;  %v3235_v9 = vpop.f32.mrb[95].mxu1  ;;  %8888 = vmatmul.mubr.bf16.gmra.mrb[120].mxu0 %v3308_v35  ;;  %v3277_v57 = vmax.f32 %v3241_v37, 0.0 }
 0x91f   :  { %v3236_v38 = vadd.f32 %v11986_v42, %v3235_v9  ;;  %v3275_v25 = vmax.f32 %v3233_v16, 0.0 }
 0x920   :  { %v3278_v12 = vmax.f32 %v3244_v5, 0.0 }
 0x921   :  { %v3276_v18 = vmax.f32 %v3236_v38, 0.0 }
 0x922   :  { %v3310_v40 = vpack.c.bf16 %v3278_v12, %v3277_v57 }
 0x923   :  { %v3309_v2 = vpack.c.bf16 %v3276_v18, %v3275_v25 }
 0x925   :  { %8891 = vmatprep.mubr.bf16.mxu0 %v3309_v2 }
 0x926   :  { %8892 = vmatmul.mubr.bf16.gmra.mrb[124].mxu0 %v3310_v40 }
 0x9c1   :  { %v8865_v14 = vpop.f32.mrb[96].mxu0 }
 0x9c2   :  { %v3398_v29 = vpop.f32.mrb[97].mxu0  ;;  %v3407_v10 = vadd.f32 %v8865_v14, %v12023_v15 }
 0x9c3   :  { %v3399_v30 = vadd.f32 %v12023_v15, %v3398_v29  ;;  %v8866_v42 = vpop.f32.mrb[98].mxu0 }
 0x9c4   :  { %v3401_v49 = vpop.f32.mrb[99].mxu0  ;;  %v3410_v62 = vadd.f32 %v8866_v42, %v12023_v15  ;;  %v12033_v33 = vadd.f32 %v3407_v10, %v11790_v54 }
 0x9c5   :  { %v12028_v63 = vadd.f32 %v3399_v30, %v11780_v47  ;;  %v3402_v50 = vadd.f32 %v12023_v15, %v3401_v49 }
 0x9c6   :  { %v12041_v4 = vadd.f32 %v3410_v62, %v11793_v27 }
 0x9c7   :  { %v12036_v17 = vadd.f32 %v3402_v50, %v11783_v11  ;;  %v3559_v28 = vsel %vm406_vm1, %v12028_v63, 0.0  ;;  %v3565_v11 = vsel %vm406_vm1, %v12033_v33, 0.0 }
 0x9c8   :  { %3560 = vadd.xlane.f32.xlu0 %v3559_v28  ;;  %v3568_v16 = vsel %vm406_vm1, %v12041_v4, 0.0 }
 0x9c9   :  { %v8869_v7 = vpop.f32.mrb[100].mxu0  ;;  %v3562_v47 = vsel %vm406_vm1, %v12036_v17, 0.0 }
 0x9ca   :  { %3563 = vadd.xlane.f32.xlu1 %v3562_v47  ;;  %v3414_v46 = vpop.f32.mrb[101].mxu0  ;;  %v3423_v35 = vadd.f32 %v8869_v7, %v12023_v15 }
 0x9cb   :  { %v3415_v54 = vadd.f32 %v12023_v15, %v3414_v46  ;;  %v8870_v58 = vpop.f32.mrb[102].mxu0 }
 0x9cc   :  { %3566 = vadd.xlane.f32.xlu0 %v3565_v11  ;;  %v3417_v60 = vpop.f32.mrb[103].mxu0  ;;  %v3426_v27 = vadd.f32 %v8870_v58, %v12023_v15  ;;  %v12057_v13 = vadd.f32 %v3423_v35, %v11817_v56 }
 0x9cd   :  { %v12050_v37 = vadd.f32 %v3415_v54, %v11804_v22  ;;  %v3418_v44 = vadd.f32 %v12023_v15, %v3417_v60 }
 0x9ce   :  { %3569 = vadd.xlane.f32.xlu1 %v3568_v16  ;;  %v12065_v22 = vadd.f32 %v3426_v27, %v11820_v34 }
 0x9cf   :  { %v12060_v5 = vadd.f32 %v3418_v44, %v11807_v55  ;;  %v3571_v9 = vsel %vm406_vm1, %v12050_v37, 0.0  ;;  %v3577_v55 = vsel %vm406_vm1, %v12057_v13, 0.0 }
 0x9d0   :  { %3572 = vadd.xlane.f32.xlu0 %v3571_v9  ;;  %v3580_v29 = vsel %vm406_vm1, %v12065_v22, 0.0 }
 0x9d1   :  { %v8873_v38 = vpop.f32.mrb[104].mxu0  ;;  %v3574_v57 = vsel %vm406_vm1, %v12060_v5, 0.0 }
 0x9d2   :  { %3575 = vadd.xlane.f32.xlu1 %v3574_v57  ;;  %v3430_v12 = vpop.f32.mrb[105].mxu0  ;;  %v3439_v25 = vadd.f32 %v8873_v38, %v12023_v15 }
 0x9d3   :  { %v3431_v56 = vadd.f32 %v12023_v15, %v3430_v12  ;;  %v8874_v18 = vpop.f32.mrb[106].mxu0 }
 0x9d4   :  { %3578 = vadd.xlane.f32.xlu0 %v3577_v55  ;;  %v3433_v40 = vpop.f32.mrb[107].mxu0  ;;  %v3442_v34 = vadd.f32 %v8874_v18, %v12023_v15  ;;  %v12081_v10 = vadd.f32 %v3439_v25, %v11843_v8 }
 0x9d5   :  { %v12074_v2 = vadd.f32 %v3431_v56, %v11830_v59  ;;  %v3434_v14 = vadd.f32 %v12023_v15, %v3433_v40 }
 0x9d6   :  { %3581 = vadd.xlane.f32.xlu1 %v3580_v29  ;;  %v12089_v59 = vadd.f32 %v3442_v34, %v11846_v20 }
 0x9d7   :  { %v12084_v30 = vadd.f32 %v3434_v14, %v11833_v45  ;;  %v3583_v42 = vsel %vm406_vm1, %v12074_v2, 0.0  ;;  %v3589_v45 = vsel %vm406_vm1, %v12081_v10, 0.0 }
 0x9d8   :  { %3584 = vadd.xlane.f32.xlu0 %v3583_v42  ;;  %v3592_v54 = vsel %vm406_vm1, %v12089_v59, 0.0 }
 0x9d9   :  { %v8877_v49 = vpop.f32.mrb[108].mxu0  ;;  %v3586_v62 = vsel %vm406_vm1, %v12084_v30, 0.0 }
 0x9da   :  { %3587 = vadd.xlane.f32.xlu1 %v3586_v62  ;;  %v3446_v50 = vpop.f32.mrb[109].mxu0  ;;  %v3455_v28 = vadd.f32 %v8877_v49, %v12023_v15 }
 0x9db   :  { %v3447_v8 = vadd.f32 %v12023_v15, %v3446_v50  ;;  %v8878_v7 = vpop.f32.mrb[110].mxu0 }
 0x9dc   :  { %3590 = vadd.xlane.f32.xlu0 %v3589_v45  ;;  %v3449_v47 = vpop.f32.mrb[111].mxu0  ;;  %v3458_v20 = vadd.f32 %v8878_v7, %v12023_v15  ;;  %v12105_v58 = vadd.f32 %v3455_v28, %v11869_v48 }
 0x9dd   :  { %v12098_v46 = vadd.f32 %v3447_v8, %v11856_v0  ;;  %v3450_v35 = vadd.f32 %v12023_v15, %v3449_v47 }
 0x9de   :  { %3593 = vadd.xlane.f32.xlu1 %v3592_v54  ;;  %v12113_v0 = vadd.f32 %v3458_v20, %v11872_v51 }
 0x9df   :  { %v12108_v11 = vadd.f32 %v3450_v35, %v11859_v39  ;;  %v3595_v60 = vsel %vm406_vm1, %v12098_v46, 0.0  ;;  %v3601_v39 = vsel %vm406_vm1, %v12105_v58, 0.0 }
 0x9e0   :  { %3596 = vadd.xlane.f32.xlu0 %v3595_v60  ;;  %v3604_v56 = vsel %vm406_vm1, %v12113_v0, 0.0 }
 0x9e1   :  { %v8881_v27 = vpop.f32.mrb[112].mxu0  ;;  %v3598_v44 = vsel %vm406_vm1, %v12108_v11, 0.0 }
 0x9e2   :  { %3599 = vadd.xlane.f32.xlu1 %v3598_v44  ;;  %v3462_v16 = vpop.f32.mrb[113].mxu0  ;;  %v3471_v9 = vadd.f32 %v8881_v27, %v12023_v15 }
 0x9e3   :  { %v3463_v48 = vadd.f32 %v12023_v15, %v3462_v16  ;;  %v8882_v38 = vpop.f32.mrb[114].mxu0 }
 0x9e4   :  { %3602 = vadd.xlane.f32.xlu0 %v3601_v39  ;;  %v3465_v57 = vpop.f32.mrb[115].mxu0  ;;  %v3474_v51 = vadd.f32 %v8882_v38, %v12023_v15  ;;  %v12129_v18 = vadd.f32 %v3471_v9, %v11895_v41 }
 0x9e5   :  { %v12122_v12 = vadd.f32 %v3463_v48, %v11882_v36  ;;  %v3466_v25 = vadd.f32 %v12023_v15, %v3465_v57 }
 0x9e6   :  { %3605 = vadd.xlane.f32.xlu1 %v3604_v56  ;;  %v12137_v36 = vadd.f32 %v3474_v51, %v11898_v61 }
 0x9e7   :  { %v12132_v55 = vadd.f32 %v3466_v25, %v11885_v26  ;;  %v3607_v40 = vsel %vm406_vm1, %v12122_v12, 0.0  ;;  %v3613_v26 = vsel %vm406_vm1, %v12129_v18, 0.0 }
 0x9e8   :  { %3608 = vadd.xlane.f32.xlu0 %v3607_v40  ;;  %v3616_v8 = vsel %vm406_vm1, %v12137_v36, 0.0 }
 0x9e9   :  { %v8885_v34 = vpop.f32.mrb[116].mxu0  ;;  %v3610_v14 = vsel %vm406_vm1, %v12132_v55, 0.0 }
 0x9ea   :  { %3611 = vadd.xlane.f32.xlu1 %v3610_v14  ;;  %v3478_v29 = vpop.f32.mrb[117].mxu0  ;;  %v3487_v42 = vadd.f32 %v8885_v34, %v12023_v15 }
 0x9eb   :  { %v3479_v41 = vadd.f32 %v12023_v15, %v3478_v29  ;;  %v8886_v49 = vpop.f32.mrb[118].mxu0 }
 0x9ec   :  { %3614 = vadd.xlane.f32.xlu0 %v3613_v26  ;;  %v3481_v62 = vpop.f32.mrb[119].mxu0  ;;  %v3490_v61 = vadd.f32 %v8886_v49, %v12023_v15  ;;  %v12153_v7 = vadd.f32 %v3487_v42, %v11921_v6 }
 0x9ed   :  { %v12146_v50 = vadd.f32 %v3479_v41, %v11908_v43  ;;  %v3482_v28 = vadd.f32 %v12023_v15, %v3481_v62 }
 0x9ee   :  { %3617 = vadd.xlane.f32.xlu1 %v3616_v8  ;;  %v12161_v43 = vadd.f32 %v3490_v61, %v11924_v52 }
 0x9ef   :  { %v12156_v45 = vadd.f32 %v3482_v28, %v11911_v19  ;;  %v3619_v47 = vsel %vm406_vm1, %v12146_v50, 0.0  ;;  %v3625_v19 = vsel %vm406_vm1, %v12153_v7, 0.0  ;;  %v9242_v28 = vld [vmem:[%s15274_s1 + $0x58] sm:$0xff]  }
 0x9f0   :  { %3620 = vadd.xlane.f32.xlu0 %v3619_v47  ;;  %v3628_v48 = vsel %vm406_vm1, %v12161_v43, 0.0 }
 0x9f1   :  { %v8889_v20 = vpop.f32.mrb[120].mxu0  ;;  %v3622_v35 = vsel %vm406_vm1, %v12156_v45, 0.0 }
 0x9f2   :  { %3623 = vadd.xlane.f32.xlu1 %v3622_v35  ;;  %v3494_v54 = vpop.f32.mrb[121].mxu0  ;;  %v3503_v60 = vadd.f32 %v8889_v20, %v12023_v15 }
 0x9f3   :  { %v3495_v6 = vadd.f32 %v12023_v15, %v3494_v54  ;;  %v8890_v27 = vpop.f32.mrb[122].mxu0 }
 0x9f4   :  { %3626 = vadd.xlane.f32.xlu0 %v3625_v19  ;;  %v3497_v44 = vpop.f32.mrb[123].mxu0  ;;  %v3506_v52 = vadd.f32 %v8890_v27, %v12023_v15  ;;  %v12177_v38 = vadd.f32 %v3503_v60, %v11947_v53 }
 0x9f5   :  { %v12170_v16 = vadd.f32 %v3495_v6, %v11934_v21  ;;  %v3498_v9 = vadd.f32 %v12023_v15, %v3497_v44 }
 0x9f6   :  { %3629 = vadd.xlane.f32.xlu1 %v3628_v48  ;;  %v12185_v21 = vadd.f32 %v3506_v52, %v11950_v24 }
 0x9f7   :  { %v12180_v39 = vadd.f32 %v3498_v9, %v11937_v3  ;;  %v3631_v57 = vsel %vm406_vm1, %v12170_v16, 0.0  ;;  %v3637_v3 = vsel %vm406_vm1, %v12177_v38, 0.0 }
 0x9f8   :  { %3632 = vadd.xlane.f32.xlu0 %v3631_v57  ;;  %v3640_v41 = vsel %vm406_vm1, %v12185_v21, 0.0 }
 0x9f9   :  { %v8893_v51 = vpop.f32.mrb[124].mxu0  ;;  %v3634_v25 = vsel %vm406_vm1, %v12180_v39, 0.0 }
 0x9fa   :  { %3635 = vadd.xlane.f32.xlu1 %v3634_v25  ;;  %v3510_v56 = vpop.f32.mrb[125].mxu0  ;;  %v3519_v40 = vadd.f32 %v8893_v51, %v12023_v15 }
 0x9fb   :  { %v3511_v53 = vadd.f32 %v12023_v15, %v3510_v56  ;;  %v8894_v34 = vpop.f32.mrb[126].mxu0 }
 0x9fc   :  { %3638 = vadd.xlane.f32.xlu0 %v3637_v3  ;;  %v3513_v14 = vpop.f32.mrb[127].mxu0  ;;  %v3522_v24 = vadd.f32 %v8894_v34, %v12023_v15  ;;  %v12201_v49 = vadd.f32 %v3519_v40, %v11972_v23 }
 0x9fd   :  { %v12194_v29 = vadd.f32 %v3511_v53, %v11960_v1  ;;  %v3514_v42 = vadd.f32 %v12023_v15, %v3513_v14 }
 0x9fe   :  { %3641 = vadd.xlane.f32.xlu1 %v3640_v41  ;;  %v12209_v1 = vadd.f32 %v3522_v24, %v11975_v31  ;;  %v3649_v61 = vsel %vm406_vm1, %v12201_v49, 0.0  ;;  %v9241_v31 = vld [vmem:[%s15274_s1 + $0x50] sm:$0xff]  }
 0x9ff   :  { %v12204_v26 = vadd.f32 %v3514_v42, %v11963_v32  ;;  %v3643_v62 = vsel %vm406_vm1, %v12194_v29, 0.0  ;;  %v9240_v32 = vld [vmem:[%s15274_s1 + $0x48] sm:$0xff]  }
 0xa00   :  { %3644 = vadd.xlane.f32.xlu0 %v3643_v62  ;;  %v3652_v23 = vsel %vm406_vm1, %v12209_v1, 0.0  ;;  %8895 = vmatprep.subr.bf16.mxu1 %v9240_v32 }
 0xa01   :  { %v3646_v15 = vsel %vm406_vm1, %v12204_v26, 0.0  ;;  %8896 = vmatpush3.bf16.msra.mxu1 %v9240_v32 }
 0xa02   :  { %3647 = vadd.xlane.f32.xlu1 %v3646_v15  ;;  %8897 = vmatprep.subr.bf16.mxu1 %v9241_v31 }
 0xa04   :  { %3650 = vadd.xlane.f32.xlu0 %v3649_v61 }
 0xa05   :  { %8898 = vmatpush3.bf16.msra.mxu1 %v9241_v31 }
 0xa06   :  { %3653 = vadd.xlane.f32.xlu1 %v3652_v23  ;;  %8899 = vmatprep.subr.bf16.mxu1 %v9242_v28 }
 0xa09   :  { %8900 = vmatpush3.bf16.msra.mxu1 %v9242_v28 }
 0xa55   :  { %v3561_v8 = vpop.xlane.xlu0 %3560 }
 0xa56   :  { %v3655_v47 = vmul.f32 0.015625, %v3561_v8 }
 0xa57   :  { %v3564_v20 = vpop.xlane.xlu1 %3563 }
 0xa58   :  { %v12227_v35 = vsub.f32 %v12028_v63, %v3655_v47  ;;  %v3656_v54 = vmul.f32 0.015625, %v3564_v20 }
 0xa59   :  { %v3567_v60 = vpop.xlane.xlu0 %3566 }
 0xa5a   :  { %v12230_v6 = vsub.f32 %v12036_v17, %v3656_v54  ;;  %v3657_v27 = vmul.f32 0.015625, %v3567_v60  ;;  %v3719_v19 = vmul.f32 %v12227_v35, %v12227_v35 }
 0xa5b   :  { %v3570_v44 = vpop.xlane.xlu1 %3569 }
 0xa5c   :  { %v12235_v52 = vsub.f32 %v12033_v33, %v3657_v27  ;;  %v3658_v9 = vmul.f32 0.015625, %v3570_v44  ;;  %v3751_v48 = vsel %vm406_vm1, %v3719_v19, 0.0  ;;  %v3720_v63 = vmul.f32 %v12230_v6, %v12230_v6 }
 0xa5d   :  { %3752 = vadd.xlane.f32.xlu0 %v3751_v48  ;;  %v3573_v57 = vpop.xlane.xlu0 %3572 }
 0xa5e   :  { %v12241_v51 = vsub.f32 %v12041_v4, %v3658_v9  ;;  %v3659_v17 = vmul.f32 0.015625, %v3573_v57  ;;  %v3754_v25 = vsel %vm406_vm1, %v3720_v63, 0.0  ;;  %v3721_v56 = vmul.f32 %v12235_v52, %v12235_v52 }
 0xa5f   :  { %v3576_v40 = vpop.xlane.xlu1 %3575  ;;  %3755 = vadd.xlane.f32.xlu1 %v3754_v25 }
 0xa60   :  { %v12247_v33 = vsub.f32 %v12050_v37, %v3659_v17  ;;  %v3660_v53 = vmul.f32 0.015625, %v3576_v40  ;;  %v3757_v34 = vsel %vm406_vm1, %v3721_v56, 0.0  ;;  %v3722_v3 = vmul.f32 %v12241_v51, %v12241_v51 }
 0xa61   :  { %3758 = vadd.xlane.f32.xlu0 %v3757_v34  ;;  %v3579_v4 = vpop.xlane.xlu0 %3578 }
 0xa62   :  { %v12253_v14 = vsub.f32 %v12060_v5, %v3660_v53  ;;  %v3661_v24 = vmul.f32 0.015625, %v3579_v4  ;;  %v3760_v42 = vsel %vm406_vm1, %v3722_v3, 0.0  ;;  %v3723_v41 = vmul.f32 %v12247_v33, %v12247_v33 }
 0xa63   :  { %v3582_v62 = vpop.xlane.xlu1 %3581  ;;  %3761 = vadd.xlane.f32.xlu1 %v3760_v42 }
 0xa64   :  { %v12259_v37 = vsub.f32 %v12057_v13, %v3661_v24  ;;  %v3662_v15 = vmul.f32 0.015625, %v3582_v62  ;;  %v3763_v61 = vsel %vm406_vm1, %v3723_v41, 0.0  ;;  %v3724_v23 = vmul.f32 %v12253_v14, %v12253_v14 }
 0xa65   :  { %3764 = vadd.xlane.f32.xlu0 %v3763_v61  ;;  %v3585_v5 = vpop.xlane.xlu0 %3584 }
 0xa66   :  { %v12265_v32 = vsub.f32 %v12065_v22, %v3662_v15  ;;  %v3663_v31 = vmul.f32 0.015625, %v3585_v5  ;;  %v3766_v28 = vsel %vm406_vm1, %v3724_v23, 0.0  ;;  %v3725_v8 = vmul.f32 %v12259_v37, %v12259_v37 }
 0xa67   :  { %v3588_v47 = vpop.xlane.xlu1 %3587  ;;  %3767 = vadd.xlane.f32.xlu1 %v3766_v28 }
 0xa68   :  { %v12271_v13 = vsub.f32 %v12074_v2, %v3663_v31  ;;  %v3664_v20 = vmul.f32 0.015625, %v3588_v47  ;;  %v3769_v54 = vsel %vm406_vm1, %v3725_v8, 0.0  ;;  %v3726_v60 = vmul.f32 %v12265_v32, %v12265_v32 }
 0xa69   :  { %3770 = vadd.xlane.f32.xlu0 %v3769_v54  ;;  %v3591_v22 = vpop.xlane.xlu0 %3590 }
 0xa6a   :  { %v12277_v27 = vsub.f32 %v12084_v30, %v3664_v20  ;;  %v3665_v19 = vmul.f32 0.015625, %v3591_v22  ;;  %v3772_v44 = vsel %vm406_vm1, %v3726_v60, 0.0  ;;  %v3727_v9 = vmul.f32 %v12271_v13, %v12271_v13 }
 0xa6b   :  { %v3594_v48 = vpop.xlane.xlu1 %3593  ;;  %3773 = vadd.xlane.f32.xlu1 %v3772_v44 }
 0xa6c   :  { %v12283_v2 = vsub.f32 %v12081_v10, %v3665_v19  ;;  %v3666_v63 = vmul.f32 0.015625, %v3594_v48  ;;  %v3775_v57 = vsel %vm406_vm1, %v3727_v9, 0.0  ;;  %v3728_v17 = vmul.f32 %v12277_v27, %v12277_v27 }
 0xa6d   :  { %3776 = vadd.xlane.f32.xlu0 %v3775_v57  ;;  %v3597_v30 = vpop.xlane.xlu0 %3596 }
 0xa6e   :  { %v12289_v25 = vsub.f32 %v12089_v59, %v3666_v63  ;;  %v3667_v56 = vmul.f32 0.015625, %v3597_v30  ;;  %v3778_v40 = vsel %vm406_vm1, %v3728_v17, 0.0  ;;  %v3729_v53 = vmul.f32 %v12283_v2, %v12283_v2 }
 0xa6f   :  { %v3600_v34 = vpop.xlane.xlu1 %3599  ;;  %3779 = vadd.xlane.f32.xlu1 %v3778_v40 }
 0xa70   :  { %v12295_v10 = vsub.f32 %v12098_v46, %v3667_v56  ;;  %v3668_v3 = vmul.f32 0.015625, %v3600_v34  ;;  %v3781_v4 = vsel %vm406_vm1, %v3729_v53, 0.0  ;;  %v3730_v24 = vmul.f32 %v12289_v25, %v12289_v25 }
 0xa71   :  { %3782 = vadd.xlane.f32.xlu0 %v3781_v4  ;;  %v3603_v59 = vpop.xlane.xlu0 %3602 }
 0xa72   :  { %v12301_v42 = vsub.f32 %v12108_v11, %v3668_v3  ;;  %v3669_v41 = vmul.f32 0.015625, %v3603_v59  ;;  %v3784_v62 = vsel %vm406_vm1, %v3730_v24, 0.0  ;;  %v3731_v15 = vmul.f32 %v12295_v10, %v12295_v10 }
 0xa73   :  { %v3606_v61 = vpop.xlane.xlu1 %3605  ;;  %3785 = vadd.xlane.f32.xlu1 %v3784_v62 }
 0xa74   :  { %v12307_v46 = vsub.f32 %v12105_v58, %v3669_v41  ;;  %v3670_v23 = vmul.f32 0.015625, %v3606_v61  ;;  %v3787_v5 = vsel %vm406_vm1, %v3731_v15, 0.0  ;;  %v3732_v31 = vmul.f32 %v12301_v42, %v12301_v42 }
 0xa75   :  { %3788 = vadd.xlane.f32.xlu0 %v3787_v5  ;;  %v3609_v11 = vpop.xlane.xlu0 %3608 }
 0xa76   :  { %v12313_v28 = vsub.f32 %v12113_v0, %v3670_v23  ;;  %v3671_v8 = vmul.f32 0.015625, %v3609_v11  ;;  %v3790_v47 = vsel %vm406_vm1, %v3732_v31, 0.0  ;;  %v3733_v20 = vmul.f32 %v12307_v46, %v12307_v46 }
 0xa77   :  { %v3612_v54 = vpop.xlane.xlu1 %3611  ;;  %3791 = vadd.xlane.f32.xlu1 %v3790_v47 }
 0xa78   :  { %v12319_v58 = vsub.f32 %v12122_v12, %v3671_v8  ;;  %v3672_v60 = vmul.f32 0.015625, %v3612_v54  ;;  %v3793_v22 = vsel %vm406_vm1, %v3733_v20, 0.0  ;;  %v3734_v19 = vmul.f32 %v12313_v28, %v12313_v28 }
 0xa79   :  { %3794 = vadd.xlane.f32.xlu0 %v3793_v22  ;;  %v3615_v0 = vpop.xlane.xlu0 %3614 }
 0xa7a   :  { %v12325_v44 = vsub.f32 %v12132_v55, %v3672_v60  ;;  %v3673_v9 = vmul.f32 0.015625, %v3615_v0  ;;  %v3796_v48 = vsel %vm406_vm1, %v3734_v19, 0.0  ;;  %v3735_v63 = vmul.f32 %v12319_v58, %v12319_v58 }
 0xa7b   :  { %v3618_v57 = vpop.xlane.xlu1 %3617  ;;  %3797 = vadd.xlane.f32.xlu1 %v3796_v48 }
 0xa7c   :  { %v12331_v12 = vsub.f32 %v12129_v18, %v3673_v9  ;;  %v3674_v17 = vmul.f32 0.015625, %v3618_v57  ;;  %v3799_v30 = vsel %vm406_vm1, %v3735_v63, 0.0  ;;  %v3736_v56 = vmul.f32 %v12325_v44, %v12325_v44 }
 0xa7d   :  { %3800 = vadd.xlane.f32.xlu0 %v3799_v30  ;;  %v3621_v55 = vpop.xlane.xlu0 %3620 }
 0xa7e   :  { %v12337_v40 = vsub.f32 %v12137_v36, %v3674_v17  ;;  %v3675_v53 = vmul.f32 0.015625, %v3621_v55  ;;  %v3802_v34 = vsel %vm406_vm1, %v3736_v56, 0.0  ;;  %v3737_v3 = vmul.f32 %v12331_v12, %v12331_v12 }
 0xa7f   :  { %v3624_v4 = vpop.xlane.xlu1 %3623  ;;  %3803 = vadd.xlane.f32.xlu1 %v3802_v34 }
 0xa80   :  { %v12343_v18 = vsub.f32 %v12146_v50, %v3675_v53  ;;  %v3676_v24 = vmul.f32 0.015625, %v3624_v4  ;;  %v3805_v59 = vsel %vm406_vm1, %v3737_v3, 0.0  ;;  %v3738_v41 = vmul.f32 %v12337_v40, %v12337_v40 }
 0xa81   :  { %3806 = vadd.xlane.f32.xlu0 %v3805_v59  ;;  %v3627_v36 = vpop.xlane.xlu0 %3626 }
 0xa82   :  { %v12349_v62 = vsub.f32 %v12156_v45, %v3676_v24  ;;  %v3677_v15 = vmul.f32 0.015625, %v3627_v36  ;;  %v3808_v61 = vsel %vm406_vm1, %v3738_v41, 0.0  ;;  %v3739_v23 = vmul.f32 %v12343_v18, %v12343_v18  ;;  %v9243_v45 = vld [vmem:[%s15274_s1 + $0x60] sm:$0xff]  }
 0xa83   :  { %v3630_v5 = vpop.xlane.xlu1 %3629  ;;  %3809 = vadd.xlane.f32.xlu1 %v3808_v61  ;;  %8901 = vmatprep.subr.bf16.mxu1 %v9243_v45 }
 0xa84   :  { %v12355_v50 = vsub.f32 %v12153_v7, %v3677_v15  ;;  %v3678_v31 = vmul.f32 0.015625, %v3630_v5  ;;  %v3811_v11 = vsel %vm406_vm1, %v3739_v23, 0.0  ;;  %v3740_v8 = vmul.f32 %v12349_v62, %v12349_v62  ;;  %8902 = vmatpush3.bf16.msra.mxu1 %v9243_v45 }
 0xa85   :  { %3812 = vadd.xlane.f32.xlu0 %v3811_v11  ;;  %v3633_v47 = vpop.xlane.xlu0 %3632 }
 0xa86   :  { %v12364_v20 = vsub.f32 %v12161_v43, %v3678_v31  ;;  %v3679_v54 = vmul.f32 0.015625, %v3633_v47  ;;  %v3814_v60 = vsel %vm406_vm1, %v3740_v8, 0.0  ;;  %v3741_v7 = vmul.f32 %v12355_v50, %v12355_v50 }
 0xa87   :  { %v3636_v22 = vpop.xlane.xlu1 %3635  ;;  %3815 = vadd.xlane.f32.xlu1 %v3814_v60 }
 0xa88   :  { %v12370_v19 = vsub.f32 %v12170_v16, %v3679_v54  ;;  %v3680_v0 = vmul.f32 0.015625, %v3636_v22  ;;  %v3817_v9 = vsel %vm406_vm1, %v3741_v7, 0.0  ;;  %v3742_v43 = vmul.f32 %v12364_v20, %v12364_v20 }
 0xa89   :  { %3818 = vadd.xlane.f32.xlu0 %v3817_v9  ;;  %v3639_v48 = vpop.xlane.xlu0 %3638 }
 0xa8a   :  { %v12376_v63 = vsub.f32 %v12180_v39, %v3680_v0  ;;  %v3681_v57 = vmul.f32 0.015625, %v3639_v48  ;;  %v3820_v17 = vsel %vm406_vm1, %v3742_v43, 0.0  ;;  %v3743_v30 = vmul.f32 %v12370_v19, %v12370_v19 }
 0xa8b   :  { %v3642_v56 = vpop.xlane.xlu1 %3641  ;;  %3821 = vadd.xlane.f32.xlu1 %v3820_v17 }
 0xa8c   :  { %v12382_v16 = vsub.f32 %v12177_v38, %v3681_v57  ;;  %v3682_v55 = vmul.f32 0.015625, %v3642_v56  ;;  %v3823_v53 = vsel %vm406_vm1, %v3743_v30, 0.0  ;;  %v3744_v34 = vmul.f32 %v12376_v63, %v12376_v63 }
 0xa8d   :  { %3824 = vadd.xlane.f32.xlu0 %v3823_v53  ;;  %v3645_v39 = vpop.xlane.xlu0 %3644 }
 0xa8e   :  { %v12388_v3 = vsub.f32 %v12185_v21, %v3682_v55  ;;  %v3683_v4 = vmul.f32 0.015625, %v3645_v39  ;;  %v3826_v24 = vsel %vm406_vm1, %v3744_v34, 0.0  ;;  %v3745_v59 = vmul.f32 %v12382_v16, %v12382_v16 }
 0xa8f   :  { %3827 = vadd.xlane.f32.xlu1 %v3826_v24  ;;  %v3648_v38 = vpop.xlane.xlu1 %3647 }
 0xa90   :  { %v12394_v41 = vsub.f32 %v12194_v29, %v3683_v4  ;;  %v3684_v36 = vmul.f32 0.015625, %v3648_v38  ;;  %v3829_v15 = vsel %vm406_vm1, %v3745_v59, 0.0  ;;  %v3746_v61 = vmul.f32 %v12388_v3, %v12388_v3 }
 0xa91   :  { %3830 = vadd.xlane.f32.xlu0 %v3829_v15  ;;  %v3651_v21 = vpop.xlane.xlu0 %3650 }
 0xa92   :  { %v12400_v23 = vsub.f32 %v12204_v26, %v3684_v36  ;;  %v3685_v5 = vmul.f32 0.015625, %v3651_v21  ;;  %v3832_v31 = vsel %vm406_vm1, %v3746_v61, 0.0  ;;  %v3747_v11 = vmul.f32 %v12394_v41, %v12394_v41 }
 0xa93   :  { %3833 = vadd.xlane.f32.xlu1 %v3832_v31  ;;  %v3654_v29 = vpop.xlane.xlu1 %3653 }
 0xa94   :  { %v12406_v8 = vsub.f32 %v12201_v49, %v3685_v5  ;;  %v3686_v45 = vmul.f32 0.015625, %v3654_v29  ;;  %v3835_v47 = vsel %vm406_vm1, %v3747_v11, 0.0  ;;  %v3748_v54 = vmul.f32 %v12400_v23, %v12400_v23  ;;  %v12424_v11 = vld [vmem:[%s15276_s3 + $0xe] ss:$0 sm:$0xff] }
 0xa95   :  { %3836 = vadd.xlane.f32.xlu0 %v3835_v47 }
 0xa96   :  { %v12412_v26 = vsub.f32 %v12209_v1, %v3686_v45  ;;  %v3838_v60 = vsel %vm406_vm1, %v3748_v54, 0.0  ;;  %v3749_v7 = vmul.f32 %v12406_v8, %v12406_v8 }
 0xa97   :  { %3839 = vadd.xlane.f32.xlu1 %v3838_v60 }
 0xa98   :  { %v3841_v22 = vsel %vm406_vm1, %v3749_v7, 0.0  ;;  %v3750_v49 = vmul.f32 %v12412_v26, %v12412_v26 }
 0xa99   :  { %3842 = vadd.xlane.f32.xlu0 %v3841_v22 }
 0xa9a   :  { %v3844_v0 = vsel %vm406_vm1, %v3750_v49, 0.0 }
 0xa9b   :  { %3845 = vadd.xlane.f32.xlu1 %v3844_v0 }
 0xaea   :  { %v3753_v9 = vpop.xlane.xlu0 %3752 }
 0xaeb   :  { %v3847_v43 = vmul.f32 0.015625, %v3753_v9 }
 0xaec   :  { %v3756_v48 = vpop.xlane.xlu1 %3755 }
 0xaed   :  { %v3879_v1 = vadd.f32 1e-05, %v3847_v43  ;;  %v3848_v57 = vmul.f32 0.015625, %v3756_v48  ;;  %v12432_v48 = vld [vmem:[%s15276_s3 + $0xf] ss:$0 sm:$0xff] }
 0xaee   :  { %v3759_v17 = vpop.xlane.xlu0 %3758 }
 0xaef   :  { %9468 = vrsqrt.f32 %v3879_v1  ;;  %v3880_v30 = vadd.f32 1e-05, %v3848_v57  ;;  %v3849_v56 = vmul.f32 0.015625, %v3759_v17 }
 0xaf0   :  { %v3762_v55 = vpop.xlane.xlu1 %3761 }
 0xaf1   :  { %9470 = vrsqrt.f32 %v3880_v30  ;;  %v3881_v53 = vadd.f32 1e-05, %v3849_v56  ;;  %v3850_v34 = vmul.f32 0.015625, %v3762_v55 }
 0xaf2   :  { %v3765_v39 = vpop.xlane.xlu0 %3764 }
 0xaf3   :  { %9472 = vrsqrt.f32 %v3881_v53  ;;  %v3882_v4 = vadd.f32 1e-05, %v3850_v34  ;;  %v3851_v24 = vmul.f32 0.015625, %v3765_v39 }
 0xaf4   :  { %v3768_v59 = vpop.xlane.xlu1 %3767 }
 0xaf5   :  { %9474 = vrsqrt.f32 %v3882_v4  ;;  %v3883_v38 = vadd.f32 1e-05, %v3851_v24  ;;  %v3852_v36 = vmul.f32 0.015625, %v3768_v59 }
 0xaf6   :  { %v3771_v15 = vpop.xlane.xlu0 %3770 }
 0xaf7   :  { %9476 = vrsqrt.f32 %v3883_v38  ;;  %v3884_v61 = vadd.f32 1e-05, %v3852_v36  ;;  %v3853_v21 = vmul.f32 0.015625, %v3771_v15 }
 0xaf8   :  { %v3774_v5 = vpop.xlane.xlu1 %3773 }
 0xaf9   :  { %v9469_v31 = vpop.eup %9468  ;;  %9478 = vrsqrt.f32 %v3884_v61  ;;  %v3885_v29 = vadd.f32 1e-05, %v3853_v21  ;;  %v3854_v45 = vmul.f32 0.015625, %v3774_v5 }
 0xafa   :  { %v3777_v47 = vpop.xlane.xlu0 %3776  ;;  %v3943_v54 = vmul.f32 %v9469_v31, %v12227_v35 }
 0xafb   :  { %v9471_v60 = vpop.eup %9470  ;;  %9480 = vrsqrt.f32 %v3885_v29  ;;  %v3886_v7 = vadd.f32 1e-05, %v3854_v45  ;;  %v3855_v22 = vmul.f32 0.015625, %v3777_v47 }
 0xafc   :  { %v3780_v49 = vpop.xlane.xlu1 %3779  ;;  %v3944_v0 = vmul.f32 %v9471_v60, %v12230_v6  ;;  %v3979_v9 = vmul.f32 %v12424_v11, %v3943_v54 }
 0xafd   :  { %v9473_v43 = vpop.eup %9472  ;;  %9482 = vrsqrt.f32 %v3886_v7  ;;  %v3887_v1 = vadd.f32 1e-05, %v3855_v22  ;;  %v3856_v57 = vmul.f32 0.015625, %v3780_v49 }
 0xafe   :  { %v3945_v35 = vmul.f32 %v9473_v43, %v12235_v52  ;;  %v3783_v17 = vpop.xlane.xlu0 %3782  ;;  %v3980_v30 = vmul.f32 %v12424_v11, %v3944_v0  ;;  %v12439_v4 = vadd.f32 %v12432_v48, %v3979_v9 }
 0xaff   :  { %v9475_v56 = vpop.eup %9474  ;;  %9484 = vrsqrt.f32 %v3887_v1  ;;  %v3888_v55 = vadd.f32 1e-05, %v3856_v57  ;;  %v3857_v6 = vmul.f32 0.015625, %v3783_v17 }
 0xb00   :  { %v3981_v53 = vmul.f32 %v12424_v11, %v3945_v35  ;;  %v3946_v34 = vmul.f32 %v9475_v56, %v12241_v51  ;;  %v3786_v39 = vpop.xlane.xlu1 %3785  ;;  %v12442_v24 = vadd.f32 %v12432_v48, %v3980_v30 }
 0xb01   :  { %v9477_v59 = vpop.eup %9476  ;;  %9486 = vrsqrt.f32 %v3888_v55  ;;  %v3889_v52 = vadd.f32 1e-05, %v3857_v6  ;;  %v3858_v38 = vmul.f32 0.015625, %v3786_v39 }
 0xb02   :  { %v3982_v36 = vmul.f32 %v12424_v11, %v3946_v34  ;;  %v3789_v15 = vpop.xlane.xlu0 %3788  ;;  %v4055_v61 = vpack.c.bf16 %v12442_v24, %v12439_v4  ;;  %v3947_v21 = vmul.f32 %v9477_v59, %v12247_v33  ;;  %v12449_v29 = vadd.f32 %v12432_v48, %v3981_v53 }
 0xb03   :  { %v9479_v51 = vpop.eup %9478  ;;  %9488 = vrsqrt.f32 %v3889_v52  ;;  %v3890_v5 = vadd.f32 1e-05, %v3858_v38  ;;  %v3859_v31 = vmul.f32 0.015625, %v3789_v15 }
 0xb04   :  { %v12452_v45 = vadd.f32 %v12432_v48, %v3982_v36  ;;  %v3792_v47 = vpop.xlane.xlu1 %3791  ;;  %8903 = vmatprep.mubr.msk.bf16.mxu1 %vm406_vm1, %v4055_v61  ;;  %v3948_v54 = vmul.f32 %v9479_v51, %v12253_v14  ;;  %v3983_v60 = vmul.f32 %v12424_v11, %v3947_v21 }
 0xb05   :  { %v9481_v7 = vpop.eup %9480  ;;  %9490 = vrsqrt.f32 %v3890_v5  ;;  %v3891_v33 = vadd.f32 1e-05, %v3859_v31  ;;  %v3860_v22 = vmul.f32 0.015625, %v3792_v47 }
 0xb06   :  { %v3795_v49 = vpop.xlane.xlu0 %3794  ;;  %v4056_v0 = vpack.c.bf16 %v12452_v45, %v12449_v29  ;;  %v3984_v9 = vmul.f32 %v12424_v11, %v3948_v54  ;;  %v3949_v43 = vmul.f32 %v9481_v7, %v12259_v37  ;;  %v12463_v14 = vadd.f32 %v12432_v48, %v3983_v60 }
 0xb07   :  { %v9483_v1 = vpop.eup %9482  ;;  %9492 = vrsqrt.f32 %v3891_v33  ;;  %v3892_v57 = vadd.f32 1e-05, %v3860_v22  ;;  %v3861_v35 = vmul.f32 0.015625, %v3795_v49 }
 0xb08   :  { %v3798_v17 = vpop.xlane.xlu1 %3797  ;;  %8904 = vmatmul.mubr.msk.bf16.vlgmr.msra.gmra.mrb[96].mxu1 %vm406_vm1, %v4056_v0  ;;  %v12466_v30 = vadd.f32 %v12432_v48, %v3984_v9  ;;  %v3950_v56 = vmul.f32 %v9483_v1, %v12265_v32  ;;  %v3985_v55 = vmul.f32 %v12424_v11, %v3949_v43 }
 0xb09   :  { %v9485_v6 = vpop.eup %9484  ;;  %9494 = vrsqrt.f32 %v3892_v57  ;;  %v3893_v37 = vadd.f32 1e-05, %v3861_v35  ;;  %v3862_v53 = vmul.f32 0.015625, %v3798_v17 }
 0xb0a   :  { %v3801_v34 = vpop.xlane.xlu0 %3800  ;;  %v4057_v39 = vpack.c.bf16 %v12466_v30, %v12463_v14  ;;  %v3986_v59 = vmul.f32 %v12424_v11, %v3950_v56  ;;  %v3951_v52 = vmul.f32 %v9485_v6, %v12271_v13  ;;  %v12476_v32 = vadd.f32 %v12432_v48, %v3985_v55 }
 0xb0b   :  { %v9487_v38 = vpop.eup %9486  ;;  %9496 = vrsqrt.f32 %v3893_v37  ;;  %v3894_v36 = vadd.f32 1e-05, %v3862_v53  ;;  %v3863_v15 = vmul.f32 0.015625, %v3801_v34 }
 0xb0c   :  { %v3804_v61 = vpop.xlane.xlu1 %3803  ;;  %8907 = vmatprep.mubr.msk.bf16.mxu1 %vm406_vm1, %v4057_v39  ;;  %v12479_v21 = vadd.f32 %v12432_v48, %v3986_v59  ;;  %v3952_v51 = vmul.f32 %v9487_v38, %v12277_v27  ;;  %v3987_v5 = vmul.f32 %v12424_v11, %v3951_v52 }
 0xb0d   :  { %v9489_v31 = vpop.eup %9488  ;;  %9498 = vrsqrt.f32 %v3894_v36  ;;  %v3895_v13 = vadd.f32 1e-05, %v3863_v15  ;;  %v3864_v47 = vmul.f32 0.015625, %v3804_v61 }
 0xb0e   :  { %v3807_v54 = vpop.xlane.xlu0 %3806  ;;  %v4058_v60 = vpack.c.bf16 %v12479_v21, %v12476_v32  ;;  %v3988_v7 = vmul.f32 %v12424_v11, %v3952_v51  ;;  %v3953_v33 = vmul.f32 %v9489_v31, %v12283_v2  ;;  %v12489_v27 = vadd.f32 %v12432_v48, %v3987_v5 }
 0xb0f   :  { %v9491_v22 = vpop.eup %9490  ;;  %9500 = vrsqrt.f32 %v3895_v13  ;;  %v3896_v49 = vadd.f32 1e-05, %v3864_v47  ;;  %v3865_v0 = vmul.f32 0.015625, %v3807_v54 }
 0xb10   :  { %v3810_v9 = vpop.xlane.xlu1 %3809  ;;  %8908 = vmatmul.mubr.msk.bf16.gmra.mrb[100].mxu1 %vm406_vm1, %v4058_v60  ;;  %v12492_v43 = vadd.f32 %v12432_v48, %v3988_v7  ;;  %v3954_v1 = vmul.f32 %v9491_v22, %v12289_v25  ;;  %v3989_v57 = vmul.f32 %v12424_v11, %v3953_v33 }
 0xb11   :  { %v9493_v35 = vpop.eup %9492  ;;  %9502 = vrsqrt.f32 %v3896_v49  ;;  %v3897_v2 = vadd.f32 1e-05, %v3865_v0  ;;  %v3866_v17 = vmul.f32 0.015625, %v3810_v9 }
 0xb12   :  { %v3813_v56 = vpop.xlane.xlu0 %3812  ;;  %v4059_v55 = vpack.c.bf16 %v12492_v43, %v12489_v27  ;;  %v3990_v6 = vmul.f32 %v12424_v11, %v3954_v1  ;;  %v3955_v37 = vmul.f32 %v9493_v35, %v12295_v10  ;;  %v12502_v25 = vadd.f32 %v12432_v48, %v3989_v57 }
 0xb13   :  { %v9495_v53 = vpop.eup %9494  ;;  %9504 = vrsqrt.f32 %v3897_v2  ;;  %v3898_v34 = vadd.f32 1e-05, %v3866_v17  ;;  %v3867_v39 = vmul.f32 0.015625, %v3813_v56 }
 0xb14   :  { %v3816_v59 = vpop.xlane.xlu1 %3815  ;;  %8911 = vmatprep.mubr.msk.bf16.mxu1 %vm406_vm1, %v4059_v55  ;;  %v12505_v52 = vadd.f32 %v12432_v48, %v3990_v6  ;;  %v3956_v38 = vmul.f32 %v9495_v53, %v12301_v42  ;;  %v3991_v36 = vmul.f32 %v12424_v11, %v3955_v37 }
 0xb15   :  { %v9497_v15 = vpop.eup %9496  ;;  %9506 = vrsqrt.f32 %v3898_v34  ;;  %v3899_v10 = vadd.f32 1e-05, %v3867_v39  ;;  %v3868_v61 = vmul.f32 0.015625, %v3816_v59 }
 0xb16   :  { %v3819_v51 = vpop.xlane.xlu0 %3818  ;;  %v4060_v5 = vpack.c.bf16 %v12505_v52, %v12502_v25  ;;  %v3992_v31 = vmul.f32 %v12424_v11, %v3956_v38  ;;  %v3957_v13 = vmul.f32 %v9497_v15, %v12307_v46  ;;  %v12515_v42 = vadd.f32 %v12432_v48, %v3991_v36 }
 0xb17   :  { %v9499_v47 = vpop.eup %9498  ;;  %9508 = vrsqrt.f32 %v3899_v10  ;;  %v3900_v54 = vadd.f32 1e-05, %v3868_v61  ;;  %v3869_v60 = vmul.f32 0.015625, %v3819_v51 }
 0xb18   :  { %v3822_v7 = vpop.xlane.xlu1 %3821  ;;  %8912 = vmatmul.mubr.msk.bf16.gmra.mrb[104].mxu1 %vm406_vm1, %v4060_v5  ;;  %v12518_v33 = vadd.f32 %v12432_v48, %v3992_v31  ;;  %v3958_v22 = vmul.f32 %v9499_v47, %v12313_v28  ;;  %v3993_v49 = vmul.f32 %v12424_v11, %v3957_v13 }
 0xb19   :  { %v9501_v0 = vpop.eup %9500  ;;  %9510 = vrsqrt.f32 %v3900_v54  ;;  %v3901_v46 = vadd.f32 1e-05, %v3869_v60  ;;  %v3870_v9 = vmul.f32 0.015625, %v3822_v7 }
 0xb1a   :  { %v3825_v1 = vpop.xlane.xlu0 %3824  ;;  %v4061_v57 = vpack.c.bf16 %v12518_v33, %v12515_v42  ;;  %v3994_v35 = vmul.f32 %v12424_v11, %v3958_v22  ;;  %v3959_v2 = vmul.f32 %v9501_v0, %v12319_v58  ;;  %v12528_v28 = vadd.f32 %v12432_v48, %v3993_v49 }
 0xb1b   :  { %v9503_v17 = vpop.eup %9502  ;;  %9512 = vrsqrt.f32 %v3901_v46  ;;  %v3902_v56 = vadd.f32 1e-05, %v3870_v9  ;;  %v3871_v55 = vmul.f32 0.015625, %v3825_v1 }
 0xb1c   :  { %v3828_v6 = vpop.xlane.xlu1 %3827  ;;  %8915 = vmatprep.mubr.msk.bf16.mxu1 %vm406_vm1, %v4061_v57  ;;  %v12531_v37 = vadd.f32 %v12432_v48, %v3994_v35  ;;  %v3960_v53 = vmul.f32 %v9503_v17, %v12325_v44  ;;  %v3995_v34 = vmul.f32 %v12424_v11, %v3959_v2 }
 0xb1d   :  { %v9505_v39 = vpop.eup %9504  ;;  %9514 = vrsqrt.f32 %v3902_v56  ;;  %v3903_v58 = vadd.f32 1e-05, %v3871_v55  ;;  %v3872_v59 = vmul.f32 0.015625, %v3828_v6 }
 0xb1e   :  { %v3831_v38 = vpop.xlane.xlu0 %3830  ;;  %v4062_v36 = vpack.c.bf16 %v12531_v37, %v12528_v28  ;;  %v3996_v15 = vmul.f32 %v12424_v11, %v3960_v53  ;;  %v3961_v10 = vmul.f32 %v9505_v39, %v12331_v12  ;;  %v12541_v44 = vadd.f32 %v12432_v48, %v3995_v34 }
 0xb1f   :  { %v9507_v61 = vpop.eup %9506  ;;  %9516 = vrsqrt.f32 %v3903_v58  ;;  %v3904_v51 = vadd.f32 1e-05, %v3872_v59  ;;  %v3873_v5 = vmul.f32 0.015625, %v3831_v38 }
 0xb20   :  { %v3834_v31 = vpop.xlane.xlu1 %3833  ;;  %8916 = vmatmul.mubr.msk.bf16.gmra.mrb[108].mxu1 %vm406_vm1, %v4062_v36  ;;  %v12544_v13 = vadd.f32 %v12432_v48, %v3996_v15  ;;  %v3962_v47 = vmul.f32 %v9507_v61, %v12337_v40  ;;  %v3997_v54 = vmul.f32 %v12424_v11, %v3961_v10 }
 0xb21   :  { %v9509_v60 = vpop.eup %9508  ;;  %9518 = vrsqrt.f32 %v3904_v51  ;;  %v3905_v12 = vadd.f32 1e-05, %v3873_v5  ;;  %v3874_v7 = vmul.f32 0.015625, %v3834_v31 }
 0xb22   :  { %v3837_v22 = vpop.xlane.xlu0 %3836  ;;  %v4063_v49 = vpack.c.bf16 %v12544_v13, %v12541_v44  ;;  %v3998_v0 = vmul.f32 %v12424_v11, %v3962_v47  ;;  %v3963_v46 = vmul.f32 %v9509_v60, %v12343_v18  ;;  %v12554_v40 = vadd.f32 %v12432_v48, %v3997_v54 }
 0xb23   :  { %v9511_v9 = vpop.eup %9510  ;;  %9520 = vrsqrt.f32 %v3905_v12  ;;  %v3906_v1 = vadd.f32 1e-05, %v3874_v7  ;;  %v3875_v57 = vmul.f32 0.015625, %v3837_v22 }
 0xb24   :  { %v3840_v35 = vpop.xlane.xlu1 %3839  ;;  %8919 = vmatprep.mubr.msk.bf16.mxu1 %vm406_vm1, %v4063_v49  ;;  %v12557_v2 = vadd.f32 %v12432_v48, %v3998_v0  ;;  %v3964_v17 = vmul.f32 %v9511_v9, %v12349_v62  ;;  %v3999_v56 = vmul.f32 %v12424_v11, %v3963_v46 }
 0xb25   :  { %v9513_v55 = vpop.eup %9512  ;;  %9522 = vrsqrt.f32 %v3906_v1  ;;  %v3907_v18 = vadd.f32 1e-05, %v3875_v57  ;;  %v3876_v6 = vmul.f32 0.015625, %v3840_v35 }
 0xb26   :  { %v3843_v53 = vpop.xlane.xlu0 %3842  ;;  %v4064_v34 = vpack.c.bf16 %v12557_v2, %v12554_v40  ;;  %v4000_v39 = vmul.f32 %v12424_v11, %v3964_v17  ;;  %v3965_v58 = vmul.f32 %v9513_v55, %v12355_v50  ;;  %v12567_v62 = vadd.f32 %v12432_v48, %v3999_v56 }
 0xb27   :  { %v9515_v59 = vpop.eup %9514  ;;  %9524 = vrsqrt.f32 %v3907_v18  ;;  %v3908_v38 = vadd.f32 1e-05, %v3876_v6  ;;  %v3877_v36 = vmul.f32 0.015625, %v3843_v53 }
 0xb28   :  { %v3846_v15 = vpop.xlane.xlu1 %3845  ;;  %8920 = vmatmul.mubr.msk.bf16.gmra.mrb[112].mxu1 %vm406_vm1, %v4064_v34  ;;  %v12570_v10 = vadd.f32 %v12432_v48, %v4000_v39  ;;  %v3966_v61 = vmul.f32 %v9515_v59, %v12364_v20  ;;  %v4001_v51 = vmul.f32 %v12424_v11, %v3965_v58 }
 0xb29   :  { %v9517_v5 = vpop.eup %9516  ;;  %9526 = vrsqrt.f32 %v3908_v38  ;;  %v3909_v50 = vadd.f32 1e-05, %v3877_v36  ;;  %v3878_v31 = vmul.f32 0.015625, %v3846_v15 }
 0xb2a   :  { %v4065_v47 = vpack.c.bf16 %v12570_v10, %v12567_v62  ;;  %v4002_v54 = vmul.f32 %v12424_v11, %v3966_v61  ;;  %v3967_v60 = vmul.f32 %v9517_v5, %v12370_v19  ;;  %v12580_v20 = vadd.f32 %v12432_v48, %v4001_v51 }
 0xb2b   :  { %v9519_v12 = vpop.eup %9518  ;;  %9528 = vrsqrt.f32 %v3909_v50  ;;  %v3910_v7 = vadd.f32 1e-05, %v3878_v31 }
 0xb2c   :  { %8923 = vmatprep.mubr.msk.bf16.mxu1 %vm406_vm1, %v4065_v47  ;;  %v12583_v22 = vadd.f32 %v12432_v48, %v4002_v54  ;;  %v3968_v49 = vmul.f32 %v9519_v12, %v12376_v63  ;;  %v4003_v0 = vmul.f32 %v12424_v11, %v3967_v60 }
 0xb2d   :  { %v9521_v46 = vpop.eup %9520  ;;  %9530 = vrsqrt.f32 %v3910_v7 }
 0xb2e   :  { %v4066_v19 = vpack.c.bf16 %v12583_v22, %v12580_v20  ;;  %v4004_v9 = vmul.f32 %v12424_v11, %v3968_v49  ;;  %v3969_v1 = vmul.f32 %v9521_v46, %v12382_v16  ;;  %v12593_v35 = vadd.f32 %v12432_v48, %v4003_v0 }
 0xb2f   :  { %v9523_v57 = vpop.eup %9522 }
 0xb30   :  { %8924 = vmatmul.mubr.msk.bf16.gmra.mrb[116].mxu1 %vm406_vm1, %v4066_v19  ;;  %v12596_v17 = vadd.f32 %v12432_v48, %v4004_v9  ;;  %v3970_v63 = vmul.f32 %v9523_v57, %v12388_v3  ;;  %v4005_v56 = vmul.f32 %v12424_v11, %v3969_v1 }
 0xb31   :  { %v9525_v55 = vpop.eup %9524 }
 0xb32   :  { %v4067_v18 = vpack.c.bf16 %v12596_v17, %v12593_v35  ;;  %v4006_v6 = vmul.f32 %v12424_v11, %v3970_v63  ;;  %v3971_v16 = vmul.f32 %v9525_v55, %v12394_v41  ;;  %v12606_v34 = vadd.f32 %v12432_v48, %v4005_v56 }
 0xb33   :  { %v9527_v53 = vpop.eup %9526 }
 0xb34   :  { %8927 = vmatprep.mubr.msk.bf16.mxu1 %vm406_vm1, %v4067_v18  ;;  %v12609_v39 = vadd.f32 %v12432_v48, %v4006_v6  ;;  %v3972_v3 = vmul.f32 %v9527_v53, %v12400_v23  ;;  %v4007_v58 = vmul.f32 %v12424_v11, %v3971_v16 }
 0xb35   :  { %v9529_v59 = vpop.eup %9528 }
 0xb36   :  { %v4068_v38 = vpack.c.bf16 %v12609_v39, %v12606_v34  ;;  %v4008_v36 = vmul.f32 %v12424_v11, %v3972_v3  ;;  %v3973_v41 = vmul.f32 %v9529_v59, %v12406_v8  ;;  %v12619_v61 = vadd.f32 %v12432_v48, %v4007_v58 }
 0xb37   :  { %v9531_v15 = vpop.eup %9530 }
 0xb38   :  { %8928 = vmatmul.mubr.msk.bf16.gmra.mrb[120].mxu1 %vm406_vm1, %v4068_v38  ;;  %v12622_v51 = vadd.f32 %v12432_v48, %v4008_v36  ;;  %v3974_v23 = vmul.f32 %v9531_v15, %v12412_v26  ;;  %v4009_v5 = vmul.f32 %v12424_v11, %v3973_v41  ;;  %v12642_v26 = vld [vmem:[%s15276_s3 + $0x10] ss:$0 sm:$0xff] }
 0xb3a   :  { %v4069_v50 = vpack.c.bf16 %v12622_v51, %v12619_v61  ;;  %v4010_v31 = vmul.f32 %v12424_v11, %v3974_v23  ;;  %v12631_v8 = vadd.f32 %v12432_v48, %v4009_v5 }
 0xb3c   :  { %8931 = vmatprep.mubr.msk.bf16.mxu1 %vm406_vm1, %v4069_v50  ;;  %v12634_v47 = vadd.f32 %v12432_v48, %v4010_v31 }
 0xb3e   :  { %v4070_v54 = vpack.c.bf16 %v12634_v47, %v12631_v8 }
 0xb40   :  { %8932 = vmatmul.mubr.msk.bf16.gmra.mrb[124].mxu1 %vm406_vm1, %v4070_v54 }
 0xbdb   :  { %v8905_v60 = vpop.f32.mrb[96].mxu1 }
 0xbdc   :  { %v4182_v11 = vpop.f32.mrb[97].mxu1  ;;  %v4191_v12 = vadd.f32 %v8905_v60, %v12642_v26 }
 0xbdd   :  { %v4183_v7 = vadd.f32 %v12642_v26, %v4182_v11  ;;  %v8906_v49 = vpop.f32.mrb[98].mxu1 }
 0xbde   :  { %v4185_v0 = vpop.f32.mrb[99].mxu1  ;;  %v4194_v46 = vadd.f32 %v8906_v49, %v12642_v26  ;;  %v12652_v9 = vadd.f32 %v4191_v12, %v12449_v29 }
 0xbdf   :  { %v12647_v48 = vadd.f32 %v4183_v7, %v12439_v4  ;;  %v4186_v19 = vadd.f32 %v12642_v26, %v4185_v0 }
 0xbe0   :  { %v12660_v63 = vadd.f32 %v4194_v46, %v12452_v45 }
 0xbe1   :  { %v12655_v1 = vadd.f32 %v4186_v19, %v12442_v24  ;;  %v4343_v57 = vsel %vm406_vm1, %v12647_v48, 0.0  ;;  %v4349_v24 = vsel %vm406_vm1, %v12652_v9, 0.0 }
 0xbe2   :  { %4344 = vadd.xlane.f32.xlu0 %v4343_v57  ;;  %v4352_v58 = vsel %vm406_vm1, %v12660_v63, 0.0 }
 0xbe3   :  { %v8909_v56 = vpop.f32.mrb[100].mxu1  ;;  %v4346_v4 = vsel %vm406_vm1, %v12655_v1, 0.0 }
 0xbe4   :  { %4347 = vadd.xlane.f32.xlu1 %v4346_v4  ;;  %v4198_v55 = vpop.f32.mrb[101].mxu1  ;;  %v4207_v18 = vadd.f32 %v8909_v56, %v12642_v26 }
 0xbe5   :  { %v4199_v29 = vadd.f32 %v12642_v26, %v4198_v55  ;;  %v8910_v6 = vpop.f32.mrb[102].mxu1 }
 0xbe6   :  { %4350 = vadd.xlane.f32.xlu0 %v4349_v24  ;;  %v4201_v16 = vpop.f32.mrb[103].mxu1  ;;  %v4210_v45 = vadd.f32 %v8910_v6, %v12642_v26  ;;  %v12676_v59 = vadd.f32 %v4207_v18, %v12476_v32 }
 0xbe7   :  { %v12669_v53 = vadd.f32 %v4199_v29, %v12463_v14  ;;  %v4202_v3 = vadd.f32 %v12642_v26, %v4201_v16 }
 0xbe8   :  { %4353 = vadd.xlane.f32.xlu1 %v4352_v58  ;;  %v12684_v14 = vadd.f32 %v4210_v45, %v12479_v21 }
 0xbe9   :  { %v12679_v38 = vadd.f32 %v4202_v3, %v12466_v30  ;;  %v4355_v36 = vsel %vm406_vm1, %v12669_v53, 0.0  ;;  %v4361_v30 = vsel %vm406_vm1, %v12676_v59, 0.0 }
 0xbea   :  { %4356 = vadd.xlane.f32.xlu0 %v4355_v36  ;;  %v4364_v11 = vsel %vm406_vm1, %v12684_v14, 0.0 }
 0xbeb   :  { %v8913_v41 = vpop.f32.mrb[104].mxu1  ;;  %v4358_v15 = vsel %vm406_vm1, %v12679_v38, 0.0 }
 0xbec   :  { %4359 = vadd.xlane.f32.xlu1 %v4358_v15  ;;  %v4214_v23 = vpop.f32.mrb[105].mxu1  ;;  %v4223_v5 = vadd.f32 %v8913_v41, %v12642_v26 }
 0xbed   :  { %v4215_v32 = vadd.f32 %v12642_v26, %v4214_v23  ;;  %v8914_v50 = vpop.f32.mrb[106].mxu1 }
 0xbee   :  { %4362 = vadd.xlane.f32.xlu0 %v4361_v30  ;;  %v4217_v31 = vpop.f32.mrb[107].mxu1  ;;  %v4226_v21 = vadd.f32 %v8914_v50, %v12642_v26  ;;  %v12700_v12 = vadd.f32 %v4223_v5, %v12502_v25 }
 0xbef   :  { %v12693_v54 = vadd.f32 %v4215_v32, %v12489_v27  ;;  %v4218_v60 = vadd.f32 %v12642_v26, %v4217_v31 }
 0xbf0   :  { %4365 = vadd.xlane.f32.xlu1 %v4364_v11  ;;  %v12708_v27 = vadd.f32 %v4226_v21, %v12505_v52 }
 0xbf1   :  { %v12703_v7 = vadd.f32 %v4218_v60, %v12492_v43  ;;  %v4367_v49 = vsel %vm406_vm1, %v12693_v54, 0.0  ;;  %v4373_v43 = vsel %vm406_vm1, %v12700_v12, 0.0 }
 0xbf2   :  { %4368 = vadd.xlane.f32.xlu0 %v4367_v49  ;;  %v4376_v29 = vsel %vm406_vm1, %v12708_v27, 0.0 }
 0xbf3   :  { %v8917_v0 = vpop.f32.mrb[108].mxu1  ;;  %v4370_v46 = vsel %vm406_vm1, %v12703_v7, 0.0 }
 0xbf4   :  { %4371 = vadd.xlane.f32.xlu1 %v4370_v46  ;;  %v4230_v19 = vpop.f32.mrb[109].mxu1  ;;  %v4239_v57 = vadd.f32 %v8917_v0, %v12642_v26 }
 0xbf5   :  { %v4231_v25 = vadd.f32 %v12642_v26, %v4230_v19  ;;  %v8918_v56 = vpop.f32.mrb[110].mxu1 }
 0xbf6   :  { %4374 = vadd.xlane.f32.xlu0 %v4373_v43  ;;  %v4233_v4 = vpop.f32.mrb[111].mxu1  ;;  %v4242_v52 = vadd.f32 %v8918_v56, %v12642_v26  ;;  %v12724_v6 = vadd.f32 %v4239_v57, %v12528_v28 }
 0xbf7   :  { %v12717_v55 = vadd.f32 %v4231_v25, %v12515_v42  ;;  %v4234_v18 = vadd.f32 %v12642_v26, %v4233_v4 }
 0xbf8   :  { %4377 = vadd.xlane.f32.xlu1 %v4376_v29  ;;  %v12732_v42 = vadd.f32 %v4242_v52, %v12531_v37 }
 0xbf9   :  { %v12727_v24 = vadd.f32 %v4234_v18, %v12518_v33  ;;  %v4379_v16 = vsel %vm406_vm1, %v12717_v55, 0.0  ;;  %v4385_v33 = vsel %vm406_vm1, %v12724_v6, 0.0 }
 0xbfa   :  { %4380 = vadd.xlane.f32.xlu0 %v4379_v16  ;;  %v4388_v32 = vsel %vm406_vm1, %v12732_v42, 0.0 }
 0xbfb   :  { %v8921_v45 = vpop.f32.mrb[112].mxu1  ;;  %v4382_v3 = vsel %vm406_vm1, %v12727_v24, 0.0 }
 0xbfc   :  { %4383 = vadd.xlane.f32.xlu1 %v4382_v3  ;;  %v4246_v58 = vpop.f32.mrb[113].mxu1  ;;  %v4255_v36 = vadd.f32 %v8921_v45, %v12642_v26 }
 0xbfd   :  { %v4247_v28 = vadd.f32 %v12642_v26, %v4246_v58  ;;  %v8922_v41 = vpop.f32.mrb[114].mxu1 }
 0xbfe   :  { %4386 = vadd.xlane.f32.xlu0 %v4385_v33  ;;  %v4249_v15 = vpop.f32.mrb[115].mxu1  ;;  %v4258_v37 = vadd.f32 %v8922_v41, %v12642_v26  ;;  %v12748_v50 = vadd.f32 %v4255_v36, %v12554_v40 }
 0xbff   :  { %v12741_v23 = vadd.f32 %v4247_v28, %v12541_v44  ;;  %v4250_v5 = vadd.f32 %v12642_v26, %v4249_v15 }
 0xc00   :  { %4389 = vadd.xlane.f32.xlu1 %v4388_v32  ;;  %v12756_v44 = vadd.f32 %v4258_v37, %v12557_v2 }
 0xc01   :  { %v12751_v30 = vadd.f32 %v4250_v5, %v12544_v13  ;;  %v4391_v31 = vsel %vm406_vm1, %v12741_v23, 0.0  ;;  %v4397_v13 = vsel %vm406_vm1, %v12748_v50, 0.0 }
 0xc02   :  { %4392 = vadd.xlane.f32.xlu0 %v4391_v31  ;;  %v4400_v25 = vsel %vm406_vm1, %v12756_v44, 0.0 }
 0xc03   :  { %v8925_v21 = vpop.f32.mrb[116].mxu1  ;;  %v4394_v60 = vsel %vm406_vm1, %v12751_v30, 0.0 }
 0xc04   :  { %4395 = vadd.xlane.f32.xlu1 %v4394_v60  ;;  %v4262_v11 = vpop.f32.mrb[117].mxu1  ;;  %v4271_v49 = vadd.f32 %v8925_v21, %v12642_v26 }
 0xc05   :  { %v4263_v40 = vadd.f32 %v12642_v26, %v4262_v11  ;;  %v8926_v0 = vpop.f32.mrb[118].mxu1 }
 0xc06   :  { %4398 = vadd.xlane.f32.xlu0 %v4397_v13  ;;  %v4265_v46 = vpop.f32.mrb[119].mxu1  ;;  %v4274_v2 = vadd.f32 %v8926_v0, %v12642_v26  ;;  %v12772_v56 = vadd.f32 %v4271_v49, %v12580_v20 }
 0xc07   :  { %v12765_v19 = vadd.f32 %v4263_v40, %v12567_v62  ;;  %v4266_v57 = vadd.f32 %v12642_v26, %v4265_v46 }
 0xc08   :  { %4401 = vadd.xlane.f32.xlu1 %v4400_v25  ;;  %v12780_v62 = vadd.f32 %v4274_v2, %v12583_v22 }
 0xc09   :  { %v12775_v43 = vadd.f32 %v4266_v57, %v12570_v10  ;;  %v4403_v4 = vsel %vm406_vm1, %v12765_v19, 0.0  ;;  %v4409_v10 = vsel %vm406_vm1, %v12772_v56, 0.0  ;;  %v9246_v57 = vld [vmem:[%s15277_s2 + $0x50] sm:$0xff]  }
 0xc0a   :  { %4404 = vadd.xlane.f32.xlu0 %v4403_v4  ;;  %v4412_v28 = vsel %vm406_vm1, %v12780_v62, 0.0 }
 0xc0b   :  { %v8929_v52 = vpop.f32.mrb[120].mxu1  ;;  %v4406_v18 = vsel %vm406_vm1, %v12775_v43, 0.0 }
 0xc0c   :  { %4407 = vadd.xlane.f32.xlu1 %v4406_v18  ;;  %v4278_v29 = vpop.f32.mrb[121].mxu1  ;;  %v4287_v16 = vadd.f32 %v8929_v52, %v12642_v26 }
 0xc0d   :  { %v4279_v20 = vadd.f32 %v12642_v26, %v4278_v29  ;;  %v8930_v45 = vpop.f32.mrb[122].mxu1 }
 0xc0e   :  { %4410 = vadd.xlane.f32.xlu0 %v4409_v10  ;;  %v4281_v3 = vpop.f32.mrb[123].mxu1  ;;  %v4290_v22 = vadd.f32 %v8930_v45, %v12642_v26  ;;  %v12796_v41 = vadd.f32 %v4287_v16, %v12606_v34 }
 0xc0f   :  { %v12789_v58 = vadd.f32 %v4279_v20, %v12593_v35  ;;  %v4282_v36 = vadd.f32 %v12642_v26, %v4281_v3 }
 0xc10   :  { %4413 = vadd.xlane.f32.xlu1 %v4412_v28  ;;  %v12804_v35 = vadd.f32 %v4290_v22, %v12609_v39 }
 0xc11   :  { %v12799_v33 = vadd.f32 %v4282_v36, %v12596_v17  ;;  %v4415_v15 = vsel %vm406_vm1, %v12789_v58, 0.0  ;;  %v4421_v17 = vsel %vm406_vm1, %v12796_v41, 0.0 }
 0xc12   :  { %4416 = vadd.xlane.f32.xlu0 %v4415_v15  ;;  %v4424_v40 = vsel %vm406_vm1, %v12804_v35, 0.0 }
 0xc13   :  { %v8933_v37 = vpop.f32.mrb[124].mxu1  ;;  %v4418_v5 = vsel %vm406_vm1, %v12799_v33, 0.0 }
 0xc14   :  { %4419 = vadd.xlane.f32.xlu1 %v4418_v5  ;;  %v4294_v32 = vpop.f32.mrb[125].mxu1  ;;  %v4303_v31 = vadd.f32 %v8933_v37, %v12642_v26 }
 0xc15   :  { %v4295_v34 = vadd.f32 %v12642_v26, %v4294_v32  ;;  %v8934_v21 = vpop.f32.mrb[126].mxu1 }
 0xc16   :  { %4422 = vadd.xlane.f32.xlu0 %v4421_v17  ;;  %v4297_v60 = vpop.f32.mrb[127].mxu1  ;;  %v4306_v39 = vadd.f32 %v8934_v21, %v12642_v26  ;;  %v12820_v0 = vadd.f32 %v4303_v31, %v12631_v8 }
 0xc17   :  { %v12813_v11 = vadd.f32 %v4295_v34, %v12619_v61  ;;  %v4298_v49 = vadd.f32 %v12642_v26, %v4297_v60 }
 0xc18   :  { %4425 = vadd.xlane.f32.xlu1 %v4424_v40  ;;  %v12828_v61 = vadd.f32 %v4306_v39, %v12634_v47  ;;  %v4433_v2 = vsel %vm406_vm1, %v12820_v0, 0.0  ;;  %v9245_v47 = vld [vmem:[%s15277_s2 + $0x48] sm:$0xff]  }
 0xc19   :  { %v12823_v13 = vadd.f32 %v4298_v49, %v12622_v51  ;;  %v4427_v46 = vsel %vm406_vm1, %v12813_v11, 0.0  ;;  %v9244_v51 = vld [vmem:[%s15277_s2 + $0x40] sm:$0xff]  }
 0xc1a   :  { %4428 = vadd.xlane.f32.xlu0 %v4427_v46  ;;  %v4436_v8 = vsel %vm406_vm1, %v12828_v61, 0.0  ;;  %8935 = vmatprep.subr.bf16.mxu0 %v9244_v51 }
 0xc1b   :  { %v4430_v26 = vsel %vm406_vm1, %v12823_v13, 0.0  ;;  %8936 = vmatpush3.bf16.msra.mxu0 %v9244_v51 }
 0xc1c   :  { %4431 = vadd.xlane.f32.xlu1 %v4430_v26  ;;  %8937 = vmatprep.subr.bf16.mxu0 %v9245_v47 }
 0xc1e   :  { %4434 = vadd.xlane.f32.xlu0 %v4433_v2 }
 0xc1f   :  { %8938 = vmatpush3.bf16.msra.mxu0 %v9245_v47 }
 0xc20   :  { %4437 = vadd.xlane.f32.xlu1 %v4436_v8  ;;  %8939 = vmatprep.subr.bf16.mxu0 %v9246_v57 }
 0xc23   :  { %8940 = vmatpush3.bf16.msra.mxu0 %v9246_v57 }
 0xc6f   :  { %v4345_v25 = vpop.xlane.xlu0 %4344 }
 0xc70   :  { %v4439_v4 = vmul.f32 0.015625, %v4345_v25 }
 0xc71   :  { %v4348_v52 = vpop.xlane.xlu1 %4347 }
 0xc72   :  { %v12846_v18 = vsub.f32 %v12647_v48, %v4439_v4  ;;  %v4440_v29 = vmul.f32 0.015625, %v4348_v52 }
 0xc73   :  { %v4351_v16 = vpop.xlane.xlu0 %4350 }
 0xc74   :  { %v12849_v20 = vsub.f32 %v12655_v1, %v4440_v29  ;;  %v4441_v45 = vmul.f32 0.015625, %v4351_v16  ;;  %v4503_v10 = vmul.f32 %v12846_v18, %v12846_v18 }
 0xc75   :  { %v4354_v3 = vpop.xlane.xlu1 %4353 }
 0xc76   :  { %v12854_v22 = vsub.f32 %v12652_v9, %v4441_v45  ;;  %v4442_v36 = vmul.f32 0.015625, %v4354_v3  ;;  %v4535_v28 = vsel %vm406_vm1, %v4503_v10, 0.0  ;;  %v4504_v48 = vmul.f32 %v12849_v20, %v12849_v20 }
 0xc77   :  { %4536 = vadd.xlane.f32.xlu0 %v4535_v28  ;;  %v4357_v15 = vpop.xlane.xlu0 %4356 }
 0xc78   :  { %v12860_v37 = vsub.f32 %v12660_v63, %v4442_v36  ;;  %v4443_v1 = vmul.f32 0.015625, %v4357_v15  ;;  %v4538_v5 = vsel %vm406_vm1, %v4504_v48, 0.0  ;;  %v4505_v32 = vmul.f32 %v12854_v22, %v12854_v22 }
 0xc79   :  { %v4360_v31 = vpop.xlane.xlu1 %4359  ;;  %4539 = vadd.xlane.f32.xlu1 %v4538_v5 }
 0xc7a   :  { %v12866_v9 = vsub.f32 %v12669_v53, %v4443_v1  ;;  %v4444_v34 = vmul.f32 0.015625, %v4360_v31  ;;  %v4541_v21 = vsel %vm406_vm1, %v4505_v32, 0.0  ;;  %v4506_v17 = vmul.f32 %v12860_v37, %v12860_v37 }
 0xc7b   :  { %4542 = vadd.xlane.f32.xlu0 %v4541_v21  ;;  %v4363_v63 = vpop.xlane.xlu0 %4362 }
 0xc7c   :  { %v12872_v60 = vsub.f32 %v12679_v38, %v4444_v34  ;;  %v4445_v39 = vmul.f32 0.015625, %v4363_v63  ;;  %v4544_v49 = vsel %vm406_vm1, %v4506_v17, 0.0  ;;  %v4507_v40 = vmul.f32 %v12866_v9, %v12866_v9 }
 0xc7d   :  { %v4366_v46 = vpop.xlane.xlu1 %4365  ;;  %4545 = vadd.xlane.f32.xlu1 %v4544_v49 }
 0xc7e   :  { %v12878_v53 = vsub.f32 %v12676_v59, %v4445_v39  ;;  %v4446_v26 = vmul.f32 0.015625, %v4366_v46  ;;  %v4547_v2 = vsel %vm406_vm1, %v4507_v40, 0.0  ;;  %v4508_v8 = vmul.f32 %v12872_v60, %v12872_v60 }
 0xc7f   :  { %4548 = vadd.xlane.f32.xlu0 %v4547_v2  ;;  %v4369_v38 = vpop.xlane.xlu0 %4368 }
 0xc80   :  { %v12884_v51 = vsub.f32 %v12684_v14, %v4446_v26  ;;  %v4447_v47 = vmul.f32 0.015625, %v4369_v38  ;;  %v4550_v57 = vsel %vm406_vm1, %v4508_v8, 0.0  ;;  %v4509_v25 = vmul.f32 %v12878_v53, %v12878_v53 }
 0xc81   :  { %v4372_v4 = vpop.xlane.xlu1 %4371  ;;  %4551 = vadd.xlane.f32.xlu1 %v4550_v57 }
 0xc82   :  { %v12890_v59 = vsub.f32 %v12693_v54, %v4447_v47  ;;  %v4448_v52 = vmul.f32 0.015625, %v4372_v4  ;;  %v4553_v29 = vsel %vm406_vm1, %v4509_v25, 0.0  ;;  %v4510_v16 = vmul.f32 %v12884_v51, %v12884_v51 }
 0xc83   :  { %4554 = vadd.xlane.f32.xlu0 %v4553_v29  ;;  %v4375_v14 = vpop.xlane.xlu0 %4374 }
 0xc84   :  { %v12896_v45 = vsub.f32 %v12703_v7, %v4448_v52  ;;  %v4449_v10 = vmul.f32 0.015625, %v4375_v14  ;;  %v4556_v3 = vsel %vm406_vm1, %v4510_v16, 0.0  ;;  %v4511_v36 = vmul.f32 %v12890_v59, %v12890_v59 }
 0xc85   :  { %v4378_v28 = vpop.xlane.xlu1 %4377  ;;  %4557 = vadd.xlane.f32.xlu1 %v4556_v3 }
 0xc86   :  { %v12902_v54 = vsub.f32 %v12700_v12, %v4449_v10  ;;  %v4450_v48 = vmul.f32 0.015625, %v4378_v28  ;;  %v4559_v15 = vsel %vm406_vm1, %v4511_v36, 0.0  ;;  %v4512_v1 = vmul.f32 %v12896_v45, %v12896_v45 }
 0xc87   :  { %4560 = vadd.xlane.f32.xlu0 %v4559_v15  ;;  %v4381_v7 = vpop.xlane.xlu0 %4380 }
 0xc88   :  { %v12908_v5 = vsub.f32 %v12708_v27, %v4450_v48  ;;  %v4451_v32 = vmul.f32 0.015625, %v4381_v7  ;;  %v4562_v31 = vsel %vm406_vm1, %v4512_v1, 0.0  ;;  %v4513_v34 = vmul.f32 %v12902_v54, %v12902_v54 }
 0xc89   :  { %v4384_v21 = vpop.xlane.xlu1 %4383  ;;  %4563 = vadd.xlane.f32.xlu1 %v4562_v31 }
 0xc8a   :  { %v12914_v12 = vsub.f32 %v12717_v55, %v4451_v32  ;;  %v4452_v17 = vmul.f32 0.015625, %v4384_v21  ;;  %v4565_v63 = vsel %vm406_vm1, %v4513_v34, 0.0  ;;  %v4514_v39 = vmul.f32 %v12908_v5, %v12908_v5 }
 0xc8b   :  { %4566 = vadd.xlane.f32.xlu0 %v4565_v63  ;;  %v4387_v27 = vpop.xlane.xlu0 %4386 }
 0xc8c   :  { %v12920_v49 = vsub.f32 %v12727_v24, %v4452_v17  ;;  %v4453_v40 = vmul.f32 0.015625, %v4387_v27  ;;  %v4568_v46 = vsel %vm406_vm1, %v4514_v39, 0.0  ;;  %v4515_v26 = vmul.f32 %v12914_v12, %v12914_v12 }
 0xc8d   :  { %v4390_v2 = vpop.xlane.xlu1 %4389  ;;  %4569 = vadd.xlane.f32.xlu1 %v4568_v46 }
 0xc8e   :  { %v12926_v55 = vsub.f32 %v12724_v6, %v4453_v40  ;;  %v4454_v8 = vmul.f32 0.015625, %v4390_v2  ;;  %v4571_v38 = vsel %vm406_vm1, %v4515_v26, 0.0  ;;  %v4516_v47 = vmul.f32 %v12920_v49, %v12920_v49 }
 0xc8f   :  { %4572 = vadd.xlane.f32.xlu0 %v4571_v38  ;;  %v4393_v24 = vpop.xlane.xlu0 %4392 }
 0xc90   :  { %v12932_v57 = vsub.f32 %v12732_v42, %v4454_v8  ;;  %v4455_v25 = vmul.f32 0.015625, %v4393_v24  ;;  %v4574_v4 = vsel %vm406_vm1, %v4516_v47, 0.0  ;;  %v4517_v52 = vmul.f32 %v12926_v55, %v12926_v55 }
 0xc91   :  { %v4396_v29 = vpop.xlane.xlu1 %4395  ;;  %4575 = vadd.xlane.f32.xlu1 %v4574_v4 }
 0xc92   :  { %v12938_v6 = vsub.f32 %v12741_v23, %v4455_v25  ;;  %v4456_v16 = vmul.f32 0.015625, %v4396_v29  ;;  %v4577_v14 = vsel %vm406_vm1, %v4517_v52, 0.0  ;;  %v4518_v10 = vmul.f32 %v12932_v57, %v12932_v57 }
 0xc93   :  { %4578 = vadd.xlane.f32.xlu0 %v4577_v14  ;;  %v4399_v42 = vpop.xlane.xlu0 %4398 }
 0xc94   :  { %v12944_v3 = vsub.f32 %v12751_v30, %v4456_v16  ;;  %v4457_v36 = vmul.f32 0.015625, %v4399_v42  ;;  %v4580_v28 = vsel %vm406_vm1, %v4518_v10, 0.0  ;;  %v4519_v48 = vmul.f32 %v12938_v6, %v12938_v6 }
 0xc95   :  { %v4402_v15 = vpop.xlane.xlu1 %4401  ;;  %4581 = vadd.xlane.f32.xlu1 %v4580_v28 }
 0xc96   :  { %v12950_v23 = vsub.f32 %v12748_v50, %v4457_v36  ;;  %v4458_v1 = vmul.f32 0.015625, %v4402_v15  ;;  %v4583_v7 = vsel %vm406_vm1, %v4519_v48, 0.0  ;;  %v4520_v32 = vmul.f32 %v12944_v3, %v12944_v3 }
 0xc97   :  { %4584 = vadd.xlane.f32.xlu0 %v4583_v7  ;;  %v4405_v30 = vpop.xlane.xlu0 %4404 }
 0xc98   :  { %v12956_v31 = vsub.f32 %v12756_v44, %v4458_v1  ;;  %v4459_v34 = vmul.f32 0.015625, %v4405_v30  ;;  %v4586_v21 = vsel %vm406_vm1, %v4520_v32, 0.0  ;;  %v4521_v17 = vmul.f32 %v12950_v23, %v12950_v23 }
 0xc99   :  { %v4408_v63 = vpop.xlane.xlu1 %4407  ;;  %4587 = vadd.xlane.f32.xlu1 %v4586_v21 }
 0xc9a   :  { %v12962_v50 = vsub.f32 %v12765_v19, %v4459_v34  ;;  %v4460_v39 = vmul.f32 0.015625, %v4408_v63  ;;  %v4589_v27 = vsel %vm406_vm1, %v4521_v17, 0.0  ;;  %v4522_v40 = vmul.f32 %v12956_v31, %v12956_v31 }
 0xc9b   :  { %4590 = vadd.xlane.f32.xlu0 %v4589_v27  ;;  %v4411_v44 = vpop.xlane.xlu0 %4410 }
 0xc9c   :  { %v12968_v46 = vsub.f32 %v12775_v43, %v4460_v39  ;;  %v4461_v26 = vmul.f32 0.015625, %v4411_v44  ;;  %v4592_v2 = vsel %vm406_vm1, %v4522_v40, 0.0  ;;  %v4523_v8 = vmul.f32 %v12962_v50, %v12962_v50  ;;  %v9247_v43 = vld [vmem:[%s15277_s2 + $0x58] sm:$0xff]  }
 0xc9d   :  { %v4414_v38 = vpop.xlane.xlu1 %4413  ;;  %4593 = vadd.xlane.f32.xlu1 %v4592_v2  ;;  %8941 = vmatprep.subr.bf16.mxu0 %v9247_v43 }
 0xc9e   :  { %v12974_v19 = vsub.f32 %v12772_v56, %v4461_v26  ;;  %v4462_v47 = vmul.f32 0.015625, %v4414_v38  ;;  %v4595_v24 = vsel %vm406_vm1, %v4523_v8, 0.0  ;;  %v4524_v25 = vmul.f32 %v12968_v46, %v12968_v46  ;;  %8942 = vmatpush3.bf16.msra.mxu0 %v9247_v43 }
 0xc9f   :  { %4596 = vadd.xlane.f32.xlu0 %v4595_v24  ;;  %v4417_v4 = vpop.xlane.xlu0 %4416 }
 0xca0   :  { %v12983_v52 = vsub.f32 %v12780_v62, %v4462_v47  ;;  %v4463_v29 = vmul.f32 0.015625, %v4417_v4  ;;  %v4598_v16 = vsel %vm406_vm1, %v4524_v25, 0.0  ;;  %v4525_v56 = vmul.f32 %v12974_v19, %v12974_v19 }
 0xca1   :  { %v4420_v14 = vpop.xlane.xlu1 %4419  ;;  %4599 = vadd.xlane.f32.xlu1 %v4598_v16 }
 0xca2   :  { %v12989_v10 = vsub.f32 %v12789_v58, %v4463_v29  ;;  %v4464_v42 = vmul.f32 0.015625, %v4420_v14  ;;  %v4601_v36 = vsel %vm406_vm1, %v4525_v56, 0.0  ;;  %v4526_v62 = vmul.f32 %v12983_v52, %v12983_v52 }
 0xca3   :  { %4602 = vadd.xlane.f32.xlu0 %v4601_v36  ;;  %v4423_v28 = vpop.xlane.xlu0 %4422  ;;  %v9249_v36 = vld [vmem:[%s15274_s1 + $0x110] sm:$0xff]  }
 0xca4   :  { %v12995_v48 = vsub.f32 %v12799_v33, %v4464_v42  ;;  %v4465_v15 = vmul.f32 0.015625, %v4423_v28  ;;  %v4604_v1 = vsel %vm406_vm1, %v4526_v62, 0.0  ;;  %v4527_v7 = vmul.f32 %v12989_v10, %v12989_v10  ;;  %v9250_v62 = vld [vmem:[%s15274_s1 + $0x118] sm:$0xff]   ;;  %v9251_v28 = vld [vmem:[%s15274_s1 + $0x120] sm:$0xff]  }
 0xca5   :  { %v4426_v32 = vpop.xlane.xlu1 %4425  ;;  %4605 = vadd.xlane.f32.xlu1 %v4604_v1  ;;  %v9253_v1 = vld [vmem:[%s15274_s1 + $0x130] sm:$0xff]  }
 0xca6   :  { %v13001_v58 = vsub.f32 %v12796_v41, %v4465_v15  ;;  %v4466_v30 = vmul.f32 0.015625, %v4426_v32  ;;  %v4607_v34 = vsel %vm406_vm1, %v4527_v7, 0.0  ;;  %v4528_v21 = vmul.f32 %v12995_v48, %v12995_v48  ;;  %v9252_v15 = vld [vmem:[%s15274_s1 + $0x128] sm:$0xff]   ;;  %v9254_v7 = vld [vmem:[%s15274_s1 + $0x138] sm:$0xff]  }
 0xca7   :  { %4608 = vadd.xlane.f32.xlu0 %v4607_v34  ;;  %v4429_v33 = vpop.xlane.xlu0 %4428 }
 0xca8   :  { %v13007_v17 = vsub.f32 %v12804_v35, %v4466_v30  ;;  %v4467_v63 = vmul.f32 0.015625, %v4429_v33  ;;  %v4610_v39 = vsel %vm406_vm1, %v4528_v21, 0.0  ;;  %v4529_v27 = vmul.f32 %v13001_v58, %v13001_v58 }
 0xca9   :  { %4611 = vadd.xlane.f32.xlu1 %v4610_v39  ;;  %v4432_v41 = vpop.xlane.xlu1 %4431 }
 0xcaa   :  { %v13013_v40 = vsub.f32 %v12813_v11, %v4467_v63  ;;  %v4468_v44 = vmul.f32 0.015625, %v4432_v41  ;;  %v4613_v26 = vsel %vm406_vm1, %v4529_v27, 0.0  ;;  %v4530_v2 = vmul.f32 %v13007_v17, %v13007_v17 }
 0xcab   :  { %4614 = vadd.xlane.f32.xlu0 %v4613_v26  ;;  %v4435_v35 = vpop.xlane.xlu0 %4434 }
 0xcac   :  { %v13019_v8 = vsub.f32 %v12823_v13, %v4468_v44  ;;  %v4469_v38 = vmul.f32 0.015625, %v4435_v35  ;;  %v4616_v47 = vsel %vm406_vm1, %v4530_v2, 0.0  ;;  %v4531_v24 = vmul.f32 %v13013_v40, %v13013_v40 }
 0xcad   :  { %4617 = vadd.xlane.f32.xlu1 %v4616_v47  ;;  %v4438_v11 = vpop.xlane.xlu1 %4437 }
 0xcae   :  { %v13025_v25 = vsub.f32 %v12820_v0, %v4469_v38  ;;  %v4470_v43 = vmul.f32 0.015625, %v4438_v11  ;;  %v4619_v4 = vsel %vm406_vm1, %v4531_v24, 0.0  ;;  %v4532_v29 = vmul.f32 %v13019_v8, %v13019_v8 }
 0xcaf   :  { %4620 = vadd.xlane.f32.xlu0 %v4619_v4 }
 0xcb0   :  { %v13031_v13 = vsub.f32 %v12828_v61, %v4470_v43  ;;  %v4622_v16 = vsel %vm406_vm1, %v4532_v29, 0.0  ;;  %v4533_v56 = vmul.f32 %v13025_v25, %v13025_v25  ;;  %v9248_v61 = vld [vmem:[%s15274_s1 + $0x108] sm:$0xff]  }
 0xcb1   :  { %4623 = vadd.xlane.f32.xlu1 %v4622_v16  ;;  %8975 = vmatprep.subr.bf16.mxu1 %v9248_v61 }
 0xcb2   :  { %v4625_v14 = vsel %vm406_vm1, %v4533_v56, 0.0  ;;  %v4534_v0 = vmul.f32 %v13031_v13, %v13031_v13  ;;  %8976 = vmatpush3.bf16.msra.mxu1 %v9248_v61 }
 0xcb3   :  { %4626 = vadd.xlane.f32.xlu0 %v4625_v14  ;;  %8977 = vmatprep.subr.bf16.mxu1 %v9249_v36  ;;  %v13064_v14 = vld [vmem:[%s15276_s3 + $0x11] ss:$0 sm:$0xff] }
 0xcb4   :  { %v4628_v42 = vsel %vm406_vm1, %v4534_v0, 0.0 }
 0xcb5   :  { %4629 = vadd.xlane.f32.xlu1 %v4628_v42 }
 0xcb6   :  { %8978 = vmatpush3.bf16.msra.mxu1 %v9249_v36 }
 0xcb7   :  { %8979 = vmatprep.subr.bf16.mxu1 %v9250_v62 }
 0xcba   :  { %8980 = vmatpush3.bf16.msra.mxu1 %v9250_v62 }
 0xcbb   :  { %8981 = vmatprep.subr.bf16.mxu1 %v9251_v28 }
 0xcbe   :  { %8982 = vmatpush3.bf16.msra.mxu1 %v9251_v28 }
 0xcbf   :  { %8983 = vmatprep.subr.bf16.mxu1 %v9252_v15 }
 0xcc2   :  { %8984 = vmatpush3.bf16.msra.mxu1 %v9252_v15 }
 0xcc3   :  { %8985 = vmatprep.subr.bf16.mxu1 %v9253_v1 }
 0xcc6   :  { %8986 = vmatpush3.bf16.msra.mxu1 %v9253_v1 }
 0xcc7   :  { %8987 = vmatprep.subr.bf16.mxu1 %v9254_v7 }
 0xcca   :  { %8988 = vmatpush3.bf16.msra.mxu1 %v9254_v7 }
 0xd04   :  { %v4537_v32 = vpop.xlane.xlu0 %4536 }
 0xd05   :  { %v4631_v30 = vmul.f32 0.015625, %v4537_v32 }
 0xd06   :  { %v4540_v34 = vpop.xlane.xlu1 %4539 }
 0xd07   :  { %v4663_v21 = vadd.f32 1e-05, %v4631_v30  ;;  %v4632_v33 = vmul.f32 0.015625, %v4540_v34  ;;  %v13072_v34 = vld [vmem:[%s15276_s3 + $0x12] ss:$0 sm:$0xff] }
 0xd08   :  { %v4543_v63 = vpop.xlane.xlu0 %4542 }
 0xd09   :  { %9532 = vrsqrt.f32 %v4663_v21  ;;  %v4664_v39 = vadd.f32 1e-05, %v4632_v33  ;;  %v4633_v27 = vmul.f32 0.015625, %v4543_v63 }
 0xd0a   :  { %v4546_v41 = vpop.xlane.xlu1 %4545 }
 0xd0b   :  { %9534 = vrsqrt.f32 %v4664_v39  ;;  %v4665_v44 = vadd.f32 1e-05, %v4633_v27  ;;  %v4634_v26 = vmul.f32 0.015625, %v4546_v41 }
 0xd0c   :  { %v4549_v2 = vpop.xlane.xlu0 %4548 }
 0xd0d   :  { %9536 = vrsqrt.f32 %v4665_v44  ;;  %v4666_v35 = vadd.f32 1e-05, %v4634_v26  ;;  %v4635_v38 = vmul.f32 0.015625, %v4549_v2 }
 0xd0e   :  { %v4552_v47 = vpop.xlane.xlu1 %4551 }
 0xd0f   :  { %9538 = vrsqrt.f32 %v4666_v35  ;;  %v4667_v24 = vadd.f32 1e-05, %v4635_v38  ;;  %v4636_v11 = vmul.f32 0.015625, %v4552_v47 }
 0xd10   :  { %v4555_v43 = vpop.xlane.xlu0 %4554 }
 0xd11   :  { %9540 = vrsqrt.f32 %v4667_v24  ;;  %v4668_v4 = vadd.f32 1e-05, %v4636_v11  ;;  %v4637_v29 = vmul.f32 0.015625, %v4555_v43 }
 0xd12   :  { %v4558_v16 = vpop.xlane.xlu1 %4557 }
 0xd13   :  { %v9533_v56 = vpop.eup %9532  ;;  %9542 = vrsqrt.f32 %v4668_v4  ;;  %v4669_v0 = vadd.f32 1e-05, %v4637_v29  ;;  %v4638_v42 = vmul.f32 0.015625, %v4558_v16 }
 0xd14   :  { %v4561_v61 = vpop.xlane.xlu0 %4560  ;;  %v4727_v36 = vmul.f32 %v9533_v56, %v12846_v18 }
 0xd15   :  { %v9535_v62 = vpop.eup %9534  ;;  %9544 = vrsqrt.f32 %v4669_v0  ;;  %v4670_v28 = vadd.f32 1e-05, %v4638_v42  ;;  %v4639_v15 = vmul.f32 0.015625, %v4561_v61 }
 0xd16   :  { %v4564_v1 = vpop.xlane.xlu1 %4563  ;;  %v4728_v7 = vmul.f32 %v9535_v62, %v12849_v20  ;;  %v4763_v32 = vmul.f32 %v13064_v14, %v4727_v36 }
 0xd17   :  { %v9537_v30 = vpop.eup %9536  ;;  %9546 = vrsqrt.f32 %v4670_v28  ;;  %v4671_v21 = vadd.f32 1e-05, %v4639_v15  ;;  %v4640_v33 = vmul.f32 0.015625, %v4564_v1 }
 0xd18   :  { %v4729_v18 = vmul.f32 %v9537_v30, %v12854_v22  ;;  %v4567_v63 = vpop.xlane.xlu0 %4566  ;;  %v4764_v39 = vmul.f32 %v13064_v14, %v4728_v7  ;;  %v13079_v35 = vadd.f32 %v13072_v34, %v4763_v32 }
 0xd19   :  { %v9539_v27 = vpop.eup %9538  ;;  %9548 = vrsqrt.f32 %v4671_v21  ;;  %v4672_v41 = vadd.f32 1e-05, %v4640_v33  ;;  %v4641_v20 = vmul.f32 0.015625, %v4567_v63 }
 0xd1a   :  { %v4765_v44 = vmul.f32 %v13064_v14, %v4729_v18  ;;  %v4730_v26 = vmul.f32 %v9539_v27, %v12860_v37  ;;  %v4570_v2 = vpop.xlane.xlu1 %4569  ;;  %v13082_v38 = vadd.f32 %v13072_v34, %v4764_v39 }
 0xd1b   :  { %v9541_v47 = vpop.eup %9540  ;;  %9550 = vrsqrt.f32 %v4672_v41  ;;  %v4673_v22 = vadd.f32 1e-05, %v4641_v20  ;;  %v4642_v24 = vmul.f32 0.015625, %v4570_v2 }
 0xd1c   :  { %v4766_v11 = vmul.f32 %v13064_v14, %v4730_v26  ;;  %v4573_v43 = vpop.xlane.xlu0 %4572  ;;  %v4839_v4 = vpack.c.bf16 %v13082_v38, %v13079_v35  ;;  %v4731_v29 = vmul.f32 %v9541_v47, %v12866_v9  ;;  %v13089_v0 = vadd.f32 %v13072_v34, %v4765_v44 }
 0xd1d   :  { %v9543_v37 = vpop.eup %9542  ;;  %9552 = vrsqrt.f32 %v4673_v22  ;;  %v4674_v16 = vadd.f32 1e-05, %v4642_v24  ;;  %v4643_v56 = vmul.f32 0.015625, %v4573_v43 }
 0xd1e   :  { %v13092_v42 = vadd.f32 %v13072_v34, %v4766_v11  ;;  %v4576_v61 = vpop.xlane.xlu1 %4575  ;;  %8943 = vmatprep.mubr.msk.bf16.mxu0 %vm406_vm1, %v4839_v4  ;;  %v4732_v36 = vmul.f32 %v9543_v37, %v12872_v60  ;;  %v4767_v62 = vmul.f32 %v13064_v14, %v4731_v29 }
 0xd1f   :  { %v9545_v28 = vpop.eup %9544  ;;  %9554 = vrsqrt.f32 %v4674_v16  ;;  %v4675_v9 = vadd.f32 1e-05, %v4643_v56  ;;  %v4644_v15 = vmul.f32 0.015625, %v4576_v61 }
 0xd20   :  { %v4579_v1 = vpop.xlane.xlu0 %4578  ;;  %v4840_v7 = vpack.c.bf16 %v13092_v42, %v13089_v0  ;;  %v4768_v32 = vmul.f32 %v13064_v14, %v4732_v36  ;;  %v4733_v30 = vmul.f32 %v9545_v28, %v12878_v53  ;;  %v13103_v60 = vadd.f32 %v13072_v34, %v4767_v62 }
 0xd21   :  { %v9547_v21 = vpop.eup %9546  ;;  %9556 = vrsqrt.f32 %v4675_v9  ;;  %v4676_v33 = vadd.f32 1e-05, %v4644_v15  ;;  %v4645_v18 = vmul.f32 0.015625, %v4579_v1 }
 0xd22   :  { %v4582_v63 = vpop.xlane.xlu1 %4581  ;;  %8944 = vmatmul.mubr.msk.bf16.vlgmr.msra.gmra.mrb[128].mxu0 %vm406_vm1, %v4840_v7  ;;  %v13106_v39 = vadd.f32 %v13072_v34, %v4768_v32  ;;  %v4734_v27 = vmul.f32 %v9547_v21, %v12884_v51  ;;  %v4769_v41 = vmul.f32 %v13064_v14, %v4733_v30 }
 0xd23   :  { %v9549_v20 = vpop.eup %9548  ;;  %9558 = vrsqrt.f32 %v4676_v33  ;;  %v4677_v53 = vadd.f32 1e-05, %v4645_v18  ;;  %v4646_v44 = vmul.f32 0.015625, %v4582_v63 }
 0xd24   :  { %v4585_v26 = vpop.xlane.xlu0 %4584  ;;  %v4841_v2 = vpack.c.bf16 %v13106_v39, %v13103_v60  ;;  %v4770_v47 = vmul.f32 %v13064_v14, %v4734_v27  ;;  %v4735_v22 = vmul.f32 %v9549_v20, %v12890_v59  ;;  %v13116_v51 = vadd.f32 %v13072_v34, %v4769_v41 }
 0xd25   :  { %v9551_v24 = vpop.eup %9550  ;;  %9560 = vrsqrt.f32 %v4677_v53  ;;  %v4678_v11 = vadd.f32 1e-05, %v4646_v44  ;;  %v4647_v43 = vmul.f32 0.015625, %v4585_v26 }
 0xd26   :  { %v4588_v4 = vpop.xlane.xlu1 %4587  ;;  %8947 = vmatprep.mubr.msk.bf16.mxu0 %vm406_vm1, %v4841_v2  ;;  %v13119_v29 = vadd.f32 %v13072_v34, %v4770_v47  ;;  %v4736_v37 = vmul.f32 %v9551_v24, %v12896_v45  ;;  %v4771_v16 = vmul.f32 %v13064_v14, %v4735_v22 }
 0xd27   :  { %v9553_v56 = vpop.eup %9552  ;;  %9562 = vrsqrt.f32 %v4678_v11  ;;  %v4679_v59 = vadd.f32 1e-05, %v4647_v43  ;;  %v4648_v61 = vmul.f32 0.015625, %v4588_v4 }
 0xd28   :  { %v4591_v36 = vpop.xlane.xlu0 %4590  ;;  %v4842_v62 = vpack.c.bf16 %v13119_v29, %v13116_v51  ;;  %v4772_v28 = vmul.f32 %v13064_v14, %v4736_v37  ;;  %v4737_v9 = vmul.f32 %v9553_v56, %v12902_v54  ;;  %v13129_v45 = vadd.f32 %v13072_v34, %v4771_v16 }
 0xd29   :  { %v9555_v15 = vpop.eup %9554  ;;  %9564 = vrsqrt.f32 %v4679_v59  ;;  %v4680_v1 = vadd.f32 1e-05, %v4648_v61  ;;  %v4649_v7 = vmul.f32 0.015625, %v4591_v36 }
 0xd2a   :  { %v4594_v32 = vpop.xlane.xlu1 %4593  ;;  %8948 = vmatmul.mubr.msk.bf16.gmra.mrb[132].mxu0 %vm406_vm1, %v4842_v62  ;;  %v13132_v30 = vadd.f32 %v13072_v34, %v4772_v28  ;;  %v4738_v21 = vmul.f32 %v9555_v15, %v12908_v5  ;;  %v4773_v33 = vmul.f32 %v13064_v14, %v4737_v9 }
 0xd2b   :  { %v9557_v18 = vpop.eup %9556  ;;  %9566 = vrsqrt.f32 %v4680_v1  ;;  %v4681_v54 = vadd.f32 1e-05, %v4649_v7  ;;  %v4650_v63 = vmul.f32 0.015625, %v4594_v32 }
 0xd2c   :  { %v4597_v27 = vpop.xlane.xlu0 %4596  ;;  %v4843_v41 = vpack.c.bf16 %v13132_v30, %v13129_v45  ;;  %v4774_v20 = vmul.f32 %v13064_v14, %v4738_v21  ;;  %v4739_v53 = vmul.f32 %v9557_v18, %v12914_v12  ;;  %v13142_v5 = vadd.f32 %v13072_v34, %v4773_v33 }
 0xd2d   :  { %v9559_v44 = vpop.eup %9558  ;;  %9568 = vrsqrt.f32 %v4681_v54  ;;  %v4682_v26 = vadd.f32 1e-05, %v4650_v63  ;;  %v4651_v2 = vmul.f32 0.015625, %v4597_v27 }
 0xd2e   :  { %v4600_v47 = vpop.xlane.xlu1 %4599  ;;  %8951 = vmatprep.mubr.msk.bf16.mxu0 %vm406_vm1, %v4843_v41  ;;  %v13145_v22 = vadd.f32 %v13072_v34, %v4774_v20  ;;  %v4740_v24 = vmul.f32 %v9559_v44, %v12920_v49  ;;  %v4775_v11 = vmul.f32 %v13064_v14, %v4739_v53 }
 0xd2f   :  { %v9561_v43 = vpop.eup %9560  ;;  %9570 = vrsqrt.f32 %v4682_v26  ;;  %v4683_v12 = vadd.f32 1e-05, %v4651_v2  ;;  %v4652_v4 = vmul.f32 0.015625, %v4600_v47 }
 0xd30   :  { %v4603_v37 = vpop.xlane.xlu0 %4602  ;;  %v4844_v16 = vpack.c.bf16 %v13145_v22, %v13142_v5  ;;  %v4776_v56 = vmul.f32 %v13064_v14, %v4740_v24  ;;  %v4741_v59 = vmul.f32 %v9561_v43, %v12926_v55  ;;  %v13155_v49 = vadd.f32 %v13072_v34, %v4775_v11 }
 0xd31   :  { %v9563_v61 = vpop.eup %9562  ;;  %9572 = vrsqrt.f32 %v4683_v12  ;;  %v4684_v36 = vadd.f32 1e-05, %v4652_v4  ;;  %v4653_v62 = vmul.f32 0.015625, %v4603_v37 }
 0xd32   :  { %v4606_v28 = vpop.xlane.xlu1 %4605  ;;  %8952 = vmatmul.mubr.msk.bf16.gmra.mrb[136].mxu0 %vm406_vm1, %v4844_v16  ;;  %v13158_v9 = vadd.f32 %v13072_v34, %v4776_v56  ;;  %v4742_v15 = vmul.f32 %v9563_v61, %v12932_v57  ;;  %v4777_v1 = vmul.f32 %v13064_v14, %v4741_v59 }
 0xd33   :  { %v9565_v7 = vpop.eup %9564  ;;  %9574 = vrsqrt.f32 %v4684_v36  ;;  %v4685_v55 = vadd.f32 1e-05, %v4653_v62  ;;  %v4654_v32 = vmul.f32 0.015625, %v4606_v28 }
 0xd34   :  { %v4609_v21 = vpop.xlane.xlu0 %4608  ;;  %v4845_v33 = vpack.c.bf16 %v13158_v9, %v13155_v49  ;;  %v4778_v18 = vmul.f32 %v13064_v14, %v4742_v15  ;;  %v4743_v54 = vmul.f32 %v9565_v7, %v12938_v6  ;;  %v13168_v57 = vadd.f32 %v13072_v34, %v4777_v1 }
 0xd35   :  { %v9567_v63 = vpop.eup %9566  ;;  %9576 = vrsqrt.f32 %v4685_v55  ;;  %v4686_v27 = vadd.f32 1e-05, %v4654_v32  ;;  %v4655_v41 = vmul.f32 0.015625, %v4609_v21 }
 0xd36   :  { %v4612_v20 = vpop.xlane.xlu1 %4611  ;;  %8955 = vmatprep.mubr.msk.bf16.mxu0 %vm406_vm1, %v4845_v33  ;;  %v13171_v53 = vadd.f32 %v13072_v34, %v4778_v18  ;;  %v4744_v44 = vmul.f32 %v9567_v63, %v12944_v3  ;;  %v4779_v26 = vmul.f32 %v13064_v14, %v4743_v54 }
 0xd37   :  { %v9569_v2 = vpop.eup %9568  ;;  %9578 = vrsqrt.f32 %v4686_v27  ;;  %v4687_v6 = vadd.f32 1e-05, %v4655_v41  ;;  %v4656_v47 = vmul.f32 0.015625, %v4612_v20 }
 0xd38   :  { %v4615_v24 = vpop.xlane.xlu0 %4614  ;;  %v4846_v11 = vpack.c.bf16 %v13171_v53, %v13168_v57  ;;  %v4780_v43 = vmul.f32 %v13064_v14, %v4744_v44  ;;  %v4745_v12 = vmul.f32 %v9569_v2, %v12950_v23  ;;  %v13181_v3 = vadd.f32 %v13072_v34, %v4779_v26 }
 0xd39   :  { %v9571_v4 = vpop.eup %9570  ;;  %9580 = vrsqrt.f32 %v4687_v6  ;;  %v4688_v37 = vadd.f32 1e-05, %v4656_v47  ;;  %v4657_v16 = vmul.f32 0.015625, %v4615_v24 }
 0xd3a   :  { %v4618_v56 = vpop.xlane.xlu1 %4617  ;;  %8956 = vmatmul.mubr.msk.bf16.gmra.mrb[140].mxu0 %vm406_vm1, %v4846_v11  ;;  %v13184_v59 = vadd.f32 %v13072_v34, %v4780_v43  ;;  %v4746_v61 = vmul.f32 %v9571_v4, %v12956_v31  ;;  %v4781_v36 = vmul.f32 %v13064_v14, %v4745_v12 }
 0xd3b   :  { %v9573_v62 = vpop.eup %9572  ;;  %9582 = vrsqrt.f32 %v4688_v37  ;;  %v4689_v23 = vadd.f32 1e-05, %v4657_v16  ;;  %v4658_v28 = vmul.f32 0.015625, %v4618_v56 }
 0xd3c   :  { %v4621_v15 = vpop.xlane.xlu0 %4620  ;;  %v4847_v1 = vpack.c.bf16 %v13184_v59, %v13181_v3  ;;  %v4782_v7 = vmul.f32 %v13064_v14, %v4746_v61  ;;  %v4747_v55 = vmul.f32 %v9573_v62, %v12962_v50  ;;  %v13194_v31 = vadd.f32 %v13072_v34, %v4781_v36 }
 0xd3d   :  { %v9575_v32 = vpop.eup %9574  ;;  %9584 = vrsqrt.f32 %v4689_v23  ;;  %v4690_v21 = vadd.f32 1e-05, %v4658_v28  ;;  %v4659_v33 = vmul.f32 0.015625, %v4621_v15 }
 0xd3e   :  { %v4624_v18 = vpop.xlane.xlu1 %4623  ;;  %8959 = vmatprep.mubr.msk.bf16.mxu0 %vm406_vm1, %v4847_v1  ;;  %v13197_v54 = vadd.f32 %v13072_v34, %v4782_v7  ;;  %v4748_v63 = vmul.f32 %v9575_v32, %v12968_v46  ;;  %v4783_v27 = vmul.f32 %v13064_v14, %v4747_v55 }
 0xd3f   :  { %v9577_v41 = vpop.eup %9576  ;;  %9586 = vrsqrt.f32 %v4690_v21  ;;  %v4691_v50 = vadd.f32 1e-05, %v4659_v33  ;;  %v4660_v20 = vmul.f32 0.015625, %v4624_v18 }
 0xd40   :  { %v4627_v44 = vpop.xlane.xlu0 %4626  ;;  %v4848_v26 = vpack.c.bf16 %v13197_v54, %v13194_v31  ;;  %v4784_v2 = vmul.f32 %v13064_v14, %v4748_v63  ;;  %v4749_v6 = vmul.f32 %v9577_v41, %v12974_v19  ;;  %v13207_v46 = vadd.f32 %v13072_v34, %v4783_v27 }
 0xd41   :  { %v9579_v47 = vpop.eup %9578  ;;  %9588 = vrsqrt.f32 %v4691_v50  ;;  %v4692_v24 = vadd.f32 1e-05, %v4660_v20  ;;  %v4661_v11 = vmul.f32 0.015625, %v4627_v44 }
 0xd42   :  { %v4630_v43 = vpop.xlane.xlu1 %4629  ;;  %8960 = vmatmul.mubr.msk.bf16.gmra.mrb[144].mxu0 %vm406_vm1, %v4848_v26  ;;  %v13210_v12 = vadd.f32 %v13072_v34, %v4784_v2  ;;  %v4750_v4 = vmul.f32 %v9579_v47, %v12983_v52  ;;  %v4785_v37 = vmul.f32 %v13064_v14, %v4749_v6 }
 0xd43   :  { %v9581_v16 = vpop.eup %9580  ;;  %9590 = vrsqrt.f32 %v4692_v24  ;;  %v4693_v19 = vadd.f32 1e-05, %v4661_v11  ;;  %v4662_v56 = vmul.f32 0.015625, %v4630_v43 }
 0xd44   :  { %v4849_v61 = vpack.c.bf16 %v13210_v12, %v13207_v46  ;;  %v4786_v36 = vmul.f32 %v13064_v14, %v4750_v4  ;;  %v4751_v62 = vmul.f32 %v9581_v16, %v12989_v10  ;;  %v13220_v52 = vadd.f32 %v13072_v34, %v4785_v37 }
 0xd45   :  { %v9583_v23 = vpop.eup %9582  ;;  %9592 = vrsqrt.f32 %v4693_v19  ;;  %v4694_v28 = vadd.f32 1e-05, %v4662_v56 }
 0xd46   :  { %8963 = vmatprep.mubr.msk.bf16.mxu0 %vm406_vm1, %v4849_v61  ;;  %v13223_v15 = vadd.f32 %v13072_v34, %v4786_v36  ;;  %v4752_v1 = vmul.f32 %v9583_v23, %v12995_v48  ;;  %v4787_v7 = vmul.f32 %v13064_v14, %v4751_v62 }
 0xd47   :  { %v9585_v55 = vpop.eup %9584  ;;  %9594 = vrsqrt.f32 %v4694_v28 }
 0xd48   :  { %v4850_v10 = vpack.c.bf16 %v13223_v15, %v13220_v52  ;;  %v4788_v32 = vmul.f32 %v13064_v14, %v4752_v1  ;;  %v4753_v21 = vmul.f32 %v9585_v55, %v13001_v58  ;;  %v13233_v18 = vadd.f32 %v13072_v34, %v4787_v7 }
 0xd49   :  { %v9587_v33 = vpop.eup %9586 }
 0xd4a   :  { %8964 = vmatmul.mubr.msk.bf16.gmra.mrb[148].mxu0 %vm406_vm1, %v4850_v10  ;;  %v13236_v63 = vadd.f32 %v13072_v34, %v4788_v32  ;;  %v4754_v48 = vmul.f32 %v9587_v33, %v13007_v17  ;;  %v4789_v27 = vmul.f32 %v13064_v14, %v4753_v21 }
 0xd4b   :  { %v9589_v41 = vpop.eup %9588 }
 0xd4c   :  { %v4851_v50 = vpack.c.bf16 %v13236_v63, %v13233_v18  ;;  %v4790_v20 = vmul.f32 %v13064_v14, %v4754_v48  ;;  %v4755_v58 = vmul.f32 %v9589_v41, %v13013_v40  ;;  %v13246_v26 = vadd.f32 %v13072_v34, %v4789_v27 }
 0xd4d   :  { %v9591_v44 = vpop.eup %9590 }
 0xd4e   :  { %8967 = vmatprep.mubr.msk.bf16.mxu0 %vm406_vm1, %v4851_v50  ;;  %v13249_v2 = vadd.f32 %v13072_v34, %v4790_v20  ;;  %v4756_v17 = vmul.f32 %v9591_v44, %v13019_v8  ;;  %v4791_v6 = vmul.f32 %v13064_v14, %v4755_v58 }
 0xd4f   :  { %v9593_v47 = vpop.eup %9592 }
 0xd50   :  { %v4852_v24 = vpack.c.bf16 %v13249_v2, %v13246_v26  ;;  %v4792_v11 = vmul.f32 %v13064_v14, %v4756_v17  ;;  %v4757_v40 = vmul.f32 %v9593_v47, %v13025_v25  ;;  %v13259_v4 = vadd.f32 %v13072_v34, %v4791_v6 }
 0xd51   :  { %v9595_v43 = vpop.eup %9594 }
 0xd52   :  { %8968 = vmatmul.mubr.msk.bf16.gmra.mrb[152].mxu0 %vm406_vm1, %v4852_v24  ;;  %v13262_v37 = vadd.f32 %v13072_v34, %v4792_v11  ;;  %v4758_v8 = vmul.f32 %v9595_v43, %v13031_v13  ;;  %v4793_v16 = vmul.f32 %v13064_v14, %v4757_v40  ;;  %v9255_v13 = vld [vmem:[%s15274_s1 + $0x140] sm:$0xff]  }
 0xd53   :  { %8989 = vmatprep.subr.bf16.mxu1 %v9255_v13 }
 0xd54   :  { %v4853_v19 = vpack.c.bf16 %v13262_v37, %v13259_v4  ;;  %v4794_v56 = vmul.f32 %v13064_v14, %v4758_v8  ;;  %v13271_v25 = vadd.f32 %v13072_v34, %v4793_v16  ;;  %8990 = vmatpush3.bf16.msra.mxu1 %v9255_v13  ;;  %v13285_v14 = vld [vmem:[%s15276_s3 + $0x13] ss:$0 sm:$0xff] }
 0xd56   :  { %8971 = vmatprep.mubr.msk.bf16.mxu0 %vm406_vm1, %v4853_v19  ;;  %v13274_v61 = vadd.f32 %v13072_v34, %v4794_v56 }
 0xd58   :  { %v4854_v36 = vpack.c.bf16 %v13274_v61, %v13271_v25 }
 0xd5a   :  { %8972 = vmatmul.mubr.msk.bf16.gmra.mrb[156].mxu0 %vm406_vm1, %v4854_v36 }
 0xdf5   :  { %v8945_v62 = vpop.f32.mrb[128].mxu0 }
 0xdf6   :  { %v4975_v34 = vadd.f32 %v8945_v62, %v13285_v14  ;;  %v4966_v23 = vpop.f32.mrb[129].mxu0 }
 0xdf7   :  { %v4967_v28 = vadd.f32 %v13285_v14, %v4966_v23  ;;  %v8946_v1 = vpop.f32.mrb[130].mxu0 }
 0xdf8   :  { %v4978_v7 = vadd.f32 %v8946_v1, %v13285_v14  ;;  %v4969_v55 = vpop.f32.mrb[131].mxu0  ;;  %v5095_v32 = vmax.f32 %v4975_v34, 0.0 }
 0xdf9   :  { %v4970_v10 = vadd.f32 %v13285_v14, %v4969_v55  ;;  %v5093_v33 = vmax.f32 %v4967_v28, 0.0 }
 0xdfa   :  { %v5096_v21 = vmax.f32 %v4978_v7, 0.0 }
 0xdfb   :  { %v5094_v48 = vmax.f32 %v4970_v10, 0.0 }
 0xdfc   :  { %v5142_v27 = vpack.c.bf16 %v5096_v21, %v5095_v32 }
 0xdfd   :  { %v5141_v41 = vpack.c.bf16 %v5094_v48, %v5093_v33  ;;  %v8949_v50 = vpop.f32.mrb[132].mxu0 }
 0xdfe   :  { %v4991_v20 = vadd.f32 %v8949_v50, %v13285_v14  ;;  %v4982_v58 = vpop.f32.mrb[133].mxu0 }
 0xdff   :  { %v4983_v44 = vadd.f32 %v13285_v14, %v4982_v58  ;;  %v8950_v17 = vpop.f32.mrb[134].mxu0  ;;  %8991 = vmatprep.mubr.bf16.mxu1 %v5141_v41 }
 0xe00   :  { %v4994_v6 = vadd.f32 %v8950_v17, %v13285_v14  ;;  %v4985_v47 = vpop.f32.mrb[135].mxu0  ;;  %8992 = vmatmul.mubr.bf16.vlgmr.msra.gmra.mrb[128].mxu1 %v5142_v27  ;;  %v5099_v11 = vmax.f32 %v4991_v20, 0.0 }
 0xe01   :  { %v4986_v24 = vadd.f32 %v13285_v14, %v4985_v47  ;;  %v5097_v43 = vmax.f32 %v4983_v44, 0.0 }
 0xe02   :  { %v5100_v40 = vmax.f32 %v4994_v6, 0.0 }
 0xe03   :  { %v5098_v8 = vmax.f32 %v4986_v24, 0.0 }
 0xe04   :  { %v5144_v16 = vpack.c.bf16 %v5100_v40, %v5099_v11 }
 0xe05   :  { %v5143_v19 = vpack.c.bf16 %v5098_v8, %v5097_v43  ;;  %v8953_v56 = vpop.f32.mrb[136].mxu0 }
 0xe06   :  { %v5007_v36 = vadd.f32 %v8953_v56, %v13285_v14  ;;  %v4998_v13 = vpop.f32.mrb[137].mxu0 }
 0xe07   :  { %v4999_v62 = vadd.f32 %v13285_v14, %v4998_v13  ;;  %v8954_v34 = vpop.f32.mrb[138].mxu0  ;;  %8995 = vmatprep.mubr.bf16.mxu1 %v5143_v19 }
 0xe08   :  { %v5010_v23 = vadd.f32 %v8954_v34, %v13285_v14  ;;  %v5001_v28 = vpop.f32.mrb[139].mxu0  ;;  %8996 = vmatmul.mubr.bf16.gmra.mrb[132].mxu1 %v5144_v16  ;;  %v5103_v7 = vmax.f32 %v5007_v36, 0.0 }
 0xe09   :  { %v5002_v1 = vadd.f32 %v13285_v14, %v5001_v28  ;;  %v5101_v10 = vmax.f32 %v4999_v62, 0.0 }
 0xe0a   :  { %v5104_v55 = vmax.f32 %v5010_v23, 0.0 }
 0xe0b   :  { %v5102_v32 = vmax.f32 %v5002_v1, 0.0 }
 0xe0c   :  { %v5146_v21 = vpack.c.bf16 %v5104_v55, %v5103_v7 }
 0xe0d   :  { %v5145_v33 = vpack.c.bf16 %v5102_v32, %v5101_v10  ;;  %v8957_v48 = vpop.f32.mrb[140].mxu0 }
 0xe0e   :  { %v5023_v27 = vadd.f32 %v8957_v48, %v13285_v14  ;;  %v5014_v41 = vpop.f32.mrb[141].mxu0 }
 0xe0f   :  { %v5015_v50 = vadd.f32 %v13285_v14, %v5014_v41  ;;  %v8958_v20 = vpop.f32.mrb[142].mxu0  ;;  %8999 = vmatprep.mubr.bf16.mxu1 %v5145_v33 }
 0xe10   :  { %v5026_v58 = vadd.f32 %v8958_v20, %v13285_v14  ;;  %v5017_v44 = vpop.f32.mrb[143].mxu0  ;;  %9000 = vmatmul.mubr.bf16.gmra.mrb[136].mxu1 %v5146_v21  ;;  %v5107_v6 = vmax.f32 %v5023_v27, 0.0 }
 0xe11   :  { %v5018_v17 = vadd.f32 %v13285_v14, %v5017_v44  ;;  %v5105_v24 = vmax.f32 %v5015_v50, 0.0 }
 0xe12   :  { %v5108_v47 = vmax.f32 %v5026_v58, 0.0 }
 0xe13   :  { %v5106_v11 = vmax.f32 %v5018_v17, 0.0 }
 0xe14   :  { %v5148_v40 = vpack.c.bf16 %v5108_v47, %v5107_v6 }
 0xe15   :  { %v5147_v43 = vpack.c.bf16 %v5106_v11, %v5105_v24  ;;  %v8961_v8 = vpop.f32.mrb[144].mxu0 }
 0xe16   :  { %v5039_v16 = vadd.f32 %v8961_v8, %v13285_v14  ;;  %v5030_v19 = vpop.f32.mrb[145].mxu0 }
 0xe17   :  { %v5031_v56 = vadd.f32 %v13285_v14, %v5030_v19  ;;  %v8962_v36 = vpop.f32.mrb[146].mxu0  ;;  %9003 = vmatprep.mubr.bf16.mxu1 %v5147_v43 }
 0xe18   :  { %v5042_v13 = vadd.f32 %v8962_v36, %v13285_v14  ;;  %v5033_v62 = vpop.f32.mrb[147].mxu0  ;;  %9004 = vmatmul.mubr.bf16.gmra.mrb[140].mxu1 %v5148_v40  ;;  %v5111_v23 = vmax.f32 %v5039_v16, 0.0 }
 0xe19   :  { %v5034_v34 = vadd.f32 %v13285_v14, %v5033_v62  ;;  %v5109_v1 = vmax.f32 %v5031_v56, 0.0 }
 0xe1a   :  { %v5112_v28 = vmax.f32 %v5042_v13, 0.0 }
 0xe1b   :  { %v5110_v7 = vmax.f32 %v5034_v34, 0.0 }
 0xe1c   :  { %v5150_v55 = vpack.c.bf16 %v5112_v28, %v5111_v23 }
 0xe1d   :  { %v5149_v10 = vpack.c.bf16 %v5110_v7, %v5109_v1  ;;  %v8965_v32 = vpop.f32.mrb[148].mxu0 }
 0xe1e   :  { %v5055_v21 = vadd.f32 %v8965_v32, %v13285_v14  ;;  %v5046_v33 = vpop.f32.mrb[149].mxu0 }
 0xe1f   :  { %v5047_v48 = vadd.f32 %v13285_v14, %v5046_v33  ;;  %v8966_v27 = vpop.f32.mrb[150].mxu0  ;;  %9007 = vmatprep.mubr.bf16.mxu1 %v5149_v10 }
 0xe20   :  { %v5058_v41 = vadd.f32 %v8966_v27, %v13285_v14  ;;  %v5049_v50 = vpop.f32.mrb[151].mxu0  ;;  %9008 = vmatmul.mubr.bf16.gmra.mrb[144].mxu1 %v5150_v55  ;;  %v5115_v58 = vmax.f32 %v5055_v21, 0.0 }
 0xe21   :  { %v5050_v20 = vadd.f32 %v13285_v14, %v5049_v50  ;;  %v5113_v17 = vmax.f32 %v5047_v48, 0.0 }
 0xe22   :  { %v5116_v44 = vmax.f32 %v5058_v41, 0.0 }
 0xe23   :  { %v5114_v6 = vmax.f32 %v5050_v20, 0.0 }
 0xe24   :  { %v5152_v47 = vpack.c.bf16 %v5116_v44, %v5115_v58 }
 0xe25   :  { %v5151_v24 = vpack.c.bf16 %v5114_v6, %v5113_v17  ;;  %v8969_v11 = vpop.f32.mrb[152].mxu0  ;;  %v13322_v6 = vld [vmem:[%s15276_s3 + $0x14] ss:$0 sm:$0xff] }
 0xe26   :  { %v5071_v40 = vadd.f32 %v8969_v11, %v13285_v14  ;;  %v5062_v43 = vpop.f32.mrb[153].mxu0 }
 0xe27   :  { %v5063_v8 = vadd.f32 %v13285_v14, %v5062_v43  ;;  %v8970_v16 = vpop.f32.mrb[154].mxu0  ;;  %9011 = vmatprep.mubr.bf16.mxu1 %v5151_v24 }
 0xe28   :  { %v5074_v19 = vadd.f32 %v8970_v16, %v13285_v14  ;;  %v5065_v56 = vpop.f32.mrb[155].mxu0  ;;  %9012 = vmatmul.mubr.bf16.gmra.mrb[148].mxu1 %v5152_v47  ;;  %v5119_v13 = vmax.f32 %v5071_v40, 0.0 }
 0xe29   :  { %v5066_v36 = vadd.f32 %v13285_v14, %v5065_v56  ;;  %v5117_v34 = vmax.f32 %v5063_v8, 0.0 }
 0xe2a   :  { %v5120_v62 = vmax.f32 %v5074_v19, 0.0 }
 0xe2b   :  { %v5118_v23 = vmax.f32 %v5066_v36, 0.0 }
 0xe2c   :  { %v5154_v28 = vpack.c.bf16 %v5120_v62, %v5119_v13 }
 0xe2d   :  { %v5153_v1 = vpack.c.bf16 %v5118_v23, %v5117_v34  ;;  %v8973_v7 = vpop.f32.mrb[156].mxu0 }
 0xe2e   :  { %v5087_v55 = vadd.f32 %v8973_v7, %v13285_v14  ;;  %v5078_v10 = vpop.f32.mrb[157].mxu0 }
 0xe2f   :  { %v5079_v32 = vadd.f32 %v13285_v14, %v5078_v10  ;;  %v8974_v21 = vpop.f32.mrb[158].mxu0  ;;  %9015 = vmatprep.mubr.bf16.mxu1 %v5153_v1 }
 0xe30   :  { %v5090_v33 = vadd.f32 %v8974_v21, %v13285_v14  ;;  %v5081_v48 = vpop.f32.mrb[159].mxu0  ;;  %9016 = vmatmul.mubr.bf16.gmra.mrb[152].mxu1 %v5154_v28  ;;  %v5123_v41 = vmax.f32 %v5087_v55, 0.0 }
 0xe31   :  { %v5082_v27 = vadd.f32 %v13285_v14, %v5081_v48  ;;  %v5121_v20 = vmax.f32 %v5079_v32, 0.0 }
 0xe32   :  { %v5124_v50 = vmax.f32 %v5090_v33, 0.0 }
 0xe33   :  { %v5122_v58 = vmax.f32 %v5082_v27, 0.0 }
 0xe34   :  { %v5156_v44 = vpack.c.bf16 %v5124_v50, %v5123_v41 }
 0xe35   :  { %v5155_v17 = vpack.c.bf16 %v5122_v58, %v5121_v20 }
 0xe37   :  { %9019 = vmatprep.mubr.bf16.mxu1 %v5155_v17 }
 0xe38   :  { %9020 = vmatmul.mubr.bf16.gmra.mrb[156].mxu1 %v5156_v44 }
 0xed3   :  { %v8993_v47 = vpop.f32.mrb[128].mxu1 }
 0xed4   :  { %v5244_v24 = vpop.f32.mrb[129].mxu1  ;;  %v5253_v11 = vadd.f32 %v8993_v47, %v13322_v6 }
 0xed5   :  { %v5245_v40 = vadd.f32 %v13322_v6, %v5244_v24  ;;  %v8994_v14 = vpop.f32.mrb[130].mxu1 }
 0xed6   :  { %v5247_v43 = vpop.f32.mrb[131].mxu1  ;;  %v5256_v16 = vadd.f32 %v8994_v14, %v13322_v6  ;;  %v13332_v56 = vadd.f32 %v5253_v11, %v13089_v0 }
 0xed7   :  { %v13327_v8 = vadd.f32 %v5245_v40, %v13079_v35  ;;  %v5248_v19 = vadd.f32 %v13322_v6, %v5247_v43 }
 0xed8   :  { %v13340_v62 = vadd.f32 %v5256_v16, %v13092_v42 }
 0xed9   :  { %v13335_v36 = vadd.f32 %v5248_v19, %v13082_v38  ;;  %v5405_v13 = vsel %vm406_vm1, %v13327_v8, 0.0  ;;  %v5411_v38 = vsel %vm406_vm1, %v13332_v56, 0.0 }
 0xeda   :  { %5406 = vadd.xlane.f32.xlu0 %v5405_v13  ;;  %v5414_v32 = vsel %vm406_vm1, %v13340_v62, 0.0 }
 0xedb   :  { %v8997_v34 = vpop.f32.mrb[132].mxu1  ;;  %v5408_v35 = vsel %vm406_vm1, %v13335_v36, 0.0 }
 0xedc   :  { %5409 = vadd.xlane.f32.xlu1 %v5408_v35  ;;  %v5260_v23 = vpop.f32.mrb[133].mxu1  ;;  %v5269_v28 = vadd.f32 %v8997_v34, %v13322_v6 }
 0xedd   :  { %v5261_v0 = vadd.f32 %v13322_v6, %v5260_v23  ;;  %v8998_v1 = vpop.f32.mrb[134].mxu1 }
 0xede   :  { %5412 = vadd.xlane.f32.xlu0 %v5411_v38  ;;  %v5263_v7 = vpop.f32.mrb[135].mxu1  ;;  %v5272_v42 = vadd.f32 %v8998_v1, %v13322_v6  ;;  %v13356_v21 = vadd.f32 %v5269_v28, %v13116_v51 }
 0xedf   :  { %v13349_v55 = vadd.f32 %v5261_v0, %v13103_v60  ;;  %v5264_v10 = vadd.f32 %v13322_v6, %v5263_v7 }
 0xee0   :  { %5415 = vadd.xlane.f32.xlu1 %v5414_v32  ;;  %v13364_v60 = vadd.f32 %v5272_v42, %v13119_v29 }
 0xee1   :  { %v13359_v33 = vadd.f32 %v5264_v10, %v13106_v39  ;;  %v5417_v48 = vsel %vm406_vm1, %v13349_v55, 0.0  ;;  %v5423_v39 = vsel %vm406_vm1, %v13356_v21, 0.0 }
 0xee2   :  { %5418 = vadd.xlane.f32.xlu0 %v5417_v48  ;;  %v5426_v24 = vsel %vm406_vm1, %v13364_v60, 0.0 }
 0xee3   :  { %v9001_v27 = vpop.f32.mrb[136].mxu1  ;;  %v5420_v41 = vsel %vm406_vm1, %v13359_v33, 0.0 }
 0xee4   :  { %5421 = vadd.xlane.f32.xlu1 %v5420_v41  ;;  %v5276_v50 = vpop.f32.mrb[137].mxu1  ;;  %v5285_v20 = vadd.f32 %v9001_v27, %v13322_v6 }
 0xee5   :  { %v5277_v51 = vadd.f32 %v13322_v6, %v5276_v50  ;;  %v9002_v58 = vpop.f32.mrb[138].mxu1 }
 0xee6   :  { %5424 = vadd.xlane.f32.xlu0 %v5423_v39  ;;  %v5279_v44 = vpop.f32.mrb[139].mxu1  ;;  %v5288_v29 = vadd.f32 %v9002_v58, %v13322_v6  ;;  %v13380_v11 = vadd.f32 %v5285_v20, %v13142_v5 }
 0xee7   :  { %v13373_v17 = vadd.f32 %v5277_v51, %v13129_v45  ;;  %v5280_v47 = vadd.f32 %v13322_v6, %v5279_v44 }
 0xee8   :  { %5427 = vadd.xlane.f32.xlu1 %v5426_v24  ;;  %v13388_v45 = vadd.f32 %v5288_v29, %v13145_v22 }
 0xee9   :  { %v13383_v40 = vadd.f32 %v5280_v47, %v13132_v30  ;;  %v5429_v14 = vsel %vm406_vm1, %v13373_v17, 0.0  ;;  %v5435_v30 = vsel %vm406_vm1, %v13380_v11, 0.0 }
 0xeea   :  { %5430 = vadd.xlane.f32.xlu0 %v5429_v14  ;;  %v5438_v0 = vsel %vm406_vm1, %v13388_v45, 0.0 }
 0xeeb   :  { %v9005_v43 = vpop.f32.mrb[140].mxu1  ;;  %v5432_v16 = vsel %vm406_vm1, %v13383_v40, 0.0 }
 0xeec   :  { %5433 = vadd.xlane.f32.xlu1 %v5432_v16  ;;  %v5292_v19 = vpop.f32.mrb[141].mxu1  ;;  %v5301_v13 = vadd.f32 %v9005_v43, %v13322_v6 }
 0xeed   :  { %v5293_v5 = vadd.f32 %v13322_v6, %v5292_v19  ;;  %v9006_v34 = vpop.f32.mrb[142].mxu1 }
 0xeee   :  { %5436 = vadd.xlane.f32.xlu0 %v5435_v30  ;;  %v5295_v35 = vpop.f32.mrb[143].mxu1  ;;  %v5304_v22 = vadd.f32 %v9006_v34, %v13322_v6  ;;  %v13404_v1 = vadd.f32 %v5301_v13, %v13168_v57 }
 0xeef   :  { %v13397_v23 = vadd.f32 %v5293_v5, %v13155_v49  ;;  %v5296_v28 = vadd.f32 %v13322_v6, %v5295_v35 }
 0xef0   :  { %5439 = vadd.xlane.f32.xlu1 %v5438_v0  ;;  %v13412_v49 = vadd.f32 %v5304_v22, %v13171_v53 }
 0xef1   :  { %v13407_v38 = vadd.f32 %v5296_v28, %v13158_v9  ;;  %v5441_v7 = vsel %vm406_vm1, %v13397_v23, 0.0  ;;  %v5447_v9 = vsel %vm406_vm1, %v13404_v1, 0.0 }
 0xef2   :  { %5442 = vadd.xlane.f32.xlu0 %v5441_v7  ;;  %v5450_v51 = vsel %vm406_vm1, %v13412_v49, 0.0 }
 0xef3   :  { %v9009_v42 = vpop.f32.mrb[144].mxu1  ;;  %v5444_v10 = vsel %vm406_vm1, %v13407_v38, 0.0 }
 0xef4   :  { %5445 = vadd.xlane.f32.xlu1 %v5444_v10  ;;  %v5308_v32 = vpop.f32.mrb[145].mxu1  ;;  %v5317_v48 = vadd.f32 %v9009_v42, %v13322_v6 }
 0xef5   :  { %v5309_v57 = vadd.f32 %v13322_v6, %v5308_v32  ;;  %v9010_v27 = vpop.f32.mrb[146].mxu1 }
 0xef6   :  { %5448 = vadd.xlane.f32.xlu0 %v5447_v9  ;;  %v5311_v41 = vpop.f32.mrb[147].mxu1  ;;  %v5320_v53 = vadd.f32 %v9010_v27, %v13322_v6  ;;  %v13428_v58 = vadd.f32 %v5317_v48, %v13194_v31 }
 0xef7   :  { %v13421_v50 = vadd.f32 %v5309_v57, %v13181_v3  ;;  %v5312_v20 = vadd.f32 %v13322_v6, %v5311_v41 }
 0xef8   :  { %5451 = vadd.xlane.f32.xlu1 %v5450_v51  ;;  %v13436_v3 = vadd.f32 %v5320_v53, %v13197_v54 }
 0xef9   :  { %v13431_v39 = vadd.f32 %v5312_v20, %v13184_v59  ;;  %v5453_v44 = vsel %vm406_vm1, %v13421_v50, 0.0  ;;  %v5459_v59 = vsel %vm406_vm1, %v13428_v58, 0.0 }
 0xefa   :  { %5454 = vadd.xlane.f32.xlu0 %v5453_v44  ;;  %v5462_v5 = vsel %vm406_vm1, %v13436_v3, 0.0 }
 0xefb   :  { %v9013_v29 = vpop.f32.mrb[148].mxu1  ;;  %v5456_v47 = vsel %vm406_vm1, %v13431_v39, 0.0 }
 0xefc   :  { %5457 = vadd.xlane.f32.xlu1 %v5456_v47  ;;  %v5324_v24 = vpop.f32.mrb[149].mxu1  ;;  %v5333_v14 = vadd.f32 %v9013_v29, %v13322_v6 }
 0xefd   :  { %v5325_v31 = vadd.f32 %v13322_v6, %v5324_v24  ;;  %v9014_v43 = vpop.f32.mrb[150].mxu1 }
 0xefe   :  { %5460 = vadd.xlane.f32.xlu0 %v5459_v59  ;;  %v5327_v16 = vpop.f32.mrb[151].mxu1  ;;  %v5336_v54 = vadd.f32 %v9014_v43, %v13322_v6  ;;  %v13452_v34 = vadd.f32 %v5333_v14, %v13220_v52 }
 0xeff   :  { %v13445_v19 = vadd.f32 %v5325_v31, %v13207_v46  ;;  %v5328_v13 = vadd.f32 %v13322_v6, %v5327_v16 }
 0xf00   :  { %5463 = vadd.xlane.f32.xlu1 %v5462_v5  ;;  %v13460_v46 = vadd.f32 %v5336_v54, %v13223_v15 }
 0xf01   :  { %v13455_v30 = vadd.f32 %v5328_v13, %v13210_v12  ;;  %v5465_v35 = vsel %vm406_vm1, %v13445_v19, 0.0  ;;  %v5471_v12 = vsel %vm406_vm1, %v13452_v34, 0.0  ;;  %v9258_v13 = vld [vmem:[%s15274_s1 + $0x78] sm:$0xff]  }
 0xf02   :  { %5466 = vadd.xlane.f32.xlu0 %v5465_v35  ;;  %v5474_v57 = vsel %vm406_vm1, %v13460_v46, 0.0 }
 0xf03   :  { %v9017_v22 = vpop.f32.mrb[152].mxu1  ;;  %v5468_v28 = vsel %vm406_vm1, %v13455_v30, 0.0 }
 0xf04   :  { %5469 = vadd.xlane.f32.xlu1 %v5468_v28  ;;  %v5340_v0 = vpop.f32.mrb[153].mxu1  ;;  %v5349_v7 = vadd.f32 %v9017_v22, %v13322_v6 }
 0xf05   :  { %v5341_v52 = vadd.f32 %v13322_v6, %v5340_v0  ;;  %v9018_v42 = vpop.f32.mrb[154].mxu1 }
 0xf06   :  { %5472 = vadd.xlane.f32.xlu0 %v5471_v12  ;;  %v5343_v10 = vpop.f32.mrb[155].mxu1  ;;  %v5352_v15 = vadd.f32 %v9018_v42, %v13322_v6  ;;  %v13476_v27 = vadd.f32 %v5349_v7, %v13246_v26 }
 0xf07   :  { %v13469_v32 = vadd.f32 %v5341_v52, %v13233_v18  ;;  %v5344_v48 = vadd.f32 %v13322_v6, %v5343_v10 }
 0xf08   :  { %5475 = vadd.xlane.f32.xlu1 %v5474_v57  ;;  %v13484_v18 = vadd.f32 %v5352_v15, %v13249_v2 }
 0xf09   :  { %v13479_v9 = vadd.f32 %v5344_v48, %v13236_v63  ;;  %v5477_v41 = vsel %vm406_vm1, %v13469_v32, 0.0  ;;  %v5483_v63 = vsel %vm406_vm1, %v13476_v27, 0.0 }
 0xf0a   :  { %5478 = vadd.xlane.f32.xlu0 %v5477_v41  ;;  %v5486_v31 = vsel %vm406_vm1, %v13484_v18, 0.0 }
 0xf0b   :  { %v9021_v53 = vpop.f32.mrb[156].mxu1  ;;  %v5480_v20 = vsel %vm406_vm1, %v13479_v9, 0.0 }
 0xf0c   :  { %5481 = vadd.xlane.f32.xlu1 %v5480_v20  ;;  %v5356_v51 = vpop.f32.mrb[157].mxu1  ;;  %v5365_v44 = vadd.f32 %v9021_v53, %v13322_v6 }
 0xf0d   :  { %v5357_v26 = vadd.f32 %v13322_v6, %v5356_v51  ;;  %v9022_v29 = vpop.f32.mrb[158].mxu1 }
 0xf0e   :  { %5484 = vadd.xlane.f32.xlu0 %v5483_v63  ;;  %v5359_v47 = vpop.f32.mrb[159].mxu1  ;;  %v5368_v2 = vadd.f32 %v9022_v29, %v13322_v6  ;;  %v13500_v43 = vadd.f32 %v5365_v44, %v13271_v25 }
 0xf0f   :  { %v13493_v24 = vadd.f32 %v5357_v26, %v13259_v4  ;;  %v5360_v14 = vadd.f32 %v13322_v6, %v5359_v47 }
 0xf10   :  { %5487 = vadd.xlane.f32.xlu1 %v5486_v31  ;;  %v13508_v4 = vadd.f32 %v5368_v2, %v13274_v61  ;;  %v5495_v54 = vsel %vm406_vm1, %v13500_v43, 0.0  ;;  %v9257_v61 = vld [vmem:[%s15274_s1 + $0x70] sm:$0xff]  }
 0xf11   :  { %v13503_v59 = vadd.f32 %v5360_v14, %v13262_v37  ;;  %v5489_v16 = vsel %vm406_vm1, %v13493_v24, 0.0  ;;  %v9256_v37 = vld [vmem:[%s15274_s1 + $0x68] sm:$0xff]  }
 0xf12   :  { %5490 = vadd.xlane.f32.xlu0 %v5489_v16  ;;  %v5498_v25 = vsel %vm406_vm1, %v13508_v4, 0.0  ;;  %9023 = vmatprep.subr.bf16.mxu0 %v9256_v37 }
 0xf13   :  { %v5492_v6 = vsel %vm406_vm1, %v13503_v59, 0.0  ;;  %9024 = vmatpush3.bf16.msra.mxu0 %v9256_v37 }
 0xf14   :  { %5493 = vadd.xlane.f32.xlu1 %v5492_v6  ;;  %9025 = vmatprep.subr.bf16.mxu0 %v9257_v61 }
 0xf16   :  { %5496 = vadd.xlane.f32.xlu0 %v5495_v54 }
 0xf17   :  { %9026 = vmatpush3.bf16.msra.mxu0 %v9257_v61 }
 0xf18   :  { %5499 = vadd.xlane.f32.xlu1 %v5498_v25  ;;  %9027 = vmatprep.subr.bf16.mxu0 %v9258_v13 }
 0xf1b   :  { %9028 = vmatpush3.bf16.msra.mxu0 %v9258_v13 }
 0xf67   :  { %v5407_v5 = vpop.xlane.xlu0 %5406 }
 0xf68   :  { %v5501_v35 = vmul.f32 0.015625, %v5407_v5 }
 0xf69   :  { %v5410_v22 = vpop.xlane.xlu1 %5409 }
 0xf6a   :  { %v13526_v28 = vsub.f32 %v13327_v8, %v5501_v35  ;;  %v5502_v0 = vmul.f32 0.015625, %v5410_v22 }
 0xf6b   :  { %v5413_v7 = vpop.xlane.xlu0 %5412 }
 0xf6c   :  { %v13529_v52 = vsub.f32 %v13335_v36, %v5502_v0  ;;  %v5503_v42 = vmul.f32 0.015625, %v5413_v7  ;;  %v5565_v12 = vmul.f32 %v13526_v28, %v13526_v28 }
 0xf6d   :  { %v5416_v10 = vpop.xlane.xlu1 %5415 }
 0xf6e   :  { %v13534_v15 = vsub.f32 %v13332_v56, %v5503_v42  ;;  %v5504_v48 = vmul.f32 0.015625, %v5416_v10  ;;  %v5597_v57 = vsel %vm406_vm1, %v5565_v12, 0.0  ;;  %v5566_v8 = vmul.f32 %v13529_v52, %v13529_v52 }
 0xf6f   :  { %5598 = vadd.xlane.f32.xlu0 %v5597_v57  ;;  %v5419_v41 = vpop.xlane.xlu0 %5418 }
 0xf70   :  { %v13540_v53 = vsub.f32 %v13340_v62, %v5504_v48  ;;  %v5505_v36 = vmul.f32 0.015625, %v5419_v41  ;;  %v5600_v20 = vsel %vm406_vm1, %v5566_v8, 0.0  ;;  %v5567_v51 = vmul.f32 %v13534_v15, %v13534_v15 }
 0xf71   :  { %v5422_v44 = vpop.xlane.xlu1 %5421  ;;  %5601 = vadd.xlane.f32.xlu1 %v5600_v20 }
 0xf72   :  { %v13546_v56 = vsub.f32 %v13349_v55, %v5505_v36  ;;  %v5506_v26 = vmul.f32 0.015625, %v5422_v44  ;;  %v5603_v29 = vsel %vm406_vm1, %v5567_v51, 0.0  ;;  %v5568_v63 = vmul.f32 %v13540_v53, %v13540_v53 }
 0xf73   :  { %5604 = vadd.xlane.f32.xlu0 %v5603_v29  ;;  %v5425_v62 = vpop.xlane.xlu0 %5424 }
 0xf74   :  { %v13552_v47 = vsub.f32 %v13359_v33, %v5506_v26  ;;  %v5507_v2 = vmul.f32 0.015625, %v5425_v62  ;;  %v5606_v14 = vsel %vm406_vm1, %v5568_v63, 0.0  ;;  %v5569_v31 = vmul.f32 %v13546_v56, %v13546_v56 }
 0xf75   :  { %v5428_v16 = vpop.xlane.xlu1 %5427  ;;  %5607 = vadd.xlane.f32.xlu1 %v5606_v14 }
 0xf76   :  { %v13558_v55 = vsub.f32 %v13356_v21, %v5507_v2  ;;  %v5508_v6 = vmul.f32 0.015625, %v5428_v16  ;;  %v5609_v54 = vsel %vm406_vm1, %v5569_v31, 0.0  ;;  %v5570_v25 = vmul.f32 %v13552_v47, %v13552_v47 }
 0xf77   :  { %5610 = vadd.xlane.f32.xlu0 %v5609_v54  ;;  %v5431_v33 = vpop.xlane.xlu0 %5430 }
 0xf78   :  { %v13564_v37 = vsub.f32 %v13364_v60, %v5508_v6  ;;  %v5509_v61 = vmul.f32 0.015625, %v5431_v33  ;;  %v5612_v13 = vsel %vm406_vm1, %v5570_v25, 0.0  ;;  %v5571_v5 = vmul.f32 %v13558_v55, %v13558_v55 }
 0xf79   :  { %v5434_v35 = vpop.xlane.xlu1 %5433  ;;  %5613 = vadd.xlane.f32.xlu1 %v5612_v13 }
 0xf7a   :  { %v13570_v21 = vsub.f32 %v13373_v17, %v5509_v61  ;;  %v5510_v22 = vmul.f32 0.015625, %v5434_v35  ;;  %v5615_v0 = vsel %vm406_vm1, %v5571_v5, 0.0  ;;  %v5572_v7 = vmul.f32 %v13564_v37, %v13564_v37 }
 0xf7b   :  { %5616 = vadd.xlane.f32.xlu0 %v5615_v0  ;;  %v5437_v60 = vpop.xlane.xlu0 %5436 }
 0xf7c   :  { %v13576_v42 = vsub.f32 %v13383_v40, %v5510_v22  ;;  %v5511_v12 = vmul.f32 0.015625, %v5437_v60  ;;  %v5618_v10 = vsel %vm406_vm1, %v5572_v7, 0.0  ;;  %v5573_v48 = vmul.f32 %v13570_v21, %v13570_v21 }
 0xf7d   :  { %v5440_v57 = vpop.xlane.xlu1 %5439  ;;  %5619 = vadd.xlane.f32.xlu1 %v5618_v10 }
 0xf7e   :  { %v13582_v17 = vsub.f32 %v13380_v11, %v5511_v12  ;;  %v5512_v8 = vmul.f32 0.015625, %v5440_v57  ;;  %v5621_v41 = vsel %vm406_vm1, %v5573_v48, 0.0  ;;  %v5574_v36 = vmul.f32 %v13576_v42, %v13576_v42 }
 0xf7f   :  { %5622 = vadd.xlane.f32.xlu0 %v5621_v41  ;;  %v5443_v40 = vpop.xlane.xlu0 %5442 }
 0xf80   :  { %v13588_v20 = vsub.f32 %v13388_v45, %v5512_v8  ;;  %v5513_v51 = vmul.f32 0.015625, %v5443_v40  ;;  %v5624_v44 = vsel %vm406_vm1, %v5574_v36, 0.0  ;;  %v5575_v26 = vmul.f32 %v13582_v17, %v13582_v17 }
 0xf81   :  { %v5446_v29 = vpop.xlane.xlu1 %5445  ;;  %5625 = vadd.xlane.f32.xlu1 %v5624_v44 }
 0xf82   :  { %v13594_v11 = vsub.f32 %v13397_v23, %v5513_v51  ;;  %v5514_v63 = vmul.f32 0.015625, %v5446_v29  ;;  %v5627_v62 = vsel %vm406_vm1, %v5575_v26, 0.0  ;;  %v5576_v2 = vmul.f32 %v13588_v20, %v13588_v20 }
 0xf83   :  { %5628 = vadd.xlane.f32.xlu0 %v5627_v62  ;;  %v5449_v45 = vpop.xlane.xlu0 %5448 }
 0xf84   :  { %v13600_v14 = vsub.f32 %v13407_v38, %v5514_v63  ;;  %v5515_v31 = vmul.f32 0.015625, %v5449_v45  ;;  %v5630_v16 = vsel %vm406_vm1, %v5576_v2, 0.0  ;;  %v5577_v6 = vmul.f32 %v13594_v11, %v13594_v11 }
 0xf85   :  { %v5452_v54 = vpop.xlane.xlu1 %5451  ;;  %5631 = vadd.xlane.f32.xlu1 %v5630_v16 }
 0xf86   :  { %v13606_v23 = vsub.f32 %v13404_v1, %v5515_v31  ;;  %v5516_v25 = vmul.f32 0.015625, %v5452_v54  ;;  %v5633_v33 = vsel %vm406_vm1, %v5577_v6, 0.0  ;;  %v5578_v61 = vmul.f32 %v13600_v14, %v13600_v14 }
 0xf87   :  { %5634 = vadd.xlane.f32.xlu0 %v5633_v33  ;;  %v5455_v38 = vpop.xlane.xlu0 %5454 }
 0xf88   :  { %v13612_v13 = vsub.f32 %v13412_v49, %v5516_v25  ;;  %v5517_v5 = vmul.f32 0.015625, %v5455_v38  ;;  %v5636_v35 = vsel %vm406_vm1, %v5578_v61, 0.0  ;;  %v5579_v22 = vmul.f32 %v13606_v23, %v13606_v23 }
 0xf89   :  { %v5458_v0 = vpop.xlane.xlu1 %5457  ;;  %5637 = vadd.xlane.f32.xlu1 %v5636_v35 }
 0xf8a   :  { %v13618_v1 = vsub.f32 %v13421_v50, %v5517_v5  ;;  %v5518_v7 = vmul.f32 0.015625, %v5458_v0  ;;  %v5639_v60 = vsel %vm406_vm1, %v5579_v22, 0.0  ;;  %v5580_v12 = vmul.f32 %v13612_v13, %v13612_v13 }
 0xf8b   :  { %5640 = vadd.xlane.f32.xlu0 %v5639_v60  ;;  %v5461_v49 = vpop.xlane.xlu0 %5460 }
 0xf8c   :  { %v13624_v10 = vsub.f32 %v13431_v39, %v5518_v7  ;;  %v5519_v48 = vmul.f32 0.015625, %v5461_v49  ;;  %v5642_v57 = vsel %vm406_vm1, %v5580_v12, 0.0  ;;  %v5581_v8 = vmul.f32 %v13618_v1, %v13618_v1 }
 0xf8d   :  { %v5464_v41 = vpop.xlane.xlu1 %5463  ;;  %5643 = vadd.xlane.f32.xlu1 %v5642_v57 }
 0xf8e   :  { %v13630_v50 = vsub.f32 %v13428_v58, %v5519_v48  ;;  %v5520_v36 = vmul.f32 0.015625, %v5464_v41  ;;  %v5645_v40 = vsel %vm406_vm1, %v5581_v8, 0.0  ;;  %v5582_v51 = vmul.f32 %v13624_v10, %v13624_v10 }
 0xf8f   :  { %5646 = vadd.xlane.f32.xlu0 %v5645_v40  ;;  %v5467_v39 = vpop.xlane.xlu0 %5466 }
 0xf90   :  { %v13636_v44 = vsub.f32 %v13436_v3, %v5520_v36  ;;  %v5521_v26 = vmul.f32 0.015625, %v5467_v39  ;;  %v5648_v29 = vsel %vm406_vm1, %v5582_v51, 0.0  ;;  %v5583_v63 = vmul.f32 %v13630_v50, %v13630_v50 }
 0xf91   :  { %v5470_v62 = vpop.xlane.xlu1 %5469  ;;  %5649 = vadd.xlane.f32.xlu1 %v5648_v29 }
 0xf92   :  { %v13642_v58 = vsub.f32 %v13445_v19, %v5521_v26  ;;  %v5522_v2 = vmul.f32 0.015625, %v5470_v62  ;;  %v5651_v45 = vsel %vm406_vm1, %v5583_v63, 0.0  ;;  %v5584_v31 = vmul.f32 %v13636_v44, %v13636_v44 }
 0xf93   :  { %5652 = vadd.xlane.f32.xlu0 %v5651_v45  ;;  %v5473_v3 = vpop.xlane.xlu0 %5472 }
 0xf94   :  { %v13648_v16 = vsub.f32 %v13455_v30, %v5522_v2  ;;  %v5523_v6 = vmul.f32 0.015625, %v5473_v3  ;;  %v5654_v54 = vsel %vm406_vm1, %v5584_v31, 0.0  ;;  %v5585_v25 = vmul.f32 %v13642_v58, %v13642_v58  ;;  %v9259_v30 = vld [vmem:[%s15274_s1 + $0x80] sm:$0xff]  }
 0xf95   :  { %v5476_v33 = vpop.xlane.xlu1 %5475  ;;  %5655 = vadd.xlane.f32.xlu1 %v5654_v54  ;;  %9029 = vmatprep.subr.bf16.mxu0 %v9259_v30 }
 0xf96   :  { %v13654_v19 = vsub.f32 %v13452_v34, %v5523_v6  ;;  %v5524_v61 = vmul.f32 0.015625, %v5476_v33  ;;  %v5657_v38 = vsel %vm406_vm1, %v5585_v25, 0.0  ;;  %v5586_v5 = vmul.f32 %v13648_v16, %v13648_v16  ;;  %9030 = vmatpush3.bf16.msra.mxu0 %v9259_v30 }
 0xf97   :  { %5658 = vadd.xlane.f32.xlu0 %v5657_v38  ;;  %v5479_v35 = vpop.xlane.xlu0 %5478 }
 0xf98   :  { %v13663_v22 = vsub.f32 %v13460_v46, %v5524_v61  ;;  %v5525_v0 = vmul.f32 0.015625, %v5479_v35  ;;  %v5660_v7 = vsel %vm406_vm1, %v5586_v5, 0.0  ;;  %v5587_v34 = vmul.f32 %v13654_v19, %v13654_v19 }
 0xf99   :  { %v5482_v60 = vpop.xlane.xlu1 %5481  ;;  %5661 = vadd.xlane.f32.xlu1 %v5660_v7 }
 0xf9a   :  { %v13669_v12 = vsub.f32 %v13469_v32, %v5525_v0  ;;  %v5526_v49 = vmul.f32 0.015625, %v5482_v60  ;;  %v5663_v48 = vsel %vm406_vm1, %v5587_v34, 0.0  ;;  %v5588_v46 = vmul.f32 %v13663_v22, %v13663_v22 }
 0xf9b   :  { %5664 = vadd.xlane.f32.xlu0 %v5663_v48  ;;  %v5485_v57 = vpop.xlane.xlu0 %5484 }
 0xf9c   :  { %v13675_v8 = vsub.f32 %v13479_v9, %v5526_v49  ;;  %v5527_v41 = vmul.f32 0.015625, %v5485_v57  ;;  %v5666_v36 = vsel %vm406_vm1, %v5588_v46, 0.0  ;;  %v5589_v40 = vmul.f32 %v13669_v12, %v13669_v12 }
 0xf9d   :  { %v5488_v51 = vpop.xlane.xlu1 %5487  ;;  %5667 = vadd.xlane.f32.xlu1 %v5666_v36 }
 0xf9e   :  { %v13681_v32 = vsub.f32 %v13476_v27, %v5527_v41  ;;  %v5528_v39 = vmul.f32 0.015625, %v5488_v51  ;;  %v5669_v26 = vsel %vm406_vm1, %v5589_v40, 0.0  ;;  %v5590_v29 = vmul.f32 %v13675_v8, %v13675_v8 }
 0xf9f   :  { %5670 = vadd.xlane.f32.xlu0 %v5669_v26  ;;  %v5491_v9 = vpop.xlane.xlu0 %5490 }
 0xfa0   :  { %v13687_v63 = vsub.f32 %v13484_v18, %v5528_v39  ;;  %v5529_v62 = vmul.f32 0.015625, %v5491_v9  ;;  %v5672_v2 = vsel %vm406_vm1, %v5590_v29, 0.0  ;;  %v5591_v45 = vmul.f32 %v13681_v32, %v13681_v32 }
 0xfa1   :  { %5673 = vadd.xlane.f32.xlu1 %v5672_v2  ;;  %v5494_v27 = vpop.xlane.xlu1 %5493 }
 0xfa2   :  { %v13693_v31 = vsub.f32 %v13493_v24, %v5529_v62  ;;  %v5530_v3 = vmul.f32 0.015625, %v5494_v27  ;;  %v5675_v6 = vsel %vm406_vm1, %v5591_v45, 0.0  ;;  %v5592_v54 = vmul.f32 %v13687_v63, %v13687_v63 }
 0xfa3   :  { %5676 = vadd.xlane.f32.xlu0 %v5675_v6  ;;  %v5497_v18 = vpop.xlane.xlu0 %5496 }
 0xfa4   :  { %v13699_v25 = vsub.f32 %v13503_v59, %v5530_v3  ;;  %v5531_v33 = vmul.f32 0.015625, %v5497_v18  ;;  %v5678_v61 = vsel %vm406_vm1, %v5592_v54, 0.0  ;;  %v5593_v38 = vmul.f32 %v13693_v31, %v13693_v31 }
 0xfa5   :  { %5679 = vadd.xlane.f32.xlu1 %v5678_v61  ;;  %v5500_v24 = vpop.xlane.xlu1 %5499 }
 0xfa6   :  { %v13705_v5 = vsub.f32 %v13500_v43, %v5531_v33  ;;  %v5532_v30 = vmul.f32 0.015625, %v5500_v24  ;;  %v5681_v35 = vsel %vm406_vm1, %v5593_v38, 0.0  ;;  %v5594_v0 = vmul.f32 %v13699_v25, %v13699_v25  ;;  %v13723_v38 = vld [vmem:[%s15276_s3 + $0x15] ss:$0 sm:$0xff] }
 0xfa7   :  { %5682 = vadd.xlane.f32.xlu0 %v5681_v35 }
 0xfa8   :  { %v13711_v59 = vsub.f32 %v13508_v4, %v5532_v30  ;;  %v5684_v7 = vsel %vm406_vm1, %v5594_v0, 0.0  ;;  %v5595_v34 = vmul.f32 %v13705_v5, %v13705_v5 }
 0xfa9   :  { %5685 = vadd.xlane.f32.xlu1 %v5684_v7 }
 0xfaa   :  { %v5687_v60 = vsel %vm406_vm1, %v5595_v34, 0.0  ;;  %v5596_v43 = vmul.f32 %v13711_v59, %v13711_v59 }
 0xfab   :  { %5688 = vadd.xlane.f32.xlu0 %v5687_v60 }
 0xfac   :  { %v5690_v49 = vsel %vm406_vm1, %v5596_v43, 0.0 }
 0xfad   :  { %5691 = vadd.xlane.f32.xlu1 %v5690_v49 }
 0xffc   :  { %v5599_v48 = vpop.xlane.xlu0 %5598 }
 0xffd   :  { %v5693_v46 = vmul.f32 0.015625, %v5599_v48 }
 0xffe   :  { %v5602_v57 = vpop.xlane.xlu1 %5601 }
 0xfff   :  { %v5725_v4 = vadd.f32 1e-05, %v5693_v46  ;;  %v5694_v41 = vmul.f32 0.015625, %v5602_v57  ;;  %v13731_v57 = vld [vmem:[%s15276_s3 + $0x16] ss:$0 sm:$0xff] }
0x1000   :  { %v5605_v36 = vpop.xlane.xlu0 %5604 }
0x1001   :  { %9596 = vrsqrt.f32 %v5725_v4  ;;  %v5726_v40 = vadd.f32 1e-05, %v5694_v41  ;;  %v5695_v51 = vmul.f32 0.015625, %v5605_v36 }
0x1002   :  { %v5608_v39 = vpop.xlane.xlu1 %5607 }
0x1003   :  { %9598 = vrsqrt.f32 %v5726_v40  ;;  %v5727_v26 = vadd.f32 1e-05, %v5695_v51  ;;  %v5696_v29 = vmul.f32 0.015625, %v5608_v39 }
0x1004   :  { %v5611_v9 = vpop.xlane.xlu0 %5610 }
0x1005   :  { %9600 = vrsqrt.f32 %v5727_v26  ;;  %v5728_v62 = vadd.f32 1e-05, %v5696_v29  ;;  %v5697_v2 = vmul.f32 0.015625, %v5611_v9 }
0x1006   :  { %v5614_v45 = vpop.xlane.xlu1 %5613 }
0x1007   :  { %9602 = vrsqrt.f32 %v5728_v62  ;;  %v5729_v27 = vadd.f32 1e-05, %v5697_v2  ;;  %v5698_v3 = vmul.f32 0.015625, %v5614_v45 }
0x1008   :  { %v5617_v6 = vpop.xlane.xlu0 %5616 }
0x1009   :  { %9604 = vrsqrt.f32 %v5729_v27  ;;  %v5730_v54 = vadd.f32 1e-05, %v5698_v3  ;;  %v5699_v18 = vmul.f32 0.015625, %v5617_v6 }
0x100a   :  { %v5620_v33 = vpop.xlane.xlu1 %5619 }
0x100b   :  { %v9597_v61 = vpop.eup %9596  ;;  %9606 = vrsqrt.f32 %v5730_v54  ;;  %v5731_v24 = vadd.f32 1e-05, %v5699_v18  ;;  %v5700_v30 = vmul.f32 0.015625, %v5620_v33 }
0x100c   :  { %v5623_v35 = vpop.xlane.xlu0 %5622  ;;  %v5789_v0 = vmul.f32 %v9597_v61, %v13526_v28 }
0x100d   :  { %v9599_v7 = vpop.eup %9598  ;;  %9608 = vrsqrt.f32 %v5731_v24  ;;  %v5732_v34 = vadd.f32 1e-05, %v5700_v30  ;;  %v5701_v60 = vmul.f32 0.015625, %v5623_v35 }
0x100e   :  { %v5626_v43 = vpop.xlane.xlu1 %5625  ;;  %v5790_v49 = vmul.f32 %v9599_v7, %v13529_v52  ;;  %v5825_v48 = vmul.f32 %v13723_v38, %v5789_v0 }
0x100f   :  { %v9601_v46 = vpop.eup %9600  ;;  %9610 = vrsqrt.f32 %v5732_v34  ;;  %v5733_v4 = vadd.f32 1e-05, %v5701_v60  ;;  %v5702_v41 = vmul.f32 0.015625, %v5626_v43 }
0x1010   :  { %v5791_v28 = vmul.f32 %v9601_v46, %v13534_v15  ;;  %v5629_v36 = vpop.xlane.xlu0 %5628  ;;  %v5826_v40 = vmul.f32 %v13723_v38, %v5790_v49  ;;  %v13738_v62 = vadd.f32 %v13731_v57, %v5825_v48 }
0x1011   :  { %v9603_v51 = vpop.eup %9602  ;;  %9612 = vrsqrt.f32 %v5733_v4  ;;  %v5734_v39 = vadd.f32 1e-05, %v5702_v41  ;;  %v5703_v52 = vmul.f32 0.015625, %v5629_v36 }
0x1012   :  { %v5827_v26 = vmul.f32 %v13723_v38, %v5791_v28  ;;  %v5792_v29 = vmul.f32 %v9603_v51, %v13540_v53  ;;  %v5632_v9 = vpop.xlane.xlu1 %5631  ;;  %v13741_v2 = vadd.f32 %v13731_v57, %v5826_v40 }
0x1013   :  { %v9605_v45 = vpop.eup %9604  ;;  %9614 = vrsqrt.f32 %v5734_v39  ;;  %v5735_v15 = vadd.f32 1e-05, %v5703_v52  ;;  %v5704_v27 = vmul.f32 0.015625, %v5632_v9 }
0x1014   :  { %v5828_v3 = vmul.f32 %v13723_v38, %v5792_v29  ;;  %v5635_v6 = vpop.xlane.xlu0 %5634  ;;  %v5901_v54 = vpack.c.bf16 %v13741_v2, %v13738_v62  ;;  %v5793_v18 = vmul.f32 %v9605_v45, %v13546_v56  ;;  %v13748_v24 = vadd.f32 %v13731_v57, %v5827_v26 }
0x1015   :  { %v9607_v53 = vpop.eup %9606  ;;  %9616 = vrsqrt.f32 %v5735_v15  ;;  %v5736_v33 = vadd.f32 1e-05, %v5704_v27  ;;  %v5705_v61 = vmul.f32 0.015625, %v5635_v6 }
0x1016   :  { %v13751_v30 = vadd.f32 %v13731_v57, %v5828_v3  ;;  %v5638_v35 = vpop.xlane.xlu1 %5637  ;;  %9031 = vmatprep.mubr.msk.bf16.mxu0 %vm406_vm1, %v5901_v54  ;;  %v5794_v0 = vmul.f32 %v9607_v53, %v13552_v47  ;;  %v5829_v7 = vmul.f32 %v13723_v38, %v5793_v18 }
0x1017   :  { %v9609_v34 = vpop.eup %9608  ;;  %9618 = vrsqrt.f32 %v5736_v33  ;;  %v5737_v56 = vadd.f32 1e-05, %v5705_v61  ;;  %v5706_v60 = vmul.f32 0.015625, %v5638_v35 }
0x1018   :  { %v5641_v43 = vpop.xlane.xlu0 %5640  ;;  %v5902_v49 = vpack.c.bf16 %v13751_v30, %v13748_v24  ;;  %v5830_v48 = vmul.f32 %v13723_v38, %v5794_v0  ;;  %v5795_v46 = vmul.f32 %v9609_v34, %v13558_v55  ;;  %v13762_v47 = vadd.f32 %v13731_v57, %v5829_v7 }
0x1019   :  { %v9611_v4 = vpop.eup %9610  ;;  %9620 = vrsqrt.f32 %v5737_v56  ;;  %v5738_v41 = vadd.f32 1e-05, %v5706_v60  ;;  %v5707_v28 = vmul.f32 0.015625, %v5641_v43 }
0x101a   :  { %v5644_v36 = vpop.xlane.xlu1 %5643  ;;  %9032 = vmatmul.mubr.msk.bf16.vlgmr.msra.gmra.mrb[160].mxu0 %vm406_vm1, %v5902_v49  ;;  %v13765_v40 = vadd.f32 %v13731_v57, %v5830_v48  ;;  %v5796_v51 = vmul.f32 %v9611_v4, %v13564_v37  ;;  %v5831_v39 = vmul.f32 %v13723_v38, %v5795_v46 }
0x101b   :  { %v9613_v52 = vpop.eup %9612  ;;  %9622 = vrsqrt.f32 %v5738_v41  ;;  %v5739_v55 = vadd.f32 1e-05, %v5707_v28  ;;  %v5708_v26 = vmul.f32 0.015625, %v5644_v36 }
0x101c   :  { %v5647_v29 = vpop.xlane.xlu0 %5646  ;;  %v5903_v9 = vpack.c.bf16 %v13765_v40, %v13762_v47  ;;  %v5832_v45 = vmul.f32 %v13723_v38, %v5796_v51  ;;  %v5797_v15 = vmul.f32 %v9613_v52, %v13570_v21  ;;  %v13775_v37 = vadd.f32 %v13731_v57, %v5831_v39 }
0x101d   :  { %v9615_v27 = vpop.eup %9614  ;;  %9624 = vrsqrt.f32 %v5739_v55  ;;  %v5740_v3 = vadd.f32 1e-05, %v5708_v26  ;;  %v5709_v6 = vmul.f32 0.015625, %v5647_v29 }
0x101e   :  { %v5650_v54 = vpop.xlane.xlu1 %5649  ;;  %9035 = vmatprep.mubr.msk.bf16.mxu0 %vm406_vm1, %v5903_v9  ;;  %v13778_v18 = vadd.f32 %v13731_v57, %v5832_v45  ;;  %v5798_v53 = vmul.f32 %v9615_v27, %v13576_v42  ;;  %v5833_v33 = vmul.f32 %v13723_v38, %v5797_v15 }
0x101f   :  { %v9617_v61 = vpop.eup %9616  ;;  %9626 = vrsqrt.f32 %v5740_v3  ;;  %v5741_v21 = vadd.f32 1e-05, %v5709_v6  ;;  %v5710_v35 = vmul.f32 0.015625, %v5650_v54 }
0x1020   :  { %v5653_v0 = vpop.xlane.xlu0 %5652  ;;  %v5904_v7 = vpack.c.bf16 %v13778_v18, %v13775_v37  ;;  %v5834_v34 = vmul.f32 %v13723_v38, %v5798_v53  ;;  %v5799_v56 = vmul.f32 %v9617_v61, %v13582_v17  ;;  %v13788_v42 = vadd.f32 %v13731_v57, %v5833_v33 }
0x1021   :  { %v9619_v60 = vpop.eup %9618  ;;  %9628 = vrsqrt.f32 %v5741_v21  ;;  %v5742_v43 = vadd.f32 1e-05, %v5710_v35  ;;  %v5711_v49 = vmul.f32 0.015625, %v5653_v0 }
0x1022   :  { %v5656_v48 = vpop.xlane.xlu1 %5655  ;;  %9036 = vmatmul.mubr.msk.bf16.gmra.mrb[164].mxu0 %vm406_vm1, %v5904_v7  ;;  %v13791_v46 = vadd.f32 %v13731_v57, %v5834_v34  ;;  %v5800_v4 = vmul.f32 %v9619_v60, %v13588_v20  ;;  %v5835_v41 = vmul.f32 %v13723_v38, %v5799_v56 }
0x1023   :  { %v9621_v28 = vpop.eup %9620  ;;  %9630 = vrsqrt.f32 %v5742_v43  ;;  %v5743_v17 = vadd.f32 1e-05, %v5711_v49  ;;  %v5712_v36 = vmul.f32 0.015625, %v5656_v48 }
0x1024   :  { %v5659_v51 = vpop.xlane.xlu0 %5658  ;;  %v5905_v39 = vpack.c.bf16 %v13791_v46, %v13788_v42  ;;  %v5836_v52 = vmul.f32 %v13723_v38, %v5800_v4  ;;  %v5801_v55 = vmul.f32 %v9621_v28, %v13594_v11  ;;  %v13801_v20 = vadd.f32 %v13731_v57, %v5835_v41 }
0x1025   :  { %v9623_v26 = vpop.eup %9622  ;;  %9632 = vrsqrt.f32 %v5743_v17  ;;  %v5744_v29 = vadd.f32 1e-05, %v5712_v36  ;;  %v5713_v9 = vmul.f32 0.015625, %v5659_v51 }
0x1026   :  { %v5662_v45 = vpop.xlane.xlu1 %5661  ;;  %9039 = vmatprep.mubr.msk.bf16.mxu0 %vm406_vm1, %v5905_v39  ;;  %v13804_v15 = vadd.f32 %v13731_v57, %v5836_v52  ;;  %v5802_v27 = vmul.f32 %v9623_v26, %v13600_v14  ;;  %v5837_v3 = vmul.f32 %v13723_v38, %v5801_v55 }
0x1027   :  { %v9625_v6 = vpop.eup %9624  ;;  %9634 = vrsqrt.f32 %v5744_v29  ;;  %v5745_v11 = vadd.f32 1e-05, %v5713_v9  ;;  %v5714_v54 = vmul.f32 0.015625, %v5662_v45 }
0x1028   :  { %v5665_v53 = vpop.xlane.xlu0 %5664  ;;  %v5906_v33 = vpack.c.bf16 %v13804_v15, %v13801_v20  ;;  %v5838_v61 = vmul.f32 %v13723_v38, %v5802_v27  ;;  %v5803_v21 = vmul.f32 %v9625_v6, %v13606_v23  ;;  %v13814_v14 = vadd.f32 %v13731_v57, %v5837_v3 }
0x1029   :  { %v9627_v35 = vpop.eup %9626  ;;  %9636 = vrsqrt.f32 %v5745_v11  ;;  %v5746_v0 = vadd.f32 1e-05, %v5714_v54  ;;  %v5715_v7 = vmul.f32 0.015625, %v5665_v53 }
0x102a   :  { %v5668_v34 = vpop.xlane.xlu1 %5667  ;;  %9040 = vmatmul.mubr.msk.bf16.gmra.mrb[168].mxu0 %vm406_vm1, %v5906_v33  ;;  %v13817_v56 = vadd.f32 %v13731_v57, %v5838_v61  ;;  %v5804_v60 = vmul.f32 %v9627_v35, %v13612_v13  ;;  %v5839_v43 = vmul.f32 %v13723_v38, %v5803_v21 }
0x102b   :  { %v9629_v49 = vpop.eup %9628  ;;  %9638 = vrsqrt.f32 %v5746_v0  ;;  %v5747_v23 = vadd.f32 1e-05, %v5715_v7  ;;  %v5716_v48 = vmul.f32 0.015625, %v5668_v34 }
0x102c   :  { %v5671_v4 = vpop.xlane.xlu0 %5670  ;;  %v5907_v41 = vpack.c.bf16 %v13817_v56, %v13814_v14  ;;  %v5840_v28 = vmul.f32 %v13723_v38, %v5804_v60  ;;  %v5805_v17 = vmul.f32 %v9629_v49, %v13618_v1  ;;  %v13827_v13 = vadd.f32 %v13731_v57, %v5839_v43 }
0x102d   :  { %v9631_v36 = vpop.eup %9630  ;;  %9640 = vrsqrt.f32 %v5747_v23  ;;  %v5748_v51 = vadd.f32 1e-05, %v5716_v48  ;;  %v5717_v39 = vmul.f32 0.015625, %v5671_v4 }
0x102e   :  { %v5674_v52 = vpop.xlane.xlu1 %5673  ;;  %9043 = vmatprep.mubr.msk.bf16.mxu0 %vm406_vm1, %v5907_v41  ;;  %v13830_v55 = vadd.f32 %v13731_v57, %v5840_v28  ;;  %v5806_v26 = vmul.f32 %v9631_v36, %v13624_v10  ;;  %v5841_v29 = vmul.f32 %v13723_v38, %v5805_v17 }
0x102f   :  { %v9633_v9 = vpop.eup %9632  ;;  %9642 = vrsqrt.f32 %v5748_v51  ;;  %v5749_v1 = vadd.f32 1e-05, %v5717_v39  ;;  %v5718_v45 = vmul.f32 0.015625, %v5674_v52 }
0x1030   :  { %v5677_v27 = vpop.xlane.xlu0 %5676  ;;  %v5908_v3 = vpack.c.bf16 %v13830_v55, %v13827_v13  ;;  %v5842_v6 = vmul.f32 %v13723_v38, %v5806_v26  ;;  %v5807_v11 = vmul.f32 %v9633_v9, %v13630_v50  ;;  %v13840_v10 = vadd.f32 %v13731_v57, %v5841_v29 }
0x1031   :  { %v9635_v54 = vpop.eup %9634  ;;  %9644 = vrsqrt.f32 %v5749_v1  ;;  %v5750_v53 = vadd.f32 1e-05, %v5718_v45  ;;  %v5719_v33 = vmul.f32 0.015625, %v5677_v27 }
0x1032   :  { %v5680_v61 = vpop.xlane.xlu1 %5679  ;;  %9044 = vmatmul.mubr.msk.bf16.gmra.mrb[172].mxu0 %vm406_vm1, %v5908_v3  ;;  %v13843_v21 = vadd.f32 %v13731_v57, %v5842_v6  ;;  %v5808_v35 = vmul.f32 %v9635_v54, %v13636_v44  ;;  %v5843_v0 = vmul.f32 %v13723_v38, %v5807_v11 }
0x1033   :  { %v9637_v7 = vpop.eup %9636  ;;  %9646 = vrsqrt.f32 %v5750_v53  ;;  %v5751_v50 = vadd.f32 1e-05, %v5719_v33  ;;  %v5720_v34 = vmul.f32 0.015625, %v5680_v61 }
0x1034   :  { %v5683_v60 = vpop.xlane.xlu0 %5682  ;;  %v5909_v43 = vpack.c.bf16 %v13843_v21, %v13840_v10  ;;  %v5844_v49 = vmul.f32 %v13723_v38, %v5808_v35  ;;  %v5809_v23 = vmul.f32 %v9637_v7, %v13642_v58  ;;  %v13853_v44 = vadd.f32 %v13731_v57, %v5843_v0 }
0x1035   :  { %v9639_v48 = vpop.eup %9638  ;;  %9648 = vrsqrt.f32 %v5751_v50  ;;  %v5752_v4 = vadd.f32 1e-05, %v5720_v34  ;;  %v5721_v41 = vmul.f32 0.015625, %v5683_v60 }
0x1036   :  { %v5686_v28 = vpop.xlane.xlu1 %5685  ;;  %9047 = vmatprep.mubr.msk.bf16.mxu0 %vm406_vm1, %v5909_v43  ;;  %v13856_v17 = vadd.f32 %v13731_v57, %v5844_v49  ;;  %v5810_v36 = vmul.f32 %v9639_v48, %v13648_v16  ;;  %v5845_v51 = vmul.f32 %v13723_v38, %v5809_v23 }
0x1037   :  { %v9641_v39 = vpop.eup %9640  ;;  %9650 = vrsqrt.f32 %v5752_v4  ;;  %v5753_v58 = vadd.f32 1e-05, %v5721_v41  ;;  %v5722_v52 = vmul.f32 0.015625, %v5686_v28 }
0x1038   :  { %v5689_v26 = vpop.xlane.xlu0 %5688  ;;  %v5910_v29 = vpack.c.bf16 %v13856_v17, %v13853_v44  ;;  %v5846_v9 = vmul.f32 %v13723_v38, %v5810_v36  ;;  %v5811_v1 = vmul.f32 %v9641_v39, %v13654_v19  ;;  %v13866_v16 = vadd.f32 %v13731_v57, %v5845_v51 }
0x1039   :  { %v9643_v45 = vpop.eup %9642  ;;  %9652 = vrsqrt.f32 %v5753_v58  ;;  %v5754_v27 = vadd.f32 1e-05, %v5722_v52  ;;  %v5723_v3 = vmul.f32 0.015625, %v5689_v26 }
0x103a   :  { %v5692_v6 = vpop.xlane.xlu1 %5691  ;;  %9048 = vmatmul.mubr.msk.bf16.gmra.mrb[176].mxu0 %vm406_vm1, %v5910_v29  ;;  %v13869_v11 = vadd.f32 %v13731_v57, %v5846_v9  ;;  %v5812_v54 = vmul.f32 %v9643_v45, %v13663_v22  ;;  %v5847_v53 = vmul.f32 %v13723_v38, %v5811_v1 }
0x103b   :  { %v9645_v33 = vpop.eup %9644  ;;  %9654 = vrsqrt.f32 %v5754_v27  ;;  %v5755_v19 = vadd.f32 1e-05, %v5723_v3  ;;  %v5724_v61 = vmul.f32 0.015625, %v5692_v6 }
0x103c   :  { %v5911_v35 = vpack.c.bf16 %v13869_v11, %v13866_v16  ;;  %v5848_v0 = vmul.f32 %v13723_v38, %v5812_v54  ;;  %v5813_v7 = vmul.f32 %v9645_v33, %v13669_v12  ;;  %v13879_v22 = vadd.f32 %v13731_v57, %v5847_v53 }
0x103d   :  { %v9647_v50 = vpop.eup %9646  ;;  %9656 = vrsqrt.f32 %v5755_v19  ;;  %v5756_v34 = vadd.f32 1e-05, %v5724_v61 }
0x103e   :  { %9051 = vmatprep.mubr.msk.bf16.mxu0 %vm406_vm1, %v5911_v35  ;;  %v13882_v60 = vadd.f32 %v13731_v57, %v5848_v0  ;;  %v5814_v43 = vmul.f32 %v9647_v50, %v13675_v8  ;;  %v5849_v49 = vmul.f32 %v13723_v38, %v5813_v7 }
0x103f   :  { %v9649_v23 = vpop.eup %9648  ;;  %9658 = vrsqrt.f32 %v5756_v34 }
0x1040   :  { %v5912_v12 = vpack.c.bf16 %v13882_v60, %v13879_v22  ;;  %v5850_v48 = vmul.f32 %v13723_v38, %v5814_v43  ;;  %v5815_v4 = vmul.f32 %v9649_v23, %v13681_v32  ;;  %v13892_v28 = vadd.f32 %v13731_v57, %v5849_v49 }
0x1041   :  { %v9651_v41 = vpop.eup %9650 }
0x1042   :  { %9052 = vmatmul.mubr.msk.bf16.gmra.mrb[180].mxu0 %vm406_vm1, %v5912_v12  ;;  %v13895_v36 = vadd.f32 %v13731_v57, %v5850_v48  ;;  %v5816_v8 = vmul.f32 %v9651_v41, %v13687_v63  ;;  %v5851_v51 = vmul.f32 %v13723_v38, %v5815_v4 }
0x1043   :  { %v9653_v39 = vpop.eup %9652 }
0x1044   :  { %v5913_v58 = vpack.c.bf16 %v13895_v36, %v13892_v28  ;;  %v5852_v52 = vmul.f32 %v13723_v38, %v5816_v8  ;;  %v5817_v32 = vmul.f32 %v9653_v39, %v13693_v31  ;;  %v13905_v29 = vadd.f32 %v13731_v57, %v5851_v51 }
0x1045   :  { %v9655_v26 = vpop.eup %9654 }
0x1046   :  { %9055 = vmatprep.mubr.msk.bf16.mxu0 %vm406_vm1, %v5913_v58  ;;  %v13908_v9 = vadd.f32 %v13731_v57, %v5852_v52  ;;  %v5818_v63 = vmul.f32 %v9655_v26, %v13699_v25  ;;  %v5853_v1 = vmul.f32 %v13723_v38, %v5817_v32 }
0x1047   :  { %v9657_v45 = vpop.eup %9656 }
0x1048   :  { %v5914_v27 = vpack.c.bf16 %v13908_v9, %v13905_v29  ;;  %v5854_v3 = vmul.f32 %v13723_v38, %v5818_v63  ;;  %v5819_v31 = vmul.f32 %v9657_v45, %v13705_v5  ;;  %v13918_v54 = vadd.f32 %v13731_v57, %v5853_v1 }
0x1049   :  { %v9659_v6 = vpop.eup %9658 }
0x104a   :  { %9056 = vmatmul.mubr.msk.bf16.gmra.mrb[184].mxu0 %vm406_vm1, %v5914_v27  ;;  %v13921_v53 = vadd.f32 %v13731_v57, %v5854_v3  ;;  %v5820_v25 = vmul.f32 %v9659_v6, %v13711_v59  ;;  %v5855_v33 = vmul.f32 %v13723_v38, %v5819_v31  ;;  %v13941_v59 = vld [vmem:[%s15276_s3 + $0x17] ss:$0 sm:$0xff] }
0x104c   :  { %v5915_v19 = vpack.c.bf16 %v13921_v53, %v13918_v54  ;;  %v5856_v61 = vmul.f32 %v13723_v38, %v5820_v25  ;;  %v13930_v5 = vadd.f32 %v13731_v57, %v5855_v33 }
0x104e   :  { %9059 = vmatprep.mubr.msk.bf16.mxu0 %vm406_vm1, %v5915_v19  ;;  %v13933_v35 = vadd.f32 %v13731_v57, %v5856_v61 }
0x1050   :  { %v5916_v0 = vpack.c.bf16 %v13933_v35, %v13930_v5 }
0x1052   :  { %9060 = vmatmul.mubr.msk.bf16.gmra.mrb[188].mxu0 %vm406_vm1, %v5916_v0 }
0x10ed   :  { %v9033_v7 = vpop.f32.mrb[160].mxu0 }
0x10ee   :  { %v6028_v38 = vpop.f32.mrb[161].mxu0  ;;  %v6037_v50 = vadd.f32 %v9033_v7, %v13941_v59 }
0x10ef   :  { %v6029_v34 = vadd.f32 %v13941_v59, %v6028_v38  ;;  %v9034_v43 = vpop.f32.mrb[162].mxu0 }
0x10f0   :  { %v6031_v49 = vpop.f32.mrb[163].mxu0  ;;  %v6040_v23 = vadd.f32 %v9034_v43, %v13941_v59  ;;  %v13951_v48 = vadd.f32 %v6037_v50, %v13748_v24 }
0x10f1   :  { %v13946_v57 = vadd.f32 %v6029_v34, %v13738_v62  ;;  %v6032_v12 = vadd.f32 %v13941_v59, %v6031_v49 }
0x10f2   :  { %v13959_v8 = vadd.f32 %v6040_v23, %v13751_v30 }
0x10f3   :  { %v13954_v4 = vadd.f32 %v6032_v12, %v13741_v2  ;;  %v6189_v41 = vsel %vm406_vm1, %v13946_v57, 0.0  ;;  %v6195_v2 = vsel %vm406_vm1, %v13951_v48, 0.0 }
0x10f4   :  { %6190 = vadd.xlane.f32.xlu0 %v6189_v41  ;;  %v6198_v1 = vsel %vm406_vm1, %v13959_v8, 0.0 }
0x10f5   :  { %v9037_v51 = vpop.f32.mrb[164].mxu0  ;;  %v6192_v62 = vsel %vm406_vm1, %v13954_v4, 0.0 }
0x10f6   :  { %6193 = vadd.xlane.f32.xlu1 %v6192_v62  ;;  %v6044_v39 = vpop.f32.mrb[165].mxu0  ;;  %v6053_v58 = vadd.f32 %v9037_v51, %v13941_v59 }
0x10f7   :  { %v6045_v24 = vadd.f32 %v13941_v59, %v6044_v39  ;;  %v9038_v52 = vpop.f32.mrb[166].mxu0 }
0x10f8   :  { %6196 = vadd.xlane.f32.xlu0 %v6195_v2  ;;  %v6047_v32 = vpop.f32.mrb[167].mxu0  ;;  %v6056_v30 = vadd.f32 %v9038_v52, %v13941_v59  ;;  %v13975_v45 = vadd.f32 %v6053_v58, %v13775_v37 }
0x10f9   :  { %v13968_v26 = vadd.f32 %v6045_v24, %v13762_v47  ;;  %v6048_v63 = vadd.f32 %v13941_v59, %v6047_v32 }
0x10fa   :  { %6199 = vadd.xlane.f32.xlu1 %v6198_v1  ;;  %v13983_v47 = vadd.f32 %v6056_v30, %v13778_v18 }
0x10fb   :  { %v13978_v27 = vadd.f32 %v6048_v63, %v13765_v40  ;;  %v6201_v3 = vsel %vm406_vm1, %v13968_v26, 0.0  ;;  %v6207_v40 = vsel %vm406_vm1, %v13975_v45, 0.0 }
0x10fc   :  { %6202 = vadd.xlane.f32.xlu0 %v6201_v3  ;;  %v6210_v38 = vsel %vm406_vm1, %v13983_v47, 0.0 }
0x10fd   :  { %v9041_v31 = vpop.f32.mrb[168].mxu0  ;;  %v6204_v6 = vsel %vm406_vm1, %v13978_v27, 0.0 }
0x10fe   :  { %6205 = vadd.xlane.f32.xlu1 %v6204_v6  ;;  %v6060_v25 = vpop.f32.mrb[169].mxu0  ;;  %v6069_v33 = vadd.f32 %v9041_v31, %v13941_v59 }
0x10ff   :  { %v6061_v37 = vadd.f32 %v13941_v59, %v6060_v25  ;;  %v9042_v19 = vpop.f32.mrb[170].mxu0 }
0x1100   :  { %6208 = vadd.xlane.f32.xlu0 %v6207_v40  ;;  %v6063_v61 = vpop.f32.mrb[171].mxu0  ;;  %v6072_v18 = vadd.f32 %v9042_v19, %v13941_v59  ;;  %v13999_v50 = vadd.f32 %v6069_v33, %v13801_v20 }
0x1101   :  { %v13992_v0 = vadd.f32 %v6061_v37, %v13788_v42  ;;  %v6064_v7 = vadd.f32 %v13941_v59, %v6063_v61 }
0x1102   :  { %6211 = vadd.xlane.f32.xlu1 %v6210_v38  ;;  %v14007_v42 = vadd.f32 %v6072_v18, %v13804_v15 }
0x1103   :  { %v14002_v34 = vadd.f32 %v6064_v7, %v13791_v46  ;;  %v6213_v43 = vsel %vm406_vm1, %v13992_v0, 0.0  ;;  %v6219_v46 = vsel %vm406_vm1, %v13999_v50, 0.0 }
0x1104   :  { %6214 = vadd.xlane.f32.xlu0 %v6213_v43  ;;  %v6222_v24 = vsel %vm406_vm1, %v14007_v42, 0.0 }
0x1105   :  { %v9045_v49 = vpop.f32.mrb[172].mxu0  ;;  %v6216_v23 = vsel %vm406_vm1, %v14002_v34, 0.0 }
0x1106   :  { %6217 = vadd.xlane.f32.xlu1 %v6216_v23  ;;  %v6076_v12 = vpop.f32.mrb[173].mxu0  ;;  %v6085_v41 = vadd.f32 %v9045_v49, %v13941_v59 }
0x1107   :  { %v6077_v20 = vadd.f32 %v13941_v59, %v6076_v12  ;;  %v9046_v51 = vpop.f32.mrb[174].mxu0 }
0x1108   :  { %6220 = vadd.xlane.f32.xlu0 %v6219_v46  ;;  %v6079_v62 = vpop.f32.mrb[175].mxu0  ;;  %v6088_v15 = vadd.f32 %v9046_v51, %v13941_v59  ;;  %v14023_v52 = vadd.f32 %v6085_v41, %v13827_v13 }
0x1109   :  { %v14016_v39 = vadd.f32 %v6077_v20, %v13814_v14  ;;  %v6080_v58 = vadd.f32 %v13941_v59, %v6079_v62 }
0x110a   :  { %6223 = vadd.xlane.f32.xlu1 %v6222_v24  ;;  %v14031_v14 = vadd.f32 %v6088_v15, %v13830_v55 }
0x110b   :  { %v14026_v2 = vadd.f32 %v6080_v58, %v13817_v56  ;;  %v6225_v32 = vsel %vm406_vm1, %v14016_v39, 0.0  ;;  %v6231_v56 = vsel %vm406_vm1, %v14023_v52, 0.0 }
0x110c   :  { %6226 = vadd.xlane.f32.xlu0 %v6225_v32  ;;  %v6234_v37 = vsel %vm406_vm1, %v14031_v14, 0.0 }
0x110d   :  { %v9049_v30 = vpop.f32.mrb[176].mxu0  ;;  %v6228_v63 = vsel %vm406_vm1, %v14026_v2, 0.0 }
0x110e   :  { %6229 = vadd.xlane.f32.xlu1 %v6228_v63  ;;  %v6092_v1 = vpop.f32.mrb[177].mxu0  ;;  %v6101_v3 = vadd.f32 %v9049_v30, %v13941_v59 }
0x110f   :  { %v6093_v13 = vadd.f32 %v13941_v59, %v6092_v1  ;;  %v9050_v31 = vpop.f32.mrb[178].mxu0 }
0x1110   :  { %6232 = vadd.xlane.f32.xlu0 %v6231_v56  ;;  %v6095_v6 = vpop.f32.mrb[179].mxu0  ;;  %v6104_v55 = vadd.f32 %v9050_v31, %v13941_v59  ;;  %v14047_v19 = vadd.f32 %v6101_v3, %v13853_v44 }
0x1111   :  { %v14040_v25 = vadd.f32 %v6093_v13, %v13840_v10  ;;  %v6096_v33 = vadd.f32 %v13941_v59, %v6095_v6 }
0x1112   :  { %6235 = vadd.xlane.f32.xlu1 %v6234_v37  ;;  %v14055_v10 = vadd.f32 %v6104_v55, %v13856_v17 }
0x1113   :  { %v14050_v40 = vadd.f32 %v6096_v33, %v13843_v21  ;;  %v6237_v61 = vsel %vm406_vm1, %v14040_v25, 0.0  ;;  %v6243_v21 = vsel %vm406_vm1, %v14047_v19, 0.0 }
0x1114   :  { %6238 = vadd.xlane.f32.xlu0 %v6237_v61  ;;  %v6246_v20 = vsel %vm406_vm1, %v14055_v10, 0.0 }
0x1115   :  { %v9053_v18 = vpop.f32.mrb[180].mxu0  ;;  %v6240_v7 = vsel %vm406_vm1, %v14050_v40, 0.0 }
0x1116   :  { %6241 = vadd.xlane.f32.xlu1 %v6240_v7  ;;  %v6108_v38 = vpop.f32.mrb[181].mxu0  ;;  %v6117_v43 = vadd.f32 %v9053_v18, %v13941_v59 }
0x1117   :  { %v6109_v44 = vadd.f32 %v13941_v59, %v6108_v38  ;;  %v9054_v49 = vpop.f32.mrb[182].mxu0 }
0x1118   :  { %6244 = vadd.xlane.f32.xlu0 %v6243_v21  ;;  %v6111_v23 = vpop.f32.mrb[183].mxu0  ;;  %v6120_v17 = vadd.f32 %v9054_v49, %v13941_v59  ;;  %v14071_v51 = vadd.f32 %v6117_v43, %v13879_v22 }
0x1119   :  { %v14064_v12 = vadd.f32 %v6109_v44, %v13866_v16  ;;  %v6112_v41 = vadd.f32 %v13941_v59, %v6111_v23 }
0x111a   :  { %6247 = vadd.xlane.f32.xlu1 %v6246_v20  ;;  %v14079_v16 = vadd.f32 %v6120_v17, %v13882_v60 }
0x111b   :  { %v14074_v46 = vadd.f32 %v6112_v41, %v13869_v11  ;;  %v6249_v62 = vsel %vm406_vm1, %v14064_v12, 0.0  ;;  %v6255_v11 = vsel %vm406_vm1, %v14071_v51, 0.0  ;;  %v9262_v41 = vld [vmem:[%s15277_s2 + $0x70] sm:$0xff]  }
0x111c   :  { %6250 = vadd.xlane.f32.xlu0 %v6249_v62  ;;  %v6258_v13 = vsel %vm406_vm1, %v14079_v16, 0.0 }
0x111d   :  { %v9057_v15 = vpop.f32.mrb[184].mxu0  ;;  %v6252_v58 = vsel %vm406_vm1, %v14074_v46, 0.0 }
0x111e   :  { %6253 = vadd.xlane.f32.xlu1 %v6252_v58  ;;  %v6124_v24 = vpop.f32.mrb[185].mxu0  ;;  %v6133_v32 = vadd.f32 %v9057_v15, %v13941_v59 }
0x111f   :  { %v6125_v22 = vadd.f32 %v13941_v59, %v6124_v24  ;;  %v9058_v30 = vpop.f32.mrb[186].mxu0 }
0x1120   :  { %6256 = vadd.xlane.f32.xlu0 %v6255_v11  ;;  %v6127_v63 = vpop.f32.mrb[187].mxu0  ;;  %v6136_v60 = vadd.f32 %v9058_v30, %v13941_v59  ;;  %v14095_v31 = vadd.f32 %v6133_v32, %v13905_v29 }
0x1121   :  { %v14088_v1 = vadd.f32 %v6125_v22, %v13892_v28  ;;  %v6128_v3 = vadd.f32 %v13941_v59, %v6127_v63 }
0x1122   :  { %6259 = vadd.xlane.f32.xlu1 %v6258_v13  ;;  %v14103_v28 = vadd.f32 %v6136_v60, %v13908_v9 }
0x1123   :  { %v14098_v56 = vadd.f32 %v6128_v3, %v13895_v36  ;;  %v6261_v6 = vsel %vm406_vm1, %v14088_v1, 0.0  ;;  %v6267_v36 = vsel %vm406_vm1, %v14095_v31, 0.0 }
0x1124   :  { %6262 = vadd.xlane.f32.xlu0 %v6261_v6  ;;  %v6270_v44 = vsel %vm406_vm1, %v14103_v28, 0.0 }
0x1125   :  { %v9061_v55 = vpop.f32.mrb[188].mxu0  ;;  %v6264_v33 = vsel %vm406_vm1, %v14098_v56, 0.0 }
0x1126   :  { %6265 = vadd.xlane.f32.xlu1 %v6264_v33  ;;  %v6140_v37 = vpop.f32.mrb[189].mxu0  ;;  %v6149_v61 = vadd.f32 %v9061_v55, %v13941_v59 }
0x1127   :  { %v6141_v29 = vadd.f32 %v13941_v59, %v6140_v37  ;;  %v9062_v18 = vpop.f32.mrb[190].mxu0 }
0x1128   :  { %6268 = vadd.xlane.f32.xlu0 %v6267_v36  ;;  %v6143_v7 = vpop.f32.mrb[191].mxu0  ;;  %v6152_v9 = vadd.f32 %v9062_v18, %v13941_v59  ;;  %v14119_v49 = vadd.f32 %v6149_v61, %v13930_v5 }
0x1129   :  { %v14112_v38 = vadd.f32 %v6141_v29, %v13918_v54  ;;  %v6144_v43 = vadd.f32 %v13941_v59, %v6143_v7 }
0x112a   :  { %6271 = vadd.xlane.f32.xlu1 %v6270_v44  ;;  %v14127_v54 = vadd.f32 %v6152_v9, %v13933_v35  ;;  %v6279_v17 = vsel %vm406_vm1, %v14119_v49, 0.0  ;;  %v9261_v35 = vld [vmem:[%s15277_s2 + $0x68] sm:$0xff]  }
0x112b   :  { %v14122_v21 = vadd.f32 %v6144_v43, %v13921_v53  ;;  %v6273_v23 = vsel %vm406_vm1, %v14112_v38, 0.0  ;;  %v9260_v53 = vld [vmem:[%s15277_s2 + $0x60] sm:$0xff]  }
0x112c   :  { %6274 = vadd.xlane.f32.xlu0 %v6273_v23  ;;  %v6282_v5 = vsel %vm406_vm1, %v14127_v54, 0.0  ;;  %9063 = vmatprep.subr.bf16.mxu1 %v9260_v53 }
0x112d   :  { %v6276_v59 = vsel %vm406_vm1, %v14122_v21, 0.0  ;;  %9064 = vmatpush3.bf16.msra.mxu1 %v9260_v53 }
0x112e   :  { %6277 = vadd.xlane.f32.xlu1 %v6276_v59  ;;  %9065 = vmatprep.subr.bf16.mxu1 %v9261_v35 }
0x1130   :  { %6280 = vadd.xlane.f32.xlu0 %v6279_v17 }
0x1131   :  { %9066 = vmatpush3.bf16.msra.mxu1 %v9261_v35 }
0x1132   :  { %6283 = vadd.xlane.f32.xlu1 %v6282_v5  ;;  %9067 = vmatprep.subr.bf16.mxu1 %v9262_v41 }
0x1135   :  { %9068 = vmatpush3.bf16.msra.mxu1 %v9262_v41 }
0x1181   :  { %v6191_v20 = vpop.xlane.xlu0 %6190 }
0x1182   :  { %v6285_v62 = vmul.f32 0.015625, %v6191_v20 }
0x1183   :  { %v6194_v15 = vpop.xlane.xlu1 %6193 }
0x1184   :  { %v14145_v58 = vsub.f32 %v13946_v57, %v6285_v62  ;;  %v6286_v24 = vmul.f32 0.015625, %v6194_v15 }
0x1185   :  { %v6197_v32 = vpop.xlane.xlu0 %6196 }
0x1186   :  { %v14148_v22 = vsub.f32 %v13954_v4, %v6286_v24  ;;  %v6287_v30 = vmul.f32 0.015625, %v6197_v32  ;;  %v6349_v11 = vmul.f32 %v14145_v58, %v14145_v58 }
0x1187   :  { %v6200_v63 = vpop.xlane.xlu1 %6199 }
0x1188   :  { %v14153_v60 = vsub.f32 %v13951_v48, %v6287_v30  ;;  %v6288_v3 = vmul.f32 0.015625, %v6200_v63  ;;  %v6381_v13 = vsel %vm406_vm1, %v6349_v11, 0.0  ;;  %v6350_v57 = vmul.f32 %v14148_v22, %v14148_v22 }
0x1189   :  { %6382 = vadd.xlane.f32.xlu0 %v6381_v13  ;;  %v6203_v6 = vpop.xlane.xlu0 %6202 }
0x118a   :  { %v14159_v55 = vsub.f32 %v13959_v8, %v6288_v3  ;;  %v6289_v4 = vmul.f32 0.015625, %v6203_v6  ;;  %v6384_v33 = vsel %vm406_vm1, %v6350_v57, 0.0  ;;  %v6351_v37 = vmul.f32 %v14153_v60, %v14153_v60 }
0x118b   :  { %v6206_v61 = vpop.xlane.xlu1 %6205  ;;  %6385 = vadd.xlane.f32.xlu1 %v6384_v33 }
0x118c   :  { %v14165_v48 = vsub.f32 %v13968_v26, %v6289_v4  ;;  %v6290_v29 = vmul.f32 0.015625, %v6206_v61  ;;  %v6387_v18 = vsel %vm406_vm1, %v6351_v37, 0.0  ;;  %v6352_v36 = vmul.f32 %v14159_v55, %v14159_v55 }
0x118d   :  { %6388 = vadd.xlane.f32.xlu0 %v6387_v18  ;;  %v6209_v8 = vpop.xlane.xlu0 %6208 }
0x118e   :  { %v14171_v7 = vsub.f32 %v13978_v27, %v6290_v29  ;;  %v6291_v9 = vmul.f32 0.015625, %v6209_v8  ;;  %v6390_v43 = vsel %vm406_vm1, %v6352_v36, 0.0  ;;  %v6353_v44 = vmul.f32 %v14165_v48, %v14165_v48 }
0x118f   :  { %v6212_v23 = vpop.xlane.xlu1 %6211  ;;  %6391 = vadd.xlane.f32.xlu1 %v6390_v43 }
0x1190   :  { %v14177_v26 = vsub.f32 %v13975_v45, %v6291_v9  ;;  %v6292_v59 = vmul.f32 0.015625, %v6212_v23  ;;  %v6393_v17 = vsel %vm406_vm1, %v6353_v44, 0.0  ;;  %v6354_v5 = vmul.f32 %v14171_v7, %v14171_v7 }
0x1191   :  { %6394 = vadd.xlane.f32.xlu0 %v6393_v17  ;;  %v6215_v27 = vpop.xlane.xlu0 %6214 }
0x1192   :  { %v14183_v53 = vsub.f32 %v13983_v47, %v6292_v59  ;;  %v6293_v35 = vmul.f32 0.015625, %v6215_v27  ;;  %v6396_v41 = vsel %vm406_vm1, %v6354_v5, 0.0  ;;  %v6355_v20 = vmul.f32 %v14177_v26, %v14177_v26 }
0x1193   :  { %v6218_v62 = vpop.xlane.xlu1 %6217  ;;  %6397 = vadd.xlane.f32.xlu1 %v6396_v41 }
0x1194   :  { %v14189_v45 = vsub.f32 %v13992_v0, %v6293_v35  ;;  %v6294_v15 = vmul.f32 0.015625, %v6218_v62  ;;  %v6399_v24 = vsel %vm406_vm1, %v6355_v20, 0.0  ;;  %v6356_v32 = vmul.f32 %v14183_v53, %v14183_v53 }
0x1195   :  { %6400 = vadd.xlane.f32.xlu0 %v6399_v24  ;;  %v6221_v47 = vpop.xlane.xlu0 %6220 }
0x1196   :  { %v14195_v30 = vsub.f32 %v14002_v34, %v6294_v15  ;;  %v6295_v11 = vmul.f32 0.015625, %v6221_v47  ;;  %v6402_v63 = vsel %vm406_vm1, %v6356_v32, 0.0  ;;  %v6357_v3 = vmul.f32 %v14189_v45, %v14189_v45 }
0x1197   :  { %v6224_v13 = vpop.xlane.xlu1 %6223  ;;  %6403 = vadd.xlane.f32.xlu1 %v6402_v63 }
0x1198   :  { %v14201_v0 = vsub.f32 %v13999_v50, %v6295_v11  ;;  %v6296_v57 = vmul.f32 0.015625, %v6224_v13  ;;  %v6405_v6 = vsel %vm406_vm1, %v6357_v3, 0.0  ;;  %v6358_v4 = vmul.f32 %v14195_v30, %v14195_v30 }
0x1199   :  { %6406 = vadd.xlane.f32.xlu0 %v6405_v6  ;;  %v6227_v34 = vpop.xlane.xlu0 %6226 }
0x119a   :  { %v14207_v33 = vsub.f32 %v14007_v42, %v6296_v57  ;;  %v6297_v37 = vmul.f32 0.015625, %v6227_v34  ;;  %v6408_v61 = vsel %vm406_vm1, %v6358_v4, 0.0  ;;  %v6359_v29 = vmul.f32 %v14201_v0, %v14201_v0 }
0x119b   :  { %v6230_v18 = vpop.xlane.xlu1 %6229  ;;  %6409 = vadd.xlane.f32.xlu1 %v6408_v61 }
0x119c   :  { %v14213_v50 = vsub.f32 %v14016_v39, %v6297_v37  ;;  %v6298_v36 = vmul.f32 0.015625, %v6230_v18  ;;  %v6411_v8 = vsel %vm406_vm1, %v6359_v29, 0.0  ;;  %v6360_v9 = vmul.f32 %v14207_v33, %v14207_v33 }
0x119d   :  { %6412 = vadd.xlane.f32.xlu0 %v6411_v8  ;;  %v6233_v42 = vpop.xlane.xlu0 %6232 }
0x119e   :  { %v14219_v43 = vsub.f32 %v14026_v2, %v6298_v36  ;;  %v6299_v44 = vmul.f32 0.015625, %v6233_v42  ;;  %v6414_v23 = vsel %vm406_vm1, %v6360_v9, 0.0  ;;  %v6361_v59 = vmul.f32 %v14213_v50, %v14213_v50 }
0x119f   :  { %v6236_v17 = vpop.xlane.xlu1 %6235  ;;  %6415 = vadd.xlane.f32.xlu1 %v6414_v23 }
0x11a0   :  { %v14225_v39 = vsub.f32 %v14023_v52, %v6299_v44  ;;  %v6300_v5 = vmul.f32 0.015625, %v6236_v17  ;;  %v6417_v27 = vsel %vm406_vm1, %v6361_v59, 0.0  ;;  %v6362_v35 = vmul.f32 %v14219_v43, %v14219_v43 }
0x11a1   :  { %6418 = vadd.xlane.f32.xlu0 %v6417_v27  ;;  %v6239_v2 = vpop.xlane.xlu0 %6238 }
0x11a2   :  { %v14231_v41 = vsub.f32 %v14031_v14, %v6300_v5  ;;  %v6301_v20 = vmul.f32 0.015625, %v6239_v2  ;;  %v6420_v62 = vsel %vm406_vm1, %v6362_v35, 0.0  ;;  %v6363_v15 = vmul.f32 %v14225_v39, %v14225_v39 }
0x11a3   :  { %v6242_v24 = vpop.xlane.xlu1 %6241  ;;  %6421 = vadd.xlane.f32.xlu1 %v6420_v62 }
0x11a4   :  { %v14237_v52 = vsub.f32 %v14040_v25, %v6301_v20  ;;  %v6302_v32 = vmul.f32 0.015625, %v6242_v24  ;;  %v6423_v47 = vsel %vm406_vm1, %v6363_v15, 0.0  ;;  %v6364_v11 = vmul.f32 %v14231_v41, %v14231_v41 }
0x11a5   :  { %6424 = vadd.xlane.f32.xlu0 %v6423_v47  ;;  %v6245_v14 = vpop.xlane.xlu0 %6244 }
0x11a6   :  { %v14243_v63 = vsub.f32 %v14050_v40, %v6302_v32  ;;  %v6303_v3 = vmul.f32 0.015625, %v6245_v14  ;;  %v6426_v13 = vsel %vm406_vm1, %v6364_v11, 0.0  ;;  %v6365_v57 = vmul.f32 %v14237_v52, %v14237_v52 }
0x11a7   :  { %v6248_v6 = vpop.xlane.xlu1 %6247  ;;  %6427 = vadd.xlane.f32.xlu1 %v6426_v13 }
0x11a8   :  { %v14249_v25 = vsub.f32 %v14047_v19, %v6303_v3  ;;  %v6304_v4 = vmul.f32 0.015625, %v6248_v6  ;;  %v6429_v34 = vsel %vm406_vm1, %v6365_v57, 0.0  ;;  %v6366_v37 = vmul.f32 %v14243_v63, %v14243_v63 }
0x11a9   :  { %6430 = vadd.xlane.f32.xlu0 %v6429_v34  ;;  %v6251_v40 = vpop.xlane.xlu0 %6250 }
0x11aa   :  { %v14255_v61 = vsub.f32 %v14055_v10, %v6304_v4  ;;  %v6305_v29 = vmul.f32 0.015625, %v6251_v40  ;;  %v6432_v18 = vsel %vm406_vm1, %v6366_v37, 0.0  ;;  %v6367_v36 = vmul.f32 %v14249_v25, %v14249_v25 }
0x11ab   :  { %v6254_v8 = vpop.xlane.xlu1 %6253  ;;  %6433 = vadd.xlane.f32.xlu1 %v6432_v18 }
0x11ac   :  { %v14261_v19 = vsub.f32 %v14064_v12, %v6305_v29  ;;  %v6306_v9 = vmul.f32 0.015625, %v6254_v8  ;;  %v6435_v42 = vsel %vm406_vm1, %v6367_v36, 0.0  ;;  %v6368_v44 = vmul.f32 %v14255_v61, %v14255_v61 }
0x11ad   :  { %6436 = vadd.xlane.f32.xlu0 %v6435_v42  ;;  %v6257_v10 = vpop.xlane.xlu0 %6256 }
0x11ae   :  { %v14267_v23 = vsub.f32 %v14074_v46, %v6306_v9  ;;  %v6307_v59 = vmul.f32 0.015625, %v6257_v10  ;;  %v6438_v17 = vsel %vm406_vm1, %v6368_v44, 0.0  ;;  %v6369_v5 = vmul.f32 %v14261_v19, %v14261_v19  ;;  %v9263_v46 = vld [vmem:[%s15277_s2 + $0x78] sm:$0xff]  }
0x11af   :  { %v6260_v27 = vpop.xlane.xlu1 %6259  ;;  %6439 = vadd.xlane.f32.xlu1 %v6438_v17  ;;  %9069 = vmatprep.subr.bf16.mxu1 %v9263_v46 }
0x11b0   :  { %v14273_v12 = vsub.f32 %v14071_v51, %v6307_v59  ;;  %v6308_v35 = vmul.f32 0.015625, %v6260_v27  ;;  %v6441_v2 = vsel %vm406_vm1, %v6369_v5, 0.0  ;;  %v6370_v20 = vmul.f32 %v14267_v23, %v14267_v23  ;;  %9070 = vmatpush3.bf16.msra.mxu1 %v9263_v46 }
0x11b1   :  { %6442 = vadd.xlane.f32.xlu0 %v6441_v2  ;;  %v6263_v62 = vpop.xlane.xlu0 %6262 }
0x11b2   :  { %v14282_v15 = vsub.f32 %v14079_v16, %v6308_v35  ;;  %v6309_v24 = vmul.f32 0.015625, %v6263_v62  ;;  %v6444_v32 = vsel %vm406_vm1, %v6370_v20, 0.0  ;;  %v6371_v51 = vmul.f32 %v14273_v12, %v14273_v12 }
0x11b3   :  { %v6266_v47 = vpop.xlane.xlu1 %6265  ;;  %6445 = vadd.xlane.f32.xlu1 %v6444_v32 }
0x11b4   :  { %v14288_v11 = vsub.f32 %v14088_v1, %v6309_v24  ;;  %v6310_v14 = vmul.f32 0.015625, %v6266_v47  ;;  %v6447_v3 = vsel %vm406_vm1, %v6371_v51, 0.0  ;;  %v6372_v16 = vmul.f32 %v14282_v15, %v14282_v15 }
0x11b5   :  { %6448 = vadd.xlane.f32.xlu0 %v6447_v3  ;;  %v6269_v13 = vpop.xlane.xlu0 %6268  ;;  %v9265_v3 = vld [vmem:[%s15274_s1 + $0x150] sm:$0xff]  }
0x11b6   :  { %v14294_v57 = vsub.f32 %v14098_v56, %v6310_v14  ;;  %v6311_v6 = vmul.f32 0.015625, %v6269_v13  ;;  %v6450_v4 = vsel %vm406_vm1, %v6372_v16, 0.0  ;;  %v6373_v34 = vmul.f32 %v14288_v11, %v14288_v11  ;;  %v9266_v16 = vld [vmem:[%s15274_s1 + $0x158] sm:$0xff]   ;;  %v9267_v13 = vld [vmem:[%s15274_s1 + $0x160] sm:$0xff]  }
0x11b7   :  { %v6272_v37 = vpop.xlane.xlu1 %6271  ;;  %6451 = vadd.xlane.f32.xlu1 %v6450_v4  ;;  %v9269_v4 = vld [vmem:[%s15274_s1 + $0x170] sm:$0xff]  }
0x11b8   :  { %v14300_v1 = vsub.f32 %v14095_v31, %v6311_v6  ;;  %v6312_v40 = vmul.f32 0.015625, %v6272_v37  ;;  %v6453_v29 = vsel %vm406_vm1, %v6373_v34, 0.0  ;;  %v6374_v18 = vmul.f32 %v14294_v57, %v14294_v57  ;;  %v9268_v6 = vld [vmem:[%s15274_s1 + $0x168] sm:$0xff]   ;;  %v9270_v34 = vld [vmem:[%s15274_s1 + $0x178] sm:$0xff]  }
0x11b9   :  { %6454 = vadd.xlane.f32.xlu0 %v6453_v29  ;;  %v6275_v56 = vpop.xlane.xlu0 %6274 }
0x11ba   :  { %v14306_v36 = vsub.f32 %v14103_v28, %v6312_v40  ;;  %v6313_v8 = vmul.f32 0.015625, %v6275_v56  ;;  %v6456_v9 = vsel %vm406_vm1, %v6374_v18, 0.0  ;;  %v6375_v42 = vmul.f32 %v14300_v1, %v14300_v1 }
0x11bb   :  { %6457 = vadd.xlane.f32.xlu1 %v6456_v9  ;;  %v6278_v31 = vpop.xlane.xlu1 %6277 }
0x11bc   :  { %v14312_v44 = vsub.f32 %v14112_v38, %v6313_v8  ;;  %v6314_v10 = vmul.f32 0.015625, %v6278_v31  ;;  %v6459_v59 = vsel %vm406_vm1, %v6375_v42, 0.0  ;;  %v6376_v17 = vmul.f32 %v14306_v36, %v14306_v36 }
0x11bd   :  { %6460 = vadd.xlane.f32.xlu0 %v6459_v59  ;;  %v6281_v28 = vpop.xlane.xlu0 %6280 }
0x11be   :  { %v14318_v5 = vsub.f32 %v14122_v21, %v6314_v10  ;;  %v6315_v27 = vmul.f32 0.015625, %v6281_v28  ;;  %v6462_v35 = vsel %vm406_vm1, %v6376_v17, 0.0  ;;  %v6377_v2 = vmul.f32 %v14312_v44, %v14312_v44 }
0x11bf   :  { %6463 = vadd.xlane.f32.xlu1 %v6462_v35  ;;  %v6284_v38 = vpop.xlane.xlu1 %6283 }
0x11c0   :  { %v14324_v20 = vsub.f32 %v14119_v49, %v6315_v27  ;;  %v6316_v46 = vmul.f32 0.015625, %v6284_v38  ;;  %v6465_v62 = vsel %vm406_vm1, %v6377_v2, 0.0  ;;  %v6378_v24 = vmul.f32 %v14318_v5, %v14318_v5 }
0x11c1   :  { %6466 = vadd.xlane.f32.xlu0 %v6465_v62 }
0x11c2   :  { %v14330_v21 = vsub.f32 %v14127_v54, %v6316_v46  ;;  %v6468_v32 = vsel %vm406_vm1, %v6378_v24, 0.0  ;;  %v6379_v51 = vmul.f32 %v14324_v20, %v14324_v20  ;;  %v9264_v54 = vld [vmem:[%s15274_s1 + $0x148] sm:$0xff]  }
0x11c3   :  { %6469 = vadd.xlane.f32.xlu1 %v6468_v32  ;;  %9103 = vmatprep.subr.bf16.mxu0 %v9264_v54 }
0x11c4   :  { %v6471_v47 = vsel %vm406_vm1, %v6379_v51, 0.0  ;;  %v6380_v49 = vmul.f32 %v14330_v21, %v14330_v21  ;;  %9104 = vmatpush3.bf16.msra.mxu0 %v9264_v54 }
0x11c5   :  { %6472 = vadd.xlane.f32.xlu0 %v6471_v47  ;;  %9105 = vmatprep.subr.bf16.mxu0 %v9265_v3  ;;  %v14363_v47 = vld [vmem:[%s15276_s3 + $0x18] ss:$0 sm:$0xff] }
0x11c6   :  { %v6474_v14 = vsel %vm406_vm1, %v6380_v49, 0.0 }
0x11c7   :  { %6475 = vadd.xlane.f32.xlu1 %v6474_v14 }
0x11c8   :  { %9106 = vmatpush3.bf16.msra.mxu0 %v9265_v3 }
0x11c9   :  { %9107 = vmatprep.subr.bf16.mxu0 %v9266_v16 }
0x11cc   :  { %9108 = vmatpush3.bf16.msra.mxu0 %v9266_v16 }
0x11cd   :  { %9109 = vmatprep.subr.bf16.mxu0 %v9267_v13 }
0x11d0   :  { %9110 = vmatpush3.bf16.msra.mxu0 %v9267_v13 }
0x11d1   :  { %9111 = vmatprep.subr.bf16.mxu0 %v9268_v6 }
0x11d4   :  { %9112 = vmatpush3.bf16.msra.mxu0 %v9268_v6 }
0x11d5   :  { %9113 = vmatprep.subr.bf16.mxu0 %v9269_v4 }
0x11d8   :  { %9114 = vmatpush3.bf16.msra.mxu0 %v9269_v4 }
0x11d9   :  { %9115 = vmatprep.subr.bf16.mxu0 %v9270_v34 }
0x11dc   :  { %9116 = vmatpush3.bf16.msra.mxu0 %v9270_v34 }
0x1216   :  { %v6383_v37 = vpop.xlane.xlu0 %6382 }
0x1217   :  { %v6477_v40 = vmul.f32 0.015625, %v6383_v37 }
0x1218   :  { %v6386_v29 = vpop.xlane.xlu1 %6385 }
0x1219   :  { %v6509_v18 = vadd.f32 1e-05, %v6477_v40  ;;  %v6478_v56 = vmul.f32 0.015625, %v6386_v29  ;;  %v14371_v29 = vld [vmem:[%s15276_s3 + $0x19] ss:$0 sm:$0xff] }
0x121a   :  { %v6389_v8 = vpop.xlane.xlu0 %6388 }
0x121b   :  { %9660 = vrsqrt.f32 %v6509_v18  ;;  %v6510_v9 = vadd.f32 1e-05, %v6478_v56  ;;  %v6479_v42 = vmul.f32 0.015625, %v6389_v8 }
0x121c   :  { %v6392_v31 = vpop.xlane.xlu1 %6391 }
0x121d   :  { %9662 = vrsqrt.f32 %v6510_v9  ;;  %v6511_v10 = vadd.f32 1e-05, %v6479_v42  ;;  %v6480_v59 = vmul.f32 0.015625, %v6392_v31 }
0x121e   :  { %v6395_v17 = vpop.xlane.xlu0 %6394 }
0x121f   :  { %9664 = vrsqrt.f32 %v6511_v10  ;;  %v6512_v28 = vadd.f32 1e-05, %v6480_v59  ;;  %v6481_v27 = vmul.f32 0.015625, %v6395_v17 }
0x1220   :  { %v6398_v35 = vpop.xlane.xlu1 %6397 }
0x1221   :  { %9666 = vrsqrt.f32 %v6512_v28  ;;  %v6513_v2 = vadd.f32 1e-05, %v6481_v27  ;;  %v6482_v38 = vmul.f32 0.015625, %v6398_v35 }
0x1222   :  { %v6401_v46 = vpop.xlane.xlu0 %6400 }
0x1223   :  { %9668 = vrsqrt.f32 %v6513_v2  ;;  %v6514_v62 = vadd.f32 1e-05, %v6482_v38  ;;  %v6483_v24 = vmul.f32 0.015625, %v6401_v46 }
0x1224   :  { %v6404_v32 = vpop.xlane.xlu1 %6403 }
0x1225   :  { %v9661_v51 = vpop.eup %9660  ;;  %9670 = vrsqrt.f32 %v6514_v62  ;;  %v6515_v49 = vadd.f32 1e-05, %v6483_v24  ;;  %v6484_v14 = vmul.f32 0.015625, %v6404_v32 }
0x1226   :  { %v6573_v54 = vmul.f32 %v9661_v51, %v14145_v58  ;;  %v6407_v3 = vpop.xlane.xlu0 %6406 }
0x1227   :  { %v9663_v16 = vpop.eup %9662  ;;  %9672 = vrsqrt.f32 %v6515_v49  ;;  %v6516_v13 = vadd.f32 1e-05, %v6484_v14  ;;  %v6485_v6 = vmul.f32 0.015625, %v6407_v3 }
0x1228   :  { %v6574_v4 = vmul.f32 %v9663_v16, %v14148_v22  ;;  %v6410_v34 = vpop.xlane.xlu1 %6409  ;;  %v6609_v37 = vmul.f32 %v14363_v47, %v6573_v54 }
0x1229   :  { %v9665_v40 = vpop.eup %9664  ;;  %9674 = vrsqrt.f32 %v6516_v13  ;;  %v6517_v18 = vadd.f32 1e-05, %v6485_v6  ;;  %v6486_v56 = vmul.f32 0.015625, %v6410_v34 }
0x122a   :  { %v6575_v58 = vmul.f32 %v9665_v40, %v14153_v60  ;;  %v6413_v8 = vpop.xlane.xlu0 %6412  ;;  %v6610_v9 = vmul.f32 %v14363_v47, %v6574_v4  ;;  %v14378_v28 = vadd.f32 %v14371_v29, %v6609_v37 }
0x122b   :  { %v9667_v42 = vpop.eup %9666  ;;  %9676 = vrsqrt.f32 %v6517_v18  ;;  %v6518_v22 = vadd.f32 1e-05, %v6486_v56  ;;  %v6487_v31 = vmul.f32 0.015625, %v6413_v8 }
0x122c   :  { %v6611_v10 = vmul.f32 %v14363_v47, %v6575_v58  ;;  %v6576_v59 = vmul.f32 %v9667_v42, %v14159_v55  ;;  %v6416_v17 = vpop.xlane.xlu1 %6415  ;;  %v14381_v27 = vadd.f32 %v14371_v29, %v6610_v9 }
0x122d   :  { %v9669_v35 = vpop.eup %9668  ;;  %9678 = vrsqrt.f32 %v6518_v22  ;;  %v6519_v60 = vadd.f32 1e-05, %v6487_v31  ;;  %v6488_v2 = vmul.f32 0.015625, %v6416_v17 }
0x122e   :  { %v6612_v38 = vmul.f32 %v14363_v47, %v6576_v59  ;;  %v6577_v46 = vmul.f32 %v9669_v35, %v14165_v48  ;;  %v6419_v62 = vpop.xlane.xlu0 %6418  ;;  %v6685_v24 = vpack.c.bf16 %v14381_v27, %v14378_v28  ;;  %v14388_v49 = vadd.f32 %v14371_v29, %v6611_v10 }
0x122f   :  { %v9671_v55 = vpop.eup %9670  ;;  %9680 = vrsqrt.f32 %v6519_v60  ;;  %v6520_v32 = vadd.f32 1e-05, %v6488_v2  ;;  %v6489_v51 = vmul.f32 0.015625, %v6419_v62 }
0x1230   :  { %v14391_v14 = vadd.f32 %v14371_v29, %v6612_v38  ;;  %v6578_v54 = vmul.f32 %v9671_v55, %v14171_v7  ;;  %v6422_v3 = vpop.xlane.xlu1 %6421  ;;  %9071 = vmatprep.mubr.msk.bf16.mxu1 %vm406_vm1, %v6685_v24  ;;  %v6613_v48 = vmul.f32 %v14363_v47, %v6577_v46 }
0x1231   :  { %v9673_v16 = vpop.eup %9672  ;;  %9682 = vrsqrt.f32 %v6520_v32  ;;  %v6521_v13 = vadd.f32 1e-05, %v6489_v51  ;;  %v6490_v6 = vmul.f32 0.015625, %v6422_v3 }
0x1232   :  { %v6579_v4 = vmul.f32 %v9673_v16, %v14177_v26  ;;  %v6425_v34 = vpop.xlane.xlu0 %6424  ;;  %v6686_v37 = vpack.c.bf16 %v14391_v14, %v14388_v49  ;;  %v6614_v40 = vmul.f32 %v14363_v47, %v6578_v54  ;;  %v14403_v9 = vadd.f32 %v14371_v29, %v6613_v48 }
0x1233   :  { %v9675_v18 = vpop.eup %9674  ;;  %9684 = vrsqrt.f32 %v6521_v13  ;;  %v6522_v7 = vadd.f32 1e-05, %v6490_v6  ;;  %v6491_v56 = vmul.f32 0.015625, %v6425_v34 }
0x1234   :  { %v6580_v58 = vmul.f32 %v9675_v18, %v14183_v53  ;;  %v6428_v8 = vpop.xlane.xlu1 %6427  ;;  %9072 = vmatmul.mubr.msk.bf16.vlgmr.msra.gmra.mrb[160].mxu1 %vm406_vm1, %v6686_v37  ;;  %v14406_v26 = vadd.f32 %v14371_v29, %v6614_v40  ;;  %v6615_v42 = vmul.f32 %v14363_v47, %v6579_v4 }
0x1235   :  { %v9677_v22 = vpop.eup %9676  ;;  %9686 = vrsqrt.f32 %v6522_v7  ;;  %v6523_v31 = vadd.f32 1e-05, %v6491_v56  ;;  %v6492_v10 = vmul.f32 0.015625, %v6428_v8 }
0x1236   :  { %v6581_v59 = vmul.f32 %v9677_v22, %v14189_v45  ;;  %v6431_v17 = vpop.xlane.xlu0 %6430  ;;  %v6687_v53 = vpack.c.bf16 %v14406_v26, %v14403_v9  ;;  %v6616_v35 = vmul.f32 %v14363_v47, %v6580_v58  ;;  %v14416_v24 = vadd.f32 %v14371_v29, %v6615_v42 }
0x1237   :  { %v9679_v60 = vpop.eup %9678  ;;  %9688 = vrsqrt.f32 %v6523_v31  ;;  %v6524_v2 = vadd.f32 1e-05, %v6492_v10  ;;  %v6493_v38 = vmul.f32 0.015625, %v6431_v17 }
0x1238   :  { %v6582_v46 = vmul.f32 %v9679_v60, %v14195_v30  ;;  %v6434_v62 = vpop.xlane.xlu1 %6433  ;;  %9075 = vmatprep.mubr.msk.bf16.mxu1 %vm406_vm1, %v6687_v53  ;;  %v14419_v45 = vadd.f32 %v14371_v29, %v6616_v35  ;;  %v6617_v55 = vmul.f32 %v14363_v47, %v6581_v59 }
0x1239   :  { %v9681_v32 = vpop.eup %9680  ;;  %9690 = vrsqrt.f32 %v6524_v2  ;;  %v6525_v51 = vadd.f32 1e-05, %v6493_v38  ;;  %v6494_v54 = vmul.f32 0.015625, %v6434_v62 }
0x123a   :  { %v6583_v3 = vmul.f32 %v9681_v32, %v14201_v0  ;;  %v6437_v48 = vpop.xlane.xlu0 %6436  ;;  %v6688_v30 = vpack.c.bf16 %v14419_v45, %v14416_v24  ;;  %v6618_v16 = vmul.f32 %v14363_v47, %v6582_v46  ;;  %v14429_v40 = vadd.f32 %v14371_v29, %v6617_v55 }
0x123b   :  { %v9683_v13 = vpop.eup %9682  ;;  %9692 = vrsqrt.f32 %v6525_v51  ;;  %v6526_v6 = vadd.f32 1e-05, %v6494_v54  ;;  %v6495_v4 = vmul.f32 0.015625, %v6437_v48 }
0x123c   :  { %v6584_v34 = vmul.f32 %v9683_v13, %v14207_v33  ;;  %v6440_v37 = vpop.xlane.xlu1 %6439  ;;  %9076 = vmatmul.mubr.msk.bf16.gmra.mrb[164].mxu1 %vm406_vm1, %v6688_v30  ;;  %v14432_v0 = vadd.f32 %v14371_v29, %v6618_v16  ;;  %v6619_v18 = vmul.f32 %v14363_v47, %v6583_v3 }
0x123d   :  { %v9685_v7 = vpop.eup %9684  ;;  %9694 = vrsqrt.f32 %v6526_v6  ;;  %v6527_v56 = vadd.f32 1e-05, %v6495_v4  ;;  %v6496_v58 = vmul.f32 0.015625, %v6440_v37 }
0x123e   :  { %v6585_v8 = vmul.f32 %v9685_v7, %v14213_v50  ;;  %v6443_v42 = vpop.xlane.xlu0 %6442  ;;  %v6689_v33 = vpack.c.bf16 %v14432_v0, %v14429_v40  ;;  %v6620_v22 = vmul.f32 %v14363_v47, %v6584_v34  ;;  %v14442_v35 = vadd.f32 %v14371_v29, %v6619_v18 }
0x123f   :  { %v9687_v31 = vpop.eup %9686  ;;  %9696 = vrsqrt.f32 %v6527_v56  ;;  %v6528_v10 = vadd.f32 1e-05, %v6496_v58  ;;  %v6497_v59 = vmul.f32 0.015625, %v6443_v42 }
0x1240   :  { %v6586_v17 = vmul.f32 %v9687_v31, %v14219_v43  ;;  %v6446_v53 = vpop.xlane.xlu1 %6445  ;;  %9079 = vmatprep.mubr.msk.bf16.mxu1 %vm406_vm1, %v6689_v33  ;;  %v14445_v50 = vadd.f32 %v14371_v29, %v6620_v22  ;;  %v6621_v60 = vmul.f32 %v14363_v47, %v6585_v8 }
0x1241   :  { %v9689_v2 = vpop.eup %9688  ;;  %9698 = vrsqrt.f32 %v6528_v10  ;;  %v6529_v38 = vadd.f32 1e-05, %v6497_v59  ;;  %v6498_v46 = vmul.f32 0.015625, %v6446_v53 }
0x1242   :  { %v6587_v62 = vmul.f32 %v9689_v2, %v14225_v39  ;;  %v6449_v55 = vpop.xlane.xlu0 %6448  ;;  %v6690_v43 = vpack.c.bf16 %v14445_v50, %v14442_v35  ;;  %v6622_v32 = vmul.f32 %v14363_v47, %v6586_v17  ;;  %v14455_v16 = vadd.f32 %v14371_v29, %v6621_v60 }
0x1243   :  { %v9691_v51 = vpop.eup %9690  ;;  %9700 = vrsqrt.f32 %v6529_v38  ;;  %v6530_v54 = vadd.f32 1e-05, %v6498_v46  ;;  %v6499_v3 = vmul.f32 0.015625, %v6449_v55 }
0x1244   :  { %v6588_v48 = vmul.f32 %v9691_v51, %v14231_v41  ;;  %v6452_v30 = vpop.xlane.xlu1 %6451  ;;  %9080 = vmatmul.mubr.msk.bf16.gmra.mrb[168].mxu1 %vm406_vm1, %v6690_v43  ;;  %v14458_v39 = vadd.f32 %v14371_v29, %v6622_v32  ;;  %v6623_v13 = vmul.f32 %v14363_v47, %v6587_v62 }
0x1245   :  { %v9693_v6 = vpop.eup %9692  ;;  %9702 = vrsqrt.f32 %v6530_v54  ;;  %v6531_v4 = vadd.f32 1e-05, %v6499_v3  ;;  %v6500_v34 = vmul.f32 0.015625, %v6452_v30 }
0x1246   :  { %v6589_v37 = vmul.f32 %v9693_v6, %v14237_v52  ;;  %v6455_v18 = vpop.xlane.xlu0 %6454  ;;  %v6691_v41 = vpack.c.bf16 %v14458_v39, %v14455_v16  ;;  %v6624_v7 = vmul.f32 %v14363_v47, %v6588_v48  ;;  %v14468_v22 = vadd.f32 %v14371_v29, %v6623_v13 }
0x1247   :  { %v9695_v56 = vpop.eup %9694  ;;  %9704 = vrsqrt.f32 %v6531_v4  ;;  %v6532_v58 = vadd.f32 1e-05, %v6500_v34  ;;  %v6501_v8 = vmul.f32 0.015625, %v6455_v18 }
0x1248   :  { %v6590_v42 = vmul.f32 %v9695_v56, %v14243_v63  ;;  %v6458_v33 = vpop.xlane.xlu1 %6457  ;;  %9083 = vmatprep.mubr.msk.bf16.mxu1 %vm406_vm1, %v6691_v41  ;;  %v14471_v52 = vadd.f32 %v14371_v29, %v6624_v7  ;;  %v6625_v31 = vmul.f32 %v14363_v47, %v6589_v37 }
0x1249   :  { %v9697_v10 = vpop.eup %9696  ;;  %9706 = vrsqrt.f32 %v6532_v58  ;;  %v6533_v59 = vadd.f32 1e-05, %v6501_v8  ;;  %v6502_v17 = vmul.f32 0.015625, %v6458_v33 }
0x124a   :  { %v6591_v53 = vmul.f32 %v9697_v10, %v14249_v25  ;;  %v6461_v60 = vpop.xlane.xlu0 %6460  ;;  %v6692_v63 = vpack.c.bf16 %v14471_v52, %v14468_v22  ;;  %v6626_v2 = vmul.f32 %v14363_v47, %v6590_v42  ;;  %v14481_v32 = vadd.f32 %v14371_v29, %v6625_v31 }
0x124b   :  { %v9699_v38 = vpop.eup %9698  ;;  %9708 = vrsqrt.f32 %v6533_v59  ;;  %v6534_v46 = vadd.f32 1e-05, %v6502_v17  ;;  %v6503_v62 = vmul.f32 0.015625, %v6461_v60 }
0x124c   :  { %v6592_v55 = vmul.f32 %v9699_v38, %v14255_v61  ;;  %v6464_v43 = vpop.xlane.xlu1 %6463  ;;  %9084 = vmatmul.mubr.msk.bf16.gmra.mrb[172].mxu1 %vm406_vm1, %v6692_v63  ;;  %v14484_v25 = vadd.f32 %v14371_v29, %v6626_v2  ;;  %v6627_v51 = vmul.f32 %v14363_v47, %v6591_v53 }
0x124d   :  { %v9701_v54 = vpop.eup %9700  ;;  %9710 = vrsqrt.f32 %v6534_v46  ;;  %v6535_v3 = vadd.f32 1e-05, %v6503_v62  ;;  %v6504_v48 = vmul.f32 0.015625, %v6464_v43 }
0x124e   :  { %v6593_v30 = vmul.f32 %v9701_v54, %v14261_v19  ;;  %v6467_v13 = vpop.xlane.xlu0 %6466  ;;  %v6693_v61 = vpack.c.bf16 %v14484_v25, %v14481_v32  ;;  %v6628_v6 = vmul.f32 %v14363_v47, %v6592_v55  ;;  %v14494_v7 = vadd.f32 %v14371_v29, %v6627_v51 }
0x124f   :  { %v9703_v4 = vpop.eup %9702  ;;  %9712 = vrsqrt.f32 %v6535_v3  ;;  %v6536_v34 = vadd.f32 1e-05, %v6504_v48  ;;  %v6505_v37 = vmul.f32 0.015625, %v6467_v13 }
0x1250   :  { %v6594_v18 = vmul.f32 %v9703_v4, %v14267_v23  ;;  %v6470_v41 = vpop.xlane.xlu1 %6469  ;;  %9087 = vmatprep.mubr.msk.bf16.mxu1 %vm406_vm1, %v6693_v61  ;;  %v14497_v19 = vadd.f32 %v14371_v29, %v6628_v6  ;;  %v6629_v56 = vmul.f32 %v14363_v47, %v6593_v30 }
0x1251   :  { %v9705_v58 = vpop.eup %9704  ;;  %9714 = vrsqrt.f32 %v6536_v34  ;;  %v6537_v8 = vadd.f32 1e-05, %v6505_v37  ;;  %v6506_v42 = vmul.f32 0.015625, %v6470_v41 }
0x1252   :  { %v6595_v33 = vmul.f32 %v9705_v58, %v14273_v12  ;;  %v6473_v31 = vpop.xlane.xlu0 %6472  ;;  %v6694_v23 = vpack.c.bf16 %v14497_v19, %v14494_v7  ;;  %v6630_v10 = vmul.f32 %v14363_v47, %v6594_v18  ;;  %v14507_v2 = vadd.f32 %v14371_v29, %v6629_v56 }
0x1253   :  { %v9707_v59 = vpop.eup %9706  ;;  %9716 = vrsqrt.f32 %v6537_v8  ;;  %v6538_v17 = vadd.f32 1e-05, %v6506_v42  ;;  %v6507_v53 = vmul.f32 0.015625, %v6473_v31 }
0x1254   :  { %v6596_v60 = vmul.f32 %v9707_v59, %v14282_v15  ;;  %v6476_v63 = vpop.xlane.xlu1 %6475  ;;  %9088 = vmatmul.mubr.msk.bf16.gmra.mrb[176].mxu1 %vm406_vm1, %v6694_v23  ;;  %v14510_v12 = vadd.f32 %v14371_v29, %v6630_v10  ;;  %v6631_v38 = vmul.f32 %v14363_v47, %v6595_v33 }
0x1255   :  { %v9709_v46 = vpop.eup %9708  ;;  %9718 = vrsqrt.f32 %v6538_v17  ;;  %v6539_v62 = vadd.f32 1e-05, %v6507_v53  ;;  %v6508_v55 = vmul.f32 0.015625, %v6476_v63 }
0x1256   :  { %v6597_v43 = vmul.f32 %v9709_v46, %v14288_v11  ;;  %v6695_v15 = vpack.c.bf16 %v14510_v12, %v14507_v2  ;;  %v6632_v51 = vmul.f32 %v14363_v47, %v6596_v60  ;;  %v14520_v30 = vadd.f32 %v14371_v29, %v6631_v38 }
0x1257   :  { %v9711_v54 = vpop.eup %9710  ;;  %9720 = vrsqrt.f32 %v6539_v62  ;;  %v6540_v3 = vadd.f32 1e-05, %v6508_v55 }
0x1258   :  { %v6598_v48 = vmul.f32 %v9711_v54, %v14294_v57  ;;  %9091 = vmatprep.mubr.msk.bf16.mxu1 %vm406_vm1, %v6695_v15  ;;  %v14523_v13 = vadd.f32 %v14371_v29, %v6632_v51  ;;  %v6633_v11 = vmul.f32 %v14363_v47, %v6597_v43  ;;  %v9271_v15 = vld [vmem:[%s15274_s1 + $0x180] sm:$0xff]  }
0x1259   :  { %v9713_v61 = vpop.eup %9712  ;;  %9722 = vrsqrt.f32 %v6540_v3  ;;  %9117 = vmatprep.subr.bf16.mxu0 %v9271_v15 }
0x125a   :  { %v6599_v6 = vmul.f32 %v9713_v61, %v14300_v1  ;;  %v6696_v4 = vpack.c.bf16 %v14523_v13, %v14520_v30  ;;  %v6634_v34 = vmul.f32 %v14363_v47, %v6598_v48  ;;  %v14533_v18 = vadd.f32 %v14371_v29, %v6633_v11  ;;  %9118 = vmatpush3.bf16.msra.mxu0 %v9271_v15 }
0x125b   :  { %v9715_v57 = vpop.eup %9714 }
0x125c   :  { %v6600_v37 = vmul.f32 %v9715_v57, %v14306_v36  ;;  %9092 = vmatmul.mubr.msk.bf16.gmra.mrb[180].mxu1 %vm406_vm1, %v6696_v4  ;;  %v14536_v41 = vadd.f32 %v14371_v29, %v6634_v34  ;;  %v6635_v56 = vmul.f32 %v14363_v47, %v6599_v6 }
0x125d   :  { %v9717_v58 = vpop.eup %9716 }
0x125e   :  { %v6601_v1 = vmul.f32 %v9717_v58, %v14312_v44  ;;  %v6697_v8 = vpack.c.bf16 %v14536_v41, %v14533_v18  ;;  %v6636_v42 = vmul.f32 %v14363_v47, %v6600_v37  ;;  %v14546_v31 = vadd.f32 %v14371_v29, %v6635_v56 }
0x125f   :  { %v9719_v33 = vpop.eup %9718 }
0x1260   :  { %v6602_v36 = vmul.f32 %v9719_v33, %v14318_v5  ;;  %9095 = vmatprep.mubr.msk.bf16.mxu1 %vm406_vm1, %v6697_v8  ;;  %v14549_v23 = vadd.f32 %v14371_v29, %v6636_v42  ;;  %v6637_v10 = vmul.f32 %v14363_v47, %v6601_v1 }
0x1261   :  { %v9721_v59 = vpop.eup %9720 }
0x1262   :  { %v6603_v44 = vmul.f32 %v9721_v59, %v14324_v20  ;;  %v6698_v17 = vpack.c.bf16 %v14549_v23, %v14546_v31  ;;  %v6638_v53 = vmul.f32 %v14363_v47, %v6602_v36  ;;  %v14559_v63 = vadd.f32 %v14371_v29, %v6637_v10 }
0x1263   :  { %v9723_v60 = vpop.eup %9722 }
0x1264   :  { %v6604_v5 = vmul.f32 %v9723_v60, %v14330_v21  ;;  %9096 = vmatmul.mubr.msk.bf16.gmra.mrb[184].mxu1 %vm406_vm1, %v6698_v17  ;;  %v14562_v38 = vadd.f32 %v14371_v29, %v6638_v53  ;;  %v6639_v46 = vmul.f32 %v14363_v47, %v6603_v44 }
0x1266   :  { %v6699_v20 = vpack.c.bf16 %v14562_v38, %v14559_v63  ;;  %v6640_v62 = vmul.f32 %v14363_v47, %v6604_v5  ;;  %v14570_v55 = vadd.f32 %v14371_v29, %v6639_v46  ;;  %v14584_v47 = vld [vmem:[%s15276_s3 + $0x1a] ss:$0 sm:$0xff] }
0x1268   :  { %9099 = vmatprep.mubr.msk.bf16.mxu1 %vm406_vm1, %v6699_v20  ;;  %v14573_v21 = vadd.f32 %v14371_v29, %v6640_v62 }
0x126a   :  { %v6700_v43 = vpack.c.bf16 %v14573_v21, %v14570_v55 }
0x126c   :  { %9100 = vmatmul.mubr.msk.bf16.gmra.mrb[188].mxu1 %vm406_vm1, %v6700_v43 }
0x1307   :  { %v9073_v51 = vpop.f32.mrb[160].mxu1 }
0x1308   :  { %v6821_v29 = vadd.f32 %v9073_v51, %v14584_v47  ;;  %v6812_v54 = vpop.f32.mrb[161].mxu1 }
0x1309   :  { %v6813_v3 = vadd.f32 %v14584_v47, %v6812_v54  ;;  %v9074_v48 = vpop.f32.mrb[162].mxu1 }
0x130a   :  { %v6824_v11 = vadd.f32 %v9074_v48, %v14584_v47  ;;  %v6815_v61 = vpop.f32.mrb[163].mxu1  ;;  %v6941_v4 = vmax.f32 %v6821_v29, 0.0 }
0x130b   :  { %v6816_v6 = vadd.f32 %v14584_v47, %v6815_v61  ;;  %v6939_v57 = vmax.f32 %v6813_v3, 0.0 }
0x130c   :  { %v6942_v34 = vmax.f32 %v6824_v11, 0.0 }
0x130d   :  { %v6940_v37 = vmax.f32 %v6816_v6, 0.0 }
0x130e   :  { %v6988_v56 = vpack.c.bf16 %v6942_v34, %v6941_v4 }
0x130f   :  { %v6987_v58 = vpack.c.bf16 %v6940_v37, %v6939_v57  ;;  %v9077_v1 = vpop.f32.mrb[164].mxu1 }
0x1310   :  { %v6837_v8 = vadd.f32 %v9077_v1, %v14584_v47  ;;  %v6828_v42 = vpop.f32.mrb[165].mxu1 }
0x1311   :  { %v6829_v33 = vadd.f32 %v14584_v47, %v6828_v42  ;;  %v9078_v36 = vpop.f32.mrb[166].mxu1  ;;  %9119 = vmatprep.mubr.bf16.mxu0 %v6987_v58 }
0x1312   :  { %v6840_v10 = vadd.f32 %v9078_v36, %v14584_v47  ;;  %v6831_v59 = vpop.f32.mrb[167].mxu1  ;;  %9120 = vmatmul.mubr.bf16.vlgmr.msra.gmra.mrb[192].mxu0 %v6988_v56  ;;  %v6945_v17 = vmax.f32 %v6837_v8, 0.0 }
0x1313   :  { %v6832_v44 = vadd.f32 %v14584_v47, %v6831_v59  ;;  %v6943_v60 = vmax.f32 %v6829_v33, 0.0 }
0x1314   :  { %v6946_v53 = vmax.f32 %v6840_v10, 0.0 }
0x1315   :  { %v6944_v5 = vmax.f32 %v6832_v44, 0.0 }
0x1316   :  { %v6990_v46 = vpack.c.bf16 %v6946_v53, %v6945_v17 }
0x1317   :  { %v6989_v20 = vpack.c.bf16 %v6944_v5, %v6943_v60  ;;  %v9081_v62 = vpop.f32.mrb[168].mxu1 }
0x1318   :  { %v6853_v43 = vadd.f32 %v9081_v62, %v14584_v47  ;;  %v6844_v15 = vpop.f32.mrb[169].mxu1 }
0x1319   :  { %v6845_v51 = vadd.f32 %v14584_v47, %v6844_v15  ;;  %v9082_v29 = vpop.f32.mrb[170].mxu1  ;;  %9123 = vmatprep.mubr.bf16.mxu0 %v6989_v20 }
0x131a   :  { %v6856_v54 = vadd.f32 %v9082_v29, %v14584_v47  ;;  %v6847_v3 = vpop.f32.mrb[171].mxu1  ;;  %9124 = vmatmul.mubr.bf16.gmra.mrb[196].mxu0 %v6990_v46  ;;  %v6949_v11 = vmax.f32 %v6853_v43, 0.0 }
0x131b   :  { %v6848_v48 = vadd.f32 %v14584_v47, %v6847_v3  ;;  %v6947_v6 = vmax.f32 %v6845_v51, 0.0 }
0x131c   :  { %v6950_v61 = vmax.f32 %v6856_v54, 0.0 }
0x131d   :  { %v6948_v4 = vmax.f32 %v6848_v48, 0.0 }
0x131e   :  { %v6992_v34 = vpack.c.bf16 %v6950_v61, %v6949_v11 }
0x131f   :  { %v6991_v57 = vpack.c.bf16 %v6948_v4, %v6947_v6  ;;  %v9085_v37 = vpop.f32.mrb[172].mxu1 }
0x1320   :  { %v6869_v56 = vadd.f32 %v9085_v37, %v14584_v47  ;;  %v6860_v58 = vpop.f32.mrb[173].mxu1 }
0x1321   :  { %v6861_v1 = vadd.f32 %v14584_v47, %v6860_v58  ;;  %v9086_v8 = vpop.f32.mrb[174].mxu1  ;;  %9127 = vmatprep.mubr.bf16.mxu0 %v6991_v57 }
0x1322   :  { %v6872_v42 = vadd.f32 %v9086_v8, %v14584_v47  ;;  %v6863_v33 = vpop.f32.mrb[175].mxu1  ;;  %9128 = vmatmul.mubr.bf16.gmra.mrb[200].mxu0 %v6992_v34  ;;  %v6953_v10 = vmax.f32 %v6869_v56, 0.0 }
0x1323   :  { %v6864_v36 = vadd.f32 %v14584_v47, %v6863_v33  ;;  %v6951_v44 = vmax.f32 %v6861_v1, 0.0 }
0x1324   :  { %v6954_v59 = vmax.f32 %v6872_v42, 0.0 }
0x1325   :  { %v6952_v17 = vmax.f32 %v6864_v36, 0.0 }
0x1326   :  { %v6994_v53 = vpack.c.bf16 %v6954_v59, %v6953_v10 }
0x1327   :  { %v6993_v60 = vpack.c.bf16 %v6952_v17, %v6951_v44  ;;  %v9089_v5 = vpop.f32.mrb[176].mxu1 }
0x1328   :  { %v6885_v46 = vadd.f32 %v9089_v5, %v14584_v47  ;;  %v6876_v20 = vpop.f32.mrb[177].mxu1 }
0x1329   :  { %v6877_v62 = vadd.f32 %v14584_v47, %v6876_v20  ;;  %v9090_v43 = vpop.f32.mrb[178].mxu1  ;;  %9131 = vmatprep.mubr.bf16.mxu0 %v6993_v60 }
0x132a   :  { %v6888_v15 = vadd.f32 %v9090_v43, %v14584_v47  ;;  %v6879_v51 = vpop.f32.mrb[179].mxu1  ;;  %9132 = vmatmul.mubr.bf16.gmra.mrb[204].mxu0 %v6994_v53  ;;  %v6957_v54 = vmax.f32 %v6885_v46, 0.0 }
0x132b   :  { %v6880_v29 = vadd.f32 %v14584_v47, %v6879_v51  ;;  %v6955_v48 = vmax.f32 %v6877_v62, 0.0 }
0x132c   :  { %v6958_v3 = vmax.f32 %v6888_v15, 0.0 }
0x132d   :  { %v6956_v11 = vmax.f32 %v6880_v29, 0.0 }
0x132e   :  { %v6996_v61 = vpack.c.bf16 %v6958_v3, %v6957_v54 }
0x132f   :  { %v6995_v6 = vpack.c.bf16 %v6956_v11, %v6955_v48  ;;  %v9093_v4 = vpop.f32.mrb[180].mxu1 }
0x1330   :  { %v6901_v34 = vadd.f32 %v9093_v4, %v14584_v47  ;;  %v6892_v57 = vpop.f32.mrb[181].mxu1 }
0x1331   :  { %v6893_v37 = vadd.f32 %v14584_v47, %v6892_v57  ;;  %v9094_v56 = vpop.f32.mrb[182].mxu1  ;;  %9135 = vmatprep.mubr.bf16.mxu0 %v6995_v6 }
0x1332   :  { %v6904_v58 = vadd.f32 %v9094_v56, %v14584_v47  ;;  %v6895_v1 = vpop.f32.mrb[183].mxu1  ;;  %9136 = vmatmul.mubr.bf16.gmra.mrb[208].mxu0 %v6996_v61  ;;  %v6961_v42 = vmax.f32 %v6901_v34, 0.0 }
0x1333   :  { %v6896_v8 = vadd.f32 %v14584_v47, %v6895_v1  ;;  %v6959_v36 = vmax.f32 %v6893_v37, 0.0 }
0x1334   :  { %v6962_v33 = vmax.f32 %v6904_v58, 0.0 }
0x1335   :  { %v6960_v10 = vmax.f32 %v6896_v8, 0.0 }
0x1336   :  { %v6998_v59 = vpack.c.bf16 %v6962_v33, %v6961_v42 }
0x1337   :  { %v6997_v44 = vpack.c.bf16 %v6960_v10, %v6959_v36  ;;  %v9097_v17 = vpop.f32.mrb[184].mxu1  ;;  %v14621_v10 = vld [vmem:[%s15276_s3 + $0x1b] ss:$0 sm:$0xff] }
0x1338   :  { %v6917_v53 = vadd.f32 %v9097_v17, %v14584_v47  ;;  %v6908_v60 = vpop.f32.mrb[185].mxu1 }
0x1339   :  { %v6909_v5 = vadd.f32 %v14584_v47, %v6908_v60  ;;  %v9098_v46 = vpop.f32.mrb[186].mxu1  ;;  %9139 = vmatprep.mubr.bf16.mxu0 %v6997_v44 }
0x133a   :  { %v6920_v20 = vadd.f32 %v9098_v46, %v14584_v47  ;;  %v6911_v62 = vpop.f32.mrb[187].mxu1  ;;  %9140 = vmatmul.mubr.bf16.gmra.mrb[212].mxu0 %v6998_v59  ;;  %v6965_v15 = vmax.f32 %v6917_v53, 0.0 }
0x133b   :  { %v6912_v43 = vadd.f32 %v14584_v47, %v6911_v62  ;;  %v6963_v29 = vmax.f32 %v6909_v5, 0.0 }
0x133c   :  { %v6966_v51 = vmax.f32 %v6920_v20, 0.0 }
0x133d   :  { %v6964_v54 = vmax.f32 %v6912_v43, 0.0 }
0x133e   :  { %v7000_v3 = vpack.c.bf16 %v6966_v51, %v6965_v15 }
0x133f   :  { %v6999_v48 = vpack.c.bf16 %v6964_v54, %v6963_v29  ;;  %v9101_v11 = vpop.f32.mrb[188].mxu1 }
0x1340   :  { %v6933_v61 = vadd.f32 %v9101_v11, %v14584_v47  ;;  %v6924_v6 = vpop.f32.mrb[189].mxu1 }
0x1341   :  { %v6925_v4 = vadd.f32 %v14584_v47, %v6924_v6  ;;  %v9102_v34 = vpop.f32.mrb[190].mxu1  ;;  %9143 = vmatprep.mubr.bf16.mxu0 %v6999_v48 }
0x1342   :  { %v6936_v57 = vadd.f32 %v9102_v34, %v14584_v47  ;;  %v6927_v37 = vpop.f32.mrb[191].mxu1  ;;  %9144 = vmatmul.mubr.bf16.gmra.mrb[216].mxu0 %v7000_v3  ;;  %v6969_v58 = vmax.f32 %v6933_v61, 0.0 }
0x1343   :  { %v6928_v56 = vadd.f32 %v14584_v47, %v6927_v37  ;;  %v6967_v8 = vmax.f32 %v6925_v4, 0.0 }
0x1344   :  { %v6970_v1 = vmax.f32 %v6936_v57, 0.0 }
0x1345   :  { %v6968_v42 = vmax.f32 %v6928_v56, 0.0 }
0x1346   :  { %v7002_v33 = vpack.c.bf16 %v6970_v1, %v6969_v58 }
0x1347   :  { %v7001_v36 = vpack.c.bf16 %v6968_v42, %v6967_v8 }
0x1349   :  { %9147 = vmatprep.mubr.bf16.mxu0 %v7001_v36 }
0x134a   :  { %9148 = vmatmul.mubr.bf16.gmra.mrb[220].mxu0 %v7002_v33 }
0x13e5   :  { %v9121_v59 = vpop.f32.mrb[192].mxu0 }
0x13e6   :  { %v7090_v44 = vpop.f32.mrb[193].mxu0  ;;  %v7099_v17 = vadd.f32 %v9121_v59, %v14621_v10 }
0x13e7   :  { %v7091_v53 = vadd.f32 %v14621_v10, %v7090_v44  ;;  %v9122_v47 = vpop.f32.mrb[194].mxu0 }
0x13e8   :  { %v7093_v60 = vpop.f32.mrb[195].mxu0  ;;  %v7102_v46 = vadd.f32 %v9122_v47, %v14621_v10  ;;  %v14631_v62 = vadd.f32 %v7099_v17, %v14388_v49 }
0x13e9   :  { %v14626_v5 = vadd.f32 %v7091_v53, %v14378_v28  ;;  %v7094_v20 = vadd.f32 %v14621_v10, %v7093_v60 }
0x13ea   :  { %v14639_v51 = vadd.f32 %v7102_v46, %v14391_v14 }
0x13eb   :  { %v14634_v43 = vadd.f32 %v7094_v20, %v14381_v27  ;;  %v7251_v15 = vsel %vm406_vm1, %v14626_v5, 0.0  ;;  %v7257_v27 = vsel %vm406_vm1, %v14631_v62, 0.0 }
0x13ec   :  { %7252 = vadd.xlane.f32.xlu0 %v7251_v15  ;;  %v7260_v4 = vsel %vm406_vm1, %v14639_v51, 0.0 }
0x13ed   :  { %v9125_v29 = vpop.f32.mrb[196].mxu0  ;;  %v7254_v28 = vsel %vm406_vm1, %v14634_v43, 0.0 }
0x13ee   :  { %7255 = vadd.xlane.f32.xlu1 %v7254_v28  ;;  %v7106_v54 = vpop.f32.mrb[197].mxu0  ;;  %v7115_v3 = vadd.f32 %v9125_v29, %v14621_v10 }
0x13ef   :  { %v7107_v49 = vadd.f32 %v14621_v10, %v7106_v54  ;;  %v9126_v48 = vpop.f32.mrb[198].mxu0 }
0x13f0   :  { %7258 = vadd.xlane.f32.xlu0 %v7257_v27  ;;  %v7109_v11 = vpop.f32.mrb[199].mxu0  ;;  %v7118_v14 = vadd.f32 %v9126_v48, %v14621_v10  ;;  %v14655_v34 = vadd.f32 %v7115_v3, %v14416_v24 }
0x13f1   :  { %v14648_v61 = vadd.f32 %v7107_v49, %v14403_v9  ;;  %v7110_v6 = vadd.f32 %v14621_v10, %v7109_v11 }
0x13f2   :  { %7261 = vadd.xlane.f32.xlu1 %v7260_v4  ;;  %v14663_v9 = vadd.f32 %v7118_v14, %v14419_v45 }
0x13f3   :  { %v14658_v57 = vadd.f32 %v7110_v6, %v14406_v26  ;;  %v7263_v37 = vsel %vm406_vm1, %v14648_v61, 0.0  ;;  %v7269_v26 = vsel %vm406_vm1, %v14655_v34, 0.0 }
0x13f4   :  { %7264 = vadd.xlane.f32.xlu0 %v7263_v37  ;;  %v7272_v44 = vsel %vm406_vm1, %v14663_v9, 0.0 }
0x13f5   :  { %v9129_v56 = vpop.f32.mrb[200].mxu0  ;;  %v7266_v58 = vsel %vm406_vm1, %v14658_v57, 0.0 }
0x13f6   :  { %7267 = vadd.xlane.f32.xlu1 %v7266_v58  ;;  %v7122_v1 = vpop.f32.mrb[201].mxu0  ;;  %v7131_v8 = vadd.f32 %v9129_v56, %v14621_v10 }
0x13f7   :  { %v7123_v24 = vadd.f32 %v14621_v10, %v7122_v1  ;;  %v9130_v42 = vpop.f32.mrb[202].mxu0 }
0x13f8   :  { %7270 = vadd.xlane.f32.xlu0 %v7269_v26  ;;  %v7125_v33 = vpop.f32.mrb[203].mxu0  ;;  %v7134_v45 = vadd.f32 %v9130_v42, %v14621_v10  ;;  %v14679_v17 = vadd.f32 %v7131_v8, %v14442_v35 }
0x13f9   :  { %v14672_v36 = vadd.f32 %v7123_v24, %v14429_v40  ;;  %v7126_v59 = vadd.f32 %v14621_v10, %v7125_v33 }
0x13fa   :  { %7273 = vadd.xlane.f32.xlu1 %v7272_v44  ;;  %v14687_v40 = vadd.f32 %v7134_v45, %v14445_v50 }
0x13fb   :  { %v14682_v53 = vadd.f32 %v7126_v59, %v14432_v0  ;;  %v7275_v47 = vsel %vm406_vm1, %v14672_v36, 0.0  ;;  %v7281_v0 = vsel %vm406_vm1, %v14679_v17, 0.0 }
0x13fc   :  { %7276 = vadd.xlane.f32.xlu0 %v7275_v47  ;;  %v7284_v49 = vsel %vm406_vm1, %v14687_v40, 0.0 }
0x13fd   :  { %v9133_v60 = vpop.f32.mrb[204].mxu0  ;;  %v7278_v46 = vsel %vm406_vm1, %v14682_v53, 0.0 }
0x13fe   :  { %7279 = vadd.xlane.f32.xlu1 %v7278_v46  ;;  %v7138_v20 = vpop.f32.mrb[205].mxu0  ;;  %v7147_v15 = vadd.f32 %v9133_v60, %v14621_v10 }
0x13ff   :  { %v7139_v35 = vadd.f32 %v14621_v10, %v7138_v20  ;;  %v9134_v29 = vpop.f32.mrb[206].mxu0 }
0x1400   :  { %7282 = vadd.xlane.f32.xlu0 %v7281_v0  ;;  %v7141_v28 = vpop.f32.mrb[207].mxu0  ;;  %v7150_v50 = vadd.f32 %v9134_v29, %v14621_v10  ;;  %v14703_v48 = vadd.f32 %v7147_v15, %v14468_v22 }
0x1401   :  { %v14696_v54 = vadd.f32 %v7139_v35, %v14455_v16  ;;  %v7142_v3 = vadd.f32 %v14621_v10, %v7141_v28 }
0x1402   :  { %7285 = vadd.xlane.f32.xlu1 %v7284_v49  ;;  %v14711_v16 = vadd.f32 %v7150_v50, %v14471_v52 }
0x1403   :  { %v14706_v27 = vadd.f32 %v7142_v3, %v14458_v39  ;;  %v7287_v11 = vsel %vm406_vm1, %v14696_v54, 0.0  ;;  %v7293_v39 = vsel %vm406_vm1, %v14703_v48, 0.0 }
0x1404   :  { %7288 = vadd.xlane.f32.xlu0 %v7287_v11  ;;  %v7296_v24 = vsel %vm406_vm1, %v14711_v16, 0.0 }
0x1405   :  { %v9137_v14 = vpop.f32.mrb[208].mxu0  ;;  %v7290_v6 = vsel %vm406_vm1, %v14706_v27, 0.0 }
0x1406   :  { %7291 = vadd.xlane.f32.xlu1 %v7290_v6  ;;  %v7154_v4 = vpop.f32.mrb[209].mxu0  ;;  %v7163_v37 = vadd.f32 %v9137_v14, %v14621_v10 }
0x1407   :  { %v7155_v22 = vadd.f32 %v14621_v10, %v7154_v4  ;;  %v9138_v56 = vpop.f32.mrb[210].mxu0 }
0x1408   :  { %7294 = vadd.xlane.f32.xlu0 %v7293_v39  ;;  %v7157_v58 = vpop.f32.mrb[211].mxu0  ;;  %v7166_v52 = vadd.f32 %v9138_v56, %v14621_v10  ;;  %v14727_v42 = vadd.f32 %v7163_v37, %v14494_v7 }
0x1409   :  { %v14720_v1 = vadd.f32 %v7155_v22, %v14481_v32  ;;  %v7158_v8 = vadd.f32 %v14621_v10, %v7157_v58 }
0x140a   :  { %7297 = vadd.xlane.f32.xlu1 %v7296_v24  ;;  %v14735_v32 = vadd.f32 %v7166_v52, %v14497_v19 }
0x140b   :  { %v14730_v26 = vadd.f32 %v7158_v8, %v14484_v25  ;;  %v7299_v33 = vsel %vm406_vm1, %v14720_v1, 0.0  ;;  %v7305_v25 = vsel %vm406_vm1, %v14727_v42, 0.0 }
0x140c   :  { %7300 = vadd.xlane.f32.xlu0 %v7299_v33  ;;  %v7308_v35 = vsel %vm406_vm1, %v14735_v32, 0.0 }
0x140d   :  { %v9141_v45 = vpop.f32.mrb[212].mxu0  ;;  %v7302_v59 = vsel %vm406_vm1, %v14730_v26, 0.0 }
0x140e   :  { %7303 = vadd.xlane.f32.xlu1 %v7302_v59  ;;  %v7170_v44 = vpop.f32.mrb[213].mxu0  ;;  %v7179_v47 = vadd.f32 %v9141_v45, %v14621_v10 }
0x140f   :  { %v7171_v7 = vadd.f32 %v14621_v10, %v7170_v44  ;;  %v9142_v60 = vpop.f32.mrb[214].mxu0 }
0x1410   :  { %7306 = vadd.xlane.f32.xlu0 %v7305_v25  ;;  %v7173_v46 = vpop.f32.mrb[215].mxu0  ;;  %v7182_v19 = vadd.f32 %v9142_v60, %v14621_v10  ;;  %v14751_v29 = vadd.f32 %v7179_v47, %v14520_v30 }
0x1411   :  { %v14744_v20 = vadd.f32 %v7171_v7, %v14507_v2  ;;  %v7174_v15 = vadd.f32 %v14621_v10, %v7173_v46 }
0x1412   :  { %7309 = vadd.xlane.f32.xlu1 %v7308_v35  ;;  %v14759_v2 = vadd.f32 %v7182_v19, %v14523_v13 }
0x1413   :  { %v14754_v0 = vadd.f32 %v7174_v15, %v14510_v12  ;;  %v7311_v28 = vsel %vm406_vm1, %v14744_v20, 0.0  ;;  %v7317_v12 = vsel %vm406_vm1, %v14751_v29, 0.0  ;;  %v9274_v15 = vld [vmem:[%s15277_s2 + $0x90] sm:$0xff]  }
0x1414   :  { %7312 = vadd.xlane.f32.xlu0 %v7311_v28  ;;  %v7320_v22 = vsel %vm406_vm1, %v14759_v2, 0.0 }
0x1415   :  { %v9145_v50 = vpop.f32.mrb[216].mxu0  ;;  %v7314_v3 = vsel %vm406_vm1, %v14754_v0, 0.0 }
0x1416   :  { %7315 = vadd.xlane.f32.xlu1 %v7314_v3  ;;  %v7186_v49 = vpop.f32.mrb[217].mxu0  ;;  %v7195_v11 = vadd.f32 %v9145_v50, %v14621_v10 }
0x1417   :  { %v7187_v30 = vadd.f32 %v14621_v10, %v7186_v49  ;;  %v9146_v14 = vpop.f32.mrb[218].mxu0 }
0x1418   :  { %7318 = vadd.xlane.f32.xlu0 %v7317_v12  ;;  %v7189_v6 = vpop.f32.mrb[219].mxu0  ;;  %v7198_v13 = vadd.f32 %v9146_v14, %v14621_v10  ;;  %v14775_v56 = vadd.f32 %v7195_v11, %v14546_v31 }
0x1419   :  { %v14768_v4 = vadd.f32 %v7187_v30, %v14533_v18  ;;  %v7190_v37 = vadd.f32 %v14621_v10, %v7189_v6 }
0x141a   :  { %7321 = vadd.xlane.f32.xlu1 %v7320_v22  ;;  %v14783_v18 = vadd.f32 %v7198_v13, %v14549_v23 }
0x141b   :  { %v14778_v39 = vadd.f32 %v7190_v37, %v14536_v41  ;;  %v7323_v58 = vsel %vm406_vm1, %v14768_v4, 0.0  ;;  %v7329_v41 = vsel %vm406_vm1, %v14775_v56, 0.0 }
0x141c   :  { %7324 = vadd.xlane.f32.xlu0 %v7323_v58  ;;  %v7332_v7 = vsel %vm406_vm1, %v14783_v18, 0.0 }
0x141d   :  { %v9149_v52 = vpop.f32.mrb[220].mxu0  ;;  %v7326_v8 = vsel %vm406_vm1, %v14778_v39, 0.0 }
0x141e   :  { %7327 = vadd.xlane.f32.xlu1 %v7326_v8  ;;  %v7202_v24 = vpop.f32.mrb[221].mxu0  ;;  %v7211_v33 = vadd.f32 %v9149_v52, %v14621_v10 }
0x141f   :  { %v7203_v31 = vadd.f32 %v14621_v10, %v7202_v24  ;;  %v9150_v45 = vpop.f32.mrb[222].mxu0 }
0x1420   :  { %7330 = vadd.xlane.f32.xlu0 %v7329_v41  ;;  %v7205_v59 = vpop.f32.mrb[223].mxu0  ;;  %v7214_v23 = vadd.f32 %v9150_v45, %v14621_v10  ;;  %v14799_v60 = vadd.f32 %v7211_v33, %v14570_v55 }
0x1421   :  { %v14792_v44 = vadd.f32 %v7203_v31, %v14559_v63  ;;  %v7206_v47 = vadd.f32 %v14621_v10, %v7205_v59 }
0x1422   :  { %7333 = vadd.xlane.f32.xlu1 %v7332_v7  ;;  %v14807_v63 = vadd.f32 %v7214_v23, %v14573_v21  ;;  %v7341_v19 = vsel %vm406_vm1, %v14799_v60, 0.0  ;;  %v9273_v21 = vld [vmem:[%s15277_s2 + $0x88] sm:$0xff]  }
0x1423   :  { %v14802_v25 = vadd.f32 %v7206_v47, %v14562_v38  ;;  %v7335_v46 = vsel %vm406_vm1, %v14792_v44, 0.0  ;;  %v9272_v38 = vld [vmem:[%s15277_s2 + $0x80] sm:$0xff]  }
0x1424   :  { %7336 = vadd.xlane.f32.xlu0 %v7335_v46  ;;  %v7344_v55 = vsel %vm406_vm1, %v14807_v63, 0.0  ;;  %9151 = vmatprep.subr.bf16.mxu1 %v9272_v38 }
0x1425   :  { %v7338_v10 = vsel %vm406_vm1, %v14802_v25, 0.0  ;;  %9152 = vmatpush3.bf16.msra.mxu1 %v9272_v38 }
0x1426   :  { %7339 = vadd.xlane.f32.xlu1 %v7338_v10  ;;  %9153 = vmatprep.subr.bf16.mxu1 %v9273_v21 }
0x1428   :  { %7342 = vadd.xlane.f32.xlu0 %v7341_v19 }
0x1429   :  { %9154 = vmatpush3.bf16.msra.mxu1 %v9273_v21 }
0x142a   :  { %7345 = vadd.xlane.f32.xlu1 %v7344_v55  ;;  %9155 = vmatprep.subr.bf16.mxu1 %v9274_v15 }
0x142d   :  { %9156 = vmatpush3.bf16.msra.mxu1 %v9274_v15 }
0x1479   :  { %v7253_v35 = vpop.xlane.xlu0 %7252 }
0x147a   :  { %v7347_v28 = vmul.f32 0.015625, %v7253_v35 }
0x147b   :  { %v7256_v50 = vpop.xlane.xlu1 %7255 }
0x147c   :  { %v14825_v3 = vsub.f32 %v14626_v5, %v7347_v28  ;;  %v7348_v49 = vmul.f32 0.015625, %v7256_v50 }
0x147d   :  { %v7259_v11 = vpop.xlane.xlu0 %7258 }
0x147e   :  { %v14828_v30 = vsub.f32 %v14634_v43, %v7348_v49  ;;  %v7349_v14 = vmul.f32 0.015625, %v7259_v11  ;;  %v7411_v12 = vmul.f32 %v14825_v3, %v14825_v3 }
0x147f   :  { %v7262_v6 = vpop.xlane.xlu1 %7261 }
0x1480   :  { %v14833_v13 = vsub.f32 %v14631_v62, %v7349_v14  ;;  %v7350_v37 = vmul.f32 0.015625, %v7262_v6  ;;  %v7443_v22 = vsel %vm406_vm1, %v7411_v12, 0.0  ;;  %v7412_v5 = vmul.f32 %v14828_v30, %v14828_v30 }
0x1481   :  { %7444 = vadd.xlane.f32.xlu0 %v7443_v22  ;;  %v7265_v58 = vpop.xlane.xlu0 %7264 }
0x1482   :  { %v14839_v52 = vsub.f32 %v14639_v51, %v7350_v37  ;;  %v7351_v43 = vmul.f32 0.015625, %v7265_v58  ;;  %v7446_v8 = vsel %vm406_vm1, %v7412_v5, 0.0  ;;  %v7413_v24 = vmul.f32 %v14833_v13, %v14833_v13 }
0x1483   :  { %v7268_v33 = vpop.xlane.xlu1 %7267  ;;  %7447 = vadd.xlane.f32.xlu1 %v7446_v8 }
0x1484   :  { %v14845_v62 = vsub.f32 %v14648_v61, %v7351_v43  ;;  %v7352_v31 = vmul.f32 0.015625, %v7268_v33  ;;  %v7449_v45 = vsel %vm406_vm1, %v7413_v24, 0.0  ;;  %v7414_v41 = vmul.f32 %v14839_v52, %v14839_v52 }
0x1485   :  { %7450 = vadd.xlane.f32.xlu0 %v7449_v45  ;;  %v7271_v51 = vpop.xlane.xlu0 %7270 }
0x1486   :  { %v14851_v59 = vsub.f32 %v14658_v57, %v7352_v31  ;;  %v7353_v23 = vmul.f32 0.015625, %v7271_v51  ;;  %v7452_v47 = vsel %vm406_vm1, %v7414_v41, 0.0  ;;  %v7415_v7 = vmul.f32 %v14845_v62, %v14845_v62 }
0x1487   :  { %v7274_v46 = vpop.xlane.xlu1 %7273  ;;  %7453 = vadd.xlane.f32.xlu1 %v7452_v47 }
0x1488   :  { %v14857_v61 = vsub.f32 %v14655_v34, %v7353_v23  ;;  %v7354_v10 = vmul.f32 0.015625, %v7274_v46  ;;  %v7455_v19 = vsel %vm406_vm1, %v7415_v7, 0.0  ;;  %v7416_v55 = vmul.f32 %v14851_v59, %v14851_v59 }
0x1489   :  { %7456 = vadd.xlane.f32.xlu0 %v7455_v19  ;;  %v7277_v57 = vpop.xlane.xlu0 %7276 }
0x148a   :  { %v14863_v38 = vsub.f32 %v14663_v9, %v7354_v10  ;;  %v7355_v21 = vmul.f32 0.015625, %v7277_v57  ;;  %v7458_v15 = vsel %vm406_vm1, %v7416_v55, 0.0  ;;  %v7417_v35 = vmul.f32 %v14857_v61, %v14857_v61 }
0x148b   :  { %v7280_v28 = vpop.xlane.xlu1 %7279  ;;  %7459 = vadd.xlane.f32.xlu1 %v7458_v15 }
0x148c   :  { %v14869_v34 = vsub.f32 %v14672_v36, %v7355_v21  ;;  %v7356_v50 = vmul.f32 0.015625, %v7280_v28  ;;  %v7461_v49 = vsel %vm406_vm1, %v7417_v35, 0.0  ;;  %v7418_v11 = vmul.f32 %v14863_v38, %v14863_v38 }
0x148d   :  { %7462 = vadd.xlane.f32.xlu0 %v7461_v49  ;;  %v7283_v9 = vpop.xlane.xlu0 %7282 }
0x148e   :  { %v14875_v14 = vsub.f32 %v14682_v53, %v7356_v50  ;;  %v7357_v12 = vmul.f32 0.015625, %v7283_v9  ;;  %v7464_v6 = vsel %vm406_vm1, %v7418_v11, 0.0  ;;  %v7419_v37 = vmul.f32 %v14869_v34, %v14869_v34 }
0x148f   :  { %v7286_v22 = vpop.xlane.xlu1 %7285  ;;  %7465 = vadd.xlane.f32.xlu1 %v7464_v6 }
0x1490   :  { %v14881_v36 = vsub.f32 %v14679_v17, %v7357_v12  ;;  %v7358_v5 = vmul.f32 0.015625, %v7286_v22  ;;  %v7467_v58 = vsel %vm406_vm1, %v7419_v37, 0.0  ;;  %v7420_v43 = vmul.f32 %v14875_v14, %v14875_v14 }
0x1491   :  { %7468 = vadd.xlane.f32.xlu0 %v7467_v58  ;;  %v7289_v53 = vpop.xlane.xlu0 %7288 }
0x1492   :  { %v14887_v8 = vsub.f32 %v14687_v40, %v7358_v5  ;;  %v7359_v24 = vmul.f32 0.015625, %v7289_v53  ;;  %v7470_v33 = vsel %vm406_vm1, %v7420_v43, 0.0  ;;  %v7421_v31 = vmul.f32 %v14881_v36, %v14881_v36 }
0x1493   :  { %v7292_v45 = vpop.xlane.xlu1 %7291  ;;  %7471 = vadd.xlane.f32.xlu1 %v7470_v33 }
0x1494   :  { %v14893_v17 = vsub.f32 %v14696_v54, %v7359_v24  ;;  %v7360_v41 = vmul.f32 0.015625, %v7292_v45  ;;  %v7473_v51 = vsel %vm406_vm1, %v7421_v31, 0.0  ;;  %v7422_v23 = vmul.f32 %v14887_v8, %v14887_v8 }
0x1495   :  { %7474 = vadd.xlane.f32.xlu0 %v7473_v51  ;;  %v7295_v40 = vpop.xlane.xlu0 %7294 }
0x1496   :  { %v14899_v47 = vsub.f32 %v14706_v27, %v7360_v41  ;;  %v7361_v7 = vmul.f32 0.015625, %v7295_v40  ;;  %v7476_v46 = vsel %vm406_vm1, %v7422_v23, 0.0  ;;  %v7423_v10 = vmul.f32 %v14893_v17, %v14893_v17 }
0x1497   :  { %v7298_v19 = vpop.xlane.xlu1 %7297  ;;  %7477 = vadd.xlane.f32.xlu1 %v7476_v46 }
0x1498   :  { %v14905_v54 = vsub.f32 %v14703_v48, %v7361_v7  ;;  %v7362_v55 = vmul.f32 0.015625, %v7298_v19  ;;  %v7479_v57 = vsel %vm406_vm1, %v7423_v10, 0.0  ;;  %v7424_v21 = vmul.f32 %v14899_v47, %v14899_v47 }
0x1499   :  { %7480 = vadd.xlane.f32.xlu0 %v7479_v57  ;;  %v7301_v27 = vpop.xlane.xlu0 %7300 }
0x149a   :  { %v14911_v15 = vsub.f32 %v14711_v16, %v7362_v55  ;;  %v7363_v35 = vmul.f32 0.015625, %v7301_v27  ;;  %v7482_v28 = vsel %vm406_vm1, %v7424_v21, 0.0  ;;  %v7425_v50 = vmul.f32 %v14905_v54, %v14905_v54 }
0x149b   :  { %v7304_v49 = vpop.xlane.xlu1 %7303  ;;  %7483 = vadd.xlane.f32.xlu1 %v7482_v28 }
0x149c   :  { %v14917_v48 = vsub.f32 %v14720_v1, %v7363_v35  ;;  %v7364_v11 = vmul.f32 0.015625, %v7304_v49  ;;  %v7485_v9 = vsel %vm406_vm1, %v7425_v50, 0.0  ;;  %v7426_v12 = vmul.f32 %v14911_v15, %v14911_v15 }
0x149d   :  { %7486 = vadd.xlane.f32.xlu0 %v7485_v9  ;;  %v7307_v16 = vpop.xlane.xlu0 %7306 }
0x149e   :  { %v14923_v6 = vsub.f32 %v14730_v26, %v7364_v11  ;;  %v7365_v37 = vmul.f32 0.015625, %v7307_v16  ;;  %v7488_v22 = vsel %vm406_vm1, %v7426_v12, 0.0  ;;  %v7427_v5 = vmul.f32 %v14917_v48, %v14917_v48 }
0x149f   :  { %v7310_v58 = vpop.xlane.xlu1 %7309  ;;  %7489 = vadd.xlane.f32.xlu1 %v7488_v22 }
0x14a0   :  { %v14929_v1 = vsub.f32 %v14727_v42, %v7365_v37  ;;  %v7366_v43 = vmul.f32 0.015625, %v7310_v58  ;;  %v7491_v53 = vsel %vm406_vm1, %v7427_v5, 0.0  ;;  %v7428_v24 = vmul.f32 %v14923_v6, %v14923_v6 }
0x14a1   :  { %7492 = vadd.xlane.f32.xlu0 %v7491_v53  ;;  %v7313_v26 = vpop.xlane.xlu0 %7312 }
0x14a2   :  { %v14935_v33 = vsub.f32 %v14735_v32, %v7366_v43  ;;  %v7367_v31 = vmul.f32 0.015625, %v7313_v26  ;;  %v7494_v45 = vsel %vm406_vm1, %v7428_v24, 0.0  ;;  %v7429_v41 = vmul.f32 %v14929_v1, %v14929_v1 }
0x14a3   :  { %v7316_v51 = vpop.xlane.xlu1 %7315  ;;  %7495 = vadd.xlane.f32.xlu1 %v7494_v45 }
0x14a4   :  { %v14941_v42 = vsub.f32 %v14744_v20, %v7367_v31  ;;  %v7368_v23 = vmul.f32 0.015625, %v7316_v51  ;;  %v7497_v40 = vsel %vm406_vm1, %v7429_v41, 0.0  ;;  %v7430_v7 = vmul.f32 %v14935_v33, %v14935_v33 }
0x14a5   :  { %7498 = vadd.xlane.f32.xlu0 %v7497_v40  ;;  %v7319_v32 = vpop.xlane.xlu0 %7318 }
0x14a6   :  { %v14947_v46 = vsub.f32 %v14754_v0, %v7368_v23  ;;  %v7369_v10 = vmul.f32 0.015625, %v7319_v32  ;;  %v7500_v19 = vsel %vm406_vm1, %v7430_v7, 0.0  ;;  %v7431_v55 = vmul.f32 %v14941_v42, %v14941_v42  ;;  %v9275_v0 = vld [vmem:[%s15277_s2 + $0x98] sm:$0xff]  }
0x14a7   :  { %v7322_v57 = vpop.xlane.xlu1 %7321  ;;  %7501 = vadd.xlane.f32.xlu1 %v7500_v19  ;;  %9157 = vmatprep.subr.bf16.mxu1 %v9275_v0 }
0x14a8   :  { %v14953_v20 = vsub.f32 %v14751_v29, %v7369_v10  ;;  %v7370_v21 = vmul.f32 0.015625, %v7322_v57  ;;  %v7503_v27 = vsel %vm406_vm1, %v7431_v55, 0.0  ;;  %v7432_v35 = vmul.f32 %v14947_v46, %v14947_v46  ;;  %9158 = vmatpush3.bf16.msra.mxu1 %v9275_v0 }
0x14a9   :  { %7504 = vadd.xlane.f32.xlu0 %v7503_v27  ;;  %v7325_v28 = vpop.xlane.xlu0 %7324 }
0x14aa   :  { %v14962_v50 = vsub.f32 %v14759_v2, %v7370_v21  ;;  %v7371_v49 = vmul.f32 0.015625, %v7325_v28  ;;  %v7506_v11 = vsel %vm406_vm1, %v7432_v35, 0.0  ;;  %v7433_v29 = vmul.f32 %v14953_v20, %v14953_v20 }
0x14ab   :  { %v7328_v9 = vpop.xlane.xlu1 %7327  ;;  %7507 = vadd.xlane.f32.xlu1 %v7506_v11 }
0x14ac   :  { %v14968_v12 = vsub.f32 %v14768_v4, %v7371_v49  ;;  %v7372_v16 = vmul.f32 0.015625, %v7328_v9  ;;  %v7509_v37 = vsel %vm406_vm1, %v7433_v29, 0.0  ;;  %v7434_v2 = vmul.f32 %v14962_v50, %v14962_v50 }
0x14ad   :  { %7510 = vadd.xlane.f32.xlu0 %v7509_v37  ;;  %v7331_v22 = vpop.xlane.xlu0 %7330 }
0x14ae   :  { %v14974_v5 = vsub.f32 %v14778_v39, %v7372_v16  ;;  %v7373_v58 = vmul.f32 0.015625, %v7331_v22  ;;  %v7512_v43 = vsel %vm406_vm1, %v7434_v2, 0.0  ;;  %v7435_v53 = vmul.f32 %v14968_v12, %v14968_v12 }
0x14af   :  { %v7334_v24 = vpop.xlane.xlu1 %7333  ;;  %7513 = vadd.xlane.f32.xlu1 %v7512_v43 }
0x14b0   :  { %v14980_v4 = vsub.f32 %v14775_v56, %v7373_v58  ;;  %v7374_v26 = vmul.f32 0.015625, %v7334_v24  ;;  %v7515_v31 = vsel %vm406_vm1, %v7435_v53, 0.0  ;;  %v7436_v45 = vmul.f32 %v14974_v5, %v14974_v5 }
0x14b1   :  { %7516 = vadd.xlane.f32.xlu0 %v7515_v31  ;;  %v7337_v39 = vpop.xlane.xlu0 %7336 }
0x14b2   :  { %v14986_v41 = vsub.f32 %v14783_v18, %v7374_v26  ;;  %v7375_v51 = vmul.f32 0.015625, %v7337_v39  ;;  %v7518_v23 = vsel %vm406_vm1, %v7436_v45, 0.0  ;;  %v7437_v40 = vmul.f32 %v14980_v4, %v14980_v4 }
0x14b3   :  { %7519 = vadd.xlane.f32.xlu1 %v7518_v23  ;;  %v7340_v56 = vpop.xlane.xlu1 %7339 }
0x14b4   :  { %v14992_v7 = vsub.f32 %v14792_v44, %v7375_v51  ;;  %v7376_v32 = vmul.f32 0.015625, %v7340_v56  ;;  %v7521_v10 = vsel %vm406_vm1, %v7437_v40, 0.0  ;;  %v7438_v19 = vmul.f32 %v14986_v41, %v14986_v41 }
0x14b5   :  { %7522 = vadd.xlane.f32.xlu0 %v7521_v10  ;;  %v7343_v18 = vpop.xlane.xlu0 %7342 }
0x14b6   :  { %v14998_v55 = vsub.f32 %v14802_v25, %v7376_v32  ;;  %v7377_v57 = vmul.f32 0.015625, %v7343_v18  ;;  %v7524_v21 = vsel %vm406_vm1, %v7438_v19, 0.0  ;;  %v7439_v27 = vmul.f32 %v14992_v7, %v14992_v7 }
0x14b7   :  { %7525 = vadd.xlane.f32.xlu1 %v7524_v21  ;;  %v7346_v44 = vpop.xlane.xlu1 %7345 }
0x14b8   :  { %v15004_v35 = vsub.f32 %v14799_v60, %v7377_v57  ;;  %v7378_v0 = vmul.f32 0.015625, %v7346_v44  ;;  %v7527_v28 = vsel %vm406_vm1, %v7439_v27, 0.0  ;;  %v7440_v49 = vmul.f32 %v14998_v55, %v14998_v55  ;;  %v15022_v27 = vld [vmem:[%s15276_s3 + $0x1c] ss:$0 sm:$0xff] }
0x14b9   :  { %7528 = vadd.xlane.f32.xlu0 %v7527_v28 }
0x14ba   :  { %v15010_v25 = vsub.f32 %v14807_v63, %v7378_v0  ;;  %v7530_v11 = vsel %vm406_vm1, %v7440_v49, 0.0  ;;  %v7441_v29 = vmul.f32 %v15004_v35, %v15004_v35 }
0x14bb   :  { %7531 = vadd.xlane.f32.xlu1 %v7530_v11 }
0x14bc   :  { %v7533_v9 = vsel %vm406_vm1, %v7441_v29, 0.0  ;;  %v7442_v60 = vmul.f32 %v15010_v25, %v15010_v25 }
0x14bd   :  { %7534 = vadd.xlane.f32.xlu0 %v7533_v9 }
0x14be   :  { %v7536_v16 = vsel %vm406_vm1, %v7442_v60, 0.0 }
0x14bf   :  { %7537 = vadd.xlane.f32.xlu1 %v7536_v16 }
0x150e   :  { %v7445_v37 = vpop.xlane.xlu0 %7444 }
0x150f   :  { %v7539_v2 = vmul.f32 0.015625, %v7445_v37 }
0x1510   :  { %v7448_v22 = vpop.xlane.xlu1 %7447 }
0x1511   :  { %v7571_v63 = vadd.f32 1e-05, %v7539_v2  ;;  %v7540_v58 = vmul.f32 0.015625, %v7448_v22  ;;  %v15030_v22 = vld [vmem:[%s15276_s3 + $0x1d] ss:$0 sm:$0xff] }
0x1512   :  { %v7451_v43 = vpop.xlane.xlu0 %7450 }
0x1513   :  { %9724 = vrsqrt.f32 %v7571_v63  ;;  %v7572_v53 = vadd.f32 1e-05, %v7540_v58  ;;  %v7541_v24 = vmul.f32 0.015625, %v7451_v43 }
0x1514   :  { %v7454_v26 = vpop.xlane.xlu1 %7453 }
0x1515   :  { %9726 = vrsqrt.f32 %v7572_v53  ;;  %v7573_v31 = vadd.f32 1e-05, %v7541_v24  ;;  %v7542_v45 = vmul.f32 0.015625, %v7454_v26 }
0x1516   :  { %v7457_v39 = vpop.xlane.xlu0 %7456 }
0x1517   :  { %9728 = vrsqrt.f32 %v7573_v31  ;;  %v7574_v51 = vadd.f32 1e-05, %v7542_v45  ;;  %v7543_v23 = vmul.f32 0.015625, %v7457_v39 }
0x1518   :  { %v7460_v40 = vpop.xlane.xlu1 %7459 }
0x1519   :  { %9730 = vrsqrt.f32 %v7574_v51  ;;  %v7575_v56 = vadd.f32 1e-05, %v7543_v23  ;;  %v7544_v32 = vmul.f32 0.015625, %v7460_v40 }
0x151a   :  { %v7463_v10 = vpop.xlane.xlu0 %7462 }
0x151b   :  { %9732 = vrsqrt.f32 %v7575_v56  ;;  %v7576_v19 = vadd.f32 1e-05, %v7544_v32  ;;  %v7545_v18 = vmul.f32 0.015625, %v7463_v10 }
0x151c   :  { %v7466_v57 = vpop.xlane.xlu1 %7465 }
0x151d   :  { %v9725_v21 = vpop.eup %9724  ;;  %9734 = vrsqrt.f32 %v7576_v19  ;;  %v7577_v44 = vadd.f32 1e-05, %v7545_v18  ;;  %v7546_v0 = vmul.f32 0.015625, %v7466_v57 }
0x151e   :  { %v7635_v28 = vmul.f32 %v9725_v21, %v14825_v3  ;;  %v7469_v49 = vpop.xlane.xlu0 %7468 }
0x151f   :  { %v9727_v11 = vpop.eup %9726  ;;  %9736 = vrsqrt.f32 %v7577_v44  ;;  %v7578_v29 = vadd.f32 1e-05, %v7546_v0  ;;  %v7547_v9 = vmul.f32 0.015625, %v7469_v49 }
0x1520   :  { %v7636_v60 = vmul.f32 %v9727_v11, %v14828_v30  ;;  %v7472_v16 = vpop.xlane.xlu1 %7471  ;;  %v7671_v37 = vmul.f32 %v15022_v27, %v7635_v28 }
0x1521   :  { %v9729_v2 = vpop.eup %9728  ;;  %9738 = vrsqrt.f32 %v7578_v29  ;;  %v7579_v63 = vadd.f32 1e-05, %v7547_v9  ;;  %v7548_v58 = vmul.f32 0.015625, %v7472_v16 }
0x1522   :  { %v7637_v3 = vmul.f32 %v9729_v2, %v14833_v13  ;;  %v7475_v43 = vpop.xlane.xlu0 %7474  ;;  %v7672_v53 = vmul.f32 %v15022_v27, %v7636_v60  ;;  %v7707_v51 = vadd.f32 %v15030_v22, %v7671_v37 }
0x1523   :  { %v9731_v24 = vpop.eup %9730  ;;  %9740 = vrsqrt.f32 %v7579_v63  ;;  %v7580_v30 = vadd.f32 1e-05, %v7548_v58  ;;  %v7549_v26 = vmul.f32 0.015625, %v7475_v43 }
0x1524   :  { %v7673_v31 = vmul.f32 %v15022_v27, %v7637_v3  ;;  %v7638_v45 = vmul.f32 %v9731_v24, %v14839_v52  ;;  %v7478_v39 = vpop.xlane.xlu1 %7477  ;;  %v7708_v23 = vadd.f32 %v15030_v22, %v7672_v53 }
0x1525   :  { %v9733_v40 = vpop.eup %9732  ;;  %9742 = vrsqrt.f32 %v7580_v30  ;;  %v7581_v56 = vadd.f32 1e-05, %v7549_v26  ;;  %v7550_v13 = vmul.f32 0.015625, %v7478_v39 }
0x1526   :  { %v7674_v32 = vmul.f32 %v15022_v27, %v7638_v45  ;;  %v7639_v10 = vmul.f32 %v9733_v40, %v14845_v62  ;;  %v7481_v19 = vpop.xlane.xlu0 %7480  ;;  %v7747_v18 = vpack.c.bf16 %v7708_v23, %v7707_v51  ;;  %v7709_v52 = vadd.f32 %v15030_v22, %v7673_v31 }
0x1527   :  { %v9735_v57 = vpop.eup %9734  ;;  %9744 = vrsqrt.f32 %v7581_v56  ;;  %v7582_v21 = vadd.f32 1e-05, %v7550_v13  ;;  %v7551_v44 = vmul.f32 0.015625, %v7481_v19 }
0x1528   :  { %v7710_v0 = vadd.f32 %v15030_v22, %v7674_v32  ;;  %v7640_v28 = vmul.f32 %v9735_v57, %v14851_v59  ;;  %v7484_v49 = vpop.xlane.xlu1 %7483  ;;  %9159 = vmatprep.mubr.msk.bf16.mxu1 %vm406_vm1, %v7747_v18  ;;  %v7675_v11 = vmul.f32 %v15022_v27, %v7639_v10 }
0x1529   :  { %v9737_v29 = vpop.eup %9736  ;;  %9746 = vrsqrt.f32 %v7582_v21  ;;  %v7583_v62 = vadd.f32 1e-05, %v7551_v44  ;;  %v7552_v9 = vmul.f32 0.015625, %v7484_v49 }
0x152a   :  { %v7641_v60 = vmul.f32 %v9737_v29, %v14857_v61  ;;  %v7487_v16 = vpop.xlane.xlu0 %7486  ;;  %v7748_v37 = vpack.c.bf16 %v7710_v0, %v7709_v52  ;;  %v7676_v2 = vmul.f32 %v15022_v27, %v7640_v28  ;;  %v7711_v53 = vadd.f32 %v15030_v22, %v7675_v11 }
0x152b   :  { %v9739_v63 = vpop.eup %9738  ;;  %9748 = vrsqrt.f32 %v7583_v62  ;;  %v7584_v58 = vadd.f32 1e-05, %v7552_v9  ;;  %v7553_v3 = vmul.f32 0.015625, %v7487_v16 }
0x152c   :  { %v7642_v59 = vmul.f32 %v9739_v63, %v14863_v38  ;;  %v7490_v43 = vpop.xlane.xlu1 %7489  ;;  %9160 = vmatmul.mubr.msk.bf16.vlgmr.msra.gmra.mrb[192].mxu1 %vm406_vm1, %v7748_v37  ;;  %v7712_v24 = vadd.f32 %v15030_v22, %v7676_v2  ;;  %v7677_v30 = vmul.f32 %v15022_v27, %v7641_v60 }
0x152d   :  { %v9741_v61 = vpop.eup %9740  ;;  %9750 = vrsqrt.f32 %v7584_v58  ;;  %v7585_v26 = vadd.f32 1e-05, %v7553_v3  ;;  %v7554_v31 = vmul.f32 0.015625, %v7490_v43 }
0x152e   :  { %v7643_v45 = vmul.f32 %v9741_v61, %v14869_v34  ;;  %v7493_v39 = vpop.xlane.xlu0 %7492  ;;  %v7749_v51 = vpack.c.bf16 %v7712_v24, %v7711_v53  ;;  %v7678_v23 = vmul.f32 %v15022_v27, %v7642_v59  ;;  %v7713_v10 = vadd.f32 %v15030_v22, %v7677_v30 }
0x152f   :  { %v9743_v38 = vpop.eup %9742  ;;  %9752 = vrsqrt.f32 %v7585_v26  ;;  %v7586_v40 = vadd.f32 1e-05, %v7554_v31  ;;  %v7555_v56 = vmul.f32 0.015625, %v7493_v39 }
0x1530   :  { %v7644_v13 = vmul.f32 %v9743_v38, %v14875_v14  ;;  %v7496_v32 = vpop.xlane.xlu1 %7495  ;;  %9163 = vmatprep.mubr.msk.bf16.mxu1 %vm406_vm1, %v7749_v51  ;;  %v7714_v19 = vadd.f32 %v15030_v22, %v7678_v23  ;;  %v7679_v18 = vmul.f32 %v15022_v27, %v7643_v45 }
0x1531   :  { %v9745_v34 = vpop.eup %9744  ;;  %9754 = vrsqrt.f32 %v7586_v40  ;;  %v7587_v57 = vadd.f32 1e-05, %v7555_v56  ;;  %v7556_v21 = vmul.f32 0.015625, %v7496_v32 }
0x1532   :  { %v7645_v44 = vmul.f32 %v9745_v34, %v14881_v36  ;;  %v7499_v52 = vpop.xlane.xlu0 %7498  ;;  %v7750_v0 = vpack.c.bf16 %v7714_v19, %v7713_v10  ;;  %v7680_v28 = vmul.f32 %v15022_v27, %v7644_v13  ;;  %v7715_v9 = vadd.f32 %v15030_v22, %v7679_v18 }
0x1533   :  { %v9747_v14 = vpop.eup %9746  ;;  %9756 = vrsqrt.f32 %v7587_v57  ;;  %v7588_v49 = vadd.f32 1e-05, %v7556_v21  ;;  %v7557_v11 = vmul.f32 0.015625, %v7499_v52 }
0x1534   :  { %v7646_v29 = vmul.f32 %v9747_v14, %v14887_v8  ;;  %v7502_v62 = vpop.xlane.xlu1 %7501  ;;  %9164 = vmatmul.mubr.msk.bf16.gmra.mrb[196].mxu1 %vm406_vm1, %v7750_v0  ;;  %v7716_v60 = vadd.f32 %v15030_v22, %v7680_v28  ;;  %v7681_v16 = vmul.f32 %v15022_v27, %v7645_v44 }
0x1535   :  { %v9749_v36 = vpop.eup %9748  ;;  %9758 = vrsqrt.f32 %v7588_v49  ;;  %v7589_v37 = vadd.f32 1e-05, %v7557_v11  ;;  %v7558_v2 = vmul.f32 0.015625, %v7502_v62 }
0x1536   :  { %v7647_v63 = vmul.f32 %v9749_v36, %v14893_v17  ;;  %v7505_v58 = vpop.xlane.xlu0 %7504  ;;  %v7751_v3 = vpack.c.bf16 %v7716_v60, %v7715_v9  ;;  %v7682_v59 = vmul.f32 %v15022_v27, %v7646_v29  ;;  %v7717_v61 = vadd.f32 %v15030_v22, %v7681_v16 }
0x1537   :  { %v9751_v8 = vpop.eup %9750  ;;  %9760 = vrsqrt.f32 %v7589_v37  ;;  %v7590_v43 = vadd.f32 1e-05, %v7558_v2  ;;  %v7559_v53 = vmul.f32 0.015625, %v7505_v58 }
0x1538   :  { %v7648_v24 = vmul.f32 %v9751_v8, %v14899_v47  ;;  %v7508_v30 = vpop.xlane.xlu1 %7507  ;;  %9167 = vmatprep.mubr.msk.bf16.mxu1 %vm406_vm1, %v7751_v3  ;;  %v7718_v26 = vadd.f32 %v15030_v22, %v7682_v59  ;;  %v7683_v31 = vmul.f32 %v15022_v27, %v7647_v63 }
0x1539   :  { %v9753_v17 = vpop.eup %9752  ;;  %9762 = vrsqrt.f32 %v7590_v43  ;;  %v7591_v45 = vadd.f32 1e-05, %v7559_v53  ;;  %v7560_v39 = vmul.f32 0.015625, %v7508_v30 }
0x153a   :  { %v7649_v51 = vmul.f32 %v9753_v17, %v14905_v54  ;;  %v7511_v23 = vpop.xlane.xlu0 %7510  ;;  %v7752_v38 = vpack.c.bf16 %v7718_v26, %v7717_v61  ;;  %v7684_v40 = vmul.f32 %v15022_v27, %v7648_v24  ;;  %v7719_v19 = vadd.f32 %v15030_v22, %v7683_v31 }
0x153b   :  { %v9755_v47 = vpop.eup %9754  ;;  %9764 = vrsqrt.f32 %v7591_v45  ;;  %v7592_v56 = vadd.f32 1e-05, %v7560_v39  ;;  %v7561_v13 = vmul.f32 0.015625, %v7511_v23 }
0x153c   :  { %v7650_v32 = vmul.f32 %v9755_v47, %v14911_v15  ;;  %v7514_v10 = vpop.xlane.xlu1 %7513  ;;  %9168 = vmatmul.mubr.msk.bf16.gmra.mrb[200].mxu1 %vm406_vm1, %v7752_v38  ;;  %v7720_v18 = vadd.f32 %v15030_v22, %v7684_v40  ;;  %v7685_v34 = vmul.f32 %v15022_v27, %v7649_v51 }
0x153d   :  { %v9757_v54 = vpop.eup %9756  ;;  %9766 = vrsqrt.f32 %v7592_v56  ;;  %v7593_v57 = vadd.f32 1e-05, %v7561_v13  ;;  %v7562_v21 = vmul.f32 0.015625, %v7514_v10 }
0x153e   :  { %v7651_v44 = vmul.f32 %v9757_v54, %v14917_v48  ;;  %v7517_v52 = vpop.xlane.xlu0 %7516  ;;  %v7753_v0 = vpack.c.bf16 %v7720_v18, %v7719_v19  ;;  %v7686_v28 = vmul.f32 %v15022_v27, %v7650_v32  ;;  %v7721_v62 = vadd.f32 %v15030_v22, %v7685_v34 }
0x153f   :  { %v9759_v15 = vpop.eup %9758  ;;  %9768 = vrsqrt.f32 %v7593_v57  ;;  %v7594_v14 = vadd.f32 1e-05, %v7562_v21  ;;  %v7563_v49 = vmul.f32 0.015625, %v7517_v52 }
0x1540   :  { %v7652_v11 = vmul.f32 %v9759_v15, %v14923_v6  ;;  %v7520_v29 = vpop.xlane.xlu1 %7519  ;;  %9171 = vmatprep.mubr.msk.bf16.mxu1 %vm406_vm1, %v7753_v0  ;;  %v7722_v9 = vadd.f32 %v15030_v22, %v7686_v28  ;;  %v7687_v60 = vmul.f32 %v15022_v27, %v7651_v44 }
0x1541   :  { %v9761_v48 = vpop.eup %9760  ;;  %9770 = vrsqrt.f32 %v7594_v14  ;;  %v7595_v16 = vadd.f32 1e-05, %v7563_v49  ;;  %v7564_v36 = vmul.f32 0.015625, %v7520_v29 }
0x1542   :  { %v7653_v37 = vmul.f32 %v9761_v48, %v14929_v1  ;;  %v7523_v2 = vpop.xlane.xlu0 %7522  ;;  %v7754_v63 = vpack.c.bf16 %v7722_v9, %v7721_v62  ;;  %v7688_v58 = vmul.f32 %v15022_v27, %v7652_v11  ;;  %v7723_v53 = vadd.f32 %v15030_v22, %v7687_v60 }
0x1543   :  { %v9763_v6 = vpop.eup %9762  ;;  %9772 = vrsqrt.f32 %v7595_v16  ;;  %v7596_v3 = vadd.f32 1e-05, %v7564_v36  ;;  %v7565_v59 = vmul.f32 0.015625, %v7523_v2 }
0x1544   :  { %v7654_v8 = vmul.f32 %v9763_v6, %v14935_v33  ;;  %v7526_v43 = vpop.xlane.xlu1 %7525  ;;  %9172 = vmatmul.mubr.msk.bf16.gmra.mrb[204].mxu1 %vm406_vm1, %v7754_v63  ;;  %v7724_v24 = vadd.f32 %v15030_v22, %v7688_v58  ;;  %v7689_v30 = vmul.f32 %v15022_v27, %v7653_v37 }
0x1545   :  { %v9765_v1 = vpop.eup %9764  ;;  %9774 = vrsqrt.f32 %v7596_v3  ;;  %v7597_v61 = vadd.f32 1e-05, %v7565_v59  ;;  %v7566_v26 = vmul.f32 0.015625, %v7526_v43 }
0x1546   :  { %v7655_v31 = vmul.f32 %v9765_v1, %v14941_v42  ;;  %v7529_v17 = vpop.xlane.xlu0 %7528  ;;  %v7755_v45 = vpack.c.bf16 %v7724_v24, %v7723_v53  ;;  %v7690_v39 = vmul.f32 %v15022_v27, %v7654_v8  ;;  %v7725_v47 = vadd.f32 %v15030_v22, %v7689_v30 }
0x1547   :  { %v9767_v33 = vpop.eup %9766  ;;  %9776 = vrsqrt.f32 %v7597_v61  ;;  %v7598_v51 = vadd.f32 1e-05, %v7566_v26  ;;  %v7567_v23 = vmul.f32 0.015625, %v7529_v17 }
0x1548   :  { %v7656_v38 = vmul.f32 %v9767_v33, %v14947_v46  ;;  %v7532_v40 = vpop.xlane.xlu1 %7531  ;;  %9175 = vmatprep.mubr.msk.bf16.mxu1 %vm406_vm1, %v7755_v45  ;;  %v7726_v56 = vadd.f32 %v15030_v22, %v7690_v39  ;;  %v7691_v13 = vmul.f32 %v15022_v27, %v7655_v31 }
0x1549   :  { %v9769_v42 = vpop.eup %9768  ;;  %9778 = vrsqrt.f32 %v7598_v51  ;;  %v7599_v32 = vadd.f32 1e-05, %v7567_v23  ;;  %v7568_v10 = vmul.f32 0.015625, %v7532_v40 }
0x154a   :  { %v7657_v19 = vmul.f32 %v9769_v42, %v14953_v20  ;;  %v7535_v18 = vpop.xlane.xlu0 %7534  ;;  %v7756_v34 = vpack.c.bf16 %v7726_v56, %v7725_v47  ;;  %v7692_v54 = vmul.f32 %v15022_v27, %v7656_v38  ;;  %v7727_v0 = vadd.f32 %v15030_v22, %v7691_v13 }
0x154b   :  { %v9771_v46 = vpop.eup %9770  ;;  %9780 = vrsqrt.f32 %v7599_v32  ;;  %v7600_v57 = vadd.f32 1e-05, %v7568_v10  ;;  %v7569_v21 = vmul.f32 0.015625, %v7535_v18 }
0x154c   :  { %v7658_v44 = vmul.f32 %v9771_v46, %v14962_v50  ;;  %v7538_v52 = vpop.xlane.xlu1 %7537  ;;  %9176 = vmatmul.mubr.msk.bf16.gmra.mrb[208].mxu1 %vm406_vm1, %v7756_v34  ;;  %v7728_v28 = vadd.f32 %v15030_v22, %v7692_v54  ;;  %v7693_v15 = vmul.f32 %v15022_v27, %v7657_v19 }
0x154d   :  { %v9773_v20 = vpop.eup %9772  ;;  %9782 = vrsqrt.f32 %v7600_v57  ;;  %v7601_v14 = vadd.f32 1e-05, %v7569_v21  ;;  %v7570_v49 = vmul.f32 0.015625, %v7538_v52 }
0x154e   :  { %v7659_v11 = vmul.f32 %v9773_v20, %v14968_v12  ;;  %v7757_v29 = vpack.c.bf16 %v7728_v28, %v7727_v0  ;;  %v7694_v62 = vmul.f32 %v15022_v27, %v7658_v44  ;;  %v7729_v48 = vadd.f32 %v15030_v22, %v7693_v15 }
0x154f   :  { %v9775_v9 = vpop.eup %9774  ;;  %9784 = vrsqrt.f32 %v7601_v14  ;;  %v7602_v50 = vadd.f32 1e-05, %v7570_v49 }
0x1550   :  { %v7660_v60 = vmul.f32 %v9775_v9, %v14974_v5  ;;  %9179 = vmatprep.mubr.msk.bf16.mxu1 %vm406_vm1, %v7757_v29  ;;  %v7730_v16 = vadd.f32 %v15030_v22, %v7694_v62  ;;  %v7695_v36 = vmul.f32 %v15022_v27, %v7659_v11 }
0x1551   :  { %v9777_v37 = vpop.eup %9776  ;;  %9786 = vrsqrt.f32 %v7602_v50 }
0x1552   :  { %v7661_v12 = vmul.f32 %v9777_v37, %v14980_v4  ;;  %v7758_v2 = vpack.c.bf16 %v7730_v16, %v7729_v48  ;;  %v7696_v63 = vmul.f32 %v15022_v27, %v7660_v60  ;;  %v7731_v5 = vadd.f32 %v15030_v22, %v7695_v36 }
0x1553   :  { %v9779_v58 = vpop.eup %9778 }
0x1554   :  { %v7662_v6 = vmul.f32 %v9779_v58, %v14986_v41  ;;  %9180 = vmatmul.mubr.msk.bf16.gmra.mrb[212].mxu1 %vm406_vm1, %v7758_v2  ;;  %v7732_v3 = vadd.f32 %v15030_v22, %v7696_v63  ;;  %v7697_v59 = vmul.f32 %v15022_v27, %v7661_v12 }
0x1555   :  { %v9781_v8 = vpop.eup %9780 }
0x1556   :  { %v7663_v43 = vmul.f32 %v9781_v8, %v14992_v7  ;;  %v7759_v53 = vpack.c.bf16 %v7732_v3, %v7731_v5  ;;  %v7698_v4 = vmul.f32 %v15022_v27, %v7662_v6  ;;  %v7733_v41 = vadd.f32 %v15030_v22, %v7697_v59 }
0x1557   :  { %v9783_v24 = vpop.eup %9782 }
0x1558   :  { %v7664_v30 = vmul.f32 %v9783_v24, %v14998_v55  ;;  %9183 = vmatprep.mubr.msk.bf16.mxu1 %vm406_vm1, %v7759_v53  ;;  %v7734_v1 = vadd.f32 %v15030_v22, %v7698_v4  ;;  %v7699_v61 = vmul.f32 %v15022_v27, %v7663_v43 }
0x1559   :  { %v9785_v26 = vpop.eup %9784 }
0x155a   :  { %v7665_v31 = vmul.f32 %v9785_v26, %v15004_v35  ;;  %v7760_v17 = vpack.c.bf16 %v7734_v1, %v7733_v41  ;;  %v7700_v7 = vmul.f32 %v15022_v27, %v7664_v30  ;;  %v7735_v55 = vadd.f32 %v15030_v22, %v7699_v61 }
0x155b   :  { %v9787_v45 = vpop.eup %9786 }
0x155c   :  { %v7666_v39 = vmul.f32 %v9787_v45, %v15010_v25  ;;  %9184 = vmatmul.mubr.msk.bf16.gmra.mrb[216].mxu1 %vm406_vm1, %v7760_v17  ;;  %v7736_v33 = vadd.f32 %v15030_v22, %v7700_v7  ;;  %v7701_v51 = vmul.f32 %v15022_v27, %v7665_v31  ;;  %v15144_v25 = vld [vmem:[%s15276_s3 + $0x1] ss:$0 sm:$0xff] }
0x155e   :  { %v7761_v23 = vpack.c.bf16 %v7736_v33, %v7735_v55  ;;  %v7702_v38 = vmul.f32 %v15022_v27, %v7666_v39  ;;  %v7737_v35 = vadd.f32 %v15030_v22, %v7701_v51 }
0x1560   :  { %9187 = vmatprep.mubr.msk.bf16.mxu1 %vm406_vm1, %v7761_v23  ;;  %v7738_v40 = vadd.f32 %v15030_v22, %v7702_v38 }
0x1562   :  { %v7762_v47 = vpack.c.bf16 %v7738_v40, %v7737_v35 }
0x1564   :  { %9188 = vmatmul.mubr.msk.bf16.gmra.mrb[220].mxu1 %vm406_vm1, %v7762_v47 }
0x15ff   :  { %v9161_v56 = vpop.f32.mrb[192].mxu1 }
0x1600   :  { %v7883_v13 = vadd.f32 %v9161_v56, %v15144_v25  ;;  %v7874_v42 = vpop.f32.mrb[193].mxu1 }
0x1601   :  { %v7875_v27 = vadd.f32 %v15144_v25, %v7874_v42  ;;  %v9162_v32 = vpop.f32.mrb[194].mxu1 }
0x1602   :  { %8003 = vst [vmem:[%s15278_s4 + $0x10] sm:$0xff] %v7883_v13  ;;  %v7886_v22 = vadd.f32 %v9162_v32, %v15144_v25  ;;  %v7877_v10 = vpop.f32.mrb[195].mxu1 }
0x1603   :  { %8001 = vst [vmem:[%s15278_s4] sm:$0xff] %v7875_v27  ;;  %v7878_v19 = vadd.f32 %v15144_v25, %v7877_v10 }
0x1604   :  { %8004 = vst [vmem:[%s15278_s4 + $0x18] sm:$0xff] %v7886_v22 }
0x1605   :  { %8002 = vst [vmem:[%s15278_s4 + $0x8] sm:$0xff] %v7878_v19 }
0x1607   :  { %v9165_v18 = vpop.f32.mrb[196].mxu1 }
0x1608   :  { %v7899_v34 = vadd.f32 %v9165_v18, %v15144_v25  ;;  %v7890_v54 = vpop.f32.mrb[197].mxu1 }
0x1609   :  { %v7891_v46 = vadd.f32 %v15144_v25, %v7890_v54  ;;  %v9166_v57 = vpop.f32.mrb[198].mxu1 }
0x160a   :  { %8007 = vst [vmem:[%s15278_s4 + $0x30] sm:$0xff] %v7899_v34  ;;  %v7902_v21 = vadd.f32 %v9166_v57, %v15144_v25  ;;  %v7893_v44 = vpop.f32.mrb[199].mxu1 }
0x160b   :  { %8005 = vst [vmem:[%s15278_s4 + $0x20] sm:$0xff] %v7891_v46  ;;  %v7894_v52 = vadd.f32 %v15144_v25, %v7893_v44 }
0x160c   :  { %8008 = vst [vmem:[%s15278_s4 + $0x38] sm:$0xff] %v7902_v21 }
0x160d   :  { %8006 = vst [vmem:[%s15278_s4 + $0x28] sm:$0xff] %v7894_v52 }
0x160f   :  { %v9169_v0 = vpop.f32.mrb[200].mxu1 }
0x1610   :  { %v7915_v28 = vadd.f32 %v9169_v0, %v15144_v25  ;;  %v7906_v15 = vpop.f32.mrb[201].mxu1 }
0x1611   :  { %v7907_v20 = vadd.f32 %v15144_v25, %v7906_v15  ;;  %v9170_v14 = vpop.f32.mrb[202].mxu1 }
0x1612   :  { %8011 = vst [vmem:[%s15278_s4 + $0x50] sm:$0xff] %v7915_v28  ;;  %v7918_v49 = vadd.f32 %v9170_v14, %v15144_v25  ;;  %v7909_v11 = vpop.f32.mrb[203].mxu1 }
0x1613   :  { %8009 = vst [vmem:[%s15278_s4 + $0x40] sm:$0xff] %v7907_v20  ;;  %v7910_v29 = vadd.f32 %v15144_v25, %v7909_v11 }
0x1614   :  { %8012 = vst [vmem:[%s15278_s4 + $0x58] sm:$0xff] %v7918_v49 }
0x1615   :  { %8010 = vst [vmem:[%s15278_s4 + $0x48] sm:$0xff] %v7910_v29 }
0x1617   :  { %v9173_v62 = vpop.f32.mrb[204].mxu1 }
0x1618   :  { %v7931_v9 = vadd.f32 %v9173_v62, %v15144_v25  ;;  %v7922_v50 = vpop.f32.mrb[205].mxu1 }
0x1619   :  { %v7923_v60 = vadd.f32 %v15144_v25, %v7922_v50  ;;  %v9174_v48 = vpop.f32.mrb[206].mxu1 }
0x161a   :  { %8015 = vst [vmem:[%s15278_s4 + $0x70] sm:$0xff] %v7931_v9  ;;  %v7934_v16 = vadd.f32 %v9174_v48, %v15144_v25  ;;  %v7925_v36 = vpop.f32.mrb[207].mxu1 }
0x161b   :  { %8013 = vst [vmem:[%s15278_s4 + $0x60] sm:$0xff] %v7923_v60  ;;  %v7926_v37 = vadd.f32 %v15144_v25, %v7925_v36 }
0x161c   :  { %8016 = vst [vmem:[%s15278_s4 + $0x78] sm:$0xff] %v7934_v16 }
0x161d   :  { %8014 = vst [vmem:[%s15278_s4 + $0x68] sm:$0xff] %v7926_v37 }
0x161f   :  { %v9177_v12 = vpop.f32.mrb[208].mxu1 }
0x1620   :  { %v7947_v2 = vadd.f32 %v9177_v12, %v15144_v25  ;;  %v7938_v63 = vpop.f32.mrb[209].mxu1 }
0x1621   :  { %v7939_v58 = vadd.f32 %v15144_v25, %v7938_v63  ;;  %v9178_v6 = vpop.f32.mrb[210].mxu1 }
0x1622   :  { %8019 = vst [vmem:[%s15278_s4 + $0x90] sm:$0xff] %v7947_v2  ;;  %v7950_v5 = vadd.f32 %v9178_v6, %v15144_v25  ;;  %v7941_v3 = vpop.f32.mrb[211].mxu1 }
0x1623   :  { %8017 = vst [vmem:[%s15278_s4 + $0x80] sm:$0xff] %v7939_v58  ;;  %v7942_v59 = vadd.f32 %v15144_v25, %v7941_v3 }
0x1624   :  { %8020 = vst [vmem:[%s15278_s4 + $0x98] sm:$0xff] %v7950_v5 }
0x1625   :  { %8018 = vst [vmem:[%s15278_s4 + $0x88] sm:$0xff] %v7942_v59 }
0x1627   :  { %v9181_v8 = vpop.f32.mrb[212].mxu1 }
0x1628   :  { %v7963_v43 = vadd.f32 %v9181_v8, %v15144_v25  ;;  %v7954_v53 = vpop.f32.mrb[213].mxu1 }
0x1629   :  { %v7955_v4 = vadd.f32 %v15144_v25, %v7954_v53  ;;  %v9182_v24 = vpop.f32.mrb[214].mxu1 }
0x162a   :  { %8023 = vst [vmem:[%s15278_s4 + $0xb0] sm:$0xff] %v7963_v43  ;;  %v7966_v30 = vadd.f32 %v9182_v24, %v15144_v25  ;;  %v7957_v41 = vpop.f32.mrb[215].mxu1 }
0x162b   :  { %8021 = vst [vmem:[%s15278_s4 + $0xa0] sm:$0xff] %v7955_v4  ;;  %v7958_v1 = vadd.f32 %v15144_v25, %v7957_v41 }
0x162c   :  { %8024 = vst [vmem:[%s15278_s4 + $0xb8] sm:$0xff] %v7966_v30 }
0x162d   :  { %8022 = vst [vmem:[%s15278_s4 + $0xa8] sm:$0xff] %v7958_v1 }
0x162f   :  { %v9185_v61 = vpop.f32.mrb[216].mxu1 }
0x1630   :  { %v7979_v26 = vadd.f32 %v9185_v61, %v15144_v25  ;;  %v7970_v31 = vpop.f32.mrb[217].mxu1 }
0x1631   :  { %v7971_v17 = vadd.f32 %v15144_v25, %v7970_v31  ;;  %v9186_v7 = vpop.f32.mrb[218].mxu1 }
0x1632   :  { %8027 = vst [vmem:[%s15278_s4 + $0xd0] sm:$0xff] %v7979_v26  ;;  %v7982_v45 = vadd.f32 %v9186_v7, %v15144_v25  ;;  %v7973_v39 = vpop.f32.mrb[219].mxu1 }
0x1633   :  { %8025 = vst [vmem:[%s15278_s4 + $0xc0] sm:$0xff] %v7971_v17  ;;  %v7974_v55 = vadd.f32 %v15144_v25, %v7973_v39 }
0x1634   :  { %8028 = vst [vmem:[%s15278_s4 + $0xd8] sm:$0xff] %v7982_v45 }
0x1635   :  { %8026 = vst [vmem:[%s15278_s4 + $0xc8] sm:$0xff] %v7974_v55 }
0x1637   :  { %v9189_v33 = vpop.f32.mrb[220].mxu1 }
0x1638   :  { %v7995_v51 = vadd.f32 %v9189_v33, %v15144_v25  ;;  %v7986_v23 = vpop.f32.mrb[221].mxu1 }
0x1639   :  { %v7987_v38 = vadd.f32 %v15144_v25, %v7986_v23  ;;  %v9190_v35 = vpop.f32.mrb[222].mxu1 }
0x163a   :  { %8031 = vst [vmem:[%s15278_s4 + $0xf0] sm:$0xff] %v7995_v51  ;;  %v7998_v40 = vadd.f32 %v9190_v35, %v15144_v25  ;;  %v7989_v47 = vpop.f32.mrb[223].mxu1 }
0x163b   :  { %8029 = vst [vmem:[%s15278_s4 + $0xe0] sm:$0xff] %v7987_v38  ;;  %v7990_v56 = vadd.f32 %v15144_v25, %v7989_v47 }
0x163c   :  { %8032 = vst [vmem:[%s15278_s4 + $0xf8] sm:$0xff] %v7998_v40 }
0x163d   :  { %8030 = vst [vmem:[%s15278_s4 + $0xe8] sm:$0xff] %v7990_v56 }

</bundles_post_ra>
